<compile_context>
chip_gen: v7x
topology: tpu7x:2x2x1
jax: 0.10.0
libtpu: 0.0.40
codegen_flags: <defaults>
</compile_context>

<pallas_src>
import functools

import jax
import jax.numpy as jnp
from jax import lax
from jax.experimental import pallas as pl
from jax.experimental.pallas import tpu as pltpu

EPS = 1e-5
VMEM_LIMIT = 32 * 1024 * 1024          # safe scoped-VMEM budget on v5e/v6e/v7x
TFS = (2, 3, 6, 7)                     # the four GraphAttention time_filter sizes
TF_MAX = max(TFS)


def _m_tile(m):
    """Lane tile for the M (=B*T*N) axis: multiples of 128, capped at 512, and at
    least 2 grid steps when possible (so v7x's two TensorCores both get work)."""
    if m <= 128:
        return m
    t = (m // 2) // 128 * 128
    return max(128, min(512, t))


# ------------------------- matmul (+bias, +residual) ----------------------- #

def _matmul_bias_kernel(w_ref, x_ref, b_ref, o_ref):
    o_ref[...] = jnp.dot(w_ref[...], x_ref[...],
                         preferred_element_type=jnp.float32) + b_ref[...]


def matmul_bias(w, x, b):
    """o = w @ x + b.   w:(O,K)  x:(K,M)  b:(O,)."""
    O, K = w.shape
    M = x.shape[1]
    tm = _m_tile(M)
    return pl.pallas_call(
        _matmul_bias_kernel,
        out_shape=jax.ShapeDtypeStruct((O, M), jnp.float32),
        grid=(pl.cdiv(M, tm),),
        in_specs=[pl.BlockSpec((O, K), lambda i: (0, 0)),
                  pl.BlockSpec((K, tm), lambda i: (0, i)),
                  pl.BlockSpec((O, 1), lambda i: (0, 0))],
        out_specs=pl.BlockSpec((O, tm), lambda i: (0, i)),
        compiler_params=pltpu.CompilerParams(
            dimension_semantics=("parallel",), vmem_limit_bytes=VMEM_LIMIT),
    )(w, x, b.reshape(O, 1))


def _matmul2_bias_kernel(w1_ref, x1_ref, w2_ref, x2_ref, b_ref, o_ref):
    o_ref[...] = (jnp.dot(w1_ref[...], x1_ref[...], preferred_element_type=jnp.float32)
                  + jnp.dot(w2_ref[...], x2_ref[...], preferred_element_type=jnp.float32)
                  + b_ref[...])


def matmul2_bias(w1, x1, w2, x2, b):
    """o = w1 @ x1 + w2 @ x2 + b   (main 1x1 conv + fused residual 1x1 conv)."""
    O, K1 = w1.shape
    K2 = w2.shape[1]
    M = x1.shape[1]
    tm = _m_tile(M)
    return pl.pallas_call(
        _matmul2_bias_kernel,
        out_shape=jax.ShapeDtypeStruct((O, M), jnp.float32),
        grid=(pl.cdiv(M, tm),),
        in_specs=[pl.BlockSpec((O, K1), lambda i: (0, 0)),
                  pl.BlockSpec((K1, tm), lambda i: (0, i)),
                  pl.BlockSpec((O, K2), lambda i: (0, 0)),
                  pl.BlockSpec((K2, tm), lambda i: (0, i)),
                  pl.BlockSpec((O, 1), lambda i: (0, 0))],
        out_specs=pl.BlockSpec((O, tm), lambda i: (0, i)),
        compiler_params=pltpu.CompilerParams(
            dimension_semantics=("parallel",), vmem_limit_bytes=VMEM_LIMIT),
    )(w1, x1, w2, x2, b.reshape(O, 1))


# --------------------------------- batchnorm -------------------------------- #

def _bn_kernel(x_ref, o_ref, sum_ref, sq_ref, *, total_m, mask_tail):
    p = pl.program_id(0)           # phase: 0 = accumulate stats, 1 = normalize
    j = pl.program_id(1)           # M tile
    x = x_ref[...]

    @pl.when((p == 0) & (j == 0))
    def _():
        sum_ref[...] = jnp.zeros_like(sum_ref)
        sq_ref[...] = jnp.zeros_like(sq_ref)

    @pl.when(p == 0)
    def _():
        xm = x
        if mask_tail:              # only traced when M is not a multiple of the tile
            col = j * x.shape[1] + lax.broadcasted_iota(jnp.int32, x.shape, 1)
            xm = jnp.where(col < total_m, x, 0.0)
        sum_ref[...] += jnp.sum(xm, axis=1, keepdims=True)
        sq_ref[...] += jnp.sum(xm * xm, axis=1, keepdims=True)

    @pl.when((p == 1) & (j == 0))
    def _():
        inv_m = 1.0 / float(total_m)
        mean = sum_ref[...] * inv_m
        var = jnp.maximum(sq_ref[...] * inv_m - mean * mean, 0.0)   # biased variance
        scale = lax.rsqrt(var + EPS)
        sum_ref[...] = scale                   # reuse scratch: scale / shift
        sq_ref[...] = -mean * scale

    @pl.when(p == 1)
    def _():
        o_ref[...] = x * sum_ref[...] + sq_ref[...]


def batchnorm(y):
    """torch.nn.BatchNorm2d default-state forward (training-mode batch stats,
    weight=1, bias=0) on a channel-major slab y:(C, M), fused into one call.
    TODO(synk): eval-mode running stats / learned affine params not modeled."""
    C, M = y.shape
    tm = _m_tile(M)
    nm = pl.cdiv(M, tm)
    return pl.pallas_call(
        functools.partial(_bn_kernel, total_m=M, mask_tail=(M % tm != 0)),
        out_shape=jax.ShapeDtypeStruct((C, M), jnp.float32),
        grid=(2, nm),
        in_specs=[pl.BlockSpec((C, tm), lambda p, j: (0, j))],
        # out block stays parked on tile 0 during the stats phase so nothing is
        # written back to HBM until the normalized values exist (p*j == j only in
        # phase 1); each output tile is written back exactly once.
        out_specs=pl.BlockSpec((C, tm), lambda p, j: (0, p * j)),
        scratch_shapes=[pltpu.VMEM((C, 1), jnp.float32),
                        pltpu.VMEM((C, 1), jnp.float32)],
        compiler_params=pltpu.CompilerParams(
            dimension_semantics=("arbitrary", "arbitrary"),
            vmem_limit_bytes=VMEM_LIMIT),
    )(y)


# ------------------------------ graph attention ----------------------------- #

def _attn_kernel(kqv_ref, a_ref, o_ref, *, T, N, tfs, tp_pad):
    # kqv_ref: (4*3*T, T, N) packed K|Q|V conv outputs for this batch
    # a_ref:   (N, N)  = adj + adj_hat for this batch
    # o_ref:   (4*tp_pad, T*N) lane-dense per-head attention contexts
    o_ref[...] = jnp.zeros_like(o_ref)        # rows past each head's T' stay zero
    adj = a_ref[...]
    for h, tf in enumerate(tfs):
        Tp = T - tf + 1
        base = 3 * T * h
        for t in range(T):                    # static unroll over timestep_max
            kt = kqv_ref[base + t, 0:Tp, :]               # (Tp, N): K[b,t,:, :].T
            qt = kqv_ref[base + T + t, 0:Tp, :]
            vt = kqv_ref[base + 2 * T + t, 0:Tp, :]
            # score[i, j] = sum_c K[b,t,i,c] * Q[b,t,j,c]  (+ adj + adj_hat)
            s = lax.dot_general(kt, qt, (((0,), (0,)), ((), ())),
                                preferred_element_type=jnp.float32) + adj
            s = s - jnp.max(s, axis=-1, keepdims=True)    # softmax(dim=-1), exact
            e = jnp.exp(s)
            p = e / jnp.sum(e, axis=-1, keepdims=True)
            # out[c, n] = sum_m p[n, m] * V[b,t,m,c]
            z = lax.dot_general(vt, p, (((1,), (1,)), ((), ())),
                                preferred_element_type=jnp.float32)
            o_ref[h * tp_pad:h * tp_pad + Tp, t * N:(t + 1) * N] = z


def attention_all_heads(kqv, adj_sum, B, T, N):
    """kqv: (4*3*T, M) packed K/Q/V conv outputs, M ordered (batch, window, node).
    Returns all four heads' attention contexts stacked as (4*(T-1), M), zero-padded
    past each head's valid T' rows; layout feeds the next matmul directly."""
    tp_pad = T - min(TFS) + 1
    kqv4 = kqv.reshape(4 * 3 * T, B, T, N)
    return pl.pallas_call(
        functools.partial(_attn_kernel, T=T, N=N, tfs=TFS, tp_pad=tp_pad),
        out_shape=jax.ShapeDtypeStruct((4 * tp_pad, B * T * N), jnp.float32),
        grid=(B,),
        in_specs=[pl.BlockSpec((4 * 3 * T, None, T, N), lambda b: (0, b, 0, 0)),
                  pl.BlockSpec((None, N, N), lambda b: (b, 0, 0))],
        out_specs=pl.BlockSpec((4 * tp_pad, T * N), lambda b: (0, b)),
        compiler_params=pltpu.CompilerParams(
            dimension_semantics=("parallel",), vmem_limit_bytes=VMEM_LIMIT),
    )(kqv4, adj_sum)


# --------------------------------- im2col ----------------------------------- #

def im2col_padded(x, B, T, N):
    """One im2col slab shared by ALL heads: (C, M) -> (C*TF_MAX, M); row = c*7+tau,
    column (b, window_start, node). Windows running past T read zero padding and are
    never consumed (each head only uses its first T' window positions)."""
    C = x.shape[0]
    x4 = x.reshape(C, B, T, N)
    xp = jnp.pad(x4, ((0, 0), (0, 0), (0, TF_MAX - 1), (0, 0)))
    cols = jnp.stack([xp[:, :, tau:tau + T, :] for tau in range(TF_MAX)], axis=1)
    return cols.reshape(C * TF_MAX, B * T * N)


# --------------------------- parameter construction ------------------------- #

def _init_linear(key, o, i):
    kw, kb = jax.random.split(key)
    return (0.1 * jax.random.normal(kw, (o, i), jnp.float32),
            0.1 * jax.random.normal(kb, (o,), jnp.float32))


def init_block(key, C, Co, T):
    """MultiHeadGraphAttention params, packed for the fused kernels."""
    tp_pad = T - min(TFS) + 1
    keys = jax.random.split(key, 4 * 4 + 2)
    wkqv_rows, bkqv_rows, w_head_res, b_head = [], [], [], []
    w_head_out = jnp.zeros((4 * Co, 4 * tp_pad), jnp.float32)
    for h, tf in enumerate(TFS):
        Tp = T - tf + 1
        kk, kq, kv, kfc = keys[4 * h], keys[4 * h + 1], keys[4 * h + 2], keys[4 * h + 3]
        for kc in (kk, kq, kv):               # K / Q / V (1,tf) convs, T out channels
            w, b = _init_linear(kc, T, C * tf)
            wpad = jnp.pad(w.reshape(T, C, tf), ((0, 0), (0, 0), (0, TF_MAX - tf)))
            wkqv_rows.append(wpad.reshape(T, C * TF_MAX))
            bkqv_rows.append(b)
        k1, k2, _ = jax.random.split(kfc, 3)
        wo, bo = _init_linear(k1, Co, Tp)     # GraphAttention.fc_out
        wr, br = _init_linear(k2, Co, C)      # GraphAttention.fc_res
        w_head_out = w_head_out.at[h * Co:(h + 1) * Co,
                                   h * tp_pad:h * tp_pad + Tp].set(wo)
        w_head_res.append(wr)
        b_head.append(bo + br)
    w_out, b_out = _init_linear(keys[-2], Co, 4 * Co)   # MultiHead.fc_out
    w_res, b_res = _init_linear(keys[-1], Co, C)        # MultiHead.fc_res
    return dict(
        wkqv=jnp.concatenate(wkqv_rows, axis=0),           # (4*3*T, C*TF_MAX)
        bkqv=jnp.concatenate(bkqv_rows, axis=0),            # (4*3*T,)
        w_head_out=w_head_out,                               # (4*Co, 4*(T-1)) block-diag
        w_head_res=jnp.concatenate(w_head_res, axis=0),      # (4*Co, C)
        b_head=jnp.concatenate(b_head, axis=0),              # (4*Co,)
        w_out=w_out, w_res=w_res, b_out=b_out + b_res,       # fused fc_out + fc_res
    )


def init_model(key, cin, cout, hidden, T, nb_blocks):
    keys = jax.random.split(key, nb_blocks + 2)
    return dict(
        fc_in=_init_linear(keys[0], hidden, cin),
        blocks=[init_block(keys[1 + i], hidden * 2 ** i, hidden * 2 ** (i + 1), T)
                for i in range(nb_blocks)],
        fc_out=_init_linear(keys[-1], cout, hidden * 2 ** nb_blocks),
    )


# ------------------------------ forward passes ------------------------------ #

def multihead_block(p, x, adj_sum, B, T, N):
    # x: (C, M) channel-major slab, M = B*T*N ordered (batch, time, node)
    cols = im2col_padded(x, B, T, N)                           # shared by all heads
    kqv = matmul_bias(p["wkqv"], cols, p["bkqv"])              # all heads' K|Q|V, 1 call
    ctx = attention_all_heads(kqv, adj_sum, B, T, N)           # (4*(T-1), M), 1 call
    heads = matmul2_bias(p["w_head_out"], ctx,                 # per-head fc_out + fc_res
                         p["w_head_res"], x, p["b_head"])
    heads = batchnorm(heads)                                   # == 4 per-head BatchNorm2d
    out = matmul2_bias(p["w_out"], heads, p["w_res"], x, p["b_out"])
    out = batchnorm(out)
    # TODO(synk): torch.nn.Dropout (train-mode random masking) left as identity.
    return out


def model_forward(params, x, adj, adj_hat, channels_last=True):
    if channels_last:
        xc = jnp.transpose(x, (3, 0, 1, 2))      # (B,T,N,C) -> (C,B,T,N)
    else:
        xc = jnp.transpose(x, (1, 0, 3, 2))      # (B,C,N,T) -> (C,B,T,N)
    C, B, T, N = xc.shape
    adj_sum = adj + adj_hat                       # pre-summed once
    w, b = params["fc_in"]
    h = matmul_bias(w, xc.reshape(C, B * T * N), b)
    for blk in params["blocks"]:
        h = multihead_block(blk, h, adj_sum, B, T, N)
    w, b = params["fc_out"]
    out = matmul_bias(w, h, b).reshape(-1, B, T, N)
    if channels_last:
        out = jnp.transpose(out, (1, 2, 3, 0))   # -> (B, T, N, C')
    else:
        out = jnp.transpose(out, (1, 0, 3, 2))   # -> (B, C', N, T)
    return jnp.squeeze(out)                      # matches torch x.squeeze()


# ----------------------------------- main ------------------------------------ #

if __name__ == "__main__":
    B, T, N = 2, 8, 16               # T == timestep_max (needed so T' = T - tf + 1 > 0)
    cin, hidden, cout, nb_blocks = 3, 4, 2, 1

    key = jax.random.PRNGKey(0)
    kp, kx, ka, kah = jax.random.split(key, 4)
    params = init_model(kp, cin, cout, hidden, T, nb_blocks)

    x = jax.random.normal(kx, (B, T, N, cin), jnp.float32)      # channels_last input
    adj = jax.random.normal(ka, (B, N, N), jnp.float32)
    adj_hat = jax.random.normal(kah, (B, N, N), jnp.float32)

    out = jax.jit(model_forward)(params, x, adj, adj_hat)
    out = jax.block_until_ready(out)
    assert out.shape == (B, T, N, cout), out.shape
    assert bool(jnp.all(jnp.isfinite(out)))
    print("KERNEL_OK")
</pallas_src>

<mosaic_0001>
module attributes {stable_mosaic.version = 11 : i64} {
  func.func @_matmul_bias_kernel(%arg0: i32, %arg1: memref<4x3xf32, #tpu.memory_space<vmem>>, %arg2: memref<3x128xf32, #tpu.memory_space<vmem>>, %arg3: memref<4x1xf32, #tpu.memory_space<vmem>>, %arg4: memref<4x128xf32, #tpu.memory_space<vmem>>) attributes {dimension_semantics = [#tpu.dimension_semantics<parallel>], iteration_bounds = array<i64: 2>, scalar_prefetch = 0 : i64, scratch_operands = 0 : i64, tpu.core_type = #tpu.core_type<tc>, window_params = [{pipeline_mode = #tpu.pipeline_mode<synchronous>, transform_indices = @transform_0, window_bounds = array<i64: 4, 3>}, {transform_indices = @transform_1, window_bounds = array<i64: 3, 128>}, {pipeline_mode = #tpu.pipeline_mode<synchronous>, transform_indices = @transform_2, window_bounds = array<i64: 4, 1>}, {transform_indices = @transform_3, window_bounds = array<i64: 4, 128>}]} {
    %c0 = arith.constant 0 : index
    %c0_0 = arith.constant 0 : index
    %0 = vector.load %arg1[%c0, %c0_0] : memref<4x3xf32, #tpu.memory_space<vmem>>, vector<4x3xf32>
    %c0_1 = arith.constant 0 : index
    %c0_2 = arith.constant 0 : index
    %1 = vector.load %arg2[%c0_1, %c0_2] : memref<3x128xf32, #tpu.memory_space<vmem>>, vector<3x128xf32>
    %cst = arith.constant dense<0.000000e+00> : vector<4x128xf32>
    %2 = tpu.matmul %0, %1, %cst {dimension_numbers = #tpu.dot_dimension_numbers<[1], [0], [0], [1], [0, 0, 1, 1], [], []>} : vector<4x3xf32>, vector<3x128xf32>, vector<4x128xf32> -> vector<4x128xf32>
    %c0_3 = arith.constant 0 : index
    %c0_4 = arith.constant 0 : index
    %3 = vector.load %arg3[%c0_3, %c0_4] : memref<4x1xf32, #tpu.memory_space<vmem>>, vector<4x1xf32>
    %4 = vector.broadcast %3 : vector<4x1xf32> to vector<4x128xf32>
    %5 = arith.addf %2, %4 : vector<4x128xf32>
    %c0_5 = arith.constant 0 : index
    %c0_6 = arith.constant 0 : index
    %6 = vector.load %arg4[%c0_5, %c0_6] : memref<4x128xf32, #tpu.memory_space<vmem>>, vector<4x128xf32>
    tpu.vector_store %arg4[%c0_5, %c0_6], %5 {strides = array<i32>} : memref<4x128xf32, #tpu.memory_space<vmem>>, vector<4x128xf32>,
    return
  }
  func.func @transform_0(%arg0: i32) -> (i32, i32) {
    %c0_i32 = arith.constant 0 : i32
    %c0_i32_0 = arith.constant 0 : i32
    %c0_i32_1 = arith.constant 0 : i32
    return %c0_i32, %c0_i32_0 : i32, i32
  }
  func.func @transform_1(%arg0: i32) -> (i32, i32) {
    %c0_i32 = arith.constant 0 : i32
    %c0_i32_0 = arith.constant 0 : i32
    return %c0_i32, %arg0 : i32, i32
  }
  func.func @transform_2(%arg0: i32) -> (i32, i32) {
    %c0_i32 = arith.constant 0 : i32
    %c0_i32_0 = arith.constant 0 : i32
    %c0_i32_1 = arith.constant 0 : i32
    return %c0_i32, %c0_i32_0 : i32, i32
  }
  func.func @transform_3(%arg0: i32) -> (i32, i32) {
    %c0_i32 = arith.constant 0 : i32
    %c0_i32_0 = arith.constant 0 : i32
    return %c0_i32, %arg0 : i32, i32
  }
}

module attributes {stable_mosaic.version = 11 : i64} {
  func.func @_matmul_bias_kernel(%arg0: i32, %arg1: memref<96x28xf32, #tpu.memory_space<vmem>>, %arg2: memref<28x128xf32, #tpu.memory_space<vmem>>, %arg3: memref<96x1xf32, #tpu.memory_space<vmem>>, %arg4: memref<96x128xf32, #tpu.memory_space<vmem>>) attributes {dimension_semantics = [#tpu.dimension_semantics<parallel>], iteration_bounds = array<i64: 2>, scalar_prefetch = 0 : i64, scratch_operands = 0 : i64, tpu.core_type = #tpu.core_type<tc>, window_params = [{pipeline_mode = #tpu.pipeline_mode<synchronous>, transform_indices = @transform_0, window_bounds = array<i64: 96, 28>}, {transform_indices = @transform_1, window_bounds = array<i64: 28, 128>}, {pipeline_mode = #tpu.pipeline_mode<synchronous>, transform_indices = @transform_2, window_bounds = array<i64: 96, 1>}, {transform_indices = @transform_3, window_bounds = array<i64: 96, 128>}]} {
    %c0 = arith.constant 0 : index
    %c0_0 = arith.constant 0 : index
    %0 = vector.load %arg1[%c0, %c0_0] : memref<96x28xf32, #tpu.memory_space<vmem>>, vector<96x28xf32>
    %c0_1 = arith.constant 0 : index
    %c0_2 = arith.constant 0 : index
    %1 = vector.load %arg2[%c0_1, %c0_2] : memref<28x128xf32, #tpu.memory_space<vmem>>, vector<28x128xf32>
    %cst = arith.constant dense<0.000000e+00> : vector<96x128xf32>
    %2 = tpu.matmul %0, %1, %cst {dimension_numbers = #tpu.dot_dimension_numbers<[1], [0], [0], [1], [0, 0, 1, 1], [], []>} : vector<96x28xf32>, vector<28x128xf32>, vector<96x128xf32> -> vector<96x128xf32>
    %c0_3 = arith.constant 0 : index
    %c0_4 = arith.constant 0 : index
    %3 = vector.load %arg3[%c0_3, %c0_4] : memref<96x1xf32, #tpu.memory_space<vmem>>, vector<96x1xf32>
    %4 = vector.broadcast %3 : vector<96x1xf32> to vector<96x128xf32>
    %5 = arith.addf %2, %4 : vector<96x128xf32>
    %c0_5 = arith.constant 0 : index
    %c0_6 = arith.constant 0 : index
    %6 = vector.load %arg4[%c0_5, %c0_6] : memref<96x128xf32, #tpu.memory_space<vmem>>, vector<96x128xf32>
    tpu.vector_store %arg4[%c0_5, %c0_6], %5 {strides = array<i32>} : memref<96x128xf32, #tpu.memory_space<vmem>>, vector<96x128xf32>,
    return
  }
  func.func @transform_0(%arg0: i32) -> (i32, i32) {
    %c0_i32 = arith.constant 0 : i32
    %c0_i32_0 = arith.constant 0 : i32
    %c0_i32_1 = arith.constant 0 : i32
    return %c0_i32, %c0_i32_0 : i32, i32
  }
  func.func @transform_1(%arg0: i32) -> (i32, i32) {
    %c0_i32 = arith.constant 0 : i32
    %c0_i32_0 = arith.constant 0 : i32
    return %c0_i32, %arg0 : i32, i32
  }
  func.func @transform_2(%arg0: i32) -> (i32, i32) {
    %c0_i32 = arith.constant 0 : i32
    %c0_i32_0 = arith.constant 0 : i32
    %c0_i32_1 = arith.constant 0 : i32
    return %c0_i32, %c0_i32_0 : i32, i32
  }
  func.func @transform_3(%arg0: i32) -> (i32, i32) {
    %c0_i32 = arith.constant 0 : i32
    %c0_i32_0 = arith.constant 0 : i32
    return %c0_i32, %arg0 : i32, i32
  }
}

module attributes {stable_mosaic.version = 11 : i64} {
  func.func @_matmul2_bias_kernel(%arg0: i32, %arg1: memref<32x28xf32, #tpu.memory_space<vmem>>, %arg2: memref<28x128xf32, #tpu.memory_space<vmem>>, %arg3: memref<32x4xf32, #tpu.memory_space<vmem>>, %arg4: memref<4x128xf32, #tpu.memory_space<vmem>>, %arg5: memref<32x1xf32, #tpu.memory_space<vmem>>, %arg6: memref<32x128xf32, #tpu.memory_space<vmem>>) attributes {dimension_semantics = [#tpu.dimension_semantics<parallel>], iteration_bounds = array<i64: 2>, scalar_prefetch = 0 : i64, scratch_operands = 0 : i64, tpu.core_type = #tpu.core_type<tc>, window_params = [{pipeline_mode = #tpu.pipeline_mode<synchronous>, transform_indices = @transform_0, window_bounds = array<i64: 32, 28>}, {transform_indices = @transform_1, window_bounds = array<i64: 28, 128>}, {pipeline_mode = #tpu.pipeline_mode<synchronous>, transform_indices = @transform_2, window_bounds = array<i64: 32, 4>}, {transform_indices = @transform_3, window_bounds = array<i64: 4, 128>}, {pipeline_mode = #tpu.pipeline_mode<synchronous>, transform_indices = @transform_4, window_bounds = array<i64: 32, 1>}, {transform_indices = @transform_5, window_bounds = array<i64: 32, 128>}]} {
    %c0 = arith.constant 0 : index
    %c0_0 = arith.constant 0 : index
    %0 = vector.load %arg1[%c0, %c0_0] : memref<32x28xf32, #tpu.memory_space<vmem>>, vector<32x28xf32>
    %c0_1 = arith.constant 0 : index
    %c0_2 = arith.constant 0 : index
    %1 = vector.load %arg2[%c0_1, %c0_2] : memref<28x128xf32, #tpu.memory_space<vmem>>, vector<28x128xf32>
    %cst = arith.constant dense<0.000000e+00> : vector<32x128xf32>
    %2 = tpu.matmul %0, %1, %cst {dimension_numbers = #tpu.dot_dimension_numbers<[1], [0], [0], [1], [0, 0, 1, 1], [], []>} : vector<32x28xf32>, vector<28x128xf32>, vector<32x128xf32> -> vector<32x128xf32>
    %c0_3 = arith.constant 0 : index
    %c0_4 = arith.constant 0 : index
    %3 = vector.load %arg3[%c0_3, %c0_4] : memref<32x4xf32, #tpu.memory_space<vmem>>, vector<32x4xf32>
    %c0_5 = arith.constant 0 : index
    %c0_6 = arith.constant 0 : index
    %4 = vector.load %arg4[%c0_5, %c0_6] : memref<4x128xf32, #tpu.memory_space<vmem>>, vector<4x128xf32>
    %cst_7 = arith.constant dense<0.000000e+00> : vector<32x128xf32>
    %5 = tpu.matmul %3, %4, %cst_7 {dimension_numbers = #tpu.dot_dimension_numbers<[1], [0], [0], [1], [0, 0, 1, 1], [], []>} : vector<32x4xf32>, vector<4x128xf32>, vector<32x128xf32> -> vector<32x128xf32>
    %6 = arith.addf %2, %5 : vector<32x128xf32>
    %c0_8 = arith.constant 0 : index
    %c0_9 = arith.constant 0 : index
    %7 = vector.load %arg5[%c0_8, %c0_9] : memref<32x1xf32, #tpu.memory_space<vmem>>, vector<32x1xf32>
    %8 = vector.broadcast %7 : vector<32x1xf32> to vector<32x128xf32>
    %9 = arith.addf %6, %8 : vector<32x128xf32>
    %c0_10 = arith.constant 0 : index
    %c0_11 = arith.constant 0 : index
    %10 = vector.load %arg6[%c0_10, %c0_11] : memref<32x128xf32, #tpu.memory_space<vmem>>, vector<32x128xf32>
    tpu.vector_store %arg6[%c0_10, %c0_11], %9 {strides = array<i32>} : memref<32x128xf32, #tpu.memory_space<vmem>>, vector<32x128xf32>,
    return
  }
  func.func @transform_0(%arg0: i32) -> (i32, i32) {
    %c0_i32 = arith.constant 0 : i32
    %c0_i32_0 = arith.constant 0 : i32
    %c0_i32_1 = arith.constant 0 : i32
    return %c0_i32, %c0_i32_0 : i32, i32
  }
  func.func @transform_1(%arg0: i32) -> (i32, i32) {
    %c0_i32 = arith.constant 0 : i32
    %c0_i32_0 = arith.constant 0 : i32
    return %c0_i32, %arg0 : i32, i32
  }
  func.func @transform_2(%arg0: i32) -> (i32, i32) {
    %c0_i32 = arith.constant 0 : i32
    %c0_i32_0 = arith.constant 0 : i32
    %c0_i32_1 = arith.constant 0 : i32
    return %c0_i32, %c0_i32_0 : i32, i32
  }
  func.func @transform_3(%arg0: i32) -> (i32, i32) {
    %c0_i32 = arith.constant 0 : i32
    %c0_i32_0 = arith.constant 0 : i32
    return %c0_i32, %arg0 : i32, i32
  }
  func.func @transform_4(%arg0: i32) -> (i32, i32) {
    %c0_i32 = arith.constant 0 : i32
    %c0_i32_0 = arith.constant 0 : i32
    %c0_i32_1 = arith.constant 0 : i32
    return %c0_i32, %c0_i32_0 : i32, i32
  }
  func.func @transform_5(%arg0: i32) -> (i32, i32) {
    %c0_i32 = arith.constant 0 : i32
    %c0_i32_0 = arith.constant 0 : i32
    return %c0_i32, %arg0 : i32, i32
  }
}

module attributes {stable_mosaic.version = 11 : i64} {
  func.func @_attn_kernel(%arg0: i32, %arg1: memref<96x1x8x16xf32, #tpu.memory_space<vmem>>, %arg2: memref<1x16x16xf32, #tpu.memory_space<vmem>>, %arg3: memref<28x128xf32, #tpu.memory_space<vmem>>) attributes {dimension_semantics = [#tpu.dimension_semantics<parallel>], iteration_bounds = array<i64: 2>, scalar_prefetch = 0 : i64, scratch_operands = 0 : i64, tpu.core_type = #tpu.core_type<tc>, window_params = [{transform_indices = @transform_0, window_bounds = array<i64: 96, 1, 8, 16>}, {transform_indices = @transform_1, window_bounds = array<i64: 1, 16, 16>}, {transform_indices = @transform_2, window_bounds = array<i64: 28, 128>}]} {
    %cst = arith.constant 0.000000e+00 : f32
    %0 = vector.broadcast %cst : f32 to vector<28x128xf32>
    %c0 = arith.constant 0 : index
    %c0_0 = arith.constant 0 : index
    %1 = vector.load %arg3[%c0, %c0_0] : memref<28x128xf32, #tpu.memory_space<vmem>>, vector<28x128xf32>
    tpu.vector_store %arg3[%c0, %c0_0], %0 {strides = array<i32>} : memref<28x128xf32, #tpu.memory_space<vmem>>, vector<28x128xf32>,
    %c0_1 = arith.constant 0 : index
    %c0_2 = arith.constant 0 : index
    %c0_3 = arith.constant 0 : index
    %2 = vector.load %arg2[%c0_1, %c0_2, %c0_3] : memref<1x16x16xf32, #tpu.memory_space<vmem>>, vector<1x16x16xf32>
    %3 = vector.shape_cast %2 : vector<1x16x16xf32> to vector<16x16xf32>
    %c0_4 = arith.constant 0 : index
    %c0_5 = arith.constant 0 : index
    %c0_6 = arith.constant 0 : index
    %c0_7 = arith.constant 0 : index
    %4 = vector.load %arg1[%c0_4, %c0_5, %c0_6, %c0_7] : memref<96x1x8x16xf32, #tpu.memory_space<vmem>>, vector<1x1x7x16xf32>
    %5 = vector.shape_cast %4 : vector<1x1x7x16xf32> to vector<7x16xf32>
    %c8 = arith.constant 8 : index
    %c0_8 = arith.constant 0 : index
    %c0_9 = arith.constant 0 : index
    %c0_10 = arith.constant 0 : index
    %6 = vector.load %arg1[%c8, %c0_8, %c0_9, %c0_10] : memref<96x1x8x16xf32, #tpu.memory_space<vmem>>, vector<1x1x7x16xf32>
    %7 = vector.shape_cast %6 : vector<1x1x7x16xf32> to vector<7x16xf32>
    %c16 = arith.constant 16 : index
    %c0_11 = arith.constant 0 : index
    %c0_12 = arith.constant 0 : index
    %c0_13 = arith.constant 0 : index
    %8 = vector.load %arg1[%c16, %c0_11, %c0_12, %c0_13] : memref<96x1x8x16xf32, #tpu.memory_space<vmem>>, vector<1x1x7x16xf32>
    %9 = vector.shape_cast %8 : vector<1x1x7x16xf32> to vector<7x16xf32>
    %cst_14 = arith.constant dense<0.000000e+00> : vector<16x16xf32>
    %10 = tpu.matmul %5, %7, %cst_14 {dimension_numbers = #tpu.dot_dimension_numbers<[0], [0], [1], [1], [0, 1, 1, 1], [], []>} : vector<7x16xf32>, vector<7x16xf32>, vector<16x16xf32> -> vector<16x16xf32>
    %11 = arith.addf %10, %3 : vector<16x16xf32>
    %cst_15 = arith.constant dense<0xFF800000> : vector<16xf32>
    %12 = vector.multi_reduction <maximumf>, %11, %cst_15 [1] : vector<16x16xf32> to vector<16xf32>
    %13 = vector.shape_cast %12 : vector<16xf32> to vector<16x1xf32>
    %14 = vector.broadcast %13 : vector<16x1xf32> to vector<16x16xf32>
    %15 = arith.subf %11, %14 : vector<16x16xf32>
    %16 = math.exp %15 : vector<16x16xf32>
    %cst_16 = arith.constant dense<0.000000e+00> : vector<16xf32>
    %17 = vector.multi_reduction <add>, %16, %cst_16 [1] : vector<16x16xf32> to vector<16xf32>
    %18 = vector.shape_cast %17 : vector<16xf32> to vector<16x1xf32>
    %19 = vector.broadcast %18 : vector<16x1xf32> to vector<16x16xf32>
    %20 = arith.divf %16, %19 : vector<16x16xf32>
    %cst_17 = arith.constant dense<0.000000e+00> : vector<7x16xf32>
    %21 = tpu.matmul %9, %20, %cst_17 {dimension_numbers = #tpu.dot_dimension_numbers<[1], [1], [0], [0], [0, 0, 1, 0], [], []>} : vector<7x16xf32>, vector<16x16xf32>, vector<7x16xf32> -> vector<7x16xf32>
    %c0_18 = arith.constant 0 : index
    %c0_19 = arith.constant 0 : index
    %22 = vector.load %arg3[%c0_18, %c0_19] : memref<28x128xf32, #tpu.memory_space<vmem>>, vector<7x16xf32>
    tpu.vector_store %arg3[%c0_18, %c0_19], %21 {strides = array<i32>} : memref<28x128xf32, #tpu.memory_space<vmem>>, vector<7x16xf32>,
    %c1 = arith.constant 1 : index
    %c0_20 = arith.constant 0 : index
    %c0_21 = arith.constant 0 : index
    %c0_22 = arith.constant 0 : index
    %23 = vector.load %arg1[%c1, %c0_20, %c0_21, %c0_22] : memref<96x1x8x16xf32, #tpu.memory_space<vmem>>, vector<1x1x7x16xf32>
    %24 = vector.shape_cast %23 : vector<1x1x7x16xf32> to vector<7x16xf32>
    %c9 = arith.constant 9 : index
    %c0_23 = arith.constant 0 : index
    %c0_24 = arith.constant 0 : index
    %c0_25 = arith.constant 0 : index
    %25 = vector.load %arg1[%c9, %c0_23, %c0_24, %c0_25] : memref<96x1x8x16xf32, #tpu.memory_space<vmem>>, vector<1x1x7x16xf32>
    %26 = vector.shape_cast %25 : vector<1x1x7x16xf32> to vector<7x16xf32>
    %c17 = arith.constant 17 : index
    %c0_26 = arith.constant 0 : index
    %c0_27 = arith.constant 0 : index
    %c0_28 = arith.constant 0 : index
    %27 = vector.load %arg1[%c17, %c0_26, %c0_27, %c0_28] : memref<96x1x8x16xf32, #tpu.memory_space<vmem>>, vector<1x1x7x16xf32>
    %28 = vector.shape_cast %27 : vector<1x1x7x16xf32> to vector<7x16xf32>
    %cst_29 = arith.constant dense<0.000000e+00> : vector<16x16xf32>
    %29 = tpu.matmul %24, %26, %cst_29 {dimension_numbers = #tpu.dot_dimension_numbers<[0], [0], [1], [1], [0, 1, 1, 1], [], []>} : vector<7x16xf32>, vector<7x16xf32>, vector<16x16xf32> -> vector<16x16xf32>
    %30 = arith.addf %29, %3 : vector<16x16xf32>
    %cst_30 = arith.constant dense<0xFF800000> : vector<16xf32>
    %31 = vector.multi_reduction <maximumf>, %30, %cst_30 [1] : vector<16x16xf32> to vector<16xf32>
    %32 = vector.shape_cast %31 : vector<16xf32> to vector<16x1xf32>
    %33 = vector.broadcast %32 : vector<16x1xf32> to vector<16x16xf32>
    %34 = arith.subf %30, %33 : vector<16x16xf32>
    %35 = math.exp %34 : vector<16x16xf32>
    %cst_31 = arith.constant dense<0.000000e+00> : vector<16xf32>
    %36 = vector.multi_reduction <add>, %35, %cst_31 [1] : vector<16x16xf32> to vector<16xf32>
    %37 = vector.shape_cast %36 : vector<16xf32> to vector<16x1xf32>
    %38 = vector.broadcast %37 : vector<16x1xf32> to vector<16x16xf32>
    %39 = arith.divf %35, %38 : vector<16x16xf32>
    %cst_32 = arith.constant dense<0.000000e+00> : vector<7x16xf32>
    %40 = tpu.matmul %28, %39, %cst_32 {dimension_numbers = #tpu.dot_dimension_numbers<[1], [1], [0], [0], [0, 0, 1, 0], [], []>} : vector<7x16xf32>, vector<16x16xf32>, vector<7x16xf32> -> vector<7x16xf32>
    %c0_33 = arith.constant 0 : index
    %c16_34 = arith.constant 16 : index
    %41 = vector.load %arg3[%c0_33, %c16_34] : memref<28x128xf32, #tpu.memory_space<vmem>>, vector<7x16xf32>
    tpu.vector_store %arg3[%c0_33, %c16_34], %40 {strides = array<i32>} : memref<28x128xf32, #tpu.memory_space<vmem>>, vector<7x16xf32>,
    %c2 = arith.constant 2 : index
    %c0_35 = arith.constant 0 : index
    %c0_36 = arith.constant 0 : index
    %c0_37 = arith.constant 0 : index
    %42 = vector.load %arg1[%c2, %c0_35, %c0_36, %c0_37] : memref<96x1x8x16xf32, #tpu.memory_space<vmem>>, vector<1x1x7x16xf32>
    %43 = vector.shape_cast %42 : vector<1x1x7x16xf32> to vector<7x16xf32>
    %c10 = arith.constant 10 : index
    %c0_38 = arith.constant 0 : index
    %c0_39 = arith.constant 0 : index
    %c0_40 = arith.constant 0 : index
    %44 = vector.load %arg1[%c10, %c0_38, %c0_39, %c0_40] : memref<96x1x8x16xf32, #tpu.memory_space<vmem>>, vector<1x1x7x16xf32>
    %45 = vector.shape_cast %44 : vector<1x1x7x16xf32> to vector<7x16xf32>
    %c18 = arith.constant 18 : index
    %c0_41 = arith.constant 0 : index
    %c0_42 = arith.constant 0 : index
    %c0_43 = arith.constant 0 : index
    %46 = vector.load %arg1[%c18, %c0_41, %c0_42, %c0_43] : memref<96x1x8x16xf32, #tpu.memory_space<vmem>>, vector<1x1x7x16xf32>
    %47 = vector.shape_cast %46 : vector<1x1x7x16xf32> to vector<7x16xf32>
    %cst_44 = arith.constant dense<0.000000e+00> : vector<16x16xf32>
    %48 = tpu.matmul %43, %45, %cst_44 {dimension_numbers = #tpu.dot_dimension_numbers<[0], [0], [1], [1], [0, 1, 1, 1], [], []>} : vector<7x16xf32>, vector<7x16xf32>, vector<16x16xf32> -> vector<16x16xf32>
    %49 = arith.addf %48, %3 : vector<16x16xf32>
    %cst_45 = arith.constant dense<0xFF800000> : vector<16xf32>
    %50 = vector.multi_reduction <maximumf>, %49, %cst_45 [1] : vector<16x16xf32> to vector<16xf32>
    %51 = vector.shape_cast %50 : vector<16xf32> to vector<16x1xf32>
    %52 = vector.broadcast %51 : vector<16x1xf32> to vector<16x16xf32>
    %53 = arith.subf %49, %52 : vector<16x16xf32>
    %54 = math.exp %53 : vector<16x16xf32>
    %cst_46 = arith.constant dense<0.000000e+00> : vector<16xf32>
    %55 = vector.multi_reduction <add>, %54, %cst_46 [1] : vector<16x16xf32> to vector<16xf32>
    %56 = vector.shape_cast %55 : vector<16xf32> to vector<16x1xf32>
    %57 = vector.broadcast %56 : vector<16x1xf32> to vector<16x16xf32>
    %58 = arith.divf %54, %57 : vector<16x16xf32>
    %cst_47 = arith.constant dense<0.000000e+00> : vector<7x16xf32>
    %59 = tpu.matmul %47, %58, %cst_47 {dimension_numbers = #tpu.dot_dimension_numbers<[1], [1], [0], [0], [0, 0, 1, 0], [], []>} : vector<7x16xf32>, vector<16x16xf32>, vector<7x16xf32> -> vector<7x16xf32>
    %c0_48 = arith.constant 0 : index
    %c32 = arith.constant 32 : index
    %60 = vector.load %arg3[%c0_48, %c32] : memref<28x128xf32, #tpu.memory_space<vmem>>, vector<7x16xf32>
    tpu.vector_store %arg3[%c0_48, %c32], %59 {strides = array<i32>} : memref<28x128xf32, #tpu.memory_space<vmem>>, vector<7x16xf32>,
    %c3 = arith.constant 3 : index
    %c0_49 = arith.constant 0 : index
    %c0_50 = arith.constant 0 : index
    %c0_51 = arith.constant 0 : index
    %61 = vector.load %arg1[%c3, %c0_49, %c0_50, %c0_51] : memref<96x1x8x16xf32, #tpu.memory_space<vmem>>, vector<1x1x7x16xf32>
    %62 = vector.shape_cast %61 : vector<1x1x7x16xf32> to vector<7x16xf32>
    %c11 = arith.constant 11 : index
    %c0_52 = arith.constant 0 : index
    %c0_53 = arith.constant 0 : index
    %c0_54 = arith.constant 0 : index
    %63 = vector.load %arg1[%c11, %c0_52, %c0_53, %c0_54] : memref<96x1x8x16xf32, #tpu.memory_space<vmem>>, vector<1x1x7x16xf32>
    %64 = vector.shape_cast %63 : vector<1x1x7x16xf32> to vector<7x16xf32>
    %c19 = arith.constant 19 : index
    %c0_55 = arith.constant 0 : index
    %c0_56 = arith.constant 0 : index
    %c0_57 = arith.constant 0 : index
    %65 = vector.load %arg1[%c19, %c0_55, %c0_56, %c0_57] : memref<96x1x8x16xf32, #tpu.memory_space<vmem>>, vector<1x1x7x16xf32>
    %66 = vector.shape_cast %65 : vector<1x1x7x16xf32> to vector<7x16xf32>
    %cst_58 = arith.constant dense<0.000000e+00> : vector<16x16xf32>
    %67 = tpu.matmul %62, %64, %cst_58 {dimension_numbers = #tpu.dot_dimension_numbers<[0], [0], [1], [1], [0, 1, 1, 1], [], []>} : vector<7x16xf32>, vector<7x16xf32>, vector<16x16xf32> -> vector<16x16xf32>
    %68 = arith.addf %67, %3 : vector<16x16xf32>
    %cst_59 = arith.constant dense<0xFF800000> : vector<16xf32>
    %69 = vector.multi_reduction <maximumf>, %68, %cst_59 [1] : vector<16x16xf32> to vector<16xf32>
    %70 = vector.shape_cast %69 : vector<16xf32> to vector<16x1xf32>
    %71 = vector.broadcast %70 : vector<16x1xf32> to vector<16x16xf32>
    %72 = arith.subf %68, %71 : vector<16x16xf32>
    %73 = math.exp %72 : vector<16x16xf32>
    %cst_60 = arith.constant dense<0.000000e+00> : vector<16xf32>
    %74 = vector.multi_reduction <add>, %73, %cst_60 [1] : vector<16x16xf32> to vector<16xf32>
    %75 = vector.shape_cast %74 : vector<16xf32> to vector<16x1xf32>
    %76 = vector.broadcast %75 : vector<16x1xf32> to vector<16x16xf32>
    %77 = arith.divf %73, %76 : vector<16x16xf32>
    %cst_61 = arith.constant dense<0.000000e+00> : vector<7x16xf32>
    %78 = tpu.matmul %66, %77, %cst_61 {dimension_numbers = #tpu.dot_dimension_numbers<[1], [1], [0], [0], [0, 0, 1, 0], [], []>} : vector<7x16xf32>, vector<16x16xf32>, vector<7x16xf32> -> vector<7x16xf32>
    %c0_62 = arith.constant 0 : index
    %c48 = arith.constant 48 : index
    %79 = vector.load %arg3[%c0_62, %c48] : memref<28x128xf32, #tpu.memory_space<vmem>>, vector<7x16xf32>
    tpu.vector_store %arg3[%c0_62, %c48], %78 {strides = array<i32>} : memref<28x128xf32, #tpu.memory_space<vmem>>, vector<7x16xf32>,
    %c4 = arith.constant 4 : index
    %c0_63 = arith.constant 0 : index
    %c0_64 = arith.constant 0 : index
    %c0_65 = arith.constant 0 : index
    %80 = vector.load %arg1[%c4, %c0_63, %c0_64, %c0_65] : memref<96x1x8x16xf32, #tpu.memory_space<vmem>>, vector<1x1x7x16xf32>
    %81 = vector.shape_cast %80 : vector<1x1x7x16xf32> to vector<7x16xf32>
    %c12 = arith.constant 12 : index
    %c0_66 = arith.constant 0 : index
    %c0_67 = arith.constant 0 : index
    %c0_68 = arith.constant 0 : index
    %82 = vector.load %arg1[%c12, %c0_66, %c0_67, %c0_68] : memref<96x1x8x16xf32, #tpu.memory_space<vmem>>, vector<1x1x7x16xf32>
    %83 = vector.shape_cast %82 : vector<1x1x7x16xf32> to vector<7x16xf32>
    %c20 = arith.constant 20 : index
    %c0_69 = arith.constant 0 : index
    %c0_70 = arith.constant 0 : index
    %c0_71 = arith.constant 0 : index
    %84 = vector.load %arg1[%c20, %c0_69, %c0_70, %c0_71] : memref<96x1x8x16xf32, #tpu.memory_space<vmem>>, vector<1x1x7x16xf32>
    %85 = vector.shape_cast %84 : vector<1x1x7x16xf32> to vector<7x16xf32>
    %cst_72 = arith.constant dense<0.000000e+00> : vector<16x16xf32>
    %86 = tpu.matmul %81, %83, %cst_72 {dimension_numbers = #tpu.dot_dimension_numbers<[0], [0], [1], [1], [0, 1, 1, 1], [], []>} : vector<7x16xf32>, vector<7x16xf32>, vector<16x16xf32> -> vector<16x16xf32>
    %87 = arith.addf %86, %3 : vector<16x16xf32>
    %cst_73 = arith.constant dense<0xFF800000> : vector<16xf32>
    %88 = vector.multi_reduction <maximumf>, %87, %cst_73 [1] : vector<16x16xf32> to vector<16xf32>
    %89 = vector.shape_cast %88 : vector<16xf32> to vector<16x1xf32>
    %90 = vector.broadcast %89 : vector<16x1xf32> to vector<16x16xf32>
    %91 = arith.subf %87, %90 : vector<16x16xf32>
    %92 = math.exp %91 : vector<16x16xf32>
    %cst_74 = arith.constant dense<0.000000e+00> : vector<16xf32>
    %93 = vector.multi_reduction <add>, %92, %cst_74 [1] : vector<16x16xf32> to vector<16xf32>
    %94 = vector.shape_cast %93 : vector<16xf32> to vector<16x1xf32>
    %95 = vector.broadcast %94 : vector<16x1xf32> to vector<16x16xf32>
    %96 = arith.divf %92, %95 : vector<16x16xf32>
    %cst_75 = arith.constant dense<0.000000e+00> : vector<7x16xf32>
    %97 = tpu.matmul %85, %96, %cst_75 {dimension_numbers = #tpu.dot_dimension_numbers<[1], [1], [0], [0], [0, 0, 1, 0], [], []>} : vector<7x16xf32>, vector<16x16xf32>, vector<7x16xf32> -> vector<7x16xf32>
    %c0_76 = arith.constant 0 : index
    %c64 = arith.constant 64 : index
    %98 = vector.load %arg3[%c0_76, %c64] : memref<28x128xf32, #tpu.memory_space<vmem>>, vector<7x16xf32>
    tpu.vector_store %arg3[%c0_76, %c64], %97 {strides = array<i32>} : memref<28x128xf32, #tpu.memory_space<vmem>>, vector<7x16xf32>,
    %c5 = arith.constant 5 : index
    %c0_77 = arith.constant 0 : index
    %c0_78 = arith.constant 0 : index
    %c0_79 = arith.constant 0 : index
    %99 = vector.load %arg1[%c5, %c0_77, %c0_78, %c0_79] : memref<96x1x8x16xf32, #tpu.memory_space<vmem>>, vector<1x1x7x16xf32>
    %100 = vector.shape_cast %99 : vector<1x1x7x16xf32> to vector<7x16xf32>
    %c13 = arith.constant 13 : index
    %c0_80 = arith.constant 0 : index
    %c0_81 = arith.constant 0 : index
    %c0_82 = arith.constant 0 : index
    %101 = vector.load %arg1[%c13, %c0_80, %c0_81, %c0_82] : memref<96x1x8x16xf32, #tpu.memory_space<vmem>>, vector<1x1x7x16xf32>
    %102 = vector.shape_cast %101 : vector<1x1x7x16xf32> to vector<7x16xf32>
    %c21 = arith.constant 21 : index
    %c0_83 = arith.constant 0 : index
    %c0_84 = arith.constant 0 : index
    %c0_85 = arith.constant 0 : index
    %103 = vector.load %arg1[%c21, %c0_83, %c0_84, %c0_85] : memref<96x1x8x16xf32, #tpu.memory_space<vmem>>, vector<1x1x7x16xf32>
    %104 = vector.shape_cast %103 : vector<1x1x7x16xf32> to vector<7x16xf32>
    %cst_86 = arith.constant dense<0.000000e+00> : vector<16x16xf32>
    %105 = tpu.matmul %100, %102, %cst_86 {dimension_numbers = #tpu.dot_dimension_numbers<[0], [0], [1], [1], [0, 1, 1, 1], [], []>} : vector<7x16xf32>, vector<7x16xf32>, vector<16x16xf32> -> vector<16x16xf32>
    %106 = arith.addf %105, %3 : vector<16x16xf32>
    %cst_87 = arith.constant dense<0xFF800000> : vector<16xf32>
    %107 = vector.multi_reduction <maximumf>, %106, %cst_87 [1] : vector<16x16xf32> to vector<16xf32>
    %108 = vector.shape_cast %107 : vector<16xf32> to vector<16x1xf32>
    %109 = vector.broadcast %108 : vector<16x1xf32> to vector<16x16xf32>
    %110 = arith.subf %106, %109 : vector<16x16xf32>
    %111 = math.exp %110 : vector<16x16xf32>
    %cst_88 = arith.constant dense<0.000000e+00> : vector<16xf32>
    %112 = vector.multi_reduction <add>, %111, %cst_88 [1] : vector<16x16xf32> to vector<16xf32>
    %113 = vector.shape_cast %112 : vector<16xf32> to vector<16x1xf32>
    %114 = vector.broadcast %113 : vector<16x1xf32> to vector<16x16xf32>
    %115 = arith.divf %111, %114 : vector<16x16xf32>
    %cst_89 = arith.constant dense<0.000000e+00> : vector<7x16xf32>
    %116 = tpu.matmul %104, %115, %cst_89 {dimension_numbers = #tpu.dot_dimension_numbers<[1], [1], [0], [0], [0, 0, 1, 0], [], []>} : vector<7x16xf32>, vector<16x16xf32>, vector<7x16xf32> -> vector<7x16xf32>
    %c0_90 = arith.constant 0 : index
    %c80 = arith.constant 80 : index
    %117 = vector.load %arg3[%c0_90, %c80] : memref<28x128xf32, #tpu.memory_space<vmem>>, vector<7x16xf32>
    tpu.vector_store %arg3[%c0_90, %c80], %116 {strides = array<i32>} : memref<28x128xf32, #tpu.memory_space<vmem>>, vector<7x16xf32>,
    %c6 = arith.constant 6 : index
    %c0_91 = arith.constant 0 : index
    %c0_92 = arith.constant 0 : index
    %c0_93 = arith.constant 0 : index
    %118 = vector.load %arg1[%c6, %c0_91, %c0_92, %c0_93] : memref<96x1x8x16xf32, #tpu.memory_space<vmem>>, vector<1x1x7x16xf32>
    %119 = vector.shape_cast %118 : vector<1x1x7x16xf32> to vector<7x16xf32>
    %c14 = arith.constant 14 : index
    %c0_94 = arith.constant 0 : index
    %c0_95 = arith.constant 0 : index
    %c0_96 = arith.constant 0 : index
    %120 = vector.load %arg1[%c14, %c0_94, %c0_95, %c0_96] : memref<96x1x8x16xf32, #tpu.memory_space<vmem>>, vector<1x1x7x16xf32>
    %121 = vector.shape_cast %120 : vector<1x1x7x16xf32> to vector<7x16xf32>
    %c22 = arith.constant 22 : index
    %c0_97 = arith.constant 0 : index
    %c0_98 = arith.constant 0 : index
    %c0_99 = arith.constant 0 : index
    %122 = vector.load %arg1[%c22, %c0_97, %c0_98, %c0_99] : memref<96x1x8x16xf32, #tpu.memory_space<vmem>>, vector<1x1x7x16xf32>
    %123 = vector.shape_cast %122 : vector<1x1x7x16xf32> to vector<7x16xf32>
    %cst_100 = arith.constant dense<0.000000e+00> : vector<16x16xf32>
    %124 = tpu.matmul %119, %121, %cst_100 {dimension_numbers = #tpu.dot_dimension_numbers<[0], [0], [1], [1], [0, 1, 1, 1], [], []>} : vector<7x16xf32>, vector<7x16xf32>, vector<16x16xf32> -> vector<16x16xf32>
    %125 = arith.addf %124, %3 : vector<16x16xf32>
    %cst_101 = arith.constant dense<0xFF800000> : vector<16xf32>
    %126 = vector.multi_reduction <maximumf>, %125, %cst_101 [1] : vector<16x16xf32> to vector<16xf32>
    %127 = vector.shape_cast %126 : vector<16xf32> to vector<16x1xf32>
    %128 = vector.broadcast %127 : vector<16x1xf32> to vector<16x16xf32>
    %129 = arith.subf %125, %128 : vector<16x16xf32>
    %130 = math.exp %129 : vector<16x16xf32>
    %cst_102 = arith.constant dense<0.000000e+00> : vector<16xf32>
    %131 = vector.multi_reduction <add>, %130, %cst_102 [1] : vector<16x16xf32> to vector<16xf32>
    %132 = vector.shape_cast %131 : vector<16xf32> to vector<16x1xf32>
    %133 = vector.broadcast %132 : vector<16x1xf32> to vector<16x16xf32>
    %134 = arith.divf %130, %133 : vector<16x16xf32>
    %cst_103 = arith.constant dense<0.000000e+00> : vector<7x16xf32>
    %135 = tpu.matmul %123, %134, %cst_103 {dimension_numbers = #tpu.dot_dimension_numbers<[1], [1], [0], [0], [0, 0, 1, 0], [], []>} : vector<7x16xf32>, vector<16x16xf32>, vector<7x16xf32> -> vector<7x16xf32>
    %c0_104 = arith.constant 0 : index
    %c96 = arith.constant 96 : index
    %136 = vector.load %arg3[%c0_104, %c96] : memref<28x128xf32, #tpu.memory_space<vmem>>, vector<7x16xf32>
    tpu.vector_store %arg3[%c0_104, %c96], %135 {strides = array<i32>} : memref<28x128xf32, #tpu.memory_space<vmem>>, vector<7x16xf32>,
    %c7 = arith.constant 7 : index
    %c0_105 = arith.constant 0 : index
    %c0_106 = arith.constant 0 : index
    %c0_107 = arith.constant 0 : index
    %137 = vector.load %arg1[%c7, %c0_105, %c0_106, %c0_107] : memref<96x1x8x16xf32, #tpu.memory_space<vmem>>, vector<1x1x7x16xf32>
    %138 = vector.shape_cast %137 : vector<1x1x7x16xf32> to vector<7x16xf32>
    %c15 = arith.constant 15 : index
    %c0_108 = arith.constant 0 : index
    %c0_109 = arith.constant 0 : index
    %c0_110 = arith.constant 0 : index
    %139 = vector.load %arg1[%c15, %c0_108, %c0_109, %c0_110] : memref<96x1x8x16xf32, #tpu.memory_space<vmem>>, vector<1x1x7x16xf32>
    %140 = vector.shape_cast %139 : vector<1x1x7x16xf32> to vector<7x16xf32>
    %c23 = arith.constant 23 : index
    %c0_111 = arith.constant 0 : index
    %c0_112 = arith.constant 0 : index
    %c0_113 = arith.constant 0 : index
    %141 = vector.load %arg1[%c23, %c0_111, %c0_112, %c0_113] : memref<96x1x8x16xf32, #tpu.memory_space<vmem>>, vector<1x1x7x16xf32>
    %142 = vector.shape_cast %141 : vector<1x1x7x16xf32> to vector<7x16xf32>
    %cst_114 = arith.constant dense<0.000000e+00> : vector<16x16xf32>
    %143 = tpu.matmul %138, %140, %cst_114 {dimension_numbers = #tpu.dot_dimension_numbers<[0], [0], [1], [1], [0, 1, 1, 1], [], []>} : vector<7x16xf32>, vector<7x16xf32>, vector<16x16xf32> -> vector<16x16xf32>
    %144 = arith.addf %143, %3 : vector<16x16xf32>
    %cst_115 = arith.constant dense<0xFF800000> : vector<16xf32>
    %145 = vector.multi_reduction <maximumf>, %144, %cst_115 [1] : vector<16x16xf32> to vector<16xf32>
    %146 = vector.shape_cast %145 : vector<16xf32> to vector<16x1xf32>
    %147 = vector.broadcast %146 : vector<16x1xf32> to vector<16x16xf32>
    %148 = arith.subf %144, %147 : vector<16x16xf32>
    %149 = math.exp %148 : vector<16x16xf32>
    %cst_116 = arith.constant dense<0.000000e+00> : vector<16xf32>
    %150 = vector.multi_reduction <add>, %149, %cst_116 [1] : vector<16x16xf32> to vector<16xf32>
    %151 = vector.shape_cast %150 : vector<16xf32> to vector<16x1xf32>
    %152 = vector.broadcast %151 : vector<16x1xf32> to vector<16x16xf32>
    %153 = arith.divf %149, %152 : vector<16x16xf32>
    %cst_117 = arith.constant dense<0.000000e+00> : vector<7x16xf32>
    %154 = tpu.matmul %142, %153, %cst_117 {dimension_numbers = #tpu.dot_dimension_numbers<[1], [1], [0], [0], [0, 0, 1, 0], [], []>} : vector<7x16xf32>, vector<16x16xf32>, vector<7x16xf32> -> vector<7x16xf32>
    %c0_118 = arith.constant 0 : index
    %c112 = arith.constant 112 : index
    %155 = vector.load %arg3[%c0_118, %c112] : memref<28x128xf32, #tpu.memory_space<vmem>>, vector<7x16xf32>
    tpu.vector_store %arg3[%c0_118, %c112], %154 {strides = array<i32>} : memref<28x128xf32, #tpu.memory_space<vmem>>, vector<7x16xf32>,
    %c24 = arith.constant 24 : index
    %c0_119 = arith.constant 0 : index
    %c0_120 = arith.constant 0 : index
    %c0_121 = arith.constant 0 : index
    %156 = vector.load %arg1[%c24, %c0_119, %c0_120, %c0_121] : memref<96x1x8x16xf32, #tpu.memory_space<vmem>>, vector<1x1x6x16xf32>
    %157 = vector.shape_cast %156 : vector<1x1x6x16xf32> to vector<6x16xf32>
    %c32_122 = arith.constant 32 : index
    %c0_123 = arith.constant 0 : index
    %c0_124 = arith.constant 0 : index
    %c0_125 = arith.constant 0 : index
    %158 = vector.load %arg1[%c32_122, %c0_123, %c0_124, %c0_125] : memref<96x1x8x16xf32, #tpu.memory_space<vmem>>, vector<1x1x6x16xf32>
    %159 = vector.shape_cast %158 : vector<1x1x6x16xf32> to vector<6x16xf32>
    %c40 = arith.constant 40 : index
    %c0_126 = arith.constant 0 : index
    %c0_127 = arith.constant 0 : index
    %c0_128 = arith.constant 0 : index
    %160 = vector.load %arg1[%c40, %c0_126, %c0_127, %c0_128] : memref<96x1x8x16xf32, #tpu.memory_space<vmem>>, vector<1x1x6x16xf32>
    %161 = vector.shape_cast %160 : vector<1x1x6x16xf32> to vector<6x16xf32>
    %cst_129 = arith.constant dense<0.000000e+00> : vector<16x16xf32>
    %162 = tpu.matmul %157, %159, %cst_129 {dimension_numbers = #tpu.dot_dimension_numbers<[0], [0], [1], [1], [0, 1, 1, 1], [], []>} : vector<6x16xf32>, vector<6x16xf32>, vector<16x16xf32> -> vector<16x16xf32>
    %163 = arith.addf %162, %3 : vector<16x16xf32>
    %cst_130 = arith.constant dense<0xFF800000> : vector<16xf32>
    %164 = vector.multi_reduction <maximumf>, %163, %cst_130 [1] : vector<16x16xf32> to vector<16xf32>
    %165 = vector.shape_cast %164 : vector<16xf32> to vector<16x1xf32>
    %166 = vector.broadcast %165 : vector<16x1xf32> to vector<16x16xf32>
    %167 = arith.subf %163, %166 : vector<16x16xf32>
    %168 = math.exp %167 : vector<16x16xf32>
    %cst_131 = arith.constant dense<0.000000e+00> : vector<16xf32>
    %169 = vector.multi_reduction <add>, %168, %cst_131 [1] : vector<16x16xf32> to vector<16xf32>
    %170 = vector.shape_cast %169 : vector<16xf32> to vector<16x1xf32>
    %171 = vector.broadcast %170 : vector<16x1xf32> to vector<16x16xf32>
    %172 = arith.divf %168, %171 : vector<16x16xf32>
    %cst_132 = arith.constant dense<0.000000e+00> : vector<6x16xf32>
    %173 = tpu.matmul %161, %172, %cst_132 {dimension_numbers = #tpu.dot_dimension_numbers<[1], [1], [0], [0], [0, 0, 1, 0], [], []>} : vector<6x16xf32>, vector<16x16xf32>, vector<6x16xf32> -> vector<6x16xf32>
    %c7_133 = arith.constant 7 : index
    %c0_134 = arith.constant 0 : index
    %174 = vector.load %arg3[%c7_133, %c0_134] : memref<28x128xf32, #tpu.memory_space<vmem>>, vector<6x16xf32>
    tpu.vector_store %arg3[%c7_133, %c0_134], %173 {strides = array<i32>} : memref<28x128xf32, #tpu.memory_space<vmem>>, vector<6x16xf32>,
    %c25 = arith.constant 25 : index
    %c0_135 = arith.constant 0 : index
    %c0_136 = arith.constant 0 : index
    %c0_137 = arith.constant 0 : index
    %175 = vector.load %arg1[%c25, %c0_135, %c0_136, %c0_137] : memref<96x1x8x16xf32, #tpu.memory_space<vmem>>, vector<1x1x6x16xf32>
    %176 = vector.shape_cast %175 : vector<1x1x6x16xf32> to vector<6x16xf32>
    %c33 = arith.constant 33 : index
    %c0_138 = arith.constant 0 : index
    %c0_139 = arith.constant 0 : index
    %c0_140 = arith.constant 0 : index
    %177 = vector.load %arg1[%c33, %c0_138, %c0_139, %c0_140] : memref<96x1x8x16xf32, #tpu.memory_space<vmem>>, vector<1x1x6x16xf32>
    %178 = vector.shape_cast %177 : vector<1x1x6x16xf32> to vector<6x16xf32>
    %c41 = arith.constant 41 : index
    %c0_141 = arith.constant 0 : index
    %c0_142 = arith.constant 0 : index
    %c0_143 = arith.constant 0 : index
    %179 = vector.load %arg1[%c41, %c0_141, %c0_142, %c0_143] : memref<96x1x8x16xf32, #tpu.memory_space<vmem>>, vector<1x1x6x16xf32>
    %180 = vector.shape_cast %179 : vector<1x1x6x16xf32> to vector<6x16xf32>
    %cst_144 = arith.constant dense<0.000000e+00> : vector<16x16xf32>
    %181 = tpu.matmul %176, %178, %cst_144 {dimension_numbers = #tpu.dot_dimension_numbers<[0], [0], [1], [1], [0, 1, 1, 1], [], []>} : vector<6x16xf32>, vector<6x16xf32>, vector<16x16xf32> -> vector<16x16xf32>
    %182 = arith.addf %181, %3 : vector<16x16xf32>
    %cst_145 = arith.constant dense<0xFF800000> : vector<16xf32>
    %183 = vector.multi_reduction <maximumf>, %182, %cst_145 [1] : vector<16x16xf32> to vector<16xf32>
    %184 = vector.shape_cast %183 : vector<16xf32> to vector<16x1xf32>
    %185 = vector.broadcast %184 : vector<16x1xf32> to vector<16x16xf32>
    %186 = arith.subf %182, %185 : vector<16x16xf32>
    %187 = math.exp %186 : vector<16x16xf32>
    %cst_146 = arith.constant dense<0.000000e+00> : vector<16xf32>
    %188 = vector.multi_reduction <add>, %187, %cst_146 [1] : vector<16x16xf32> to vector<16xf32>
    %189 = vector.shape_cast %188 : vector<16xf32> to vector<16x1xf32>
    %190 = vector.broadcast %189 : vector<16x1xf32> to vector<16x16xf32>
    %191 = arith.divf %187, %190 : vector<16x16xf32>
    %cst_147 = arith.constant dense<0.000000e+00> : vector<6x16xf32>
    %192 = tpu.matmul %180, %191, %cst_147 {dimension_numbers = #tpu.dot_dimension_numbers<[1], [1], [0], [0], [0, 0, 1, 0], [], []>} : vector<6x16xf32>, vector<16x16xf32>, vector<6x16xf32> -> vector<6x16xf32>
    %c7_148 = arith.constant 7 : index
    %c16_149 = arith.constant 16 : index
    %193 = vector.load %arg3[%c7_148, %c16_149] : memref<28x128xf32, #tpu.memory_space<vmem>>, vector<6x16xf32>
    tpu.vector_store %arg3[%c7_148, %c16_149], %192 {strides = array<i32>} : memref<28x128xf32, #tpu.memory_space<vmem>>, vector<6x16xf32>,
    %c26 = arith.constant 26 : index
    %c0_150 = arith.constant 0 : index
    %c0_151 = arith.constant 0 : index
    %c0_152 = arith.constant 0 : index
    %194 = vector.load %arg1[%c26, %c0_150, %c0_151, %c0_152] : memref<96x1x8x16xf32, #tpu.memory_space<vmem>>, vector<1x1x6x16xf32>
    %195 = vector.shape_cast %194 : vector<1x1x6x16xf32> to vector<6x16xf32>
    %c34 = arith.constant 34 : index
    %c0_153 = arith.constant 0 : index
    %c0_154 = arith.constant 0 : index
    %c0_155 = arith.constant 0 : index
    %196 = vector.load %arg1[%c34, %c0_153, %c0_154, %c0_155] : memref<96x1x8x16xf32, #tpu.memory_space<vmem>>, vector<1x1x6x16xf32>
    %197 = vector.shape_cast %196 : vector<1x1x6x16xf32> to vector<6x16xf32>
    %c42 = arith.constant 42 : index
    %c0_156 = arith.constant 0 : index
    %c0_157 = arith.constant 0 : index
    %c0_158 = arith.constant 0 : index
    %198 = vector.load %arg1[%c42, %c0_156, %c0_157, %c0_158] : memref<96x1x8x16xf32, #tpu.memory_space<vmem>>, vector<1x1x6x16xf32>
    %199 = vector.shape_cast %198 : vector<1x1x6x16xf32> to vector<6x16xf32>
    %cst_159 = arith.constant dense<0.000000e+00> : vector<16x16xf32>
    %200 = tpu.matmul %195, %197, %cst_159 {dimension_numbers = #tpu.dot_dimension_numbers<[0], [0], [1], [1], [0, 1, 1, 1], [], []>} : vector<6x16xf32>, vector<6x16xf32>, vector<16x16xf32> -> vector<16x16xf32>
    %201 = arith.addf %200, %3 : vector<16x16xf32>
    %cst_160 = arith.constant dense<0xFF800000> : vector<16xf32>
    %202 = vector.multi_reduction <maximumf>, %201, %cst_160 [1] : vector<16x16xf32> to vector<16xf32>
    %203 = vector.shape_cast %202 : vector<16xf32> to vector<16x1xf32>
    %204 = vector.broadcast %203 : vector<16x1xf32> to vector<16x16xf32>
    %205 = arith.subf %201, %204 : vector<16x16xf32>
    %206 = math.exp %205 : vector<16x16xf32>
    %cst_161 = arith.constant dense<0.000000e+00> : vector<16xf32>
    %207 = vector.multi_reduction <add>, %206, %cst_161 [1] : vector<16x16xf32> to vector<16xf32>
    %208 = vector.shape_cast %207 : vector<16xf32> to vector<16x1xf32>
    %209 = vector.broadcast %208 : vector<16x1xf32> to vector<16x16xf32>
    %210 = arith.divf %206, %209 : vector<16x16xf32>
    %cst_162 = arith.constant dense<0.000000e+00> : vector<6x16xf32>
    %211 = tpu.matmul %199, %210, %cst_162 {dimension_numbers = #tpu.dot_dimension_numbers<[1], [1], [0], [0], [0, 0, 1, 0], [], []>} : vector<6x16xf32>, vector<16x16xf32>, vector<6x16xf32> -> vector<6x16xf32>
    %c7_163 = arith.constant 7 : index
    %c32_164 = arith.constant 32 : index
    %212 = vector.load %arg3[%c7_163, %c32_164] : memref<28x128xf32, #tpu.memory_space<vmem>>, vector<6x16xf32>
    tpu.vector_store %arg3[%c7_163, %c32_164], %211 {strides = array<i32>} : memref<28x128xf32, #tpu.memory_space<vmem>>, vector<6x16xf32>,
    %c27 = arith.constant 27 : index
    %c0_165 = arith.constant 0 : index
    %c0_166 = arith.constant 0 : index
    %c0_167 = arith.constant 0 : index
    %213 = vector.load %arg1[%c27, %c0_165, %c0_166, %c0_167] : memref<96x1x8x16xf32, #tpu.memory_space<vmem>>, vector<1x1x6x16xf32>
    %214 = vector.shape_cast %213 : vector<1x1x6x16xf32> to vector<6x16xf32>
    %c35 = arith.constant 35 : index
    %c0_168 = arith.constant 0 : index
    %c0_169 = arith.constant 0 : index
    %c0_170 = arith.constant 0 : index
    %215 = vector.load %arg1[%c35, %c0_168, %c0_169, %c0_170] : memref<96x1x8x16xf32, #tpu.memory_space<vmem>>, vector<1x1x6x16xf32>
    %216 = vector.shape_cast %215 : vector<1x1x6x16xf32> to vector<6x16xf32>
    %c43 = arith.constant 43 : index
    %c0_171 = arith.constant 0 : index
    %c0_172 = arith.constant 0 : index
    %c0_173 = arith.constant 0 : index
    %217 = vector.load %arg1[%c43, %c0_171, %c0_172, %c0_173] : memref<96x1x8x16xf32, #tpu.memory_space<vmem>>, vector<1x1x6x16xf32>
    %218 = vector.shape_cast %217 : vector<1x1x6x16xf32> to vector<6x16xf32>
    %cst_174 = arith.constant dense<0.000000e+00> : vector<16x16xf32>
    %219 = tpu.matmul %214, %216, %cst_174 {dimension_numbers = #tpu.dot_dimension_numbers<[0], [0], [1], [1], [0, 1, 1, 1], [], []>} : vector<6x16xf32>, vector<6x16xf32>, vector<16x16xf32> -> vector<16x16xf32>
    %220 = arith.addf %219, %3 : vector<16x16xf32>
    %cst_175 = arith.constant dense<0xFF800000> : vector<16xf32>
    %221 = vector.multi_reduction <maximumf>, %220, %cst_175 [1] : vector<16x16xf32> to vector<16xf32>
    %222 = vector.shape_cast %221 : vector<16xf32> to vector<16x1xf32>
    %223 = vector.broadcast %222 : vector<16x1xf32> to vector<16x16xf32>
    %224 = arith.subf %220, %223 : vector<16x16xf32>
    %225 = math.exp %224 : vector<16x16xf32>
    %cst_176 = arith.constant dense<0.000000e+00> : vector<16xf32>
    %226 = vector.multi_reduction <add>, %225, %cst_176 [1] : vector<16x16xf32> to vector<16xf32>
    %227 = vector.shape_cast %226 : vector<16xf32> to vector<16x1xf32>
    %228 = vector.broadcast %227 : vector<16x1xf32> to vector<16x16xf32>
    %229 = arith.divf %225, %228 : vector<16x16xf32>
    %cst_177 = arith.constant dense<0.000000e+00> : vector<6x16xf32>
    %230 = tpu.matmul %218, %229, %cst_177 {dimension_numbers = #tpu.dot_dimension_numbers<[1], [1], [0], [0], [0, 0, 1, 0], [], []>} : vector<6x16xf32>, vector<16x16xf32>, vector<6x16xf32> -> vector<6x16xf32>
    %c7_178 = arith.constant 7 : index
    %c48_179 = arith.constant 48 : index
    %231 = vector.load %arg3[%c7_178, %c48_179] : memref<28x128xf32, #tpu.memory_space<vmem>>, vector<6x16xf32>
    tpu.vector_store %arg3[%c7_178, %c48_179], %230 {strides = array<i32>} : memref<28x128xf32, #tpu.memory_space<vmem>>, vector<6x16xf32>,
    %c28 = arith.constant 28 : index
    %c0_180 = arith.constant 0 : index
    %c0_181 = arith.constant 0 : index
    %c0_182 = arith.constant 0 : index
    %232 = vector.load %arg1[%c28, %c0_180, %c0_181, %c0_182] : memref<96x1x8x16xf32, #tpu.memory_space<vmem>>, vector<1x1x6x16xf32>
    %233 = vector.shape_cast %232 : vector<1x1x6x16xf32> to vector<6x16xf32>
    %c36 = arith.constant 36 : index
    %c0_183 = arith.constant 0 : index
    %c0_184 = arith.constant 0 : index
    %c0_185 = arith.constant 0 : index
    %234 = vector.load %arg1[%c36, %c0_183, %c0_184, %c0_185] : memref<96x1x8x16xf32, #tpu.memory_space<vmem>>, vector<1x1x6x16xf32>
    %235 = vector.shape_cast %234 : vector<1x1x6x16xf32> to vector<6x16xf32>
    %c44 = arith.constant 44 : index
    %c0_186 = arith.constant 0 : index
    %c0_187 = arith.constant 0 : index
    %c0_188 = arith.constant 0 : index
    %236 = vector.load %arg1[%c44, %c0_186, %c0_187, %c0_188] : memref<96x1x8x16xf32, #tpu.memory_space<vmem>>, vector<1x1x6x16xf32>
    %237 = vector.shape_cast %236 : vector<1x1x6x16xf32> to vector<6x16xf32>
    %cst_189 = arith.constant dense<0.000000e+00> : vector<16x16xf32>
    %238 = tpu.matmul %233, %235, %cst_189 {dimension_numbers = #tpu.dot_dimension_numbers<[0], [0], [1], [1], [0, 1, 1, 1], [], []>} : vector<6x16xf32>, vector<6x16xf32>, vector<16x16xf32> -> vector<16x16xf32>
    %239 = arith.addf %238, %3 : vector<16x16xf32>
    %cst_190 = arith.constant dense<0xFF800000> : vector<16xf32>
    %240 = vector.multi_reduction <maximumf>, %239, %cst_190 [1] : vector<16x16xf32> to vector<16xf32>
    %241 = vector.shape_cast %240 : vector<16xf32> to vector<16x1xf32>
    %242 = vector.broadcast %241 : vector<16x1xf32> to vector<16x16xf32>
    %243 = arith.subf %239, %242 : vector<16x16xf32>
    %244 = math.exp %243 : vector<16x16xf32>
    %cst_191 = arith.constant dense<0.000000e+00> : vector<16xf32>
    %245 = vector.multi_reduction <add>, %244, %cst_191 [1] : vector<16x16xf32> to vector<16xf32>
    %246 = vector.shape_cast %245 : vector<16xf32> to vector<16x1xf32>
    %247 = vector.broadcast %246 : vector<16x1xf32> to vector<16x16xf32>
    %248 = arith.divf %244, %247 : vector<16x16xf32>
    %cst_192 = arith.constant dense<0.000000e+00> : vector<6x16xf32>
    %249 = tpu.matmul %237, %248, %cst_192 {dimension_numbers = #tpu.dot_dimension_numbers<[1], [1], [0], [0], [0, 0, 1, 0], [], []>} : vector<6x16xf32>, vector<16x16xf32>, vector<6x16xf32> -> vector<6x16xf32>
    %c7_193 = arith.constant 7 : index
    %c64_194 = arith.constant 64 : index
    %250 = vector.load %arg3[%c7_193, %c64_194] : memref<28x128xf32, #tpu.memory_space<vmem>>, vector<6x16xf32>
    tpu.vector_store %arg3[%c7_193, %c64_194], %249 {strides = array<i32>} : memref<28x128xf32, #tpu.memory_space<vmem>>, vector<6x16xf32>,
    %c29 = arith.constant 29 : index
    %c0_195 = arith.constant 0 : index
    %c0_196 = arith.constant 0 : index
    %c0_197 = arith.constant 0 : index
    %251 = vector.load %arg1[%c29, %c0_195, %c0_196, %c0_197] : memref<96x1x8x16xf32, #tpu.memory_space<vmem>>, vector<1x1x6x16xf32>
    %252 = vector.shape_cast %251 : vector<1x1x6x16xf32> to vector<6x16xf32>
    %c37 = arith.constant 37 : index
    %c0_198 = arith.constant 0 : index
    %c0_199 = arith.constant 0 : index
    %c0_200 = arith.constant 0 : index
    %253 = vector.load %arg1[%c37, %c0_198, %c0_199, %c0_200] : memref<96x1x8x16xf32, #tpu.memory_space<vmem>>, vector<1x1x6x16xf32>
    %254 = vector.shape_cast %253 : vector<1x1x6x16xf32> to vector<6x16xf32>
    %c45 = arith.constant 45 : index
    %c0_201 = arith.constant 0 : index
    %c0_202 = arith.constant 0 : index
    %c0_203 = arith.constant 0 : index
    %255 = vector.load %arg1[%c45, %c0_201, %c0_202, %c0_203] : memref<96x1x8x16xf32, #tpu.memory_space<vmem>>, vector<1x1x6x16xf32>
    %256 = vector.shape_cast %255 : vector<1x1x6x16xf32> to vector<6x16xf32>
    %cst_204 = arith.constant dense<0.000000e+00> : vector<16x16xf32>
    %257 = tpu.matmul %252, %254, %cst_204 {dimension_numbers = #tpu.dot_dimension_numbers<[0], [0], [1], [1], [0, 1, 1, 1], [], []>} : vector<6x16xf32>, vector<6x16xf32>, vector<16x16xf32> -> vector<16x16xf32>
    %258 = arith.addf %257, %3 : vector<16x16xf32>
    %cst_205 = arith.constant dense<0xFF800000> : vector<16xf32>
    %259 = vector.multi_reduction <maximumf>, %258, %cst_205 [1] : vector<16x16xf32> to vector<16xf32>
    %260 = vector.shape_cast %259 : vector<16xf32> to vector<16x1xf32>
    %261 = vector.broadcast %260 : vector<16x1xf32> to vector<16x16xf32>
    %262 = arith.subf %258, %261 : vector<16x16xf32>
    %263 = math.exp %262 : vector<16x16xf32>
    %cst_206 = arith.constant dense<0.000000e+00> : vector<16xf32>
    %264 = vector.multi_reduction <add>, %263, %cst_206 [1] : vector<16x16xf32> to vector<16xf32>
    %265 = vector.shape_cast %264 : vector<16xf32> to vector<16x1xf32>
    %266 = vector.broadcast %265 : vector<16x1xf32> to vector<16x16xf32>
    %267 = arith.divf %263, %266 : vector<16x16xf32>
    %cst_207 = arith.constant dense<0.000000e+00> : vector<6x16xf32>
    %268 = tpu.matmul %256, %267, %cst_207 {dimension_numbers = #tpu.dot_dimension_numbers<[1], [1], [0], [0], [0, 0, 1, 0], [], []>} : vector<6x16xf32>, vector<16x16xf32>, vector<6x16xf32> -> vector<6x16xf32>
    %c7_208 = arith.constant 7 : index
    %c80_209 = arith.constant 80 : index
    %269 = vector.load %arg3[%c7_208, %c80_209] : memref<28x128xf32, #tpu.memory_space<vmem>>, vector<6x16xf32>
    tpu.vector_store %arg3[%c7_208, %c80_209], %268 {strides = array<i32>} : memref<28x128xf32, #tpu.memory_space<vmem>>, vector<6x16xf32>,
    %c30 = arith.constant 30 : index
    %c0_210 = arith.constant 0 : index
    %c0_211 = arith.constant 0 : index
    %c0_212 = arith.constant 0 : index
    %270 = vector.load %arg1[%c30, %c0_210, %c0_211, %c0_212] : memref<96x1x8x16xf32, #tpu.memory_space<vmem>>, vector<1x1x6x16xf32>
    %271 = vector.shape_cast %270 : vector<1x1x6x16xf32> to vector<6x16xf32>
    %c38 = arith.constant 38 : index
    %c0_213 = arith.constant 0 : index
    %c0_214 = arith.constant 0 : index
    %c0_215 = arith.constant 0 : index
    %272 = vector.load %arg1[%c38, %c0_213, %c0_214, %c0_215] : memref<96x1x8x16xf32, #tpu.memory_space<vmem>>, vector<1x1x6x16xf32>
    %273 = vector.shape_cast %272 : vector<1x1x6x16xf32> to vector<6x16xf32>
    %c46 = arith.constant 46 : index
    %c0_216 = arith.constant 0 : index
    %c0_217 = arith.constant 0 : index
    %c0_218 = arith.constant 0 : index
    %274 = vector.load %arg1[%c46, %c0_216, %c0_217, %c0_218] : memref<96x1x8x16xf32, #tpu.memory_space<vmem>>, vector<1x1x6x16xf32>
    %275 = vector.shape_cast %274 : vector<1x1x6x16xf32> to vector<6x16xf32>
    %cst_219 = arith.constant dense<0.000000e+00> : vector<16x16xf32>
    %276 = tpu.matmul %271, %273, %cst_219 {dimension_numbers = #tpu.dot_dimension_numbers<[0], [0], [1], [1], [0, 1, 1, 1], [], []>} : vector<6x16xf32>, vector<6x16xf32>, vector<16x16xf32> -> vector<16x16xf32>
    %277 = arith.addf %276, %3 : vector<16x16xf32>
    %cst_220 = arith.constant dense<0xFF800000> : vector<16xf32>
    %278 = vector.multi_reduction <maximumf>, %277, %cst_220 [1] : vector<16x16xf32> to vector<16xf32>
    %279 = vector.shape_cast %278 : vector<16xf32> to vector<16x1xf32>
    %280 = vector.broadcast %279 : vector<16x1xf32> to vector<16x16xf32>
    %281 = arith.subf %277, %280 : vector<16x16xf32>
    %282 = math.exp %281 : vector<16x16xf32>
    %cst_221 = arith.constant dense<0.000000e+00> : vector<16xf32>
    %283 = vector.multi_reduction <add>, %282, %cst_221 [1] : vector<16x16xf32> to vector<16xf32>
    %284 = vector.shape_cast %283 : vector<16xf32> to vector<16x1xf32>
    %285 = vector.broadcast %284 : vector<16x1xf32> to vector<16x16xf32>
    %286 = arith.divf %282, %285 : vector<16x16xf32>
    %cst_222 = arith.constant dense<0.000000e+00> : vector<6x16xf32>
    %287 = tpu.matmul %275, %286, %cst_222 {dimension_numbers = #tpu.dot_dimension_numbers<[1], [1], [0], [0], [0, 0, 1, 0], [], []>} : vector<6x16xf32>, vector<16x16xf32>, vector<6x16xf32> -> vector<6x16xf32>
    %c7_223 = arith.constant 7 : index
    %c96_224 = arith.constant 96 : index
    %288 = vector.load %arg3[%c7_223, %c96_224] : memref<28x128xf32, #tpu.memory_space<vmem>>, vector<6x16xf32>
    tpu.vector_store %arg3[%c7_223, %c96_224], %287 {strides = array<i32>} : memref<28x128xf32, #tpu.memory_space<vmem>>, vector<6x16xf32>,
    %c31 = arith.constant 31 : index
    %c0_225 = arith.constant 0 : index
    %c0_226 = arith.constant 0 : index
    %c0_227 = arith.constant 0 : index
    %289 = vector.load %arg1[%c31, %c0_225, %c0_226, %c0_227] : memref<96x1x8x16xf32, #tpu.memory_space<vmem>>, vector<1x1x6x16xf32>
    %290 = vector.shape_cast %289 : vector<1x1x6x16xf32> to vector<6x16xf32>
    %c39 = arith.constant 39 : index
    %c0_228 = arith.constant 0 : index
    %c0_229 = arith.constant 0 : index
    %c0_230 = arith.constant 0 : index
    %291 = vector.load %arg1[%c39, %c0_228, %c0_229, %c0_230] : memref<96x1x8x16xf32, #tpu.memory_space<vmem>>, vector<1x1x6x16xf32>
    %292 = vector.shape_cast %291 : vector<1x1x6x16xf32> to vector<6x16xf32>
    %c47 = arith.constant 47 : index
    %c0_231 = arith.constant 0 : index
    %c0_232 = arith.constant 0 : index
    %c0_233 = arith.constant 0 : index
    %293 = vector.load %arg1[%c47, %c0_231, %c0_232, %c0_233] : memref<96x1x8x16xf32, #tpu.memory_space<vmem>>, vector<1x1x6x16xf32>
    %294 = vector.shape_cast %293 : vector<1x1x6x16xf32> to vector<6x16xf32>
    %cst_234 = arith.constant dense<0.000000e+00> : vector<16x16xf32>
    %295 = tpu.matmul %290, %292, %cst_234 {dimension_numbers = #tpu.dot_dimension_numbers<[0], [0], [1], [1], [0, 1, 1, 1], [], []>} : vector<6x16xf32>, vector<6x16xf32>, vector<16x16xf32> -> vector<16x16xf32>
    %296 = arith.addf %295, %3 : vector<16x16xf32>
    %cst_235 = arith.constant dense<0xFF800000> : vector<16xf32>
    %297 = vector.multi_reduction <maximumf>, %296, %cst_235 [1] : vector<16x16xf32> to vector<16xf32>
    %298 = vector.shape_cast %297 : vector<16xf32> to vector<16x1xf32>
    %299 = vector.broadcast %298 : vector<16x1xf32> to vector<16x16xf32>
    %300 = arith.subf %296, %299 : vector<16x16xf32>
    %301 = math.exp %300 : vector<16x16xf32>
    %cst_236 = arith.constant dense<0.000000e+00> : vector<16xf32>
    %302 = vector.multi_reduction <add>, %301, %cst_236 [1] : vector<16x16xf32> to vector<16xf32>
    %303 = vector.shape_cast %302 : vector<16xf32> to vector<16x1xf32>
    %304 = vector.broadcast %303 : vector<16x1xf32> to vector<16x16xf32>
    %305 = arith.divf %301, %304 : vector<16x16xf32>
    %cst_237 = arith.constant dense<0.000000e+00> : vector<6x16xf32>
    %306 = tpu.matmul %294, %305, %cst_237 {dimension_numbers = #tpu.dot_dimension_numbers<[1], [1], [0], [0], [0, 0, 1, 0], [], []>} : vector<6x16xf32>, vector<16x16xf32>, vector<6x16xf32> -> vector<6x16xf32>
    %c7_238 = arith.constant 7 : index
    %c112_239 = arith.constant 112 : index
    %307 = vector.load %arg3[%c7_238, %c112_239] : memref<28x128xf32, #tpu.memory_space<vmem>>, vector<6x16xf32>
    tpu.vector_store %arg3[%c7_238, %c112_239], %306 {strides = array<i32>} : memref<28x128xf32, #tpu.memory_space<vmem>>, vector<6x16xf32>,
    %c48_240 = arith.constant 48 : index
    %c0_241 = arith.constant 0 : index
    %c0_242 = arith.constant 0 : index
    %c0_243 = arith.constant 0 : index
    %308 = vector.load %arg1[%c48_240, %c0_241, %c0_242, %c0_243] : memref<96x1x8x16xf32, #tpu.memory_space<vmem>>, vector<1x1x3x16xf32>
    %309 = vector.shape_cast %308 : vector<1x1x3x16xf32> to vector<3x16xf32>
    %c56 = arith.constant 56 : index
    %c0_244 = arith.constant 0 : index
    %c0_245 = arith.constant 0 : index
    %c0_246 = arith.constant 0 : index
    %310 = vector.load %arg1[%c56, %c0_244, %c0_245, %c0_246] : memref<96x1x8x16xf32, #tpu.memory_space<vmem>>, vector<1x1x3x16xf32>
    %311 = vector.shape_cast %310 : vector<1x1x3x16xf32> to vector<3x16xf32>
    %c64_247 = arith.constant 64 : index
    %c0_248 = arith.constant 0 : index
    %c0_249 = arith.constant 0 : index
    %c0_250 = arith.constant 0 : index
    %312 = vector.load %arg1[%c64_247, %c0_248, %c0_249, %c0_250] : memref<96x1x8x16xf32, #tpu.memory_space<vmem>>, vector<1x1x3x16xf32>
    %313 = vector.shape_cast %312 : vector<1x1x3x16xf32> to vector<3x16xf32>
    %cst_251 = arith.constant dense<0.000000e+00> : vector<16x16xf32>
    %314 = tpu.matmul %309, %311, %cst_251 {dimension_numbers = #tpu.dot_dimension_numbers<[0], [0], [1], [1], [0, 1, 1, 1], [], []>} : vector<3x16xf32>, vector<3x16xf32>, vector<16x16xf32> -> vector<16x16xf32>
    %315 = arith.addf %314, %3 : vector<16x16xf32>
    %cst_252 = arith.constant dense<0xFF800000> : vector<16xf32>
    %316 = vector.multi_reduction <maximumf>, %315, %cst_252 [1] : vector<16x16xf32> to vector<16xf32>
    %317 = vector.shape_cast %316 : vector<16xf32> to vector<16x1xf32>
    %318 = vector.broadcast %317 : vector<16x1xf32> to vector<16x16xf32>
    %319 = arith.subf %315, %318 : vector<16x16xf32>
    %320 = math.exp %319 : vector<16x16xf32>
    %cst_253 = arith.constant dense<0.000000e+00> : vector<16xf32>
    %321 = vector.multi_reduction <add>, %320, %cst_253 [1] : vector<16x16xf32> to vector<16xf32>
    %322 = vector.shape_cast %321 : vector<16xf32> to vector<16x1xf32>
    %323 = vector.broadcast %322 : vector<16x1xf32> to vector<16x16xf32>
    %324 = arith.divf %320, %323 : vector<16x16xf32>
    %cst_254 = arith.constant dense<0.000000e+00> : vector<3x16xf32>
    %325 = tpu.matmul %313, %324, %cst_254 {dimension_numbers = #tpu.dot_dimension_numbers<[1], [1], [0], [0], [0, 0, 1, 0], [], []>} : vector<3x16xf32>, vector<16x16xf32>, vector<3x16xf32> -> vector<3x16xf32>
    %c14_255 = arith.constant 14 : index
    %c0_256 = arith.constant 0 : index
    %326 = vector.load %arg3[%c14_255, %c0_256] : memref<28x128xf32, #tpu.memory_space<vmem>>, vector<3x16xf32>
    tpu.vector_store %arg3[%c14_255, %c0_256], %325 {strides = array<i32>} : memref<28x128xf32, #tpu.memory_space<vmem>>, vector<3x16xf32>,
    %c49 = arith.constant 49 : index
    %c0_257 = arith.constant 0 : index
    %c0_258 = arith.constant 0 : index
    %c0_259 = arith.constant 0 : index
    %327 = vector.load %arg1[%c49, %c0_257, %c0_258, %c0_259] : memref<96x1x8x16xf32, #tpu.memory_space<vmem>>, vector<1x1x3x16xf32>
    %328 = vector.shape_cast %327 : vector<1x1x3x16xf32> to vector<3x16xf32>
    %c57 = arith.constant 57 : index
    %c0_260 = arith.constant 0 : index
    %c0_261 = arith.constant 0 : index
    %c0_262 = arith.constant 0 : index
    %329 = vector.load %arg1[%c57, %c0_260, %c0_261, %c0_262] : memref<96x1x8x16xf32, #tpu.memory_space<vmem>>, vector<1x1x3x16xf32>
    %330 = vector.shape_cast %329 : vector<1x1x3x16xf32> to vector<3x16xf32>
    %c65 = arith.constant 65 : index
    %c0_263 = arith.constant 0 : index
    %c0_264 = arith.constant 0 : index
    %c0_265 = arith.constant 0 : index
    %331 = vector.load %arg1[%c65, %c0_263, %c0_264, %c0_265] : memref<96x1x8x16xf32, #tpu.memory_space<vmem>>, vector<1x1x3x16xf32>
    %332 = vector.shape_cast %331 : vector<1x1x3x16xf32> to vector<3x16xf32>
    %cst_266 = arith.constant dense<0.000000e+00> : vector<16x16xf32>
    %333 = tpu.matmul %328, %330, %cst_266 {dimension_numbers = #tpu.dot_dimension_numbers<[0], [0], [1], [1], [0, 1, 1, 1], [], []>} : vector<3x16xf32>, vector<3x16xf32>, vector<16x16xf32> -> vector<16x16xf32>
    %334 = arith.addf %333, %3 : vector<16x16xf32>
    %cst_267 = arith.constant dense<0xFF800000> : vector<16xf32>
    %335 = vector.multi_reduction <maximumf>, %334, %cst_267 [1] : vector<16x16xf32> to vector<16xf32>
    %336 = vector.shape_cast %335 : vector<16xf32> to vector<16x1xf32>
    %337 = vector.broadcast %336 : vector<16x1xf32> to vector<16x16xf32>
    %338 = arith.subf %334, %337 : vector<16x16xf32>
    %339 = math.exp %338 : vector<16x16xf32>
    %cst_268 = arith.constant dense<0.000000e+00> : vector<16xf32>
    %340 = vector.multi_reduction <add>, %339, %cst_268 [1] : vector<16x16xf32> to vector<16xf32>
    %341 = vector.shape_cast %340 : vector<16xf32> to vector<16x1xf32>
    %342 = vector.broadcast %341 : vector<16x1xf32> to vector<16x16xf32>
    %343 = arith.divf %339, %342 : vector<16x16xf32>
    %cst_269 = arith.constant dense<0.000000e+00> : vector<3x16xf32>
    %344 = tpu.matmul %332, %343, %cst_269 {dimension_numbers = #tpu.dot_dimension_numbers<[1], [1], [0], [0], [0, 0, 1, 0], [], []>} : vector<3x16xf32>, vector<16x16xf32>, vector<3x16xf32> -> vector<3x16xf32>
    %c14_270 = arith.constant 14 : index
    %c16_271 = arith.constant 16 : index
    %345 = vector.load %arg3[%c14_270, %c16_271] : memref<28x128xf32, #tpu.memory_space<vmem>>, vector<3x16xf32>
    tpu.vector_store %arg3[%c14_270, %c16_271], %344 {strides = array<i32>} : memref<28x128xf32, #tpu.memory_space<vmem>>, vector<3x16xf32>,
    %c50 = arith.constant 50 : index
    %c0_272 = arith.constant 0 : index
    %c0_273 = arith.constant 0 : index
    %c0_274 = arith.constant 0 : index
    %346 = vector.load %arg1[%c50, %c0_272, %c0_273, %c0_274] : memref<96x1x8x16xf32, #tpu.memory_space<vmem>>, vector<1x1x3x16xf32>
    %347 = vector.shape_cast %346 : vector<1x1x3x16xf32> to vector<3x16xf32>
    %c58 = arith.constant 58 : index
    %c0_275 = arith.constant 0 : index
    %c0_276 = arith.constant 0 : index
    %c0_277 = arith.constant 0 : index
    %348 = vector.load %arg1[%c58, %c0_275, %c0_276, %c0_277] : memref<96x1x8x16xf32, #tpu.memory_space<vmem>>, vector<1x1x3x16xf32>
    %349 = vector.shape_cast %348 : vector<1x1x3x16xf32> to vector<3x16xf32>
    %c66 = arith.constant 66 : index
    %c0_278 = arith.constant 0 : index
    %c0_279 = arith.constant 0 : index
    %c0_280 = arith.constant 0 : index
    %350 = vector.load %arg1[%c66, %c0_278, %c0_279, %c0_280] : memref<96x1x8x16xf32, #tpu.memory_space<vmem>>, vector<1x1x3x16xf32>
    %351 = vector.shape_cast %350 : vector<1x1x3x16xf32> to vector<3x16xf32>
    %cst_281 = arith.constant dense<0.000000e+00> : vector<16x16xf32>
    %352 = tpu.matmul %347, %349, %cst_281 {dimension_numbers = #tpu.dot_dimension_numbers<[0], [0], [1], [1], [0, 1, 1, 1], [], []>} : vector<3x16xf32>, vector<3x16xf32>, vector<16x16xf32> -> vector<16x16xf32>
    %353 = arith.addf %352, %3 : vector<16x16xf32>
    %cst_282 = arith.constant dense<0xFF800000> : vector<16xf32>
    %354 = vector.multi_reduction <maximumf>, %353, %cst_282 [1] : vector<16x16xf32> to vector<16xf32>
    %355 = vector.shape_cast %354 : vector<16xf32> to vector<16x1xf32>
    %356 = vector.broadcast %355 : vector<16x1xf32> to vector<16x16xf32>
    %357 = arith.subf %353, %356 : vector<16x16xf32>
    %358 = math.exp %357 : vector<16x16xf32>
    %cst_283 = arith.constant dense<0.000000e+00> : vector<16xf32>
    %359 = vector.multi_reduction <add>, %358, %cst_283 [1] : vector<16x16xf32> to vector<16xf32>
    %360 = vector.shape_cast %359 : vector<16xf32> to vector<16x1xf32>
    %361 = vector.broadcast %360 : vector<16x1xf32> to vector<16x16xf32>
    %362 = arith.divf %358, %361 : vector<16x16xf32>
    %cst_284 = arith.constant dense<0.000000e+00> : vector<3x16xf32>
    %363 = tpu.matmul %351, %362, %cst_284 {dimension_numbers = #tpu.dot_dimension_numbers<[1], [1], [0], [0], [0, 0, 1, 0], [], []>} : vector<3x16xf32>, vector<16x16xf32>, vector<3x16xf32> -> vector<3x16xf32>
    %c14_285 = arith.constant 14 : index
    %c32_286 = arith.constant 32 : index
    %364 = vector.load %arg3[%c14_285, %c32_286] : memref<28x128xf32, #tpu.memory_space<vmem>>, vector<3x16xf32>
    tpu.vector_store %arg3[%c14_285, %c32_286], %363 {strides = array<i32>} : memref<28x128xf32, #tpu.memory_space<vmem>>, vector<3x16xf32>,
    %c51 = arith.constant 51 : index
    %c0_287 = arith.constant 0 : index
    %c0_288 = arith.constant 0 : index
    %c0_289 = arith.constant 0 : index
    %365 = vector.load %arg1[%c51, %c0_287, %c0_288, %c0_289] : memref<96x1x8x16xf32, #tpu.memory_space<vmem>>, vector<1x1x3x16xf32>
    %366 = vector.shape_cast %365 : vector<1x1x3x16xf32> to vector<3x16xf32>
    %c59 = arith.constant 59 : index
    %c0_290 = arith.constant 0 : index
    %c0_291 = arith.constant 0 : index
    %c0_292 = arith.constant 0 : index
    %367 = vector.load %arg1[%c59, %c0_290, %c0_291, %c0_292] : memref<96x1x8x16xf32, #tpu.memory_space<vmem>>, vector<1x1x3x16xf32>
    %368 = vector.shape_cast %367 : vector<1x1x3x16xf32> to vector<3x16xf32>
    %c67 = arith.constant 67 : index
    %c0_293 = arith.constant 0 : index
    %c0_294 = arith.constant 0 : index
    %c0_295 = arith.constant 0 : index
    %369 = vector.load %arg1[%c67, %c0_293, %c0_294, %c0_295] : memref<96x1x8x16xf32, #tpu.memory_space<vmem>>, vector<1x1x3x16xf32>
    %370 = vector.shape_cast %369 : vector<1x1x3x16xf32> to vector<3x16xf32>
    %cst_296 = arith.constant dense<0.000000e+00> : vector<16x16xf32>
    %371 = tpu.matmul %366, %368, %cst_296 {dimension_numbers = #tpu.dot_dimension_numbers<[0], [0], [1], [1], [0, 1, 1, 1], [], []>} : vector<3x16xf32>, vector<3x16xf32>, vector<16x16xf32> -> vector<16x16xf32>
    %372 = arith.addf %371, %3 : vector<16x16xf32>
    %cst_297 = arith.constant dense<0xFF800000> : vector<16xf32>
    %373 = vector.multi_reduction <maximumf>, %372, %cst_297 [1] : vector<16x16xf32> to vector<16xf32>
    %374 = vector.shape_cast %373 : vector<16xf32> to vector<16x1xf32>
    %375 = vector.broadcast %374 : vector<16x1xf32> to vector<16x16xf32>
    %376 = arith.subf %372, %375 : vector<16x16xf32>
    %377 = math.exp %376 : vector<16x16xf32>
    %cst_298 = arith.constant dense<0.000000e+00> : vector<16xf32>
    %378 = vector.multi_reduction <add>, %377, %cst_298 [1] : vector<16x16xf32> to vector<16xf32>
    %379 = vector.shape_cast %378 : vector<16xf32> to vector<16x1xf32>
    %380 = vector.broadcast %379 : vector<16x1xf32> to vector<16x16xf32>
    %381 = arith.divf %377, %380 : vector<16x16xf32>
    %cst_299 = arith.constant dense<0.000000e+00> : vector<3x16xf32>
    %382 = tpu.matmul %370, %381, %cst_299 {dimension_numbers = #tpu.dot_dimension_numbers<[1], [1], [0], [0], [0, 0, 1, 0], [], []>} : vector<3x16xf32>, vector<16x16xf32>, vector<3x16xf32> -> vector<3x16xf32>
    %c14_300 = arith.constant 14 : index
    %c48_301 = arith.constant 48 : index
    %383 = vector.load %arg3[%c14_300, %c48_301] : memref<28x128xf32, #tpu.memory_space<vmem>>, vector<3x16xf32>
    tpu.vector_store %arg3[%c14_300, %c48_301], %382 {strides = array<i32>} : memref<28x128xf32, #tpu.memory_space<vmem>>, vector<3x16xf32>,
    %c52 = arith.constant 52 : index
    %c0_302 = arith.constant 0 : index
    %c0_303 = arith.constant 0 : index
    %c0_304 = arith.constant 0 : index
    %384 = vector.load %arg1[%c52, %c0_302, %c0_303, %c0_304] : memref<96x1x8x16xf32, #tpu.memory_space<vmem>>, vector<1x1x3x16xf32>
    %385 = vector.shape_cast %384 : vector<1x1x3x16xf32> to vector<3x16xf32>
    %c60 = arith.constant 60 : index
    %c0_305 = arith.constant 0 : index
    %c0_306 = arith.constant 0 : index
    %c0_307 = arith.constant 0 : index
    %386 = vector.load %arg1[%c60, %c0_305, %c0_306, %c0_307] : memref<96x1x8x16xf32, #tpu.memory_space<vmem>>, vector<1x1x3x16xf32>
    %387 = vector.shape_cast %386 : vector<1x1x3x16xf32> to vector<3x16xf32>
    %c68 = arith.constant 68 : index
    %c0_308 = arith.constant 0 : index
    %c0_309 = arith.constant 0 : index
    %c0_310 = arith.constant 0 : index
    %388 = vector.load %arg1[%c68, %c0_308, %c0_309, %c0_310] : memref<96x1x8x16xf32, #tpu.memory_space<vmem>>, vector<1x1x3x16xf32>
    %389 = vector.shape_cast %388 : vector<1x1x3x16xf32> to vector<3x16xf32>
    %cst_311 = arith.constant dense<0.000000e+00> : vector<16x16xf32>
    %390 = tpu.matmul %385, %387, %cst_311 {dimension_numbers = #tpu.dot_dimension_numbers<[0], [0], [1], [1], [0, 1, 1, 1], [], []>} : vector<3x16xf32>, vector<3x16xf32>, vector<16x16xf32> -> vector<16x16xf32>
    %391 = arith.addf %390, %3 : vector<16x16xf32>
    %cst_312 = arith.constant dense<0xFF800000> : vector<16xf32>
    %392 = vector.multi_reduction <maximumf>, %391, %cst_312 [1] : vector<16x16xf32> to vector<16xf32>
    %393 = vector.shape_cast %392 : vector<16xf32> to vector<16x1xf32>
    %394 = vector.broadcast %393 : vector<16x1xf32> to vector<16x16xf32>
    %395 = arith.subf %391, %394 : vector<16x16xf32>
    %396 = math.exp %395 : vector<16x16xf32>
    %cst_313 = arith.constant dense<0.000000e+00> : vector<16xf32>
    %397 = vector.multi_reduction <add>, %396, %cst_313 [1] : vector<16x16xf32> to vector<16xf32>
    %398 = vector.shape_cast %397 : vector<16xf32> to vector<16x1xf32>
    %399 = vector.broadcast %398 : vector<16x1xf32> to vector<16x16xf32>
    %400 = arith.divf %396, %399 : vector<16x16xf32>
    %cst_314 = arith.constant dense<0.000000e+00> : vector<3x16xf32>
    %401 = tpu.matmul %389, %400, %cst_314 {dimension_numbers = #tpu.dot_dimension_numbers<[1], [1], [0], [0], [0, 0, 1, 0], [], []>} : vector<3x16xf32>, vector<16x16xf32>, vector<3x16xf32> -> vector<3x16xf32>
    %c14_315 = arith.constant 14 : index
    %c64_316 = arith.constant 64 : index
    %402 = vector.load %arg3[%c14_315, %c64_316] : memref<28x128xf32, #tpu.memory_space<vmem>>, vector<3x16xf32>
    tpu.vector_store %arg3[%c14_315, %c64_316], %401 {strides = array<i32>} : memref<28x128xf32, #tpu.memory_space<vmem>>, vector<3x16xf32>,
    %c53 = arith.constant 53 : index
    %c0_317 = arith.constant 0 : index
    %c0_318 = arith.constant 0 : index
    %c0_319 = arith.constant 0 : index
    %403 = vector.load %arg1[%c53, %c0_317, %c0_318, %c0_319] : memref<96x1x8x16xf32, #tpu.memory_space<vmem>>, vector<1x1x3x16xf32>
    %404 = vector.shape_cast %403 : vector<1x1x3x16xf32> to vector<3x16xf32>
    %c61 = arith.constant 61 : index
    %c0_320 = arith.constant 0 : index
    %c0_321 = arith.constant 0 : index
    %c0_322 = arith.constant 0 : index
    %405 = vector.load %arg1[%c61, %c0_320, %c0_321, %c0_322] : memref<96x1x8x16xf32, #tpu.memory_space<vmem>>, vector<1x1x3x16xf32>
    %406 = vector.shape_cast %405 : vector<1x1x3x16xf32> to vector<3x16xf32>
    %c69 = arith.constant 69 : index
    %c0_323 = arith.constant 0 : index
    %c0_324 = arith.constant 0 : index
    %c0_325 = arith.constant 0 : index
    %407 = vector.load %arg1[%c69, %c0_323, %c0_324, %c0_325] : memref<96x1x8x16xf32, #tpu.memory_space<vmem>>, vector<1x1x3x16xf32>
    %408 = vector.shape_cast %407 : vector<1x1x3x16xf32> to vector<3x16xf32>
    %cst_326 = arith.constant dense<0.000000e+00> : vector<16x16xf32>
    %409 = tpu.matmul %404, %406, %cst_326 {dimension_numbers = #tpu.dot_dimension_numbers<[0], [0], [1], [1], [0, 1, 1, 1], [], []>} : vector<3x16xf32>, vector<3x16xf32>, vector<16x16xf32> -> vector<16x16xf32>
    %410 = arith.addf %409, %3 : vector<16x16xf32>
    %cst_327 = arith.constant dense<0xFF800000> : vector<16xf32>
    %411 = vector.multi_reduction <maximumf>, %410, %cst_327 [1] : vector<16x16xf32> to vector<16xf32>
    %412 = vector.shape_cast %411 : vector<16xf32> to vector<16x1xf32>
    %413 = vector.broadcast %412 : vector<16x1xf32> to vector<16x16xf32>
    %414 = arith.subf %410, %413 : vector<16x16xf32>
    %415 = math.exp %414 : vector<16x16xf32>
    %cst_328 = arith.constant dense<0.000000e+00> : vector<16xf32>
    %416 = vector.multi_reduction <add>, %415, %cst_328 [1] : vector<16x16xf32> to vector<16xf32>
    %417 = vector.shape_cast %416 : vector<16xf32> to vector<16x1xf32>
    %418 = vector.broadcast %417 : vector<16x1xf32> to vector<16x16xf32>
    %419 = arith.divf %415, %418 : vector<16x16xf32>
    %cst_329 = arith.constant dense<0.000000e+00> : vector<3x16xf32>
    %420 = tpu.matmul %408, %419, %cst_329 {dimension_numbers = #tpu.dot_dimension_numbers<[1], [1], [0], [0], [0, 0, 1, 0], [], []>} : vector<3x16xf32>, vector<16x16xf32>, vector<3x16xf32> -> vector<3x16xf32>
    %c14_330 = arith.constant 14 : index
    %c80_331 = arith.constant 80 : index
    %421 = vector.load %arg3[%c14_330, %c80_331] : memref<28x128xf32, #tpu.memory_space<vmem>>, vector<3x16xf32>
    tpu.vector_store %arg3[%c14_330, %c80_331], %420 {strides = array<i32>} : memref<28x128xf32, #tpu.memory_space<vmem>>, vector<3x16xf32>,
    %c54 = arith.constant 54 : index
    %c0_332 = arith.constant 0 : index
    %c0_333 = arith.constant 0 : index
    %c0_334 = arith.constant 0 : index
    %422 = vector.load %arg1[%c54, %c0_332, %c0_333, %c0_334] : memref<96x1x8x16xf32, #tpu.memory_space<vmem>>, vector<1x1x3x16xf32>
    %423 = vector.shape_cast %422 : vector<1x1x3x16xf32> to vector<3x16xf32>
    %c62 = arith.constant 62 : index
    %c0_335 = arith.constant 0 : index
    %c0_336 = arith.constant 0 : index
    %c0_337 = arith.constant 0 : index
    %424 = vector.load %arg1[%c62, %c0_335, %c0_336, %c0_337] : memref<96x1x8x16xf32, #tpu.memory_space<vmem>>, vector<1x1x3x16xf32>
    %425 = vector.shape_cast %424 : vector<1x1x3x16xf32> to vector<3x16xf32>
    %c70 = arith.constant 70 : index
    %c0_338 = arith.constant 0 : index
    %c0_339 = arith.constant 0 : index
    %c0_340 = arith.constant 0 : index
    %426 = vector.load %arg1[%c70, %c0_338, %c0_339, %c0_340] : memref<96x1x8x16xf32, #tpu.memory_space<vmem>>, vector<1x1x3x16xf32>
    %427 = vector.shape_cast %426 : vector<1x1x3x16xf32> to vector<3x16xf32>
    %cst_341 = arith.constant dense<0.000000e+00> : vector<16x16xf32>
    %428 = tpu.matmul %423, %425, %cst_341 {dimension_numbers = #tpu.dot_dimension_numbers<[0], [0], [1], [1], [0, 1, 1, 1], [], []>} : vector<3x16xf32>, vector<3x16xf32>, vector<16x16xf32> -> vector<16x16xf32>
    %429 = arith.addf %428, %3 : vector<16x16xf32>
    %cst_342 = arith.constant dense<0xFF800000> : vector<16xf32>
    %430 = vector.multi_reduction <maximumf>, %429, %cst_342 [1] : vector<16x16xf32> to vector<16xf32>
    %431 = vector.shape_cast %430 : vector<16xf32> to vector<16x1xf32>
    %432 = vector.broadcast %431 : vector<16x1xf32> to vector<16x16xf32>
    %433 = arith.subf %429, %432 : vector<16x16xf32>
    %434 = math.exp %433 : vector<16x16xf32>
    %cst_343 = arith.constant dense<0.000000e+00> : vector<16xf32>
    %435 = vector.multi_reduction <add>, %434, %cst_343 [1] : vector<16x16xf32> to vector<16xf32>
    %436 = vector.shape_cast %435 : vector<16xf32> to vector<16x1xf32>
    %437 = vector.broadcast %436 : vector<16x1xf32> to vector<16x16xf32>
    %438 = arith.divf %434, %437 : vector<16x16xf32>
    %cst_344 = arith.constant dense<0.000000e+00> : vector<3x16xf32>
    %439 = tpu.matmul %427, %438, %cst_344 {dimension_numbers = #tpu.dot_dimension_numbers<[1], [1], [0], [0], [0, 0, 1, 0], [], []>} : vector<3x16xf32>, vector<16x16xf32>, vector<3x16xf32> -> vector<3x16xf32>
    %c14_345 = arith.constant 14 : index
    %c96_346 = arith.constant 96 : index
    %440 = vector.load %arg3[%c14_345, %c96_346] : memref<28x128xf32, #tpu.memory_space<vmem>>, vector<3x16xf32>
    tpu.vector_store %arg3[%c14_345, %c96_346], %439 {strides = array<i32>} : memref<28x128xf32, #tpu.memory_space<vmem>>, vector<3x16xf32>,
    %c55 = arith.constant 55 : index
    %c0_347 = arith.constant 0 : index
    %c0_348 = arith.constant 0 : index
    %c0_349 = arith.constant 0 : index
    %441 = vector.load %arg1[%c55, %c0_347, %c0_348, %c0_349] : memref<96x1x8x16xf32, #tpu.memory_space<vmem>>, vector<1x1x3x16xf32>
    %442 = vector.shape_cast %441 : vector<1x1x3x16xf32> to vector<3x16xf32>
    %c63 = arith.constant 63 : index
    %c0_350 = arith.constant 0 : index
    %c0_351 = arith.constant 0 : index
    %c0_352 = arith.constant 0 : index
    %443 = vector.load %arg1[%c63, %c0_350, %c0_351, %c0_352] : memref<96x1x8x16xf32, #tpu.memory_space<vmem>>, vector<1x1x3x16xf32>
    %444 = vector.shape_cast %443 : vector<1x1x3x16xf32> to vector<3x16xf32>
    %c71 = arith.constant 71 : index
    %c0_353 = arith.constant 0 : index
    %c0_354 = arith.constant 0 : index
    %c0_355 = arith.constant 0 : index
    %445 = vector.load %arg1[%c71, %c0_353, %c0_354, %c0_355] : memref<96x1x8x16xf32, #tpu.memory_space<vmem>>, vector<1x1x3x16xf32>
    %446 = vector.shape_cast %445 : vector<1x1x3x16xf32> to vector<3x16xf32>
    %cst_356 = arith.constant dense<0.000000e+00> : vector<16x16xf32>
    %447 = tpu.matmul %442, %444, %cst_356 {dimension_numbers = #tpu.dot_dimension_numbers<[0], [0], [1], [1], [0, 1, 1, 1], [], []>} : vector<3x16xf32>, vector<3x16xf32>, vector<16x16xf32> -> vector<16x16xf32>
    %448 = arith.addf %447, %3 : vector<16x16xf32>
    %cst_357 = arith.constant dense<0xFF800000> : vector<16xf32>
    %449 = vector.multi_reduction <maximumf>, %448, %cst_357 [1] : vector<16x16xf32> to vector<16xf32>
    %450 = vector.shape_cast %449 : vector<16xf32> to vector<16x1xf32>
    %451 = vector.broadcast %450 : vector<16x1xf32> to vector<16x16xf32>
    %452 = arith.subf %448, %451 : vector<16x16xf32>
    %453 = math.exp %452 : vector<16x16xf32>
    %cst_358 = arith.constant dense<0.000000e+00> : vector<16xf32>
    %454 = vector.multi_reduction <add>, %453, %cst_358 [1] : vector<16x16xf32> to vector<16xf32>
    %455 = vector.shape_cast %454 : vector<16xf32> to vector<16x1xf32>
    %456 = vector.broadcast %455 : vector<16x1xf32> to vector<16x16xf32>
    %457 = arith.divf %453, %456 : vector<16x16xf32>
    %cst_359 = arith.constant dense<0.000000e+00> : vector<3x16xf32>
    %458 = tpu.matmul %446, %457, %cst_359 {dimension_numbers = #tpu.dot_dimension_numbers<[1], [1], [0], [0], [0, 0, 1, 0], [], []>} : vector<3x16xf32>, vector<16x16xf32>, vector<3x16xf32> -> vector<3x16xf32>
    %c14_360 = arith.constant 14 : index
    %c112_361 = arith.constant 112 : index
    %459 = vector.load %arg3[%c14_360, %c112_361] : memref<28x128xf32, #tpu.memory_space<vmem>>, vector<3x16xf32>
    tpu.vector_store %arg3[%c14_360, %c112_361], %458 {strides = array<i32>} : memref<28x128xf32, #tpu.memory_space<vmem>>, vector<3x16xf32>,
    %c72 = arith.constant 72 : index
    %c0_362 = arith.constant 0 : index
    %c0_363 = arith.constant 0 : index
    %c0_364 = arith.constant 0 : index
    %460 = vector.load %arg1[%c72, %c0_362, %c0_363, %c0_364] : memref<96x1x8x16xf32, #tpu.memory_space<vmem>>, vector<1x1x2x16xf32>
    %461 = vector.shape_cast %460 : vector<1x1x2x16xf32> to vector<2x16xf32>
    %c80_365 = arith.constant 80 : index
    %c0_366 = arith.constant 0 : index
    %c0_367 = arith.constant 0 : index
    %c0_368 = arith.constant 0 : index
    %462 = vector.load %arg1[%c80_365, %c0_366, %c0_367, %c0_368] : memref<96x1x8x16xf32, #tpu.memory_space<vmem>>, vector<1x1x2x16xf32>
    %463 = vector.shape_cast %462 : vector<1x1x2x16xf32> to vector<2x16xf32>
    %c88 = arith.constant 88 : index
    %c0_369 = arith.constant 0 : index
    %c0_370 = arith.constant 0 : index
    %c0_371 = arith.constant 0 : index
    %464 = vector.load %arg1[%c88, %c0_369, %c0_370, %c0_371] : memref<96x1x8x16xf32, #tpu.memory_space<vmem>>, vector<1x1x2x16xf32>
    %465 = vector.shape_cast %464 : vector<1x1x2x16xf32> to vector<2x16xf32>
    %cst_372 = arith.constant dense<0.000000e+00> : vector<16x16xf32>
    %466 = tpu.matmul %461, %463, %cst_372 {dimension_numbers = #tpu.dot_dimension_numbers<[0], [0], [1], [1], [0, 1, 1, 1], [], []>} : vector<2x16xf32>, vector<2x16xf32>, vector<16x16xf32> -> vector<16x16xf32>
    %467 = arith.addf %466, %3 : vector<16x16xf32>
    %cst_373 = arith.constant dense<0xFF800000> : vector<16xf32>
    %468 = vector.multi_reduction <maximumf>, %467, %cst_373 [1] : vector<16x16xf32> to vector<16xf32>
    %469 = vector.shape_cast %468 : vector<16xf32> to vector<16x1xf32>
    %470 = vector.broadcast %469 : vector<16x1xf32> to vector<16x16xf32>
    %471 = arith.subf %467, %470 : vector<16x16xf32>
    %472 = math.exp %471 : vector<16x16xf32>
    %cst_374 = arith.constant dense<0.000000e+00> : vector<16xf32>
    %473 = vector.multi_reduction <add>, %472, %cst_374 [1] : vector<16x16xf32> to vector<16xf32>
    %474 = vector.shape_cast %473 : vector<16xf32> to vector<16x1xf32>
    %475 = vector.broadcast %474 : vector<16x1xf32> to vector<16x16xf32>
    %476 = arith.divf %472, %475 : vector<16x16xf32>
    %cst_375 = arith.constant dense<0.000000e+00> : vector<2x16xf32>
    %477 = tpu.matmul %465, %476, %cst_375 {dimension_numbers = #tpu.dot_dimension_numbers<[1], [1], [0], [0], [0, 0, 1, 0], [], []>} : vector<2x16xf32>, vector<16x16xf32>, vector<2x16xf32> -> vector<2x16xf32>
    %c21_376 = arith.constant 21 : index
    %c0_377 = arith.constant 0 : index
    %478 = vector.load %arg3[%c21_376, %c0_377] : memref<28x128xf32, #tpu.memory_space<vmem>>, vector<2x16xf32>
    tpu.vector_store %arg3[%c21_376, %c0_377], %477 {strides = array<i32>} : memref<28x128xf32, #tpu.memory_space<vmem>>, vector<2x16xf32>,
    %c73 = arith.constant 73 : index
    %c0_378 = arith.constant 0 : index
    %c0_379 = arith.constant 0 : index
    %c0_380 = arith.constant 0 : index
    %479 = vector.load %arg1[%c73, %c0_378, %c0_379, %c0_380] : memref<96x1x8x16xf32, #tpu.memory_space<vmem>>, vector<1x1x2x16xf32>
    %480 = vector.shape_cast %479 : vector<1x1x2x16xf32> to vector<2x16xf32>
    %c81 = arith.constant 81 : index
    %c0_381 = arith.constant 0 : index
    %c0_382 = arith.constant 0 : index
    %c0_383 = arith.constant 0 : index
    %481 = vector.load %arg1[%c81, %c0_381, %c0_382, %c0_383] : memref<96x1x8x16xf32, #tpu.memory_space<vmem>>, vector<1x1x2x16xf32>
    %482 = vector.shape_cast %481 : vector<1x1x2x16xf32> to vector<2x16xf32>
    %c89 = arith.constant 89 : index
    %c0_384 = arith.constant 0 : index
    %c0_385 = arith.constant 0 : index
    %c0_386 = arith.constant 0 : index
    %483 = vector.load %arg1[%c89, %c0_384, %c0_385, %c0_386] : memref<96x1x8x16xf32, #tpu.memory_space<vmem>>, vector<1x1x2x16xf32>
    %484 = vector.shape_cast %483 : vector<1x1x2x16xf32> to vector<2x16xf32>
    %cst_387 = arith.constant dense<0.000000e+00> : vector<16x16xf32>
    %485 = tpu.matmul %480, %482, %cst_387 {dimension_numbers = #tpu.dot_dimension_numbers<[0], [0], [1], [1], [0, 1, 1, 1], [], []>} : vector<2x16xf32>, vector<2x16xf32>, vector<16x16xf32> -> vector<16x16xf32>
    %486 = arith.addf %485, %3 : vector<16x16xf32>
    %cst_388 = arith.constant dense<0xFF800000> : vector<16xf32>
    %487 = vector.multi_reduction <maximumf>, %486, %cst_388 [1] : vector<16x16xf32> to vector<16xf32>
    %488 = vector.shape_cast %487 : vector<16xf32> to vector<16x1xf32>
    %489 = vector.broadcast %488 : vector<16x1xf32> to vector<16x16xf32>
    %490 = arith.subf %486, %489 : vector<16x16xf32>
    %491 = math.exp %490 : vector<16x16xf32>
    %cst_389 = arith.constant dense<0.000000e+00> : vector<16xf32>
    %492 = vector.multi_reduction <add>, %491, %cst_389 [1] : vector<16x16xf32> to vector<16xf32>
    %493 = vector.shape_cast %492 : vector<16xf32> to vector<16x1xf32>
    %494 = vector.broadcast %493 : vector<16x1xf32> to vector<16x16xf32>
    %495 = arith.divf %491, %494 : vector<16x16xf32>
    %cst_390 = arith.constant dense<0.000000e+00> : vector<2x16xf32>
    %496 = tpu.matmul %484, %495, %cst_390 {dimension_numbers = #tpu.dot_dimension_numbers<[1], [1], [0], [0], [0, 0, 1, 0], [], []>} : vector<2x16xf32>, vector<16x16xf32>, vector<2x16xf32> -> vector<2x16xf32>
    %c21_391 = arith.constant 21 : index
    %c16_392 = arith.constant 16 : index
    %497 = vector.load %arg3[%c21_391, %c16_392] : memref<28x128xf32, #tpu.memory_space<vmem>>, vector<2x16xf32>
    tpu.vector_store %arg3[%c21_391, %c16_392], %496 {strides = array<i32>} : memref<28x128xf32, #tpu.memory_space<vmem>>, vector<2x16xf32>,
    %c74 = arith.constant 74 : index
    %c0_393 = arith.constant 0 : index
    %c0_394 = arith.constant 0 : index
    %c0_395 = arith.constant 0 : index
    %498 = vector.load %arg1[%c74, %c0_393, %c0_394, %c0_395] : memref<96x1x8x16xf32, #tpu.memory_space<vmem>>, vector<1x1x2x16xf32>
    %499 = vector.shape_cast %498 : vector<1x1x2x16xf32> to vector<2x16xf32>
    %c82 = arith.constant 82 : index
    %c0_396 = arith.constant 0 : index
    %c0_397 = arith.constant 0 : index
    %c0_398 = arith.constant 0 : index
    %500 = vector.load %arg1[%c82, %c0_396, %c0_397, %c0_398] : memref<96x1x8x16xf32, #tpu.memory_space<vmem>>, vector<1x1x2x16xf32>
    %501 = vector.shape_cast %500 : vector<1x1x2x16xf32> to vector<2x16xf32>
    %c90 = arith.constant 90 : index
    %c0_399 = arith.constant 0 : index
    %c0_400 = arith.constant 0 : index
    %c0_401 = arith.constant 0 : index
    %502 = vector.load %arg1[%c90, %c0_399, %c0_400, %c0_401] : memref<96x1x8x16xf32, #tpu.memory_space<vmem>>, vector<1x1x2x16xf32>
    %503 = vector.shape_cast %502 : vector<1x1x2x16xf32> to vector<2x16xf32>
    %cst_402 = arith.constant dense<0.000000e+00> : vector<16x16xf32>
    %504 = tpu.matmul %499, %501, %cst_402 {dimension_numbers = #tpu.dot_dimension_numbers<[0], [0], [1], [1], [0, 1, 1, 1], [], []>} : vector<2x16xf32>, vector<2x16xf32>, vector<16x16xf32> -> vector<16x16xf32>
    %505 = arith.addf %504, %3 : vector<16x16xf32>
    %cst_403 = arith.constant dense<0xFF800000> : vector<16xf32>
    %506 = vector.multi_reduction <maximumf>, %505, %cst_403 [1] : vector<16x16xf32> to vector<16xf32>
    %507 = vector.shape_cast %506 : vector<16xf32> to vector<16x1xf32>
    %508 = vector.broadcast %507 : vector<16x1xf32> to vector<16x16xf32>
    %509 = arith.subf %505, %508 : vector<16x16xf32>
    %510 = math.exp %509 : vector<16x16xf32>
    %cst_404 = arith.constant dense<0.000000e+00> : vector<16xf32>
    %511 = vector.multi_reduction <add>, %510, %cst_404 [1] : vector<16x16xf32> to vector<16xf32>
    %512 = vector.shape_cast %511 : vector<16xf32> to vector<16x1xf32>
    %513 = vector.broadcast %512 : vector<16x1xf32> to vector<16x16xf32>
    %514 = arith.divf %510, %513 : vector<16x16xf32>
    %cst_405 = arith.constant dense<0.000000e+00> : vector<2x16xf32>
    %515 = tpu.matmul %503, %514, %cst_405 {dimension_numbers = #tpu.dot_dimension_numbers<[1], [1], [0], [0], [0, 0, 1, 0], [], []>} : vector<2x16xf32>, vector<16x16xf32>, vector<2x16xf32> -> vector<2x16xf32>
    %c21_406 = arith.constant 21 : index
    %c32_407 = arith.constant 32 : index
    %516 = vector.load %arg3[%c21_406, %c32_407] : memref<28x128xf32, #tpu.memory_space<vmem>>, vector<2x16xf32>
    tpu.vector_store %arg3[%c21_406, %c32_407], %515 {strides = array<i32>} : memref<28x128xf32, #tpu.memory_space<vmem>>, vector<2x16xf32>,
    %c75 = arith.constant 75 : index
    %c0_408 = arith.constant 0 : index
    %c0_409 = arith.constant 0 : index
    %c0_410 = arith.constant 0 : index
    %517 = vector.load %arg1[%c75, %c0_408, %c0_409, %c0_410] : memref<96x1x8x16xf32, #tpu.memory_space<vmem>>, vector<1x1x2x16xf32>
    %518 = vector.shape_cast %517 : vector<1x1x2x16xf32> to vector<2x16xf32>
    %c83 = arith.constant 83 : index
    %c0_411 = arith.constant 0 : index
    %c0_412 = arith.constant 0 : index
    %c0_413 = arith.constant 0 : index
    %519 = vector.load %arg1[%c83, %c0_411, %c0_412, %c0_413] : memref<96x1x8x16xf32, #tpu.memory_space<vmem>>, vector<1x1x2x16xf32>
    %520 = vector.shape_cast %519 : vector<1x1x2x16xf32> to vector<2x16xf32>
    %c91 = arith.constant 91 : index
    %c0_414 = arith.constant 0 : index
    %c0_415 = arith.constant 0 : index
    %c0_416 = arith.constant 0 : index
    %521 = vector.load %arg1[%c91, %c0_414, %c0_415, %c0_416] : memref<96x1x8x16xf32, #tpu.memory_space<vmem>>, vector<1x1x2x16xf32>
    %522 = vector.shape_cast %521 : vector<1x1x2x16xf32> to vector<2x16xf32>
    %cst_417 = arith.constant dense<0.000000e+00> : vector<16x16xf32>
    %523 = tpu.matmul %518, %520, %cst_417 {dimension_numbers = #tpu.dot_dimension_numbers<[0], [0], [1], [1], [0, 1, 1, 1], [], []>} : vector<2x16xf32>, vector<2x16xf32>, vector<16x16xf32> -> vector<16x16xf32>
    %524 = arith.addf %523, %3 : vector<16x16xf32>
    %cst_418 = arith.constant dense<0xFF800000> : vector<16xf32>
    %525 = vector.multi_reduction <maximumf>, %524, %cst_418 [1] : vector<16x16xf32> to vector<16xf32>
    %526 = vector.shape_cast %525 : vector<16xf32> to vector<16x1xf32>
    %527 = vector.broadcast %526 : vector<16x1xf32> to vector<16x16xf32>
    %528 = arith.subf %524, %527 : vector<16x16xf32>
    %529 = math.exp %528 : vector<16x16xf32>
    %cst_419 = arith.constant dense<0.000000e+00> : vector<16xf32>
    %530 = vector.multi_reduction <add>, %529, %cst_419 [1] : vector<16x16xf32> to vector<16xf32>
    %531 = vector.shape_cast %530 : vector<16xf32> to vector<16x1xf32>
    %532 = vector.broadcast %531 : vector<16x1xf32> to vector<16x16xf32>
    %533 = arith.divf %529, %532 : vector<16x16xf32>
    %cst_420 = arith.constant dense<0.000000e+00> : vector<2x16xf32>
    %534 = tpu.matmul %522, %533, %cst_420 {dimension_numbers = #tpu.dot_dimension_numbers<[1], [1], [0], [0], [0, 0, 1, 0], [], []>} : vector<2x16xf32>, vector<16x16xf32>, vector<2x16xf32> -> vector<2x16xf32>
    %c21_421 = arith.constant 21 : index
    %c48_422 = arith.constant 48 : index
    %535 = vector.load %arg3[%c21_421, %c48_422] : memref<28x128xf32, #tpu.memory_space<vmem>>, vector<2x16xf32>
    tpu.vector_store %arg3[%c21_421, %c48_422], %534 {strides = array<i32>} : memref<28x128xf32, #tpu.memory_space<vmem>>, vector<2x16xf32>,
    %c76 = arith.constant 76 : index
    %c0_423 = arith.constant 0 : index
    %c0_424 = arith.constant 0 : index
    %c0_425 = arith.constant 0 : index
    %536 = vector.load %arg1[%c76, %c0_423, %c0_424, %c0_425] : memref<96x1x8x16xf32, #tpu.memory_space<vmem>>, vector<1x1x2x16xf32>
    %537 = vector.shape_cast %536 : vector<1x1x2x16xf32> to vector<2x16xf32>
    %c84 = arith.constant 84 : index
    %c0_426 = arith.constant 0 : index
    %c0_427 = arith.constant 0 : index
    %c0_428 = arith.constant 0 : index
    %538 = vector.load %arg1[%c84, %c0_426, %c0_427, %c0_428] : memref<96x1x8x16xf32, #tpu.memory_space<vmem>>, vector<1x1x2x16xf32>
    %539 = vector.shape_cast %538 : vector<1x1x2x16xf32> to vector<2x16xf32>
    %c92 = arith.constant 92 : index
    %c0_429 = arith.constant 0 : index
    %c0_430 = arith.constant 0 : index
    %c0_431 = arith.constant 0 : index
    %540 = vector.load %arg1[%c92, %c0_429, %c0_430, %c0_431] : memref<96x1x8x16xf32, #tpu.memory_space<vmem>>, vector<1x1x2x16xf32>
    %541 = vector.shape_cast %540 : vector<1x1x2x16xf32> to vector<2x16xf32>
    %cst_432 = arith.constant dense<0.000000e+00> : vector<16x16xf32>
    %542 = tpu.matmul %537, %539, %cst_432 {dimension_numbers = #tpu.dot_dimension_numbers<[0], [0], [1], [1], [0, 1, 1, 1], [], []>} : vector<2x16xf32>, vector<2x16xf32>, vector<16x16xf32> -> vector<16x16xf32>
    %543 = arith.addf %542, %3 : vector<16x16xf32>
    %cst_433 = arith.constant dense<0xFF800000> : vector<16xf32>
    %544 = vector.multi_reduction <maximumf>, %543, %cst_433 [1] : vector<16x16xf32> to vector<16xf32>
    %545 = vector.shape_cast %544 : vector<16xf32> to vector<16x1xf32>
    %546 = vector.broadcast %545 : vector<16x1xf32> to vector<16x16xf32>
    %547 = arith.subf %543, %546 : vector<16x16xf32>
    %548 = math.exp %547 : vector<16x16xf32>
    %cst_434 = arith.constant dense<0.000000e+00> : vector<16xf32>
    %549 = vector.multi_reduction <add>, %548, %cst_434 [1] : vector<16x16xf32> to vector<16xf32>
    %550 = vector.shape_cast %549 : vector<16xf32> to vector<16x1xf32>
    %551 = vector.broadcast %550 : vector<16x1xf32> to vector<16x16xf32>
    %552 = arith.divf %548, %551 : vector<16x16xf32>
    %cst_435 = arith.constant dense<0.000000e+00> : vector<2x16xf32>
    %553 = tpu.matmul %541, %552, %cst_435 {dimension_numbers = #tpu.dot_dimension_numbers<[1], [1], [0], [0], [0, 0, 1, 0], [], []>} : vector<2x16xf32>, vector<16x16xf32>, vector<2x16xf32> -> vector<2x16xf32>
    %c21_436 = arith.constant 21 : index
    %c64_437 = arith.constant 64 : index
    %554 = vector.load %arg3[%c21_436, %c64_437] : memref<28x128xf32, #tpu.memory_space<vmem>>, vector<2x16xf32>
    tpu.vector_store %arg3[%c21_436, %c64_437], %553 {strides = array<i32>} : memref<28x128xf32, #tpu.memory_space<vmem>>, vector<2x16xf32>,
    %c77 = arith.constant 77 : index
    %c0_438 = arith.constant 0 : index
    %c0_439 = arith.constant 0 : index
    %c0_440 = arith.constant 0 : index
    %555 = vector.load %arg1[%c77, %c0_438, %c0_439, %c0_440] : memref<96x1x8x16xf32, #tpu.memory_space<vmem>>, vector<1x1x2x16xf32>
    %556 = vector.shape_cast %555 : vector<1x1x2x16xf32> to vector<2x16xf32>
    %c85 = arith.constant 85 : index
    %c0_441 = arith.constant 0 : index
    %c0_442 = arith.constant 0 : index
    %c0_443 = arith.constant 0 : index
    %557 = vector.load %arg1[%c85, %c0_441, %c0_442, %c0_443] : memref<96x1x8x16xf32, #tpu.memory_space<vmem>>, vector<1x1x2x16xf32>
    %558 = vector.shape_cast %557 : vector<1x1x2x16xf32> to vector<2x16xf32>
    %c93 = arith.constant 93 : index
    %c0_444 = arith.constant 0 : index
    %c0_445 = arith.constant 0 : index
    %c0_446 = arith.constant 0 : index
    %559 = vector.load %arg1[%c93, %c0_444, %c0_445, %c0_446] : memref<96x1x8x16xf32, #tpu.memory_space<vmem>>, vector<1x1x2x16xf32>
    %560 = vector.shape_cast %559 : vector<1x1x2x16xf32> to vector<2x16xf32>
    %cst_447 = arith.constant dense<0.000000e+00> : vector<16x16xf32>
    %561 = tpu.matmul %556, %558, %cst_447 {dimension_numbers = #tpu.dot_dimension_numbers<[0], [0], [1], [1], [0, 1, 1, 1], [], []>} : vector<2x16xf32>, vector<2x16xf32>, vector<16x16xf32> -> vector<16x16xf32>
    %562 = arith.addf %561, %3 : vector<16x16xf32>
    %cst_448 = arith.constant dense<0xFF800000> : vector<16xf32>
    %563 = vector.multi_reduction <maximumf>, %562, %cst_448 [1] : vector<16x16xf32> to vector<16xf32>
    %564 = vector.shape_cast %563 : vector<16xf32> to vector<16x1xf32>
    %565 = vector.broadcast %564 : vector<16x1xf32> to vector<16x16xf32>
    %566 = arith.subf %562, %565 : vector<16x16xf32>
    %567 = math.exp %566 : vector<16x16xf32>
    %cst_449 = arith.constant dense<0.000000e+00> : vector<16xf32>
    %568 = vector.multi_reduction <add>, %567, %cst_449 [1] : vector<16x16xf32> to vector<16xf32>
    %569 = vector.shape_cast %568 : vector<16xf32> to vector<16x1xf32>
    %570 = vector.broadcast %569 : vector<16x1xf32> to vector<16x16xf32>
    %571 = arith.divf %567, %570 : vector<16x16xf32>
    %cst_450 = arith.constant dense<0.000000e+00> : vector<2x16xf32>
    %572 = tpu.matmul %560, %571, %cst_450 {dimension_numbers = #tpu.dot_dimension_numbers<[1], [1], [0], [0], [0, 0, 1, 0], [], []>} : vector<2x16xf32>, vector<16x16xf32>, vector<2x16xf32> -> vector<2x16xf32>
    %c21_451 = arith.constant 21 : index
    %c80_452 = arith.constant 80 : index
    %573 = vector.load %arg3[%c21_451, %c80_452] : memref<28x128xf32, #tpu.memory_space<vmem>>, vector<2x16xf32>
    tpu.vector_store %arg3[%c21_451, %c80_452], %572 {strides = array<i32>} : memref<28x128xf32, #tpu.memory_space<vmem>>, vector<2x16xf32>,
    %c78 = arith.constant 78 : index
    %c0_453 = arith.constant 0 : index
    %c0_454 = arith.constant 0 : index
    %c0_455 = arith.constant 0 : index
    %574 = vector.load %arg1[%c78, %c0_453, %c0_454, %c0_455] : memref<96x1x8x16xf32, #tpu.memory_space<vmem>>, vector<1x1x2x16xf32>
    %575 = vector.shape_cast %574 : vector<1x1x2x16xf32> to vector<2x16xf32>
    %c86 = arith.constant 86 : index
    %c0_456 = arith.constant 0 : index
    %c0_457 = arith.constant 0 : index
    %c0_458 = arith.constant 0 : index
    %576 = vector.load %arg1[%c86, %c0_456, %c0_457, %c0_458] : memref<96x1x8x16xf32, #tpu.memory_space<vmem>>, vector<1x1x2x16xf32>
    %577 = vector.shape_cast %576 : vector<1x1x2x16xf32> to vector<2x16xf32>
    %c94 = arith.constant 94 : index
    %c0_459 = arith.constant 0 : index
    %c0_460 = arith.constant 0 : index
    %c0_461 = arith.constant 0 : index
    %578 = vector.load %arg1[%c94, %c0_459, %c0_460, %c0_461] : memref<96x1x8x16xf32, #tpu.memory_space<vmem>>, vector<1x1x2x16xf32>
    %579 = vector.shape_cast %578 : vector<1x1x2x16xf32> to vector<2x16xf32>
    %cst_462 = arith.constant dense<0.000000e+00> : vector<16x16xf32>
    %580 = tpu.matmul %575, %577, %cst_462 {dimension_numbers = #tpu.dot_dimension_numbers<[0], [0], [1], [1], [0, 1, 1, 1], [], []>} : vector<2x16xf32>, vector<2x16xf32>, vector<16x16xf32> -> vector<16x16xf32>
    %581 = arith.addf %580, %3 : vector<16x16xf32>
    %cst_463 = arith.constant dense<0xFF800000> : vector<16xf32>
    %582 = vector.multi_reduction <maximumf>, %581, %cst_463 [1] : vector<16x16xf32> to vector<16xf32>
    %583 = vector.shape_cast %582 : vector<16xf32> to vector<16x1xf32>
    %584 = vector.broadcast %583 : vector<16x1xf32> to vector<16x16xf32>
    %585 = arith.subf %581, %584 : vector<16x16xf32>
    %586 = math.exp %585 : vector<16x16xf32>
    %cst_464 = arith.constant dense<0.000000e+00> : vector<16xf32>
    %587 = vector.multi_reduction <add>, %586, %cst_464 [1] : vector<16x16xf32> to vector<16xf32>
    %588 = vector.shape_cast %587 : vector<16xf32> to vector<16x1xf32>
    %589 = vector.broadcast %588 : vector<16x1xf32> to vector<16x16xf32>
    %590 = arith.divf %586, %589 : vector<16x16xf32>
    %cst_465 = arith.constant dense<0.000000e+00> : vector<2x16xf32>
    %591 = tpu.matmul %579, %590, %cst_465 {dimension_numbers = #tpu.dot_dimension_numbers<[1], [1], [0], [0], [0, 0, 1, 0], [], []>} : vector<2x16xf32>, vector<16x16xf32>, vector<2x16xf32> -> vector<2x16xf32>
    %c21_466 = arith.constant 21 : index
    %c96_467 = arith.constant 96 : index
    %592 = vector.load %arg3[%c21_466, %c96_467] : memref<28x128xf32, #tpu.memory_space<vmem>>, vector<2x16xf32>
    tpu.vector_store %arg3[%c21_466, %c96_467], %591 {strides = array<i32>} : memref<28x128xf32, #tpu.memory_space<vmem>>, vector<2x16xf32>,
    %c79 = arith.constant 79 : index
    %c0_468 = arith.constant 0 : index
    %c0_469 = arith.constant 0 : index
    %c0_470 = arith.constant 0 : index
    %593 = vector.load %arg1[%c79, %c0_468, %c0_469, %c0_470] : memref<96x1x8x16xf32, #tpu.memory_space<vmem>>, vector<1x1x2x16xf32>
    %594 = vector.shape_cast %593 : vector<1x1x2x16xf32> to vector<2x16xf32>
    %c87 = arith.constant 87 : index
    %c0_471 = arith.constant 0 : index
    %c0_472 = arith.constant 0 : index
    %c0_473 = arith.constant 0 : index
    %595 = vector.load %arg1[%c87, %c0_471, %c0_472, %c0_473] : memref<96x1x8x16xf32, #tpu.memory_space<vmem>>, vector<1x1x2x16xf32>
    %596 = vector.shape_cast %595 : vector<1x1x2x16xf32> to vector<2x16xf32>
    %c95 = arith.constant 95 : index
    %c0_474 = arith.constant 0 : index
    %c0_475 = arith.constant 0 : index
    %c0_476 = arith.constant 0 : index
    %597 = vector.load %arg1[%c95, %c0_474, %c0_475, %c0_476] : memref<96x1x8x16xf32, #tpu.memory_space<vmem>>, vector<1x1x2x16xf32>
    %598 = vector.shape_cast %597 : vector<1x1x2x16xf32> to vector<2x16xf32>
    %cst_477 = arith.constant dense<0.000000e+00> : vector<16x16xf32>
    %599 = tpu.matmul %594, %596, %cst_477 {dimension_numbers = #tpu.dot_dimension_numbers<[0], [0], [1], [1], [0, 1, 1, 1], [], []>} : vector<2x16xf32>, vector<2x16xf32>, vector<16x16xf32> -> vector<16x16xf32>
    %600 = arith.addf %599, %3 : vector<16x16xf32>
    %cst_478 = arith.constant dense<0xFF800000> : vector<16xf32>
    %601 = vector.multi_reduction <maximumf>, %600, %cst_478 [1] : vector<16x16xf32> to vector<16xf32>
    %602 = vector.shape_cast %601 : vector<16xf32> to vector<16x1xf32>
    %603 = vector.broadcast %602 : vector<16x1xf32> to vector<16x16xf32>
    %604 = arith.subf %600, %603 : vector<16x16xf32>
    %605 = math.exp %604 : vector<16x16xf32>
    %cst_479 = arith.constant dense<0.000000e+00> : vector<16xf32>
    %606 = vector.multi_reduction <add>, %605, %cst_479 [1] : vector<16x16xf32> to vector<16xf32>
    %607 = vector.shape_cast %606 : vector<16xf32> to vector<16x1xf32>
    %608 = vector.broadcast %607 : vector<16x1xf32> to vector<16x16xf32>
    %609 = arith.divf %605, %608 : vector<16x16xf32>
    %cst_480 = arith.constant dense<0.000000e+00> : vector<2x16xf32>
    %610 = tpu.matmul %598, %609, %cst_480 {dimension_numbers = #tpu.dot_dimension_numbers<[1], [1], [0], [0], [0, 0, 1, 0], [], []>} : vector<2x16xf32>, vector<16x16xf32>, vector<2x16xf32> -> vector<2x16xf32>
    %c21_481 = arith.constant 21 : index
    %c112_482 = arith.constant 112 : index
    %611 = vector.load %arg3[%c21_481, %c112_482] : memref<28x128xf32, #tpu.memory_space<vmem>>, vector<2x16xf32>
    tpu.vector_store %arg3[%c21_481, %c112_482], %610 {strides = array<i32>} : memref<28x128xf32, #tpu.memory_space<vmem>>, vector<2x16xf32>,
    return
  }
  func.func @transform_0(%arg0: i32) -> (i32, i32, i32, i32) {
    %c0_i32 = arith.constant 0 : i32
    %c0_i32_0 = arith.constant 0 : i32
    %c0_i32_1 = arith.constant 0 : i32
    %c0_i32_2 = arith.constant 0 : i32
    return %c0_i32, %arg0, %c0_i32_0, %c0_i32_1 : i32, i32, i32, i32
  }
  func.func @transform_1(%arg0: i32) -> (i32, i32, i32) {
    %c0_i32 = arith.constant 0 : i32
    %c0_i32_0 = arith.constant 0 : i32
    %c0_i32_1 = arith.constant 0 : i32
    return %arg0, %c0_i32, %c0_i32_0 : i32, i32, i32
  }
  func.func @transform_2(%arg0: i32) -> (i32, i32) {
    %c0_i32 = arith.constant 0 : i32
    %c0_i32_0 = arith.constant 0 : i32
    return %c0_i32, %arg0 : i32, i32
  }
}

module attributes {stable_mosaic.version = 11 : i64} {
  func.func @_bn_kernel(%arg0: i32, %arg1: i32, %arg2: memref<32x128xf32, #tpu.memory_space<vmem>>, %arg3: memref<32x128xf32, #tpu.memory_space<vmem>>, %arg4: memref<32x1xf32, #tpu.memory_space<vmem>>, %arg5: memref<32x1xf32, #tpu.memory_space<vmem>>) attributes {dimension_semantics = [#tpu.dimension_semantics<arbitrary>, #tpu.dimension_semantics<arbitrary>], iteration_bounds = array<i64: 2, 2>, scalar_prefetch = 0 : i64, scratch_operands = 2 : i64, tpu.core_type = #tpu.core_type<tc>, window_params = [{transform_indices = @transform_0, window_bounds = array<i64: 32, 128>}, {transform_indices = @transform_1, window_bounds = array<i64: 32, 128>}]} {
    %c0 = arith.constant 0 : index
    %c0_0 = arith.constant 0 : index
    %0 = vector.load %arg2[%c0, %c0_0] : memref<32x128xf32, #tpu.memory_space<vmem>>, vector<32x128xf32>
    %c0_i32 = arith.constant 0 : i32
    %1 = arith.cmpi eq, %arg0, %c0_i32 : i32
    %c0_i32_1 = arith.constant 0 : i32
    %2 = arith.cmpi eq, %arg1, %c0_i32_1 : i32
    %3 = arith.andi %1, %2 : i1
    %4 = arith.extui %3 : i1 to i32
    %c0_i32_2 = arith.constant 0 : i32
    %5 = arith.cmpi ne, %4, %c0_i32_2 : i32
    scf.if %5 {
      %cst = arith.constant 0.000000e+00 : f32
      %17 = vector.broadcast %cst : f32 to vector<32x1xf32>
      %c0_9 = arith.constant 0 : index
      %c0_10 = arith.constant 0 : index
      %18 = vector.load %arg4[%c0_9, %c0_10] : memref<32x1xf32, #tpu.memory_space<vmem>>, vector<32x1xf32>
      tpu.vector_store %arg4[%c0_9, %c0_10], %17 {strides = array<i32>} : memref<32x1xf32, #tpu.memory_space<vmem>>, vector<32x1xf32>,
      %cst_11 = arith.constant 0.000000e+00 : f32
      %19 = vector.broadcast %cst_11 : f32 to vector<32x1xf32>
      %c0_12 = arith.constant 0 : index
      %c0_13 = arith.constant 0 : index
      %20 = vector.load %arg5[%c0_12, %c0_13] : memref<32x1xf32, #tpu.memory_space<vmem>>, vector<32x1xf32>
      tpu.vector_store %arg5[%c0_12, %c0_13], %19 {strides = array<i32>} : memref<32x1xf32, #tpu.memory_space<vmem>>, vector<32x1xf32>,
    } else {
    }
    %c0_i32_3 = arith.constant 0 : i32
    %6 = arith.cmpi eq, %arg0, %c0_i32_3 : i32
    %7 = arith.extui %6 : i1 to i32
    %c0_i32_4 = arith.constant 0 : i32
    %8 = arith.cmpi ne, %7, %c0_i32_4 : i32
    scf.if %8 {
      %c0_9 = arith.constant 0 : index
      %c0_10 = arith.constant 0 : index
      %17 = vector.load %arg4[%c0_9, %c0_10] : memref<32x1xf32, #tpu.memory_space<vmem>>, vector<32x1xf32>
      %cst = arith.constant dense<0.000000e+00> : vector<32xf32>
      %18 = vector.multi_reduction <add>, %0, %cst [1] : vector<32x128xf32> to vector<32xf32>
      %19 = vector.shape_cast %18 : vector<32xf32> to vector<32x1xf32>
      %20 = arith.addf %17, %19 : vector<32x1xf32>
      %c0_11 = arith.constant 0 : index
      %c0_12 = arith.constant 0 : index
      %21 = vector.load %arg4[%c0_11, %c0_12] : memref<32x1xf32, #tpu.memory_space<vmem>>, vector<32x1xf32>
      tpu.vector_store %arg4[%c0_11, %c0_12], %20 {strides = array<i32>} : memref<32x1xf32, #tpu.memory_space<vmem>>, vector<32x1xf32>,
      %c0_13 = arith.constant 0 : index
      %c0_14 = arith.constant 0 : index
      %22 = vector.load %arg5[%c0_13, %c0_14] : memref<32x1xf32, #tpu.memory_space<vmem>>, vector<32x1xf32>
      %23 = arith.mulf %0, %0 : vector<32x128xf32>
      %cst_15 = arith.constant dense<0.000000e+00> : vector<32xf32>
      %24 = vector.multi_reduction <add>, %23, %cst_15 [1] : vector<32x128xf32> to vector<32xf32>
      %25 = vector.shape_cast %24 : vector<32xf32> to vector<32x1xf32>
      %26 = arith.addf %22, %25 : vector<32x1xf32>
      %c0_16 = arith.constant 0 : index
      %c0_17 = arith.constant 0 : index
      %27 = vector.load %arg5[%c0_16, %c0_17] : memref<32x1xf32, #tpu.memory_space<vmem>>, vector<32x1xf32>
      tpu.vector_store %arg5[%c0_16, %c0_17], %26 {strides = array<i32>} : memref<32x1xf32, #tpu.memory_space<vmem>>, vector<32x1xf32>,
    } else {
    }
    %c1_i32 = arith.constant 1 : i32
    %9 = arith.cmpi eq, %arg0, %c1_i32 : i32
    %c0_i32_5 = arith.constant 0 : i32
    %10 = arith.cmpi eq, %arg1, %c0_i32_5 : i32
    %11 = arith.andi %9, %10 : i1
    %12 = arith.extui %11 : i1 to i32
    %c0_i32_6 = arith.constant 0 : i32
    %13 = arith.cmpi ne, %12, %c0_i32_6 : i32
    scf.if %13 {
      %c0_9 = arith.constant 0 : index
      %c0_10 = arith.constant 0 : index
      %17 = vector.load %arg4[%c0_9, %c0_10] : memref<32x1xf32, #tpu.memory_space<vmem>>, vector<32x1xf32>
      %cst = arith.constant 3.906250e-03 : f32
      %18 = vector.broadcast %cst : f32 to vector<32x1xf32>
      %19 = arith.mulf %17, %18 : vector<32x1xf32>
      %c0_11 = arith.constant 0 : index
      %c0_12 = arith.constant 0 : index
      %20 = vector.load %arg5[%c0_11, %c0_12] : memref<32x1xf32, #tpu.memory_space<vmem>>, vector<32x1xf32>
      %cst_13 = arith.constant 3.906250e-03 : f32
      %21 = vector.broadcast %cst_13 : f32 to vector<32x1xf32>
      %22 = arith.mulf %20, %21 : vector<32x1xf32>
      %23 = arith.mulf %19, %19 : vector<32x1xf32>
      %24 = arith.subf %22, %23 : vector<32x1xf32>
      %cst_14 = arith.constant 0.000000e+00 : f32
      %25 = vector.broadcast %cst_14 : f32 to vector<32x1xf32>
      %26 = arith.maximumf %24, %25 : vector<32x1xf32>
      %cst_15 = arith.constant 9.99999974E-6 : f32
      %27 = vector.broadcast %cst_15 : f32 to vector<32x1xf32>
      %28 = arith.addf %26, %27 : vector<32x1xf32>
      %29 = math.rsqrt %28 : vector<32x1xf32>
      %c0_16 = arith.constant 0 : index
      %c0_17 = arith.constant 0 : index
      %30 = vector.load %arg4[%c0_16, %c0_17] : memref<32x1xf32, #tpu.memory_space<vmem>>, vector<32x1xf32>
      tpu.vector_store %arg4[%c0_16, %c0_17], %29 {strides = array<i32>} : memref<32x1xf32, #tpu.memory_space<vmem>>, vector<32x1xf32>,
      %cst_18 = arith.constant 0.000000e+00 : f32
      %31 = vector.broadcast %cst_18 : f32 to vector<32x1xf32>
      %32 = arith.subf %31, %19 : vector<32x1xf32>
      %33 = arith.mulf %32, %29 : vector<32x1xf32>
      %c0_19 = arith.constant 0 : index
      %c0_20 = arith.constant 0 : index
      %34 = vector.load %arg5[%c0_19, %c0_20] : memref<32x1xf32, #tpu.memory_space<vmem>>, vector<32x1xf32>
      tpu.vector_store %arg5[%c0_19, %c0_20], %33 {strides = array<i32>} : memref<32x1xf32, #tpu.memory_space<vmem>>, vector<32x1xf32>,
    } else {
    }
    %c1_i32_7 = arith.constant 1 : i32
    %14 = arith.cmpi eq, %arg0, %c1_i32_7 : i32
    %15 = arith.extui %14 : i1 to i32
    %c0_i32_8 = arith.constant 0 : i32
    %16 = arith.cmpi ne, %15, %c0_i32_8 : i32
    scf.if %16 {
      %c0_9 = arith.constant 0 : index
      %c0_10 = arith.constant 0 : index
      %17 = vector.load %arg4[%c0_9, %c0_10] : memref<32x1xf32, #tpu.memory_space<vmem>>, vector<32x1xf32>
      %18 = vector.broadcast %17 : vector<32x1xf32> to vector<32x128xf32>
      %19 = arith.mulf %0, %18 : vector<32x128xf32>
      %c0_11 = arith.constant 0 : index
      %c0_12 = arith.constant 0 : index
      %20 = vector.load %arg5[%c0_11, %c0_12] : memref<32x1xf32, #tpu.memory_space<vmem>>, vector<32x1xf32>
      %21 = vector.broadcast %20 : vector<32x1xf32> to vector<32x128xf32>
      %22 = arith.addf %19, %21 : vector<32x128xf32>
      %c0_13 = arith.constant 0 : index
      %c0_14 = arith.constant 0 : index
      %23 = vector.load %arg3[%c0_13, %c0_14] : memref<32x128xf32, #tpu.memory_space<vmem>>, vector<32x128xf32>
      tpu.vector_store %arg3[%c0_13, %c0_14], %22 {strides = array<i32>} : memref<32x128xf32, #tpu.memory_space<vmem>>, vector<32x128xf32>,
    } else {
    }
    return
  }
  func.func @transform_0(%arg0: i32, %arg1: i32) -> (i32, i32) {
    %c0_i32 = arith.constant 0 : i32
    %c0_i32_0 = arith.constant 0 : i32
    return %c0_i32, %arg1 : i32, i32
  }
  func.func @transform_1(%arg0: i32, %arg1: i32) -> (i32, i32) {
    %0 = arith.muli %arg0, %arg1 : i32
    %c0_i32 = arith.constant 0 : i32
    %c0_i32_0 = arith.constant 0 : i32
    return %c0_i32, %0 : i32, i32
  }
}

module attributes {stable_mosaic.version = 11 : i64} {
  func.func @_matmul2_bias_kernel(%arg0: i32, %arg1: memref<8x32xf32, #tpu.memory_space<vmem>>, %arg2: memref<32x128xf32, #tpu.memory_space<vmem>>, %arg3: memref<8x4xf32, #tpu.memory_space<vmem>>, %arg4: memref<4x128xf32, #tpu.memory_space<vmem>>, %arg5: memref<8x1xf32, #tpu.memory_space<vmem>>, %arg6: memref<8x128xf32, #tpu.memory_space<vmem>>) attributes {dimension_semantics = [#tpu.dimension_semantics<parallel>], iteration_bounds = array<i64: 2>, scalar_prefetch = 0 : i64, scratch_operands = 0 : i64, tpu.core_type = #tpu.core_type<tc>, window_params = [{pipeline_mode = #tpu.pipeline_mode<synchronous>, transform_indices = @transform_0, window_bounds = array<i64: 8, 32>}, {transform_indices = @transform_1, window_bounds = array<i64: 32, 128>}, {pipeline_mode = #tpu.pipeline_mode<synchronous>, transform_indices = @transform_2, window_bounds = array<i64: 8, 4>}, {transform_indices = @transform_3, window_bounds = array<i64: 4, 128>}, {pipeline_mode = #tpu.pipeline_mode<synchronous>, transform_indices = @transform_4, window_bounds = array<i64: 8, 1>}, {transform_indices = @transform_5, window_bounds = array<i64: 8, 128>}]} {
    %c0 = arith.constant 0 : index
    %c0_0 = arith.constant 0 : index
    %0 = vector.load %arg1[%c0, %c0_0] : memref<8x32xf32, #tpu.memory_space<vmem>>, vector<8x32xf32>
    %c0_1 = arith.constant 0 : index
    %c0_2 = arith.constant 0 : index
    %1 = vector.load %arg2[%c0_1, %c0_2] : memref<32x128xf32, #tpu.memory_space<vmem>>, vector<32x128xf32>
    %cst = arith.constant dense<0.000000e+00> : vector<8x128xf32>
    %2 = tpu.matmul %0, %1, %cst {dimension_numbers = #tpu.dot_dimension_numbers<[1], [0], [0], [1], [0, 0, 1, 1], [], []>} : vector<8x32xf32>, vector<32x128xf32>, vector<8x128xf32> -> vector<8x128xf32>
    %c0_3 = arith.constant 0 : index
    %c0_4 = arith.constant 0 : index
    %3 = vector.load %arg3[%c0_3, %c0_4] : memref<8x4xf32, #tpu.memory_space<vmem>>, vector<8x4xf32>
    %c0_5 = arith.constant 0 : index
    %c0_6 = arith.constant 0 : index
    %4 = vector.load %arg4[%c0_5, %c0_6] : memref<4x128xf32, #tpu.memory_space<vmem>>, vector<4x128xf32>
    %cst_7 = arith.constant dense<0.000000e+00> : vector<8x128xf32>
    %5 = tpu.matmul %3, %4, %cst_7 {dimension_numbers = #tpu.dot_dimension_numbers<[1], [0], [0], [1], [0, 0, 1, 1], [], []>} : vector<8x4xf32>, vector<4x128xf32>, vector<8x128xf32> -> vector<8x128xf32>
    %6 = arith.addf %2, %5 : vector<8x128xf32>
    %c0_8 = arith.constant 0 : index
    %c0_9 = arith.constant 0 : index
    %7 = vector.load %arg5[%c0_8, %c0_9] : memref<8x1xf32, #tpu.memory_space<vmem>>, vector<8x1xf32>
    %8 = vector.broadcast %7 : vector<8x1xf32> to vector<8x128xf32>
    %9 = arith.addf %6, %8 : vector<8x128xf32>
    %c0_10 = arith.constant 0 : index
    %c0_11 = arith.constant 0 : index
    %10 = vector.load %arg6[%c0_10, %c0_11] : memref<8x128xf32, #tpu.memory_space<vmem>>, vector<8x128xf32>
    tpu.vector_store %arg6[%c0_10, %c0_11], %9 {strides = array<i32>} : memref<8x128xf32, #tpu.memory_space<vmem>>, vector<8x128xf32>,
    return
  }
  func.func @transform_0(%arg0: i32) -> (i32, i32) {
    %c0_i32 = arith.constant 0 : i32
    %c0_i32_0 = arith.constant 0 : i32
    %c0_i32_1 = arith.constant 0 : i32
    return %c0_i32, %c0_i32_0 : i32, i32
  }
  func.func @transform_1(%arg0: i32) -> (i32, i32) {
    %c0_i32 = arith.constant 0 : i32
    %c0_i32_0 = arith.constant 0 : i32
    return %c0_i32, %arg0 : i32, i32
  }
  func.func @transform_2(%arg0: i32) -> (i32, i32) {
    %c0_i32 = arith.constant 0 : i32
    %c0_i32_0 = arith.constant 0 : i32
    %c0_i32_1 = arith.constant 0 : i32
    return %c0_i32, %c0_i32_0 : i32, i32
  }
  func.func @transform_3(%arg0: i32) -> (i32, i32) {
    %c0_i32 = arith.constant 0 : i32
    %c0_i32_0 = arith.constant 0 : i32
    return %c0_i32, %arg0 : i32, i32
  }
  func.func @transform_4(%arg0: i32) -> (i32, i32) {
    %c0_i32 = arith.constant 0 : i32
    %c0_i32_0 = arith.constant 0 : i32
    %c0_i32_1 = arith.constant 0 : i32
    return %c0_i32, %c0_i32_0 : i32, i32
  }
  func.func @transform_5(%arg0: i32) -> (i32, i32) {
    %c0_i32 = arith.constant 0 : i32
    %c0_i32_0 = arith.constant 0 : i32
    return %c0_i32, %arg0 : i32, i32
  }
}

module attributes {stable_mosaic.version = 11 : i64} {
  func.func @_bn_kernel(%arg0: i32, %arg1: i32, %arg2: memref<8x128xf32, #tpu.memory_space<vmem>>, %arg3: memref<8x128xf32, #tpu.memory_space<vmem>>, %arg4: memref<8x1xf32, #tpu.memory_space<vmem>>, %arg5: memref<8x1xf32, #tpu.memory_space<vmem>>) attributes {dimension_semantics = [#tpu.dimension_semantics<arbitrary>, #tpu.dimension_semantics<arbitrary>], iteration_bounds = array<i64: 2, 2>, scalar_prefetch = 0 : i64, scratch_operands = 2 : i64, tpu.core_type = #tpu.core_type<tc>, window_params = [{transform_indices = @transform_0, window_bounds = array<i64: 8, 128>}, {transform_indices = @transform_1, window_bounds = array<i64: 8, 128>}]} {
    %c0 = arith.constant 0 : index
    %c0_0 = arith.constant 0 : index
    %0 = vector.load %arg2[%c0, %c0_0] : memref<8x128xf32, #tpu.memory_space<vmem>>, vector<8x128xf32>
    %c0_i32 = arith.constant 0 : i32
    %1 = arith.cmpi eq, %arg0, %c0_i32 : i32
    %c0_i32_1 = arith.constant 0 : i32
    %2 = arith.cmpi eq, %arg1, %c0_i32_1 : i32
    %3 = arith.andi %1, %2 : i1
    %4 = arith.extui %3 : i1 to i32
    %c0_i32_2 = arith.constant 0 : i32
    %5 = arith.cmpi ne, %4, %c0_i32_2 : i32
    scf.if %5 {
      %cst = arith.constant 0.000000e+00 : f32
      %17 = vector.broadcast %cst : f32 to vector<8x1xf32>
      %c0_9 = arith.constant 0 : index
      %c0_10 = arith.constant 0 : index
      %18 = vector.load %arg4[%c0_9, %c0_10] : memref<8x1xf32, #tpu.memory_space<vmem>>, vector<8x1xf32>
      tpu.vector_store %arg4[%c0_9, %c0_10], %17 {strides = array<i32>} : memref<8x1xf32, #tpu.memory_space<vmem>>, vector<8x1xf32>,
      %cst_11 = arith.constant 0.000000e+00 : f32
      %19 = vector.broadcast %cst_11 : f32 to vector<8x1xf32>
      %c0_12 = arith.constant 0 : index
      %c0_13 = arith.constant 0 : index
      %20 = vector.load %arg5[%c0_12, %c0_13] : memref<8x1xf32, #tpu.memory_space<vmem>>, vector<8x1xf32>
      tpu.vector_store %arg5[%c0_12, %c0_13], %19 {strides = array<i32>} : memref<8x1xf32, #tpu.memory_space<vmem>>, vector<8x1xf32>,
    } else {
    }
    %c0_i32_3 = arith.constant 0 : i32
    %6 = arith.cmpi eq, %arg0, %c0_i32_3 : i32
    %7 = arith.extui %6 : i1 to i32
    %c0_i32_4 = arith.constant 0 : i32
    %8 = arith.cmpi ne, %7, %c0_i32_4 : i32
    scf.if %8 {
      %c0_9 = arith.constant 0 : index
      %c0_10 = arith.constant 0 : index
      %17 = vector.load %arg4[%c0_9, %c0_10] : memref<8x1xf32, #tpu.memory_space<vmem>>, vector<8x1xf32>
      %cst = arith.constant dense<0.000000e+00> : vector<8xf32>
      %18 = vector.multi_reduction <add>, %0, %cst [1] : vector<8x128xf32> to vector<8xf32>
      %19 = vector.shape_cast %18 : vector<8xf32> to vector<8x1xf32>
      %20 = arith.addf %17, %19 : vector<8x1xf32>
      %c0_11 = arith.constant 0 : index
      %c0_12 = arith.constant 0 : index
      %21 = vector.load %arg4[%c0_11, %c0_12] : memref<8x1xf32, #tpu.memory_space<vmem>>, vector<8x1xf32>
      tpu.vector_store %arg4[%c0_11, %c0_12], %20 {strides = array<i32>} : memref<8x1xf32, #tpu.memory_space<vmem>>, vector<8x1xf32>,
      %c0_13 = arith.constant 0 : index
      %c0_14 = arith.constant 0 : index
      %22 = vector.load %arg5[%c0_13, %c0_14] : memref<8x1xf32, #tpu.memory_space<vmem>>, vector<8x1xf32>
      %23 = arith.mulf %0, %0 : vector<8x128xf32>
      %cst_15 = arith.constant dense<0.000000e+00> : vector<8xf32>
      %24 = vector.multi_reduction <add>, %23, %cst_15 [1] : vector<8x128xf32> to vector<8xf32>
      %25 = vector.shape_cast %24 : vector<8xf32> to vector<8x1xf32>
      %26 = arith.addf %22, %25 : vector<8x1xf32>
      %c0_16 = arith.constant 0 : index
      %c0_17 = arith.constant 0 : index
      %27 = vector.load %arg5[%c0_16, %c0_17] : memref<8x1xf32, #tpu.memory_space<vmem>>, vector<8x1xf32>
      tpu.vector_store %arg5[%c0_16, %c0_17], %26 {strides = array<i32>} : memref<8x1xf32, #tpu.memory_space<vmem>>, vector<8x1xf32>,
    } else {
    }
    %c1_i32 = arith.constant 1 : i32
    %9 = arith.cmpi eq, %arg0, %c1_i32 : i32
    %c0_i32_5 = arith.constant 0 : i32
    %10 = arith.cmpi eq, %arg1, %c0_i32_5 : i32
    %11 = arith.andi %9, %10 : i1
    %12 = arith.extui %11 : i1 to i32
    %c0_i32_6 = arith.constant 0 : i32
    %13 = arith.cmpi ne, %12, %c0_i32_6 : i32
    scf.if %13 {
      %c0_9 = arith.constant 0 : index
      %c0_10 = arith.constant 0 : index
      %17 = vector.load %arg4[%c0_9, %c0_10] : memref<8x1xf32, #tpu.memory_space<vmem>>, vector<8x1xf32>
      %cst = arith.constant 3.906250e-03 : f32
      %18 = vector.broadcast %cst : f32 to vector<8x1xf32>
      %19 = arith.mulf %17, %18 : vector<8x1xf32>
      %c0_11 = arith.constant 0 : index
      %c0_12 = arith.constant 0 : index
      %20 = vector.load %arg5[%c0_11, %c0_12] : memref<8x1xf32, #tpu.memory_space<vmem>>, vector<8x1xf32>
      %cst_13 = arith.constant 3.906250e-03 : f32
      %21 = vector.broadcast %cst_13 : f32 to vector<8x1xf32>
      %22 = arith.mulf %20, %21 : vector<8x1xf32>
      %23 = arith.mulf %19, %19 : vector<8x1xf32>
      %24 = arith.subf %22, %23 : vector<8x1xf32>
      %cst_14 = arith.constant 0.000000e+00 : f32
      %25 = vector.broadcast %cst_14 : f32 to vector<8x1xf32>
      %26 = arith.maximumf %24, %25 : vector<8x1xf32>
      %cst_15 = arith.constant 9.99999974E-6 : f32
      %27 = vector.broadcast %cst_15 : f32 to vector<8x1xf32>
      %28 = arith.addf %26, %27 : vector<8x1xf32>
      %29 = math.rsqrt %28 : vector<8x1xf32>
      %c0_16 = arith.constant 0 : index
      %c0_17 = arith.constant 0 : index
      %30 = vector.load %arg4[%c0_16, %c0_17] : memref<8x1xf32, #tpu.memory_space<vmem>>, vector<8x1xf32>
      tpu.vector_store %arg4[%c0_16, %c0_17], %29 {strides = array<i32>} : memref<8x1xf32, #tpu.memory_space<vmem>>, vector<8x1xf32>,
      %cst_18 = arith.constant 0.000000e+00 : f32
      %31 = vector.broadcast %cst_18 : f32 to vector<8x1xf32>
      %32 = arith.subf %31, %19 : vector<8x1xf32>
      %33 = arith.mulf %32, %29 : vector<8x1xf32>
      %c0_19 = arith.constant 0 : index
      %c0_20 = arith.constant 0 : index
      %34 = vector.load %arg5[%c0_19, %c0_20] : memref<8x1xf32, #tpu.memory_space<vmem>>, vector<8x1xf32>
      tpu.vector_store %arg5[%c0_19, %c0_20], %33 {strides = array<i32>} : memref<8x1xf32, #tpu.memory_space<vmem>>, vector<8x1xf32>,
    } else {
    }
    %c1_i32_7 = arith.constant 1 : i32
    %14 = arith.cmpi eq, %arg0, %c1_i32_7 : i32
    %15 = arith.extui %14 : i1 to i32
    %c0_i32_8 = arith.constant 0 : i32
    %16 = arith.cmpi ne, %15, %c0_i32_8 : i32
    scf.if %16 {
      %c0_9 = arith.constant 0 : index
      %c0_10 = arith.constant 0 : index
      %17 = vector.load %arg4[%c0_9, %c0_10] : memref<8x1xf32, #tpu.memory_space<vmem>>, vector<8x1xf32>
      %18 = vector.broadcast %17 : vector<8x1xf32> to vector<8x128xf32>
      %19 = arith.mulf %0, %18 : vector<8x128xf32>
      %c0_11 = arith.constant 0 : index
      %c0_12 = arith.constant 0 : index
      %20 = vector.load %arg5[%c0_11, %c0_12] : memref<8x1xf32, #tpu.memory_space<vmem>>, vector<8x1xf32>
      %21 = vector.broadcast %20 : vector<8x1xf32> to vector<8x128xf32>
      %22 = arith.addf %19, %21 : vector<8x128xf32>
      %c0_13 = arith.constant 0 : index
      %c0_14 = arith.constant 0 : index
      %23 = vector.load %arg3[%c0_13, %c0_14] : memref<8x128xf32, #tpu.memory_space<vmem>>, vector<8x128xf32>
      tpu.vector_store %arg3[%c0_13, %c0_14], %22 {strides = array<i32>} : memref<8x128xf32, #tpu.memory_space<vmem>>, vector<8x128xf32>,
    } else {
    }
    return
  }
  func.func @transform_0(%arg0: i32, %arg1: i32) -> (i32, i32) {
    %c0_i32 = arith.constant 0 : i32
    %c0_i32_0 = arith.constant 0 : i32
    return %c0_i32, %arg1 : i32, i32
  }
  func.func @transform_1(%arg0: i32, %arg1: i32) -> (i32, i32) {
    %0 = arith.muli %arg0, %arg1 : i32
    %c0_i32 = arith.constant 0 : i32
    %c0_i32_0 = arith.constant 0 : i32
    return %c0_i32, %0 : i32, i32
  }
}

module attributes {stable_mosaic.version = 11 : i64} {
  func.func @_matmul_bias_kernel(%arg0: i32, %arg1: memref<2x8xf32, #tpu.memory_space<vmem>>, %arg2: memref<8x128xf32, #tpu.memory_space<vmem>>, %arg3: memref<2x1xf32, #tpu.memory_space<vmem>>, %arg4: memref<2x128xf32, #tpu.memory_space<vmem>>) attributes {dimension_semantics = [#tpu.dimension_semantics<parallel>], iteration_bounds = array<i64: 2>, scalar_prefetch = 0 : i64, scratch_operands = 0 : i64, tpu.core_type = #tpu.core_type<tc>, window_params = [{pipeline_mode = #tpu.pipeline_mode<synchronous>, transform_indices = @transform_0, window_bounds = array<i64: 2, 8>}, {transform_indices = @transform_1, window_bounds = array<i64: 8, 128>}, {pipeline_mode = #tpu.pipeline_mode<synchronous>, transform_indices = @transform_2, window_bounds = array<i64: 2, 1>}, {transform_indices = @transform_3, window_bounds = array<i64: 2, 128>}]} {
    %c0 = arith.constant 0 : index
    %c0_0 = arith.constant 0 : index
    %0 = vector.load %arg1[%c0, %c0_0] : memref<2x8xf32, #tpu.memory_space<vmem>>, vector<2x8xf32>
    %c0_1 = arith.constant 0 : index
    %c0_2 = arith.constant 0 : index
    %1 = vector.load %arg2[%c0_1, %c0_2] : memref<8x128xf32, #tpu.memory_space<vmem>>, vector<8x128xf32>
    %cst = arith.constant dense<0.000000e+00> : vector<2x128xf32>
    %2 = tpu.matmul %0, %1, %cst {dimension_numbers = #tpu.dot_dimension_numbers<[1], [0], [0], [1], [0, 0, 1, 1], [], []>} : vector<2x8xf32>, vector<8x128xf32>, vector<2x128xf32> -> vector<2x128xf32>
    %c0_3 = arith.constant 0 : index
    %c0_4 = arith.constant 0 : index
    %3 = vector.load %arg3[%c0_3, %c0_4] : memref<2x1xf32, #tpu.memory_space<vmem>>, vector<2x1xf32>
    %4 = vector.broadcast %3 : vector<2x1xf32> to vector<2x128xf32>
    %5 = arith.addf %2, %4 : vector<2x128xf32>
    %c0_5 = arith.constant 0 : index
    %c0_6 = arith.constant 0 : index
    %6 = vector.load %arg4[%c0_5, %c0_6] : memref<2x128xf32, #tpu.memory_space<vmem>>, vector<2x128xf32>
    tpu.vector_store %arg4[%c0_5, %c0_6], %5 {strides = array<i32>} : memref<2x128xf32, #tpu.memory_space<vmem>>, vector<2x128xf32>,
    return
  }
  func.func @transform_0(%arg0: i32) -> (i32, i32) {
    %c0_i32 = arith.constant 0 : i32
    %c0_i32_0 = arith.constant 0 : i32
    %c0_i32_1 = arith.constant 0 : i32
    return %c0_i32, %c0_i32_0 : i32, i32
  }
  func.func @transform_1(%arg0: i32) -> (i32, i32) {
    %c0_i32 = arith.constant 0 : i32
    %c0_i32_0 = arith.constant 0 : i32
    return %c0_i32, %arg0 : i32, i32
  }
  func.func @transform_2(%arg0: i32) -> (i32, i32) {
    %c0_i32 = arith.constant 0 : i32
    %c0_i32_0 = arith.constant 0 : i32
    %c0_i32_1 = arith.constant 0 : i32
    return %c0_i32, %c0_i32_0 : i32, i32
  }
  func.func @transform_3(%arg0: i32) -> (i32, i32) {
    %c0_i32 = arith.constant 0 : i32
    %c0_i32_0 = arith.constant 0 : i32
    return %c0_i32, %arg0 : i32, i32
  }
}

</mosaic_0001>

<bundles_post_ra>
// kernel: model_forward.8
= control target key start
LH: loop header
LB: loop body
LE: loop exit
PB: predicated region body
PF: predicated region fallthrough
CT: control target
= control target key end

     0   :  { %s367_s12 = smov 0   ;;  %s390_s0 = inlined_call_operand.vmem [shape: f32[4,3], index: 0, kind: input, shape index: {}]   ;;  %s391_s1 = inlined_call_operand.vmem [shape: f32[3,256], index: 1, kind: input, shape index: {}]   ;;  %s392_s2 = inlined_call_operand.vmem [shape: f32[4,1], index: 2, kind: input, shape index: {}]   ;;  %s393_s3 = inlined_call_operand.vmem [shape: f32[4,256], index: 3, kind: output, shape index: {}]  }
   0x1 LB: > { %s306_s13 = sadd.s32 4294967295, %s342_s12   ;;  %p310_p0 = scmp.ge.s32.totalorder %s342_s12, 1  ;;  %s342_s12 = sphi %s367_s12, %s13_s12  }
   0x2   : > { %p136_p1 = scmp.lt.s32.totalorder %s342_s12, 3 }
   0x4   : > { %p137_p2 = pnand %p310_p0, %p136_p1 }
   0x5   : > { %p158_p3 = scmp.lt.s32.totalorder (!%p137_p2), %s306_s13, 1  ;;  %v344_v0 = vmov (!%p137_p2), 0.0   ;;  %vm345_vm0 = vmmov (!%p137_p2), 0   ;;  %v168_v1 = vld [vmem:[%s392_s2] sm:$0xf] (!%p137_p2)  ;;  %v346_v2 = vmov (!%p137_p2), 0  }
   0x6   : > { %140 = sbr.rel (%p137_p2) target bundleno = 233 (0xe9), region = 32  ;;  %319 = vmatprep.subr.mxu0 (!%p137_p2), %v344_v0  ;;  %321 = vmatprep.mubr.msk.f32.mxu0 (!%p137_p2), %vm345_vm0, %v344_v0  ;;  %vm178_vm1 = vcmask (!%p137_p2), 1042432   ;;  %v166_v3 = vld [vmem:[%s390_s0] sm:$0xf] (!%p137_p2)  ;;  %vm174_vm2 = vcmask (!%p137_p2), 23552  }
   0x7   : > { %335 = vset.pattern.permute.xlu0 (!%p137_p2), %v346_v2 }
   0x8   : > { %171 = vperm.xlu0 (!%p137_p2), %335, %v168_v1  }
   0xd   : > { %s395_s13 = smov (!%p158_p3, %s306_s13), 1 }
   0xe   : > { %s311_s16 = sshll.u32 %s395_s13, 2 }
   0xf   : > { %s161_s19 = scalar_lea.vmem %s391_s1, %s311_s16  ;;  %s165_s24 = scalar_lea.vmem %s393_s3, %s311_s16 }
  0x10   : > { %v167_v4 = vld [vmem:[%s161_s19] sm:$0x7] }
  0x11   : > { %320 = vmatpush3.msk.msra.mxu0 %vm178_vm1, %v167_v4 }
  0x12   : > { %322 = vmatmul.mubr.msk.f32.vlgmr.msra.gmra.mrb[0].mxu0 %vm174_vm2, %v166_v3 }
  0x87   : > { %v172_v5 = vpop.permute.xlu0 %171 }
  0xe5   : > { %v248_v6 = vpop.f32.mrb[0].mxu0 }
  0xe6   : > { %v249_v7 = vadd.f32 %v248_v6, %v172_v5  ;;  %v323_v8 = vpop.f32.mrb[1].mxu0 }
  0xe8   : > { %252 = vst [vmem:[%s165_s24] sm:$0xf] %v249_v7 }
  0xe9 PF: > { %s13_s12 = sadd.s32 1, %s342_s12  }
  0xea   : > { %p10_p4 = scmp.ge.s32.totalorder %s13_s12, 4  }
  0xec   :  { %12 = sbr.rel (!%p10_p4) target bundleno = 1 (0x1), region = 62 }

// kernel: model_forward.9
= control target key start
LH: loop header
LB: loop body
LE: loop exit
PB: predicated region body
PF: predicated region fallthrough
CT: control target
= control target key end

     0   :  { %s773_s12 = smov 0   ;;  %s775_s13 = smov 0   ;;  %s947_s0 = inlined_call_operand.vmem [shape: f32[96,28], index: 0, kind: input, shape index: {}]   ;;  %s948_s1 = inlined_call_operand.vmem [shape: f32[28,256], index: 1, kind: input, shape index: {}]   ;;  %s949_s2 = inlined_call_operand.vmem [shape: f32[96,1], index: 2, kind: input, shape index: {}]   ;;  %s950_s3 = inlined_call_operand.vmem [shape: f32[96,256], index: 3, kind: output, shape index: {}]  }
   0x1   :  { %s777_s14 = smov 0  }
   0x2 LB: > { %s618_s15 = sadd.s32 4294967295, %s749_s14   ;;  %s790_s16 = sadd.s32 1, %s749_s14   ;;  %s749_s14 = sphi %s777_s14, %s954_s14   ;;  %s745_s13 = sphi %s775_s13, %s953_s13   ;;  %s741_s12 = sphi %s773_s12, %s952_s12  }
   0x3   : > { %s38_s17 = ssub.s32 %s749_s14, %s790_s16  ;;  %s41_s18 = sadd.s32 1, %s745_s13 }
   0x4   : > { %p39_p0 = scmp.eq.s32.totalorder %s38_s17, 0  ;;  %p48_p1 = scmp.ne.s32.totalorder %s745_s13, %s741_s12 }
   0x5   : > { %p49_p2 = scmp.eq.s32.totalorder %s749_s14, 0  ;;  %p99_p3 = scmp.eq.s32.totalorder %s618_s15, 1 }
   0x6   : > { %s801_s19 = scalar_select %p39_p0, %s745_s13, %s41_s18  }
   0x7   : > { %p50_p4 = por %p49_p2, %p48_p1  ;;  %p803_p5 = por %p99_p3, %p48_p1 }
   0x8   : > { %p621_p6 = scmp.ge.s32.totalorder %s749_s14, 2 }
   0xa   : > { %127 = sbr.rel (%p621_p6) target bundleno = 24 (0x18), region = 24 }
  0x11   : > { %130 = sbr.rel (!%p50_p4) target bundleno = 24 (0x18), region = 28  ;;  %s132_s21 = sand.u32 (%p50_p4), 1, %s745_s13  }
  0x12   : > { %s623_s22 = sshll.u32 (%p50_p4), %s749_s14, 3  ;;  %s622_s23 = sshll.u32 (%p50_p4), %s132_s21, 5 }
  0x13   : > { %s136_s26 = scalar_lea.vmem (%p50_p4), %s948_s1, %s623_s22  ;;  %s134_s27 = scalar_lea.vmem (%p50_p4), [#allocation2], %s622_s23 }
  0x14   : > { %v170_v0 = vld [vmem:[%s136_s26] sm:$0xff] (%p50_p4)  ;;  %v172_v1 = vld [vmem:[%s136_s26 + $0x10] sm:$0xff] (%p50_p4) }
  0x15   : > { %v174_v2 = vld [vmem:[%s136_s26 + $0x20] sm:$0xff] (%p50_p4)  ;;  %171 = vst [vmem:[%s134_s27] sm:$0xff] (%p50_p4), %v170_v0  ;;  %173 = vst [vmem:[%s134_s27 + $0x8] sm:$0xff] (%p50_p4), %v172_v1  ;;  %v176_v3 = vld [vmem:[%s136_s26 + $0x30] sm:$0xff] (%p50_p4) }
  0x16   : > { %175 = vst [vmem:[%s134_s27 + $0x10] sm:$0xff] (%p50_p4), %v174_v2  ;;  %177 = vst [vmem:[%s134_s27 + $0x18] sm:$0xff] (%p50_p4), %v176_v3 }
  0x18 PF: > { %p624_p7 = scmp.ge.s32.totalorder %s749_s14, 1  ;;  %p182_p8 = scmp.lt.s32.totalorder %s749_s14, 3 }
  0x1a   : > { %p183_p9 = pnand %p624_p7, %p182_p8 }
  0x1b   : > { %s189_s28 = sand.u32 (!%p183_p9), 1, %s741_s12   ;;  %v211_v4 = vld [vmem:[%s947_s0] sm:$0xff] (!%p183_p9)  ;;  %vm299_vm0 = vcmask (!%p183_p9), 228352   ;;  %v217_v5 = vld [vmem:[%s947_s0 + $0x30] sm:$0xff] (!%p183_p9)  ;;  %vm336_vm1 = vcmask (!%p183_p9), 1043456   ;;  %v751_v6 = vmov (!%p183_p9), 0  }
  0x1c   : > { %186 = sbr.rel (%p183_p9) target bundleno = 273 (0x111), region = 66  ;;  %s625_s6 = sshll.u32 (!%p183_p9), %s189_s28, 5  ;;  %666 = vmatprep.mubr.msk.f32.mxu0 (!%p183_p9), %vm299_vm0, %v211_v4  ;;  %675 = vmatprep.mubr.msk.f32.mxu1 (!%p183_p9), %vm299_vm0, %v217_v5  ;;  %vm752_vm2 = vmmov (!%p183_p9), 1   ;;  %v229_v13 = vld [vmem:[%s949_s2 + $0x10] sm:$0xff] (!%p183_p9)  ;;  %v227_v14 = vld [vmem:[%s949_s2] sm:$0xff] (!%p183_p9)  ;;  %v230_v15 = vld [vmem:[%s949_s2 + $0x18] sm:$0xff] (!%p183_p9) }
  0x1d   : > { %726 = vset.pattern.permute.xlu1 (!%p183_p9), %v751_v6  ;;  %725 = vset.pattern.permute.xlu0 (!%p183_p9), %v751_v6  ;;  %s191_s7 = scalar_lea.vmem (!%p183_p9), [#allocation2], %s625_s6  ;;  %vm689_vm3 = vmpackc.low (!%p183_p9), %vm336_vm1, %vm752_vm2  ;;  %v228_v16 = vld [vmem:[%s949_s2 + $0x8] sm:$0xff] (!%p183_p9)  ;;  %v218_v18 = vld [vmem:[%s947_s0 + $0x38] sm:$0xff] (!%p183_p9)  ;;  %s698_s21 = smul.u32 (!%p183_p9), 96, %s189_s28 }
  0x1e   : > { %v223_v7 = vld [vmem:[%s191_s7] sm:$0xff] (!%p183_p9)  ;;  %v224_v8 = vld [vmem:[%s191_s7 + $0x8] sm:$0xff] (!%p183_p9)  ;;  %v225_v9 = vld [vmem:[%s191_s7 + $0x10] sm:$0xff] (!%p183_p9)  ;;  %251 = vperm.xlu1 (!%p183_p9), %726, %v229_v13   ;;  %241 = vperm.xlu0 (!%p183_p9), %725, %v227_v14  }
  0x1f   : > { %v684_v10 = vpack.c.bf16 (!%p183_p9), %v224_v8, %v223_v7  ;;  %v226_v11 = vld [vmem:[%s191_s7 + $0x18] sm:$0xf] (!%p183_p9)  ;;  %v212_v17 = vld [vmem:[%s947_s0 + $0x8] sm:$0xff] (!%p183_p9)  ;;  %v213_v19 = vld [vmem:[%s947_s0 + $0x10] sm:$0xff] (!%p183_p9)  ;;  %s904_s22 = scalar_lea.vmem (!%p183_p9), [#allocation3], %s698_s21 }
  0x20   : > { %v688_v12 = vpack.c.bf16 (!%p183_p9), %v226_v11, %v225_v9  ;;  %v219_v20 = vld [vmem:[%s947_s0 + $0x40] sm:$0xff] (!%p183_p9)  ;;  %v232_v21 = vld [vmem:[%s949_s2 + $0x28] sm:$0xff] (!%p183_p9)  ;;  %v214_v23 = vld [vmem:[%s947_s0 + $0x18] sm:$0xff] (!%p183_p9) }
  0x21   : > { %685 = vmatprep.subr.bf16.mxu0 (!%p183_p9), %v684_v10  ;;  %694 = vmatprep.subr.bf16.mxu1 (!%p183_p9), %v684_v10  ;;  %v231_v22 = vld [vmem:[%s949_s2 + $0x20] sm:$0xff] (!%p183_p9)  ;;  %v220_v24 = vld [vmem:[%s947_s0 + $0x48] sm:$0xff] (!%p183_p9)  ;;  %v221_v26 = vld [vmem:[%s947_s0 + $0x50] sm:$0xff] (!%p183_p9) }
  0x22   : > { %687 = vmatpush3.bf16.msra.mxu0 (!%p183_p9), %v684_v10  ;;  %696 = vmatpush3.bf16.msra.mxu1 (!%p183_p9), %v684_v10  ;;  %v215_v25 = vld [vmem:[%s947_s0 + $0x20] sm:$0xff] (!%p183_p9)  ;;  %v234_v27 = vld [vmem:[%s949_s2 + $0x38] sm:$0xff] (!%p183_p9)  ;;  %v233_v28 = vld [vmem:[%s949_s2 + $0x30] sm:$0xff] (!%p183_p9) }
  0x23   : > { %690 = vmatprep.subr.msk.bf16.mxu0 %vm689_vm3, %v688_v12  ;;  %695 = vmatprep.subr.msk.bf16.mxu1 %vm689_vm3, %v688_v12  ;;  %v216_v29 = vld [vmem:[%s947_s0 + $0x28] sm:$0xff]  ;;  %v222_v30 = vld [vmem:[%s947_s0 + $0x58] sm:$0xff]  ;;  %v235_v32 = vld [vmem:[%s949_s2 + $0x40] sm:$0xff]  ;;  %s639_s12 = sshll.u32 (%p803_p5), %s618_s15, 3 }
  0x24   : > { %256 = vperm.xlu1 %726, %v230_v15   ;;  %246 = vperm.xlu0 %725, %v228_v16   ;;  %v236_v31 = vld [vmem:[%s949_s2 + $0x48] sm:$0xff]  ;;  %v238_v33 = vld [vmem:[%s949_s2 + $0x58] sm:$0xff]  ;;  %v237_v34 = vld [vmem:[%s949_s2 + $0x50] sm:$0xff]  ;;  %s485_s20 = scalar_lea.vmem (%p803_p5), %s950_s3, %s639_s12 }
  0x26   : > { %693 = vmatpush3.bf16.msk.msra.mxu0 %vm689_vm3, %v688_v12  ;;  %697 = vmatpush3.bf16.msk.msra.mxu1 %vm689_vm3, %v688_v12 }
  0x28   : > { %266 = vperm.xlu1 %726, %v232_v21   ;;  %261 = vperm.xlu0 %725, %v231_v22  }
  0x29   : > { %667 = vmatmul.mubr.msk.f32.vlgmr.msra.gmra.mrb[0].mxu0 %vm299_vm0, %v212_v17  ;;  %676 = vmatmul.mubr.msk.f32.vlgmr.msra.gmra.mrb[0].mxu1 %vm299_vm0, %v218_v18 }
  0x2a   : > { %669 = vmatprep.mubr.msk.f32.mxu0 %vm299_vm0, %v213_v19  ;;  %678 = vmatprep.mubr.msk.f32.mxu1 %vm299_vm0, %v219_v20 }
  0x2c   : > { %276 = vperm.xlu1 %726, %v234_v27   ;;  %271 = vperm.xlu0 %725, %v233_v28  }
  0x2d   : > { %670 = vmatmul.mubr.msk.f32.gmra.mrb[2].mxu0 %vm299_vm0, %v214_v23  ;;  %679 = vmatmul.mubr.msk.f32.gmra.mrb[2].mxu1 %vm299_vm0, %v220_v24 }
  0x2e   : > { %672 = vmatprep.mubr.msk.f32.mxu0 %vm299_vm0, %v215_v25  ;;  %681 = vmatprep.mubr.msk.f32.mxu1 %vm299_vm0, %v221_v26 }
  0x30   : > { %286 = vperm.xlu1 %726, %v236_v31   ;;  %281 = vperm.xlu0 %725, %v235_v32  }
  0x31   : > { %673 = vmatmul.mubr.msk.f32.gmra.mrb[4].mxu0 %vm299_vm0, %v216_v29  ;;  %682 = vmatmul.mubr.msk.f32.gmra.mrb[4].mxu1 %vm299_vm0, %v222_v30 }
  0x34   : > { %296 = vperm.xlu1 %726, %v238_v33   ;;  %291 = vperm.xlu0 %725, %v237_v34  }
  0x9d   : > { %v252_v35 = vpop.permute.xlu1 %251  ;;  %v242_v36 = vpop.permute.xlu0 %241 }
  0xa3   : > { %v257_v37 = vpop.permute.xlu1 %256  ;;  %v247_v38 = vpop.permute.xlu0 %246 }
  0xa7   : > { %v267_v39 = vpop.permute.xlu1 %266  ;;  %v262_v40 = vpop.permute.xlu0 %261 }
  0xab   : > { %v277_v41 = vpop.permute.xlu1 %276  ;;  %v272_v42 = vpop.permute.xlu0 %271 }
  0xaf   : > { %v287_v43 = vpop.permute.xlu1 %286  ;;  %v282_v44 = vpop.permute.xlu0 %281 }
  0xb3   : > { %v297_v61 = vpop.permute.xlu1 %296  ;;  %v292_v62 = vpop.permute.xlu0 %291 }
  0xfc   : > { %v668_v45 = vpop.f32.mrb[0].mxu0  ;;  %v677_v46 = vpop.f32.mrb[0].mxu1 }
  0xfd   : > { %v412_v47 = vadd.f32 %v668_v45, %v247_v38  ;;  %v442_v48 = vadd.f32 %v677_v46, %v277_v41  ;;  %v406_v49 = vpop.f32.mrb[1].mxu0  ;;  %v436_v50 = vpop.f32.mrb[1].mxu1 }
  0xfe   : > { %v407_v51 = vadd.f32 %v406_v49, %v242_v36  ;;  %v437_v52 = vadd.f32 %v436_v50, %v272_v42 }
  0xff   : > { %466 = vst [vmem:[%s904_s22 + $0x8] sm:$0xff] %v412_v47  ;;  %472 = vst [vmem:[%s904_s22 + $0x38] sm:$0xff] %v442_v48 }
 0x100   : > { %465 = vst [vmem:[%s904_s22] sm:$0xff] %v407_v51  ;;  %471 = vst [vmem:[%s904_s22 + $0x30] sm:$0xff] %v437_v52  ;;  %v671_v53 = vpop.f32.mrb[2].mxu0  ;;  %v680_v54 = vpop.f32.mrb[2].mxu1 }
 0x101   : > { %v422_v55 = vadd.f32 %v671_v53, %v257_v37  ;;  %v452_v56 = vadd.f32 %v680_v54, %v287_v43  ;;  %v416_v57 = vpop.f32.mrb[3].mxu0  ;;  %v446_v58 = vpop.f32.mrb[3].mxu1 }
 0x102   : > { %v417_v59 = vadd.f32 %v416_v57, %v252_v35  ;;  %v447_v60 = vadd.f32 %v446_v58, %v282_v44  ;;  %483 = sbr.rel (!%p803_p5) target bundleno = 273 (0x111), region = 74 }
 0x103   : > { %468 = vst [vmem:[%s904_s22 + $0x18] sm:$0xff] %v422_v55  ;;  %474 = vst [vmem:[%s904_s22 + $0x48] sm:$0xff] %v452_v56 }
 0x104   : > { %467 = vst [vmem:[%s904_s22 + $0x10] sm:$0xff] %v417_v59  ;;  %473 = vst [vmem:[%s904_s22 + $0x40] sm:$0xff] %v447_v60  ;;  %v674_v63 = vpop.f32.mrb[4].mxu0  ;;  %v683_v0 = vpop.f32.mrb[4].mxu1 }
 0x105   : > { %v432_v1 = vadd.f32 %v674_v63, %v267_v39  ;;  %v462_v2 = vadd.f32 %v683_v0, %v297_v61  ;;  %v426_v3 = vpop.f32.mrb[5].mxu0  ;;  %v456_v4 = vpop.f32.mrb[5].mxu1 }
 0x106   : > { %v427_v5 = vadd.f32 %v426_v3, %v262_v40  ;;  %v457_v6 = vadd.f32 %v456_v4, %v292_v62  ;;  %v537_v8 = vld [vmem:[%s904_s22 + $0x8] sm:$0xff] (%p803_p5)  ;;  %v549_v14 = vld [vmem:[%s904_s22 + $0x38] sm:$0xff] (%p803_p5) }
 0x107   : > { %470 = vst [vmem:[%s904_s22 + $0x28] sm:$0xff] %v432_v1  ;;  %476 = vst [vmem:[%s904_s22 + $0x58] sm:$0xff] %v462_v2  ;;  %v535_v7 = vld [vmem:[%s904_s22] sm:$0xff] (%p803_p5)  ;;  %v547_v13 = vld [vmem:[%s904_s22 + $0x30] sm:$0xff] (%p803_p5) }
 0x108   : > { %469 = vst [vmem:[%s904_s22 + $0x20] sm:$0xff] %v427_v5  ;;  %475 = vst [vmem:[%s904_s22 + $0x50] sm:$0xff] %v457_v6 }
 0x109   : > { %536 = vst [vmem:[%s485_s20] sm:$0xff] %v535_v7  ;;  %538 = vst [vmem:[%s485_s20 + $0x10] sm:$0xff] %v537_v8 }
 0x10a   : > { %v541_v10 = vld [vmem:[%s904_s22 + $0x18] sm:$0xff]  ;;  %548 = vst [vmem:[%s485_s20 + $0x60] sm:$0xff] %v547_v13  ;;  %550 = vst [vmem:[%s485_s20 + $0x70] sm:$0xff] %v549_v14  ;;  %v553_v16 = vld [vmem:[%s904_s22 + $0x48] sm:$0xff] }
 0x10b   : > { %v539_v9 = vld [vmem:[%s904_s22 + $0x10] sm:$0xff]  ;;  %542 = vst [vmem:[%s485_s20 + $0x30] sm:$0xff] %v541_v10  ;;  %v551_v15 = vld [vmem:[%s904_s22 + $0x40] sm:$0xff]  ;;  %554 = vst [vmem:[%s485_s20 + $0x90] sm:$0xff] %v553_v16 }
 0x10c   : > { %540 = vst [vmem:[%s485_s20 + $0x20] sm:$0xff] %v539_v9  ;;  %552 = vst [vmem:[%s485_s20 + $0x80] sm:$0xff] %v551_v15 }
 0x10e   : > { %v545_v12 = vld [vmem:[%s904_s22 + $0x28] sm:$0xff]  ;;  %v557_v18 = vld [vmem:[%s904_s22 + $0x58] sm:$0xff] }
 0x10f   : > { %v543_v11 = vld [vmem:[%s904_s22 + $0x20] sm:$0xff]  ;;  %546 = vst [vmem:[%s485_s20 + $0x50] sm:$0xff] %v545_v12  ;;  %v555_v17 = vld [vmem:[%s904_s22 + $0x50] sm:$0xff]  ;;  %558 = vst [vmem:[%s485_s20 + $0xb0] sm:$0xff] %v557_v18 }
 0x110   : > { %544 = vst [vmem:[%s485_s20 + $0x40] sm:$0xff] %v543_v11  ;;  %556 = vst [vmem:[%s485_s20 + $0xa0] sm:$0xff] %v555_v17 }
 0x111 PF: > { %p10_p10 = scmp.ge.s32.totalorder %s790_s16, 4   ;;  %s952_s12 = smov %s745_s13 }
 0x112   : > { %s953_s13 = smov %s801_s19  ;;  %s954_s14 = smov %s790_s16 }
 0x113   :  { %12 = sbr.rel (!%p10_p10) target bundleno = 2 (0x2), region = 143 }

// kernel: model_forward.11
= control target key start
LH: loop header
LB: loop body
LE: loop exit
PB: predicated region body
PF: predicated region fallthrough
CT: control target
= control target key end

     0   :  { %s812_s18 = smov 0   ;;  %s814_s19 = smov 0   ;;  %s940_s0 = inlined_call_operand.vmem [shape: f32[32,28], index: 0, kind: input, shape index: {}]   ;;  %s941_s1 = inlined_call_operand.vmem [shape: f32[28,256], index: 1, kind: input, shape index: {}]   ;;  %s942_s2 = inlined_call_operand.vmem [shape: f32[32,4], index: 2, kind: input, shape index: {}]   ;;  %s943_s3 = inlined_call_operand.vmem [shape: f32[4,256], index: 3, kind: input, shape index: {}]   ;;  %s944_s4 = inlined_call_operand.vmem [shape: f32[32,1], index: 4, kind: input, shape index: {}]   ;;  %s945_s5 = inlined_call_operand.vmem [shape: f32[32,256], index: 5, kind: output, shape index: {}]  }
   0x1   :  { %s816_s20 = smov 0  }
   0x2 LB: > { %s828_s21 = sadd.s32 4294967295, %s778_s20   ;;  %s831_s22 = sadd.s32 1, %s778_s20   ;;  %s778_s20 = sphi %s816_s20, %s951_s20   ;;  %s774_s19 = sphi %s814_s19, %s950_s19   ;;  %s770_s18 = sphi %s812_s18, %s949_s18  }
   0x3   : > { %s40_s23 = ssub.s32 %s778_s20, %s831_s22  ;;  %s43_s24 = sadd.s32 1, %s774_s19 }
   0x4   : > { %p41_p0 = scmp.eq.s32.totalorder %s40_s23, 0  ;;  %p50_p1 = scmp.ne.s32.totalorder %s774_s19, %s770_s18 }
   0x5   : > { %p51_p2 = scmp.eq.s32.totalorder %s778_s20, 0  ;;  %p148_p3 = scmp.eq.s32.totalorder %s828_s21, 1 }
   0x6   : > { %s841_s25 = scalar_select %p41_p0, %s774_s19, %s43_s24  }
   0x7   : > { %p52_p4 = por %p51_p2, %p50_p1  ;;  %p843_p5 = por %p148_p3, %p50_p1 }
   0x8   : > { %p654_p6 = scmp.ge.s32.totalorder %s778_s20, 2 }
   0xa   : > { %179 = sbr.rel (%p654_p6) target bundleno = 24 (0x18), region = 28 }
  0x11   : > { %182 = sbr.rel (!%p52_p4) target bundleno = 24 (0x18), region = 32  ;;  %s184_s27 = sand.u32 (%p52_p4), 1, %s774_s19  }
  0x12   : > { %s656_s28 = sshll.u32 (%p52_p4), %s778_s20, 3  ;;  %s655_s29 = sshll.u32 (%p52_p4), %s184_s27, 5 }
  0x13   : > { %s188_s7 = scalar_lea.vmem (%p52_p4), %s941_s1, %s656_s28  ;;  %s186_s8 = scalar_lea.vmem (%p52_p4), [#allocation2], %s655_s29 }
  0x14   : > { %v222_v0 = vld [vmem:[%s188_s7] sm:$0xff] (%p52_p4)  ;;  %v224_v1 = vld [vmem:[%s188_s7 + $0x10] sm:$0xff] (%p52_p4) }
  0x15   : > { %v226_v2 = vld [vmem:[%s188_s7 + $0x20] sm:$0xff] (%p52_p4)  ;;  %223 = vst [vmem:[%s186_s8] sm:$0xff] (%p52_p4), %v222_v0  ;;  %225 = vst [vmem:[%s186_s8 + $0x8] sm:$0xff] (%p52_p4), %v224_v1  ;;  %v228_v3 = vld [vmem:[%s188_s7 + $0x30] sm:$0xff] (%p52_p4) }
  0x16   : > { %227 = vst [vmem:[%s186_s8 + $0x10] sm:$0xff] (%p52_p4), %v226_v2  ;;  %229 = vst [vmem:[%s186_s8 + $0x18] sm:$0xff] (%p52_p4), %v228_v3 }
  0x18 PF: > { %p657_p7 = scmp.ge.s32.totalorder %s778_s20, 1  ;;  %p241_p8 = scmp.lt.s32.totalorder %s778_s20, 3 }
  0x1a   : > { %p242_p9 = pnand %p657_p7, %p241_p8 }
  0x1b   : > { %s248_s9 = sand.u32 (!%p242_p9), 1, %s770_s18   ;;  %p278_p10 = scmp.lt.s32.totalorder (!%p242_p9), %s828_s21, 1  ;;  %v290_v4 = vld [vmem:[%s942_s2] sm:$0xff] (!%p242_p9)  ;;  %vm295_vm0 = vcmask (!%p242_p9), 31744   ;;  %v284_v5 = vld [vmem:[%s940_s0 + $0x10] sm:$0xff] (!%p242_p9)  ;;  %vm397_vm1 = vcmask (!%p242_p9), 228352  }
  0x1c   : > { %245 = sbr.rel (%p242_p9) target bundleno = 274 (0x112), region = 74  ;;  %s860_s12 = sshll.u32 (!%p242_p9), %s248_s9, 5  ;;  %690 = vmatprep.mubr.msk.f32.mxu0 (!%p242_p9), %vm295_vm0, %v290_v4  ;;  %707 = vmatprep.mubr.msk.f32.mxu1 (!%p242_p9), %vm397_vm1, %v284_v5  ;;  %v780_v9 = vmov (!%p242_p9), 0   ;;  %vm308_vm2 = vcmask (!%p242_p9), 1043456   ;;  %v500_v12 = vld [vmem:[%s944_s4 + $0x10] sm:$0xff] (!%p242_p9)  ;;  %vm781_vm3 = vmmov (!%p242_p9), 1  }
  0x1d   : > { %s250_s15 = scalar_lea.vmem (!%p242_p9), [#allocation2], %s860_s12  ;;  %755 = vset.pattern.permute.xlu1 (!%p242_p9), %v780_v9  ;;  %754 = vset.pattern.permute.xlu0 (!%p242_p9), %v780_v9  ;;  %vm873_vm4 = vmpackc.low (!%p242_p9), %vm308_vm2, %vm781_vm3  ;;  %v498_v15 = vld [vmem:[%s944_s4] sm:$0xff] (!%p242_p9)  ;;  %v501_v16 = vld [vmem:[%s944_s4 + $0x18] sm:$0xff] (!%p242_p9)  ;;  %s277_s27 = scalar_lea.vmem (!%p242_p9), [#allocation3], %s860_s12 }
  0x1e   : > { %v286_v6 = vld [vmem:[%s250_s15] sm:$0xff] (!%p242_p9)  ;;  %v287_v7 = vld [vmem:[%s250_s15 + $0x8] sm:$0xff] (!%p242_p9)  ;;  %v288_v8 = vld [vmem:[%s250_s15 + $0x10] sm:$0xff] (!%p242_p9)  ;;  %514 = vperm.xlu1 (!%p242_p9), %755, %v500_v12   ;;  %504 = vperm.xlu0 (!%p242_p9), %754, %v498_v15  }
  0x1f   : > { %v710_v10 = vpack.c.bf16 (!%p242_p9), %v287_v7, %v286_v6  ;;  %v289_v11 = vld [vmem:[%s250_s15 + $0x18] sm:$0xf] (!%p242_p9)  ;;  %v291_v18 = vld [vmem:[%s942_s2 + $0x8] sm:$0xff] (!%p242_p9)  ;;  %v292_v19 = vld [vmem:[%s942_s2 + $0x10] sm:$0xff] (!%p242_p9) }
  0x20   : > { %v714_v13 = vpack.c.bf16 (!%p242_p9), %v289_v11, %v288_v8  ;;  %v499_v20 = vld [vmem:[%s944_s4 + $0x8] sm:$0xff] (!%p242_p9)  ;;  %v293_v21 = vld [vmem:[%s942_s2 + $0x18] sm:$0xff] (!%p242_p9)  ;;  %v282_v23 = vld [vmem:[%s940_s0] sm:$0xff] (!%p242_p9) }
  0x21   : > { %720 = vmatprep.subr.bf16.mxu1 (!%p242_p9), %v710_v10  ;;  %v285_v22 = vld [vmem:[%s940_s0 + $0x18] sm:$0xff] (!%p242_p9)  ;;  %v283_v24 = vld [vmem:[%s940_s0 + $0x8] sm:$0xff] (!%p242_p9) }
  0x22   : > { %722 = vmatpush3.bf16.msra.mxu1 (!%p242_p9), %v710_v10  ;;  %519 = vperm.xlu1 (!%p242_p9), %755, %v501_v16  }
  0x23   : > { %s279_s16 = scalar_select %p278_p10, %s828_s21, 1  ;;  %721 = vmatprep.subr.msk.bf16.mxu1 %vm873_vm4, %v714_v13  ;;  %509 = vperm.xlu0 %754, %v499_v20  }
  0x24   : > { %s672_s28 = sshll.u32 (%p843_p5), %s828_s21, 3 }
  0x25   : > { %s660_s20 = sshll.u32 %s279_s16, 2  ;;  %s538_s6 = scalar_lea.vmem (%p843_p5), %s945_s5, %s672_s28 }
  0x26   : > { %s281_s29 = scalar_lea.vmem %s943_s3, %s660_s20  ;;  %723 = vmatpush3.bf16.msk.msra.mxu1 %vm873_vm4, %v714_v13 }
  0x27   : > { %v294_v17 = vld [vmem:[%s281_s29] sm:$0xf] }
  0x28   : > { %688 = vmatprep.subr.msk.mxu0 %vm308_vm2, %v294_v17 }
  0x29   : > { %689 = vmatpush3.msk.msra.mxu0 %vm308_vm2, %v294_v17  ;;  %708 = vmatmul.mubr.msk.f32.vlgmr.msra.gmra.mrb[0].mxu1 %vm397_vm1, %v285_v22 }
  0x2a   : > { %691 = vmatmul.mubr.msk.f32.vlgmr.msra.gmra.mrb[0].mxu0 %vm295_vm0, %v291_v18  ;;  %711 = vmatprep.subr.bf16.mxu0 %v710_v10 }
  0x2b   : > { %713 = vmatpush3.bf16.msra.mxu0 %v710_v10  ;;  %693 = vmatprep.mubr.msk.f32.mxu0 %vm295_vm0, %v292_v19 }
  0x2c   : > { %716 = vmatprep.subr.msk.bf16.mxu0 %vm873_vm4, %v714_v13 }
  0x2e   : > { %694 = vmatmul.mubr.msk.f32.gmra.mrb[2].mxu0 %vm295_vm0, %v293_v21 }
  0x2f   : > { %719 = vmatpush3.bf16.msk.msra.mxu0 %vm873_vm4, %v714_v13  ;;  %704 = vmatprep.mubr.msk.f32.mxu0 %vm397_vm1, %v282_v23 }
  0x32   : > { %705 = vmatmul.mubr.msk.f32.vlgmr.msra.gmra.mrb[0].mxu0 %vm397_vm1, %v283_v24 }
  0x9d   : > { %v515_v25 = vpop.permute.xlu1 %514  ;;  %v505_v26 = vpop.permute.xlu0 %504 }
  0xa1   : > { %v520_v32 = vpop.permute.xlu1 %519 }
  0xa2   : > { %v510_v35 = vpop.permute.xlu0 %509 }
  0xfc   : > { %v709_v28 = vpop.f32.mrb[0].mxu1 }
  0xfd   : > { %v489_v31 = vpop.f32.mrb[1].mxu1 }
 0x101   : > { %v695_v27 = vpop.f32.mrb[2].mxu0 }
 0x102   : > { %v388_v29 = vpop.f32.mrb[3].mxu0  ;;  %v495_v30 = vadd.f32 %v709_v28, %v695_v27 }
 0x103   : > { %v490_v33 = vadd.f32 %v489_v31, %v388_v29  ;;  %536 = sbr.rel (!%p843_p5) target bundleno = 274 (0x112), region = 82 }
 0x104   : > { %v525_v34 = vadd.f32 %v520_v32, %v495_v30 }
 0x105   : > { %v524_v36 = vadd.f32 %v515_v25, %v490_v33  ;;  %v706_v37 = vpop.f32.mrb[0].mxu0 }
 0x106   : > { %529 = vst [vmem:[%s277_s27 + $0x18] sm:$0xff] %v525_v34  ;;  %v523_v38 = vadd.f32 %v706_v37, %v510_v35  ;;  %v479_v39 = vpop.f32.mrb[1].mxu0 }
 0x107   : > { %528 = vst [vmem:[%s277_s27 + $0x10] sm:$0xff] %v524_v36  ;;  %v522_v40 = vadd.f32 %v505_v26, %v479_v39 }
 0x108   : > { %527 = vst [vmem:[%s277_s27 + $0x8] sm:$0xff] %v523_v38 }
 0x109   : > { %526 = vst [vmem:[%s277_s27] sm:$0xff] %v522_v40 }
 0x10d   : > { %v578_v44 = vld [vmem:[%s277_s27 + $0x18] sm:$0xff] }
 0x10e   : > { %v576_v43 = vld [vmem:[%s277_s27 + $0x10] sm:$0xff]  ;;  %579 = vst [vmem:[%s538_s6 + $0x30] sm:$0xff] %v578_v44 }
 0x10f   : > { %v574_v42 = vld [vmem:[%s277_s27 + $0x8] sm:$0xff]  ;;  %577 = vst [vmem:[%s538_s6 + $0x20] sm:$0xff] %v576_v43 }
 0x110   : > { %v572_v41 = vld [vmem:[%s277_s27] sm:$0xff]  ;;  %575 = vst [vmem:[%s538_s6 + $0x10] sm:$0xff] %v574_v42 }
 0x111   : > { %573 = vst [vmem:[%s538_s6] sm:$0xff] %v572_v41 }
 0x112 PF: > { %p12_p11 = scmp.ge.s32.totalorder %s831_s22, 4   ;;  %s949_s18 = smov %s774_s19 }
 0x113   : > { %s950_s19 = smov %s841_s25  ;;  %s951_s20 = smov %s831_s22 }
 0x114   :  { %14 = sbr.rel (!%p12_p11) target bundleno = 2 (0x2), region = 154 }

// kernel: model_forward.12
= control target key start
LH: loop header
LB: loop body
LE: loop exit
PB: predicated region body
PF: predicated region fallthrough
CT: control target
= control target key end

     0   :  { %s665_s6 = smov 0   ;;  %s667_s7 = smov 0   ;;  %s850_s0 = inlined_call_operand.vmem [shape: f32[32,256], index: 0, kind: input, shape index: {}]   ;;  %s851_s1 = inlined_call_operand.vmem [shape: f32[32,256], index: 1, kind: output, shape index: {}]  }
   0x1   :  { %s669_s8 = smov 0   ;;  %s671_s9 = smov 0  }
   0x2   :  { %s673_s10 = smov 0   ;;  %s675_s11 = smov 0  }
   0x3   :  { %s677_s12 = smov 0   ;;  %s679_s13 = smov 0  }
   0x4   :  { %s681_s14 = smov 0  }
   0x5 LB: > { %s482_s15 = sadd.s32 4294967295, %s651_s14   ;;  %s20_s16 = sadd.s32 1, %s643_s12  ;;  %s651_s14 = sphi %s681_s14, %s11_s14   ;;  %s647_s13 = sphi %s679_s13, %s861_s13   ;;  %s643_s12 = sphi %s677_s12, %s860_s12   ;;  %s639_s11 = sphi %s675_s11, %s859_s11   ;;  %s635_s10 = sphi %s673_s10, %s858_s10   ;;  %s631_s9 = sphi %s671_s9, %s857_s9   ;;  %s627_s8 = sphi %s669_s8, %s856_s8   ;;  %s623_s7 = sphi %s667_s7, %s855_s7   ;;  %s619_s6 = sphi %s665_s6, %s854_s6  }
   0x6   : > { %p21_p0 = scmp.ge.s32.totalorder %s20_s16, 2  ;;  %s23_s17 = sadd.s32 1, %s647_s13 }
   0x7   : > { %s30_s18 = sadd.s32 1, %s631_s9  ;;  %p37_p1 = scmp.ne.s32.totalorder %s631_s9, %s627_s8 }
   0x8   : > { %s863_s16 = smov (%p21_p0, %s20_s16), 0  ;;  %s865_s17 = smov (!%p21_p0, %s23_s17), %s647_s13 }
   0x9   : > { %s27_s19 = ssub.s32 %s643_s12, %s863_s16  ;;  %p38_p2 = scmp.eq.s32.totalorder %s651_s14, 0 }
   0xa   : > { %p25_p3 = scmp.ge.s32.totalorder %s865_s17, 2  ;;  %p28_p4 = scmp.eq.s32.totalorder %s27_s19, 0 }
   0xb   : > { %p722_p5 = por %p38_p2, %p37_p1  ;;  %s53_s21 = smul.u32 %s643_s12, %s647_s13 }
   0xc   : > { %s867_s17 = smov (%p25_p3, %s865_s17), 0  ;;  %p68_p6 = scmp.ne.s32.totalorder %s623_s7, %s619_s6 }
   0xd   : > { %s731_s22 = scalar_select %p28_p4, %s631_s9, %s30_s18  }
   0xe   : > { %s54_s23 = smul.u32 %s867_s17, %s863_s16  ;;  %p69_p7 = scmp.eq.s32.totalorder %s482_s15, 3 }
   0xf   : > { %s58_s25 = sadd.s32 1, %s623_s7  ;;  %p485_p10 = scmp.ge.s32.totalorder %s651_s14, 4 }
  0x10   : > { %s55_s24 = ssub.s32 %s53_s21, %s54_s23  ;;  %p738_p9 = por %p69_p7, %p68_p6 }
  0x11   : > { %p56_p8 = scmp.eq.s32.totalorder %s55_s24, 0  ;;  %91 = sbr.rel (%p485_p10) target bundleno = 31 (0x1f), region = 16 }
  0x13   : > { %s743_s27 = scalar_select %p56_p8, %s623_s7, %s58_s25  }
  0x18   : > { %94 = sbr.rel (!%p722_p5) target bundleno = 31 (0x1f), region = 20  ;;  %s96_s28 = sand.u32 (%p722_p5), 1, %s631_s9  }
  0x19   : > { %s487_s29 = sshll.u32 (%p722_p5), %s643_s12, 3  ;;  %s486_s30 = sshll.u32 (%p722_p5), %s96_s28, 5 }
  0x1a   : > { %s100_s4 = scalar_lea.vmem (%p722_p5), %s850_s0, %s487_s29  ;;  %s98_s5 = scalar_lea.vmem (%p722_p5), [#allocation4], %s486_s30 }
  0x1b   : > { %v134_v0 = vld [vmem:[%s100_s4] sm:$0xff] (%p722_p5)  ;;  %v136_v1 = vld [vmem:[%s100_s4 + $0x10] sm:$0xff] (%p722_p5) }
  0x1c   : > { %v138_v2 = vld [vmem:[%s100_s4 + $0x20] sm:$0xff] (%p722_p5)  ;;  %135 = vst [vmem:[%s98_s5] sm:$0xff] (%p722_p5), %v134_v0  ;;  %137 = vst [vmem:[%s98_s5 + $0x8] sm:$0xff] (%p722_p5), %v136_v1  ;;  %v140_v3 = vld [vmem:[%s100_s4 + $0x30] sm:$0xff] (%p722_p5) }
  0x1d   : > { %139 = vst [vmem:[%s98_s5 + $0x10] sm:$0xff] (%p722_p5), %v138_v2  ;;  %141 = vst [vmem:[%s98_s5 + $0x18] sm:$0xff] (%p722_p5), %v140_v3 }
  0x1f PF: > { %p488_p11 = scmp.ge.s32.totalorder %s651_s14, 1  ;;  %p146_p12 = scmp.lt.s32.totalorder %s651_s14, 5 }
  0x21   : > { %p147_p13 = pnand %p488_p11, %p146_p12 }
  0x22   : > { %s153_s15 = sand.u32 (!%p147_p13), 1, %s627_s8   ;;  %s168_s18 = sand.u32 (!%p147_p13), 1, %s619_s6  }
  0x23   : > { %150 = sbr.rel (%p147_p13) target bundleno = 393 (0x189), region = 58  ;;  %s489_s19 = sshll.u32 (!%p147_p13), %s153_s15, 5 }
  0x24   : > { %s490_s20 = sshll.u32 (!%p147_p13), %s168_s18, 5  ;;  %s155_s21 = scalar_lea.vmem (!%p147_p13), [#allocation4], %s489_s19 }
  0x25   : > { %v757_v4 = vld [vmem:[%s155_s21] sm:$0xff] (!%p147_p13)  ;;  %v759_v5 = vld [vmem:[%s155_s21 + $0x8] sm:$0xff] (!%p147_p13)  ;;  %v761_v6 = vld [vmem:[%s155_s21 + $0x10] sm:$0xff] (!%p147_p13)  ;;  %p176_p0 = scmp.eq.s32.totalorder (!%p147_p13), %s639_s11, 0  ;;  %p177_p1 = scmp.eq.s32.totalorder (!%p147_p13), %s635_s10, 0 }
  0x26   : > { %v765_v7 = vld [vmem:[%s155_s21 + $0x18] sm:$0xff] (!%p147_p13)  ;;  %s769_s23 = scalar_lea.vmem (!%p147_p13), [#allocation5], %s490_s20 }
  0x27   : > { %p178_p2 = pnand (!%p147_p13), %p177_p1, %p176_p0 }
  0x2a   : > { %181 = sbr.rel (%p178_p2) target bundleno = 49 (0x31), region = 66  ;;  %vm182_vm0 = vcmask (!%p178_p2), 7168   ;;  %v653_v8 = vmov (!%p178_p2), 0.0  }
  0x2b   : > { %183 = vst.msk [vmem:[#allocation2] sm:$0xff] (!%p178_p2), %vm182_vm0, %v653_v8  ;;  %184 = vst.msk [vmem:[#allocation2 + $0x8] sm:$0xff] (!%p178_p2), %vm182_vm0, %v653_v8 }
  0x2c   : > { %185 = vst.msk [vmem:[#allocation2 + $0x10] sm:$0xff] (!%p178_p2), %vm182_vm0, %v653_v8  ;;  %186 = vst.msk [vmem:[#allocation2 + $0x18] sm:$0xff] (!%p178_p2), %vm182_vm0, %v653_v8 }
  0x2d   : > { %187 = vst.msk [vmem:[#allocation3] sm:$0xff] (!%p178_p2), %vm182_vm0, %v653_v8  ;;  %188 = vst.msk [vmem:[#allocation3 + $0x8] sm:$0xff] (!%p178_p2), %vm182_vm0, %v653_v8 }
  0x2e   : > { %189 = vst.msk [vmem:[#allocation3 + $0x10] sm:$0xff] (!%p178_p2), %vm182_vm0, %v653_v8  ;;  %190 = vst.msk [vmem:[#allocation3 + $0x18] sm:$0xff] (!%p178_p2), %vm182_vm0, %v653_v8 }
  0x31 PF: > { %p491_p3 = scmp.ne.s32.totalorder %s639_s11, 0 }
  0x32   : > { %202 = vadd.xlane.f32.xlu1 (!%p491_p3), %v761_v6  ;;  %198 = vadd.xlane.f32.xlu0 (!%p491_p3), %v757_v4  ;;  %v220_v9 = vmul.f32 (!%p491_p3), %v759_v5, %v759_v5  ;;  %v219_v10 = vmul.f32 (!%p491_p3), %v757_v4, %v757_v4  ;;  %v222_v11 = vmul.f32 (!%p491_p3), %v765_v7, %v765_v7  ;;  %v194_v14 = vld [vmem:[#allocation2] sm:$0xff] (!%p491_p3)  ;;  %vm210_vm1 = vcmask (!%p491_p3), 7168   ;;  %v195_v20 = vld [vmem:[#allocation2 + $0x8] sm:$0xff] (!%p491_p3) }
  0x33   : > { %193 = sbr.rel (%p491_p3) target bundleno = 207 (0xcf), region = 70  ;;  %v221_v12 = vmul.f32 (!%p491_p3), %v761_v6, %v761_v6  ;;  %v196_v13 = vld [vmem:[#allocation2 + $0x10] sm:$0xff] (!%p491_p3)  ;;  %v197_v19 = vld [vmem:[#allocation2 + $0x18] sm:$0xff] (!%p491_p3) }
  0x34   : > { %v216_v25 = vld [vmem:[#allocation3 + $0x8] sm:$0xff] (!%p491_p3)  ;;  %v215_v26 = vld [vmem:[#allocation3] sm:$0xff] (!%p491_p3) }
  0x35   : > { %v218_v31 = vld [vmem:[#allocation3 + $0x18] sm:$0xff] (!%p491_p3)  ;;  %v217_v32 = vld [vmem:[#allocation3 + $0x10] sm:$0xff] (!%p491_p3) }
  0x36   : > { %204 = vadd.xlane.f32.xlu1 (!%p491_p3), %v765_v7  ;;  %200 = vadd.xlane.f32.xlu0 (!%p491_p3), %v759_v5 }
  0x3a   : > { %225 = vadd.xlane.f32.xlu1 %v220_v9  ;;  %223 = vadd.xlane.f32.xlu0 %v219_v10 }
  0x3e   : > { %229 = vadd.xlane.f32.xlu1 %v222_v11  ;;  %227 = vadd.xlane.f32.xlu0 %v221_v12 }
  0xbf   : > { %v203_v15 = vpop.xlane.xlu1 %202  ;;  %v199_v16 = vpop.xlane.xlu0 %198 }
  0xc0   : > { %v208_v17 = vadd.f32 %v203_v15, %v196_v13  ;;  %v206_v18 = vadd.f32 %v199_v16, %v194_v14 }
  0xc2   : > { %213 = vst.msk [vmem:[#allocation2 + $0x10] sm:$0xff] %vm210_vm1, %v208_v17  ;;  %211 = vst.msk [vmem:[#allocation2] sm:$0xff] %vm210_vm1, %v206_v18 }
  0xc3   : > { %v205_v21 = vpop.xlane.xlu1 %204  ;;  %v201_v22 = vpop.xlane.xlu0 %200 }
  0xc4   : > { %v209_v23 = vadd.f32 %v205_v21, %v197_v19  ;;  %v207_v24 = vadd.f32 %v201_v22, %v195_v20 }
  0xc6   : > { %214 = vst.msk [vmem:[#allocation2 + $0x18] sm:$0xff] %vm210_vm1, %v209_v23  ;;  %212 = vst.msk [vmem:[#allocation2 + $0x8] sm:$0xff] %vm210_vm1, %v207_v24 }
  0xc7   : > { %v226_v27 = vpop.xlane.xlu1 %225  ;;  %v224_v28 = vpop.xlane.xlu0 %223 }
  0xc8   : > { %v232_v29 = vadd.f32 %v226_v27, %v216_v25  ;;  %v231_v30 = vadd.f32 %v224_v28, %v215_v26 }
  0xca   : > { %236 = vst.msk [vmem:[#allocation3 + $0x8] sm:$0xff] %vm210_vm1, %v232_v29  ;;  %235 = vst.msk [vmem:[#allocation3] sm:$0xff] %vm210_vm1, %v231_v30 }
  0xcb   : > { %v230_v33 = vpop.xlane.xlu1 %229  ;;  %v228_v34 = vpop.xlane.xlu0 %227 }
  0xcc   : > { %v234_v35 = vadd.f32 %v230_v33, %v218_v31  ;;  %v233_v36 = vadd.f32 %v228_v34, %v217_v32 }
  0xce   : > { %238 = vst.msk [vmem:[#allocation3 + $0x18] sm:$0xff] %vm210_vm1, %v234_v35  ;;  %237 = vst.msk [vmem:[#allocation3 + $0x10] sm:$0xff] %vm210_vm1, %v233_v36 }
  0xcf PF: > { %p239_p4 = scmp.eq.s32.totalorder %s639_s11, 1 }
  0xd1   : > { %p240_p5 = pnand %p239_p4, %p177_p1 }
  0xd2   : > { %v244_v37 = vld [vmem:[#allocation2] sm:$0xff] (!%p240_p5)  ;;  %v245_v39 = vld [vmem:[#allocation2 + $0x8] sm:$0xff] (!%p240_p5)  ;;  %v246_v44 = vld [vmem:[#allocation2 + $0x10] sm:$0xff] (!%p240_p5)  ;;  %vm280_vm2 = vcmask (!%p240_p5), 7168  }
  0xd3   : > { %243 = sbr.rel (%p240_p5) target bundleno = 238 (0xee), region = 74  ;;  %v252_v38 = vld [vmem:[#allocation3] sm:$0xff] (!%p240_p5)  ;;  %v248_v40 = vmul.f32 (!%p240_p5), 0.00390625, %v244_v37  ;;  %v249_v42 = vmul.f32 (!%p240_p5), 0.00390625, %v245_v39  ;;  %v253_v43 = vld [vmem:[#allocation3 + $0x8] sm:$0xff] (!%p240_p5)  ;;  %v250_v47 = vmul.f32 (!%p240_p5), 0.00390625, %v246_v44 }
  0xd4   : > { %v256_v41 = vmul.f32 (!%p240_p5), 0.00390625, %v252_v38  ;;  %v257_v46 = vmul.f32 (!%p240_p5), 0.00390625, %v253_v43  ;;  %v247_v49 = vld [vmem:[#allocation2 + $0x18] sm:$0xff] (!%p240_p5) }
  0xd5   : > { %v254_v45 = vld [vmem:[#allocation3 + $0x10] sm:$0xff] (!%p240_p5)  ;;  %v255_v50 = vld [vmem:[#allocation3 + $0x18] sm:$0xff] (!%p240_p5)  ;;  %v260_v51 = vmul.f32 (!%p240_p5), %v248_v40, %v248_v40  ;;  %v261_v52 = vmul.f32 (!%p240_p5), %v249_v42, %v249_v42  ;;  %v262_v53 = vmul.f32 (!%p240_p5), %v250_v47, %v250_v47  ;;  %v251_v54 = vmul.f32 (!%p240_p5), 0.00390625, %v247_v49 }
  0xd6   : > { %v258_v48 = vmul.f32 (!%p240_p5), 0.00390625, %v254_v45  ;;  %v259_v55 = vmul.f32 (!%p240_p5), 0.00390625, %v255_v50  ;;  %v285_v9 = vsub.f32 (!%p240_p5), 0.0, %v248_v40  ;;  %v286_v10 = vsub.f32 (!%p240_p5), 0.0, %v249_v42 }
  0xd7   : > { %v264_v56 = vsub.f32 (!%p240_p5), %v256_v41, %v260_v51  ;;  %v265_v57 = vsub.f32 (!%p240_p5), %v257_v46, %v261_v52  ;;  %v263_v59 = vmul.f32 (!%p240_p5), %v251_v54, %v251_v54  ;;  %v287_v11 = vsub.f32 (!%p240_p5), 0.0, %v250_v47 }
  0xd8   : > { %v266_v58 = vsub.f32 (!%p240_p5), %v258_v48, %v262_v53  ;;  %v288_v13 = vsub.f32 (!%p240_p5), 0.0, %v251_v54 }
  0xd9   : > { %v268_v60 = vmax.f32 (!%p240_p5), %v264_v56, 0.0  ;;  %v269_v61 = vmax.f32 (!%p240_p5), %v265_v57, 0.0  ;;  %v267_v63 = vsub.f32 (!%p240_p5), %v259_v55, %v263_v59 }
  0xda   : > { %v270_v62 = vmax.f32 %v266_v58, 0.0 }
  0xdb   : > { %v272_v0 = vadd.f32 1e-05, %v268_v60  ;;  %v273_v1 = vadd.f32 1e-05, %v269_v61  ;;  %v271_v3 = vmax.f32 %v267_v63, 0.0 }
  0xdc   : > { %v274_v2 = vadd.f32 1e-05, %v270_v62 }
  0xdd   : > { %571 = vrsqrt.f32 %v272_v0  ;;  %v275_v8 = vadd.f32 1e-05, %v271_v3 }
  0xde   : > { %573 = vrsqrt.f32 %v273_v1 }
  0xdf   : > { %575 = vrsqrt.f32 %v274_v2 }
  0xe0   : > { %577 = vrsqrt.f32 %v275_v8 }
  0xe7   : > { %v572_v12 = vpop.eup %571 }
  0xe8   : > { %v574_v14 = vpop.eup %573  ;;  %281 = vst.msk [vmem:[#allocation2] sm:$0xff] %vm280_vm2, %v572_v12  ;;  %v289_v15 = vmul.f32 %v572_v12, %v285_v9 }
  0xe9   : > { %v576_v16 = vpop.eup %575  ;;  %282 = vst.msk [vmem:[#allocation2 + $0x8] sm:$0xff] %vm280_vm2, %v574_v14  ;;  %v290_v17 = vmul.f32 %v574_v14, %v286_v10 }
  0xea   : > { %v578_v18 = vpop.eup %577  ;;  %283 = vst.msk [vmem:[#allocation2 + $0x10] sm:$0xff] %vm280_vm2, %v576_v16  ;;  %293 = vst.msk [vmem:[#allocation3] sm:$0xff] %vm280_vm2, %v289_v15  ;;  %v291_v19 = vmul.f32 %v576_v16, %v287_v11 }
  0xeb   : > { %284 = vst.msk [vmem:[#allocation2 + $0x18] sm:$0xff] %vm280_vm2, %v578_v18  ;;  %294 = vst.msk [vmem:[#allocation3 + $0x8] sm:$0xff] %vm280_vm2, %v290_v17  ;;  %v292_v20 = vmul.f32 %v578_v18, %v288_v13 }
  0xec   : > { %295 = vst.msk [vmem:[#allocation3 + $0x10] sm:$0xff] %vm280_vm2, %v291_v19 }
  0xed   : > { %296 = vst.msk [vmem:[#allocation3 + $0x18] sm:$0xff] %vm280_vm2, %v292_v20 }
  0xee PF: > { %p492_p6 = scmp.ne.s32.totalorder %s639_s11, 1 }
  0xef   : > { %v300_v22 = vld [vmem:[#allocation2] sm:$0xff] (!%p492_p6)  ;;  %v654_v23 = vmov (!%p492_p6), 0  }
  0xf0   : > { %299 = sbr.rel (%p492_p6) target bundleno = 385 (0x181), region = 78  ;;  %580 = vset.pattern.permute.xlu1 (!%p492_p6), %v654_v23  ;;  %579 = vset.pattern.permute.xlu0 (!%p492_p6), %v654_v23  ;;  %v301_v25 = vld [vmem:[#allocation2 + $0x8] sm:$0xff] (!%p492_p6) }
  0xf1   : > { %v302_v21 = vld [vmem:[#allocation2 + $0x10] sm:$0xff] (!%p492_p6)  ;;  %306 = vperm.xlu0 (!%p492_p6), %579, %v300_v22   ;;  %v328_v27 = vld [vmem:[#allocation3] sm:$0xff] (!%p492_p6) }
  0xf2   : > { %316 = vperm.xlu1 (!%p492_p6), %580, %v302_v21   ;;  %v303_v24 = vld [vmem:[#allocation2 + $0x18] sm:$0xff] (!%p492_p6)  ;;  %v329_v26 = vld [vmem:[#allocation3 + $0x8] sm:$0xff] (!%p492_p6) }
  0xf3   : > { %v330_v29 = vld [vmem:[#allocation3 + $0x10] sm:$0xff] (!%p492_p6) }
  0xf4   : > { %v331_v28 = vld [vmem:[#allocation3 + $0x18] sm:$0xff] (!%p492_p6) }
  0xf5   : > { %311 = vperm.xlu0 (!%p492_p6), %579, %v301_v25  }
  0xf6   : > { %321 = vperm.xlu1 (!%p492_p6), %580, %v303_v24  }
  0xf9   : > { %334 = vperm.xlu0 %579, %v328_v27  }
  0xfa   : > { %339 = vperm.xlu1 %580, %v329_v26  }
  0xfd   : > { %344 = vperm.xlu0 %579, %v330_v29  }
  0xfe   : > { %349 = vperm.xlu1 %580, %v331_v28  }
 0x170   : > { %v307_v31 = vpop.permute.xlu0 %306 }
 0x171   : > { %v317_v30 = vpop.permute.xlu1 %316  ;;  %v324_v34 = vmul.f32 %v307_v31, %v757_v4 }
 0x172   : > { %v326_v40 = vmul.f32 %v317_v30, %v761_v6 }
 0x174   : > { %v312_v33 = vpop.permute.xlu0 %311 }
 0x175   : > { %v322_v32 = vpop.permute.xlu1 %321  ;;  %v325_v35 = vmul.f32 %v312_v33, %v759_v5 }
 0x176   : > { %v327_v41 = vmul.f32 %v322_v32, %v765_v7 }
 0x178   : > { %v335_v37 = vpop.permute.xlu0 %334 }
 0x179   : > { %v340_v36 = vpop.permute.xlu1 %339  ;;  %v352_v39 = vadd.f32 %v335_v37, %v324_v34 }
 0x17a   : > { %v353_v38 = vadd.f32 %v340_v36, %v325_v35 }
 0x17b   : > { %356 = vst [vmem:[%s769_s23] sm:$0xff] %v352_v39 }
 0x17c   : > { %357 = vst [vmem:[%s769_s23 + $0x8] sm:$0xff] %v353_v38  ;;  %v345_v43 = vpop.permute.xlu0 %344 }
 0x17d   : > { %v350_v42 = vpop.permute.xlu1 %349  ;;  %v354_v45 = vadd.f32 %v345_v43, %v326_v40 }
 0x17e   : > { %v355_v44 = vadd.f32 %v350_v42, %v327_v41 }
 0x17f   : > { %358 = vst [vmem:[%s769_s23 + $0x10] sm:$0xff] %v354_v45 }
 0x180   : > { %359 = vst [vmem:[%s769_s23 + $0x18] sm:$0xff] %v355_v44 }
 0x181 PF: > { %366 = sbr.rel (!%p738_p9) target bundleno = 393 (0x189), region = 82 }
 0x182   : > { %s367_s6 = smul.u32 (%p738_p9), %s635_s10, %s639_s11  ;;  %v403_v4 = vld [vmem:[%s769_s23] sm:$0xff] (%p738_p9) }
 0x183   : > { %v405_v5 = vld [vmem:[%s769_s23 + $0x8] sm:$0xff] (%p738_p9) }
 0x184   : > { %s494_s8 = sshll.u32 (%p738_p9), %s367_s6, 3 }
 0x185   : > { %s369_s28 = scalar_lea.vmem (%p738_p9), %s851_s1, %s494_s8 }
 0x186   : > { %v407_v6 = vld [vmem:[%s769_s23 + $0x10] sm:$0xff] (%p738_p9)  ;;  %404 = vst [vmem:[%s369_s28] sm:$0xff] (%p738_p9), %v403_v4  ;;  %406 = vst [vmem:[%s369_s28 + $0x10] sm:$0xff] (%p738_p9), %v405_v5 }
 0x187   : > { %v409_v7 = vld [vmem:[%s769_s23 + $0x18] sm:$0xff] (%p738_p9)  ;;  %408 = vst [vmem:[%s369_s28 + $0x20] sm:$0xff] (%p738_p9), %v407_v6 }
 0x188   : > { %410 = vst [vmem:[%s369_s28 + $0x30] sm:$0xff] %v409_v7 }
 0x189 PF: > { %s11_s14 = sadd.s32 1, %s651_s14   ;;  %s854_s6 = smov %s623_s7 }
 0x18a   : > { %p8_p7 = scmp.ge.s32.totalorder %s11_s14, 6   ;;  %s855_s7 = smov %s743_s27 }
 0x18b   : > { %s856_s8 = smov %s631_s9  ;;  %s857_s9 = smov %s731_s22 }
 0x18c   : > { %s858_s10 = smov %s643_s12  ;;  %s859_s11 = smov %s647_s13 }
 0x18d   : > { %s860_s12 = smov %s863_s16  ;;  %s861_s13 = smov %s867_s17 }
 0x18e   :  { %10 = sbr.rel (!%p8_p7) target bundleno = 5 (0x5), region = 151 }

// kernel: model_forward.13
= control target key start
LH: loop header
LB: loop body
LE: loop exit
PB: predicated region body
PF: predicated region fallthrough
CT: control target
= control target key end

     0   :  { %s655_s18 = smov 0   ;;  %s657_s19 = smov 0   ;;  %s731_s0 = inlined_call_operand.vmem [shape: f32[8,32], index: 0, kind: input, shape index: {}]   ;;  %s732_s1 = inlined_call_operand.vmem [shape: f32[32,256], index: 1, kind: input, shape index: {}]   ;;  %s733_s2 = inlined_call_operand.vmem [shape: f32[8,4], index: 2, kind: input, shape index: {}]   ;;  %s734_s3 = inlined_call_operand.vmem [shape: f32[4,256], index: 3, kind: input, shape index: {}]   ;;  %s735_s4 = inlined_call_operand.vmem [shape: f32[8,1], index: 4, kind: input, shape index: {}]   ;;  %s736_s5 = inlined_call_operand.vmem [shape: f32[8,256], index: 5, kind: output, shape index: {}]  }
   0x1   :  { %s659_s20 = smov 0  }
   0x2 LB: > { %s524_s21 = sadd.s32 4294967295, %s619_s20   ;;  %s672_s22 = sadd.s32 1, %s619_s20   ;;  %s619_s20 = sphi %s659_s20, %s740_s20   ;;  %s615_s19 = sphi %s657_s19, %s739_s19   ;;  %s611_s18 = sphi %s655_s18, %s738_s18  }
   0x3   : > { %s40_s23 = ssub.s32 %s619_s20, %s672_s22  ;;  %s43_s24 = sadd.s32 1, %s615_s19 }
   0x4   : > { %p41_p0 = scmp.eq.s32.totalorder %s40_s23, 0  ;;  %p50_p1 = scmp.ne.s32.totalorder %s615_s19, %s611_s18 }
   0x5   : > { %p51_p2 = scmp.eq.s32.totalorder %s619_s20, 0  ;;  %p527_p4 = scmp.ge.s32.totalorder %s619_s20, 2 }
   0x6   : > { %s681_s25 = scalar_select %p41_p0, %s615_s19, %s43_s24  }
   0x7   : > { %p52_p3 = por %p51_p2, %p50_p1  ;;  %179 = sbr.rel (%p527_p4) target bundleno = 21 (0x15), region = 28 }
   0xe   : > { %182 = sbr.rel (!%p52_p3) target bundleno = 21 (0x15), region = 32  ;;  %s184_s26 = sand.u32 (%p52_p3), 1, %s615_s19  }
   0xf   : > { %s529_s27 = sshll.u32 (%p52_p3), %s619_s20, 3  ;;  %s528_s28 = sshll.u32 (%p52_p3), %s184_s26, 5 }
  0x10   : > { %s188_s6 = scalar_lea.vmem (%p52_p3), %s732_s1, %s529_s27  ;;  %s186_s7 = scalar_lea.vmem (%p52_p3), [#allocation2], %s528_s28 }
  0x11   : > { %v222_v0 = vld [vmem:[%s188_s6] sm:$0xff] (%p52_p3)  ;;  %v224_v1 = vld [vmem:[%s188_s6 + $0x10] sm:$0xff] (%p52_p3) }
  0x12   : > { %v226_v2 = vld [vmem:[%s188_s6 + $0x20] sm:$0xff] (%p52_p3)  ;;  %223 = vst [vmem:[%s186_s7] sm:$0xff] (%p52_p3), %v222_v0  ;;  %225 = vst [vmem:[%s186_s7 + $0x8] sm:$0xff] (%p52_p3), %v224_v1  ;;  %v228_v3 = vld [vmem:[%s188_s6 + $0x30] sm:$0xff] (%p52_p3) }
  0x13   : > { %227 = vst [vmem:[%s186_s7 + $0x10] sm:$0xff] (%p52_p3), %v226_v2  ;;  %229 = vst [vmem:[%s186_s7 + $0x18] sm:$0xff] (%p52_p3), %v228_v3 }
  0x15 PF: > { %p530_p5 = scmp.ge.s32.totalorder %s619_s20, 1  ;;  %p241_p6 = scmp.lt.s32.totalorder %s619_s20, 3 }
  0x17   : > { %p242_p7 = pnand %p530_p5, %p241_p6 }
  0x18   : > { %s248_s8 = sand.u32 (!%p242_p7), 1, %s611_s18   ;;  %p694_p8 = scmp.lt.s32.totalorder (!%p242_p7), %s524_s21, 1  ;;  %v621_v4 = vmov (!%p242_p7), 0.0|0.0   ;;  %v622_v5 = vmov (!%p242_p7), 0.0   ;;  %vm623_vm0 = vmmov (!%p242_p7), 0   ;;  %v445_v6 = vld [vmem:[%s735_s4] sm:$0xff] (!%p242_p7) }
  0x19   : > { %245 = sbr.rel (%p242_p7) target bundleno = 254 (0xfe), region = 74  ;;  %562 = vmatprep.subr.bf16.mxu1 (!%p242_p7), %v621_v4  ;;  %s531_s10 = sshll.u32 (!%p242_p7), %s248_s8, 5  ;;  %546 = vmatprep.subr.mxu0 (!%p242_p7), %v622_v5  ;;  %v624_v10 = vmov (!%p242_p7), 0   ;;  %vm297_vm1 = vcmask (!%p242_p7), 1043456   ;;  %v291_v14 = vld [vmem:[%s733_s2] sm:$0xff] (!%p242_p7)  ;;  %vm293_vm2 = vcmask (!%p242_p7), 31744  }
  0x1a   : > { %548 = vmatprep.mubr.msk.f32.mxu0 (!%p242_p7), %vm623_vm0, %v622_v5  ;;  %559 = vmatprep.mubr.msk.f32.mxu1 (!%p242_p7), %vm623_vm0, %v622_v5  ;;  %s250_s13 = scalar_lea.vmem (!%p242_p7), [#allocation2], %s531_s10  ;;  %v286_v16 = vld [vmem:[%s731_s0] sm:$0xff] (!%p242_p7)  ;;  %vm371_vm3 = vcmask (!%p242_p7), 261120  }
  0x1b   : > { %v287_v7 = vld [vmem:[%s250_s13] sm:$0xff] (!%p242_p7)  ;;  %v288_v8 = vld [vmem:[%s250_s13 + $0x8] sm:$0xff] (!%p242_p7)  ;;  %v289_v9 = vld [vmem:[%s250_s13 + $0x10] sm:$0xff] (!%p242_p7)  ;;  %596 = vset.pattern.permute.xlu0 (!%p242_p7), %v624_v10 }
  0x1c   : > { %v563_v11 = vpack.c.bf16 (!%p242_p7), %v288_v8, %v287_v7  ;;  %v290_v12 = vld [vmem:[%s250_s13 + $0x18] sm:$0xff] (!%p242_p7)  ;;  %448 = vperm.xlu0 (!%p242_p7), %596, %v445_v6  }
  0x1d   : > { %v566_v13 = vpack.c.bf16 (!%p242_p7), %v290_v12, %v289_v9 }
  0x1e   : > { %564 = vmatpush3.bf16.msra.mxu1 (!%p242_p7), %v563_v11 }
  0x1f   : > { %565 = vmatprep.subr.bf16.mxu1 (!%p242_p7), %v621_v4 }
  0x20   : > { %s742_s21 = smov (!%p694_p8, %s524_s21), 1 }
  0x21   : > { %s532_s14 = sshll.u32 %s742_s21, 2  ;;  %s533_s26 = sshll.u32 %s742_s21, 3 }
  0x22   : > { %s281_s17 = scalar_lea.vmem %s734_s3, %s532_s14  ;;  %567 = vmatpush3.bf16.msra.mxu1 %v566_v13  ;;  %s285_s29 = scalar_lea.vmem %s736_s5, %s533_s26 }
  0x23   : > { %v292_v15 = vld [vmem:[%s281_s17] sm:$0xf] }
  0x24   : > { %547 = vmatpush3.msk.msra.mxu0 %vm297_vm1, %v292_v15 }
  0x25   : > { %549 = vmatmul.mubr.msk.f32.vlgmr.msra.gmra.mrb[0].mxu0 %vm293_vm2, %v291_v14  ;;  %560 = vmatmul.mubr.msk.f32.vlgmr.msra.gmra.mrb[0].mxu1 %vm371_vm3, %v286_v16 }
  0x9b   : > { %v449_v20 = vpop.permute.xlu0 %448 }
  0xf8   : > { %v367_v17 = vpop.f32.mrb[0].mxu0  ;;  %v441_v19 = vpop.f32.mrb[0].mxu1 }
  0xf9   : > { %v550_v18 = vpop.f32.mrb[1].mxu0  ;;  %v442_v21 = vadd.f32 %v441_v19, %v367_v17  ;;  %v561_v22 = vpop.f32.mrb[1].mxu1 }
  0xfb   : > { %v451_v23 = vadd.f32 %v449_v20, %v442_v21 }
  0xfd   : > { %452 = vst [vmem:[%s285_s29] sm:$0xff] %v451_v23 }
  0xfe PF: > { %p12_p9 = scmp.ge.s32.totalorder %s672_s22, 4   ;;  %s738_s18 = smov %s615_s19 }
  0xff   : > { %s739_s19 = smov %s681_s25  ;;  %s740_s20 = smov %s672_s22 }
 0x100   :  { %14 = sbr.rel (!%p12_p9) target bundleno = 2 (0x2), region = 116 }

// kernel: model_forward.15
= control target key start
LH: loop header
LB: loop body
LE: loop exit
PB: predicated region body
PF: predicated region fallthrough
CT: control target
= control target key end

     0   :  { %s362_s12 = smov 0   ;;  %s385_s0 = inlined_call_operand.vmem [shape: f32[2,8], index: 0, kind: input, shape index: {}]   ;;  %s386_s1 = inlined_call_operand.vmem [shape: f32[8,256], index: 1, kind: input, shape index: {}]   ;;  %s387_s2 = inlined_call_operand.vmem [shape: f32[2,1], index: 2, kind: input, shape index: {}]   ;;  %s388_s3 = inlined_call_operand.vmem [shape: f32[2,256], index: 3, kind: output, shape index: {}]  }
   0x1 LB: > { %s302_s13 = sadd.s32 4294967295, %s337_s12   ;;  %p306_p0 = scmp.ge.s32.totalorder %s337_s12, 1  ;;  %s337_s12 = sphi %s362_s12, %s13_s12  }
   0x2   : > { %p136_p1 = scmp.lt.s32.totalorder %s337_s12, 3 }
   0x4   : > { %p137_p2 = pnand %p306_p0, %p136_p1 }
   0x5   : > { %p158_p3 = scmp.lt.s32.totalorder (!%p137_p2), %s302_s13, 1  ;;  %v339_v0 = vmov (!%p137_p2), 0.0   ;;  %vm340_vm0 = vmmov (!%p137_p2), 0   ;;  %v168_v1 = vld [vmem:[%s387_s2] sm:$0x3] (!%p137_p2)  ;;  %v341_v2 = vmov (!%p137_p2), 0  }
   0x6   : > { %140 = sbr.rel (%p137_p2) target bundleno = 233 (0xe9), region = 32  ;;  %314 = vmatprep.subr.mxu0 (!%p137_p2), %v339_v0  ;;  %316 = vmatprep.mubr.msk.f32.mxu0 (!%p137_p2), %vm340_vm0, %v339_v0  ;;  %v166_v3 = vld [vmem:[%s385_s0] sm:$0x3] (!%p137_p2)  ;;  %vm174_vm1 = vcmask (!%p137_p2), 64512  }
   0x7   : > { %330 = vset.pattern.permute.xlu0 (!%p137_p2), %v341_v2 }
   0x8   : > { %171 = vperm.xlu0 (!%p137_p2), %330, %v168_v1  }
   0xd   : > { %s390_s13 = smov (!%p158_p3, %s302_s13), 1 }
   0xe   : > { %s307_s16 = sshll.u32 %s390_s13, 3  ;;  %s308_s22 = sshll.u32 %s390_s13, 1 }
   0xf   : > { %s161_s19 = scalar_lea.vmem %s386_s1, %s307_s16  ;;  %s165_s25 = scalar_lea.vmem %s388_s3, %s308_s22 }
  0x10   : > { %v167_v4 = vld [vmem:[%s161_s19] sm:$0xff] }
  0x11   : > { %315 = vmatpush3.msra.mxu0 %v167_v4 }
  0x12   : > { %317 = vmatmul.mubr.msk.f32.vlgmr.msra.gmra.mrb[0].mxu0 %vm174_vm1, %v166_v3 }
  0x87   : > { %v172_v5 = vpop.permute.xlu0 %171 }
  0xe5   : > { %v244_v6 = vpop.f32.mrb[0].mxu0 }
  0xe6   : > { %v245_v7 = vadd.f32 %v244_v6, %v172_v5  ;;  %v318_v8 = vpop.f32.mrb[1].mxu0 }
  0xe8   : > { %248 = vst [vmem:[%s165_s25] sm:$0x3] %v245_v7 }
  0xe9 PF: > { %s13_s12 = sadd.s32 1, %s337_s12  }
  0xea   : > { %p10_p4 = scmp.ge.s32.totalorder %s13_s12, 4  }
  0xec   :  { %12 = sbr.rel (!%p10_p4) target bundleno = 1 (0x1), region = 62 }

// kernel: model_forward.14
= control target key start
LH: loop header
LB: loop body
LE: loop exit
PB: predicated region body
PF: predicated region fallthrough
CT: control target
= control target key end

     0   :  { %s367_s6 = smov 0   ;;  %s369_s7 = smov 0   ;;  %s438_s0 = inlined_call_operand.vmem [shape: f32[8,256], index: 0, kind: input, shape index: {}]   ;;  %s439_s1 = inlined_call_operand.vmem [shape: f32[8,256], index: 1, kind: output, shape index: {}]  }
   0x1   :  { %s371_s8 = smov 0   ;;  %s373_s9 = smov 0  }
   0x2   :  { %s375_s10 = smov 0  }
   0x3 LB: > { %s20_s11 = sadd.s32 1, %s345_s8  ;;  %s23_s12 = sadd.s32 1, %s349_s9  ;;  %s353_s10 = sphi %s375_s10, %s11_s10   ;;  %s349_s9 = sphi %s373_s9, %s443_s9   ;;  %s345_s8 = sphi %s371_s8, %s442_s8   ;;  %s341_s7 = sphi %s369_s7, %s441_s7   ;;  %s337_s6 = sphi %s367_s6, %s440_s6  }
   0x4   : > { %p21_p0 = scmp.ge.s32.totalorder %s20_s11, 2  ;;  %p263_p1 = scmp.ge.s32.totalorder %s353_s10, 1 }
   0x5   : > { %p100_p2 = scmp.lt.s32.totalorder %s353_s10, 5 }
   0x6   : > { %s445_s11 = smov (%p21_p0, %s20_s11), 0  ;;  %s447_s12 = smov (!%p21_p0, %s23_s12), %s349_s9 }
   0x7   : > { %p101_p3 = pnand %p263_p1, %p100_p2  ;;  %p25_p4 = scmp.ge.s32.totalorder %s447_s12, 2 }
   0x8   : > { %p119_p5 = scmp.lt.s32.totalorder (!%p101_p3), %s337_s6, 1  ;;  %s123_s13 = smul.u32 (!%p101_p3), %s337_s6, %s341_s7 }
   0x9   : > { %s449_s12 = smov (%p25_p4, %s447_s12), 0  ;;  %104 = sbr.rel (%p101_p3) target bundleno = 343 (0x157), region = 24 }
   0xa   : > { %p130_p6 = scmp.eq.s32.totalorder (!%p101_p3), %s341_s7, 0  ;;  %p131_p7 = scmp.eq.s32.totalorder (!%p101_p3), %s337_s6, 0 }
   0xb   : > { %p124_p8 = scmp.lt.s32.totalorder (!%p101_p3), %s123_s13, 1 }
   0xc   : > { %p132_p9 = pnand (!%p101_p3), %p131_p7, %p130_p6 }
  0x10   : > { %s120_s14 = scalar_select %p119_p5, %s337_s6, 1 }
  0x11   : > { %s451_s13 = smov (!%p124_p8, %s123_s13), 1  ;;  %135 = sbr.rel (%p132_p9) target bundleno = 24 (0x18), region = 28 }
  0x12   : > { %s264_s15 = sshll.u32 %s120_s14, 3  ;;  %s265_s19 = sshll.u32 %s451_s13, 3  ;;  %vm136_vm0 = vcmask (!%p132_p9), 7168   ;;  %v355_v1 = vmov (!%p132_p9), 0.0  }
  0x13   : > { %s122_s18 = scalar_lea.vmem %s438_s0, %s264_s15  ;;  %s415_s22 = scalar_lea.vmem %s439_s1, %s265_s19  ;;  %137 = vst.msk [vmem:[#allocation2] sm:$0xff] (!%p132_p9), %vm136_vm0, %v355_v1  ;;  %138 = vst.msk [vmem:[#allocation3] sm:$0xff] (!%p132_p9), %vm136_vm0, %v355_v1 }
  0x14   : > { %v129_v0 = vld [vmem:[%s122_s18] sm:$0xff] }
  0x18 PF: > { %p266_p10 = scmp.ne.s32.totalorder %s341_s7, 0 }
  0x19   : > { %143 = vadd.xlane.f32.xlu0 (!%p266_p10), %v129_v0  ;;  %v149_v2 = vmul.f32 (!%p266_p10), %v129_v0, %v129_v0  ;;  %vm146_vm1 = vcmask (!%p266_p10), 7168  }
  0x1a   : > { %141 = sbr.rel (%p266_p10) target bundleno = 174 (0xae), region = 32  ;;  %v142_v3 = vld [vmem:[#allocation2] sm:$0xff] (!%p266_p10)  ;;  %v148_v6 = vld [vmem:[#allocation3] sm:$0xff] (!%p266_p10) }
  0x1d   : > { %150 = vadd.xlane.f32.xlu0 (!%p266_p10), %v149_v2 }
  0xa6   : > { %v144_v4 = vpop.xlane.xlu0 %143 }
  0xa7   : > { %v145_v5 = vadd.f32 %v144_v4, %v142_v3 }
  0xa9   : > { %147 = vst.msk [vmem:[#allocation2] sm:$0xff] %vm146_vm1, %v145_v5 }
  0xaa   : > { %v151_v7 = vpop.xlane.xlu0 %150 }
  0xab   : > { %v152_v8 = vadd.f32 %v151_v7, %v148_v6 }
  0xad   : > { %153 = vst.msk [vmem:[#allocation3] sm:$0xff] %vm146_vm1, %v152_v8 }
  0xae PF: > { %p154_p11 = scmp.eq.s32.totalorder %s341_s7, 1 }
  0xb0   : > { %p155_p12 = pnand %p154_p11, %p131_p7 }
  0xb1   : > { %v159_v9 = vld [vmem:[#allocation2] sm:$0xff] (!%p155_p12)  ;;  %vm168_vm2 = vcmask (!%p155_p12), 7168  }
  0xb2   : > { %158 = sbr.rel (%p155_p12) target bundleno = 203 (0xcb), region = 36  ;;  %v160_v11 = vmul.f32 (!%p155_p12), 0.00390625, %v159_v9 }
  0xb4   : > { %v161_v10 = vld [vmem:[#allocation3] sm:$0xff] (!%p155_p12)  ;;  %v163_v13 = vmul.f32 (!%p155_p12), %v160_v11, %v160_v11  ;;  %v170_v17 = vsub.f32 (!%p155_p12), 0.0, %v160_v11 }
  0xb5   : > { %v162_v12 = vmul.f32 (!%p155_p12), 0.00390625, %v161_v10 }
  0xb7   : > { %v164_v14 = vsub.f32 (!%p155_p12), %v162_v12, %v163_v13 }
  0xb9   : > { %v165_v15 = vmax.f32 %v164_v14, 0.0 }
  0xbb   : > { %v166_v16 = vadd.f32 1e-05, %v165_v15 }
  0xbd   : > { %312 = vrsqrt.f32 %v166_v16 }
  0xc7   : > { %v313_v18 = vpop.eup %312 }
  0xc8   : > { %169 = vst.msk [vmem:[#allocation2] sm:$0xff] %vm168_vm2, %v313_v18  ;;  %v171_v19 = vmul.f32 %v313_v18, %v170_v17 }
  0xca   : > { %172 = vst.msk [vmem:[#allocation3] sm:$0xff] %vm168_vm2, %v171_v19 }
  0xcb PF: > { %p267_p13 = scmp.ne.s32.totalorder %s341_s7, 1 }
  0xcc   : > { %v356_v21 = vmov (!%p267_p13), 0  }
  0xcd   : > { %175 = sbr.rel (%p267_p13) target bundleno = 343 (0x157), region = 40  ;;  %314 = vset.pattern.permute.xlu0 (!%p267_p13), %v356_v21 }
  0xcf   : > { %v176_v20 = vld [vmem:[#allocation2] sm:$0xff] (!%p267_p13) }
  0xd0   : > { %179 = vperm.xlu0 (!%p267_p13), %314, %v176_v20  }
  0xd1   : > { %v183_v22 = vld [vmem:[#allocation3] sm:$0xff] (!%p267_p13) }
  0xd4   : > { %186 = vperm.xlu0 %314, %v183_v22  }
 0x14f   : > { %v180_v23 = vpop.permute.xlu0 %179 }
 0x150   : > { %v182_v24 = vmul.f32 %v180_v23, %v129_v0 }
 0x153   : > { %v187_v25 = vpop.permute.xlu0 %186 }
 0x154   : > { %v189_v26 = vadd.f32 %v187_v25, %v182_v24 }
 0x156   : > { %190 = vst [vmem:[%s415_s22] sm:$0xff] %v189_v26 }
 0x157 PF: > { %s11_s10 = sadd.s32 1, %s353_s10   ;;  %s440_s6 = smov %s345_s8 }
 0x158   : > { %p8_p0 = scmp.ge.s32.totalorder %s11_s10, 6   ;;  %s441_s7 = smov %s349_s9 }
 0x159   : > { %s442_s8 = smov %s445_s11  ;;  %s443_s9 = smov %s449_s12 }
 0x15a   :  { %10 = sbr.rel (!%p8_p0) target bundleno = 3 (0x3), region = 70 }

// kernel: model_forward.10
= control target key start
LH: loop header
LB: loop body
LE: loop exit
PB: predicated region body
PF: predicated region fallthrough
CT: control target
= control target key end

     0   :  { %s9370_s9 = smov 0   ;;  %s9372_s10 = smov 0   ;;  %s10422_s0 = inlined_call_operand.vmem [shape: f32[96,2,8,16], index: 0, kind: input, shape index: {}]   ;;  %s10423_s1 = inlined_call_operand.vmem [shape: f32[2,16,16], index: 1, kind: input, shape index: {}]   ;;  %s10424_s2 = inlined_call_operand.vmem [shape: f32[28,256], index: 2, kind: output, shape index: {}]  }
   0x1   :  { %s9374_s11 = smov 0  }
   0x2 LB: > { %s9386_s12 = sadd.s32 4294967295, %s9343_s11   ;;  %s9389_s13 = sadd.s32 1, %s9343_s11   ;;  %s9343_s11 = sphi %s9374_s11, %s10430_s11   ;;  %s9339_s10 = sphi %s9372_s10, %s10429_s10   ;;  %s9335_s9 = sphi %s9370_s9, %s10428_s9  }
   0x3   : > { %s16_s14 = ssub.s32 %s9343_s11, %s9389_s13  ;;  %s19_s15 = sadd.s32 1, %s9339_s10 }
   0x4   : > { %p17_p0 = scmp.eq.s32.totalorder %s16_s14, 0  ;;  %p26_p1 = scmp.ne.s32.totalorder %s9339_s10, %s9335_s9 }
   0x5   : > { %p27_p2 = scmp.eq.s32.totalorder %s9343_s11, 0  ;;  %p82_p3 = scmp.eq.s32.totalorder %s9386_s12, 1 }
   0x6   : > { %s9399_s16 = scalar_select %p17_p0, %s9339_s10, %s19_s15  }
   0x7   : > { %p28_p4 = por %p27_p2, %p26_p1  ;;  %p9401_p5 = por %p82_p3, %p26_p1 }
   0x8   : > { %p8022_p6 = scmp.ge.s32.totalorder %s9343_s11, 2 }
   0xa   : > { %104 = sbr.rel (%p8022_p6) target bundleno = 69 (0x45), region = 16 }
  0x11   : > { %107 = sbr.rel (!%p28_p4) target bundleno = 69 (0x45), region = 20  ;;  %s109_s18 = sand.u32 (%p28_p4), 1, %s9339_s10  }
  0x12   : > { %s8023_s19 = sshll.u32 (%p28_p4), %s9343_s11, 3  ;;  %s9024_s20 = smul.u32 (%p28_p4), 768, %s109_s18 }
  0x13   : > { %s9411_s23 = scalar_lea.vmem (%p28_p4), %s10422_s0, %s8023_s19 }
  0x14   : > { %v331_v0 = vld [vmem:[%s9411_s23] sm:$0xff] (%p28_p4)  ;;  %v333_v1 = vld [vmem:[%s9411_s23 + $0x10] sm:$0xff] (%p28_p4)  ;;  %s9419_s24 = scalar_lea.vmem (%p28_p4), [#allocation2], %s9024_s20 }
  0x15   : > { %v335_v2 = vld [vmem:[%s9411_s23 + $0x20] sm:$0xff] (%p28_p4)  ;;  %v337_v3 = vld [vmem:[%s9411_s23 + $0x30] sm:$0xff] (%p28_p4)  ;;  %332 = vst [vmem:[%s9419_s24] sm:$0xff] (%p28_p4), %v331_v0  ;;  %334 = vst [vmem:[%s9419_s24 + $0x8] sm:$0xff] (%p28_p4), %v333_v1 }
  0x16   : > { %v339_v4 = vld [vmem:[%s9411_s23 + $0x40] sm:$0xff] (%p28_p4)  ;;  %v341_v5 = vld [vmem:[%s9411_s23 + $0x50] sm:$0xff] (%p28_p4)  ;;  %336 = vst [vmem:[%s9419_s24 + $0x10] sm:$0xff] (%p28_p4), %v335_v2  ;;  %338 = vst [vmem:[%s9419_s24 + $0x18] sm:$0xff] (%p28_p4), %v337_v3 }
  0x17   : > { %340 = vst [vmem:[%s9419_s24 + $0x20] sm:$0xff] (%p28_p4), %v339_v4  ;;  %342 = vst [vmem:[%s9419_s24 + $0x28] sm:$0xff] (%p28_p4), %v341_v5  ;;  %v343_v6 = vld [vmem:[%s9411_s23 + $0x60] sm:$0xff] (%p28_p4)  ;;  %v345_v7 = vld [vmem:[%s9411_s23 + $0x70] sm:$0xff] (%p28_p4) }
  0x18   : > { %v347_v8 = vld [vmem:[%s9411_s23 + $0x80] sm:$0xff]  ;;  %344 = vst [vmem:[%s9419_s24 + $0x30] sm:$0xff] %v343_v6  ;;  %346 = vst [vmem:[%s9419_s24 + $0x38] sm:$0xff] %v345_v7  ;;  %v349_v9 = vld [vmem:[%s9411_s23 + $0x90] sm:$0xff] }
  0x19   : > { %348 = vst [vmem:[%s9419_s24 + $0x40] sm:$0xff] %v347_v8  ;;  %v351_v10 = vld [vmem:[%s9411_s23 + $0xa0] sm:$0xff]  ;;  %v353_v11 = vld [vmem:[%s9411_s23 + $0xb0] sm:$0xff]  ;;  %350 = vst [vmem:[%s9419_s24 + $0x48] sm:$0xff] %v349_v9 }
  0x1a   : > { %352 = vst [vmem:[%s9419_s24 + $0x50] sm:$0xff] %v351_v10  ;;  %354 = vst [vmem:[%s9419_s24 + $0x58] sm:$0xff] %v353_v11  ;;  %v355_v12 = vld [vmem:[%s9411_s23 + $0xc0] sm:$0xff]  ;;  %v357_v13 = vld [vmem:[%s9411_s23 + $0xd0] sm:$0xff] }
  0x1b   : > { %v359_v14 = vld [vmem:[%s9411_s23 + $0xe0] sm:$0xff]  ;;  %356 = vst [vmem:[%s9419_s24 + $0x60] sm:$0xff] %v355_v12  ;;  %358 = vst [vmem:[%s9419_s24 + $0x68] sm:$0xff] %v357_v13  ;;  %v361_v15 = vld [vmem:[%s9411_s23 + $0xf0] sm:$0xff] }
  0x1c   : > { %360 = vst [vmem:[%s9419_s24 + $0x70] sm:$0xff] %v359_v14  ;;  %v363_v16 = vld [vmem:[%s9411_s23 + $0x100] sm:$0xff]  ;;  %v365_v17 = vld [vmem:[%s9411_s23 + $0x110] sm:$0xff]  ;;  %362 = vst [vmem:[%s9419_s24 + $0x78] sm:$0xff] %v361_v15 }
  0x1d   : > { %364 = vst [vmem:[%s9419_s24 + $0x80] sm:$0xff] %v363_v16  ;;  %366 = vst [vmem:[%s9419_s24 + $0x88] sm:$0xff] %v365_v17  ;;  %v367_v18 = vld [vmem:[%s9411_s23 + $0x120] sm:$0xff]  ;;  %v369_v19 = vld [vmem:[%s9411_s23 + $0x130] sm:$0xff] }
  0x1e   : > { %v371_v20 = vld [vmem:[%s9411_s23 + $0x140] sm:$0xff]  ;;  %368 = vst [vmem:[%s9419_s24 + $0x90] sm:$0xff] %v367_v18  ;;  %370 = vst [vmem:[%s9419_s24 + $0x98] sm:$0xff] %v369_v19  ;;  %v373_v21 = vld [vmem:[%s9411_s23 + $0x150] sm:$0xff] }
  0x1f   : > { %372 = vst [vmem:[%s9419_s24 + $0xa0] sm:$0xff] %v371_v20  ;;  %v375_v22 = vld [vmem:[%s9411_s23 + $0x160] sm:$0xff]  ;;  %v377_v23 = vld [vmem:[%s9411_s23 + $0x170] sm:$0xff]  ;;  %374 = vst [vmem:[%s9419_s24 + $0xa8] sm:$0xff] %v373_v21 }
  0x20   : > { %376 = vst [vmem:[%s9419_s24 + $0xb0] sm:$0xff] %v375_v22  ;;  %378 = vst [vmem:[%s9419_s24 + $0xb8] sm:$0xff] %v377_v23  ;;  %v379_v24 = vld [vmem:[%s9411_s23 + $0x180] sm:$0xff]  ;;  %v381_v25 = vld [vmem:[%s9411_s23 + $0x190] sm:$0xff] }
  0x21   : > { %v383_v26 = vld [vmem:[%s9411_s23 + $0x1a0] sm:$0xff]  ;;  %380 = vst [vmem:[%s9419_s24 + $0xc0] sm:$0xff] %v379_v24  ;;  %382 = vst [vmem:[%s9419_s24 + $0xc8] sm:$0xff] %v381_v25  ;;  %v385_v27 = vld [vmem:[%s9411_s23 + $0x1b0] sm:$0xff] }
  0x22   : > { %384 = vst [vmem:[%s9419_s24 + $0xd0] sm:$0xff] %v383_v26  ;;  %v387_v28 = vld [vmem:[%s9411_s23 + $0x1c0] sm:$0xff]  ;;  %v389_v29 = vld [vmem:[%s9411_s23 + $0x1d0] sm:$0xff]  ;;  %386 = vst [vmem:[%s9419_s24 + $0xd8] sm:$0xff] %v385_v27 }
  0x23   : > { %388 = vst [vmem:[%s9419_s24 + $0xe0] sm:$0xff] %v387_v28  ;;  %390 = vst [vmem:[%s9419_s24 + $0xe8] sm:$0xff] %v389_v29  ;;  %v391_v30 = vld [vmem:[%s9411_s23 + $0x1e0] sm:$0xff]  ;;  %v393_v31 = vld [vmem:[%s9411_s23 + $0x1f0] sm:$0xff] }
  0x24   : > { %v395_v32 = vld [vmem:[%s9411_s23 + $0x200] sm:$0xff]  ;;  %392 = vst [vmem:[%s9419_s24 + $0xf0] sm:$0xff] %v391_v30  ;;  %394 = vst [vmem:[%s9419_s24 + $0xf8] sm:$0xff] %v393_v31  ;;  %v397_v33 = vld [vmem:[%s9411_s23 + $0x210] sm:$0xff] }
  0x25   : > { %396 = vst [vmem:[%s9419_s24 + $0x100] sm:$0xff] %v395_v32  ;;  %v399_v34 = vld [vmem:[%s9411_s23 + $0x220] sm:$0xff]  ;;  %v401_v35 = vld [vmem:[%s9411_s23 + $0x230] sm:$0xff]  ;;  %398 = vst [vmem:[%s9419_s24 + $0x108] sm:$0xff] %v397_v33 }
  0x26   : > { %400 = vst [vmem:[%s9419_s24 + $0x110] sm:$0xff] %v399_v34  ;;  %402 = vst [vmem:[%s9419_s24 + $0x118] sm:$0xff] %v401_v35  ;;  %v403_v36 = vld [vmem:[%s9411_s23 + $0x240] sm:$0xff]  ;;  %v405_v37 = vld [vmem:[%s9411_s23 + $0x250] sm:$0xff] }
  0x27   : > { %v407_v38 = vld [vmem:[%s9411_s23 + $0x260] sm:$0xff]  ;;  %404 = vst [vmem:[%s9419_s24 + $0x120] sm:$0xff] %v403_v36  ;;  %406 = vst [vmem:[%s9419_s24 + $0x128] sm:$0xff] %v405_v37  ;;  %v409_v39 = vld [vmem:[%s9411_s23 + $0x270] sm:$0xff] }
  0x28   : > { %408 = vst [vmem:[%s9419_s24 + $0x130] sm:$0xff] %v407_v38  ;;  %v411_v40 = vld [vmem:[%s9411_s23 + $0x280] sm:$0xff]  ;;  %v413_v41 = vld [vmem:[%s9411_s23 + $0x290] sm:$0xff]  ;;  %410 = vst [vmem:[%s9419_s24 + $0x138] sm:$0xff] %v409_v39 }
  0x29   : > { %412 = vst [vmem:[%s9419_s24 + $0x140] sm:$0xff] %v411_v40  ;;  %414 = vst [vmem:[%s9419_s24 + $0x148] sm:$0xff] %v413_v41  ;;  %v415_v42 = vld [vmem:[%s9411_s23 + $0x2a0] sm:$0xff]  ;;  %v417_v43 = vld [vmem:[%s9411_s23 + $0x2b0] sm:$0xff] }
  0x2a   : > { %v419_v44 = vld [vmem:[%s9411_s23 + $0x2c0] sm:$0xff]  ;;  %416 = vst [vmem:[%s9419_s24 + $0x150] sm:$0xff] %v415_v42  ;;  %418 = vst [vmem:[%s9419_s24 + $0x158] sm:$0xff] %v417_v43  ;;  %v421_v45 = vld [vmem:[%s9411_s23 + $0x2d0] sm:$0xff] }
  0x2b   : > { %420 = vst [vmem:[%s9419_s24 + $0x160] sm:$0xff] %v419_v44  ;;  %v423_v46 = vld [vmem:[%s9411_s23 + $0x2e0] sm:$0xff]  ;;  %v425_v47 = vld [vmem:[%s9411_s23 + $0x2f0] sm:$0xff]  ;;  %422 = vst [vmem:[%s9419_s24 + $0x168] sm:$0xff] %v421_v45 }
  0x2c   : > { %424 = vst [vmem:[%s9419_s24 + $0x170] sm:$0xff] %v423_v46  ;;  %426 = vst [vmem:[%s9419_s24 + $0x178] sm:$0xff] %v425_v47  ;;  %v427_v48 = vld [vmem:[%s9411_s23 + $0x300] sm:$0xff]  ;;  %v429_v49 = vld [vmem:[%s9411_s23 + $0x310] sm:$0xff] }
  0x2d   : > { %v431_v50 = vld [vmem:[%s9411_s23 + $0x320] sm:$0xff]  ;;  %428 = vst [vmem:[%s9419_s24 + $0x180] sm:$0xff] %v427_v48  ;;  %430 = vst [vmem:[%s9419_s24 + $0x188] sm:$0xff] %v429_v49  ;;  %v433_v51 = vld [vmem:[%s9411_s23 + $0x330] sm:$0xff] }
  0x2e   : > { %432 = vst [vmem:[%s9419_s24 + $0x190] sm:$0xff] %v431_v50  ;;  %v435_v52 = vld [vmem:[%s9411_s23 + $0x340] sm:$0xff]  ;;  %v437_v53 = vld [vmem:[%s9411_s23 + $0x350] sm:$0xff]  ;;  %434 = vst [vmem:[%s9419_s24 + $0x198] sm:$0xff] %v433_v51 }
  0x2f   : > { %436 = vst [vmem:[%s9419_s24 + $0x1a0] sm:$0xff] %v435_v52  ;;  %438 = vst [vmem:[%s9419_s24 + $0x1a8] sm:$0xff] %v437_v53  ;;  %v439_v54 = vld [vmem:[%s9411_s23 + $0x360] sm:$0xff]  ;;  %v441_v55 = vld [vmem:[%s9411_s23 + $0x370] sm:$0xff] }
  0x30   : > { %v443_v56 = vld [vmem:[%s9411_s23 + $0x380] sm:$0xff]  ;;  %440 = vst [vmem:[%s9419_s24 + $0x1b0] sm:$0xff] %v439_v54  ;;  %442 = vst [vmem:[%s9419_s24 + $0x1b8] sm:$0xff] %v441_v55  ;;  %v445_v57 = vld [vmem:[%s9411_s23 + $0x390] sm:$0xff] }
  0x31   : > { %444 = vst [vmem:[%s9419_s24 + $0x1c0] sm:$0xff] %v443_v56  ;;  %v447_v58 = vld [vmem:[%s9411_s23 + $0x3a0] sm:$0xff]  ;;  %v449_v59 = vld [vmem:[%s9411_s23 + $0x3b0] sm:$0xff]  ;;  %446 = vst [vmem:[%s9419_s24 + $0x1c8] sm:$0xff] %v445_v57 }
  0x32   : > { %448 = vst [vmem:[%s9419_s24 + $0x1d0] sm:$0xff] %v447_v58  ;;  %450 = vst [vmem:[%s9419_s24 + $0x1d8] sm:$0xff] %v449_v59  ;;  %v451_v60 = vld [vmem:[%s9411_s23 + $0x3c0] sm:$0xff]  ;;  %v453_v61 = vld [vmem:[%s9411_s23 + $0x3d0] sm:$0xff] }
  0x33   : > { %v455_v62 = vld [vmem:[%s9411_s23 + $0x3e0] sm:$0xff]  ;;  %452 = vst [vmem:[%s9419_s24 + $0x1e0] sm:$0xff] %v451_v60  ;;  %454 = vst [vmem:[%s9419_s24 + $0x1e8] sm:$0xff] %v453_v61  ;;  %v457_v63 = vld [vmem:[%s9411_s23 + $0x3f0] sm:$0xff] }
  0x34   : > { %456 = vst [vmem:[%s9419_s24 + $0x1f0] sm:$0xff] %v455_v62  ;;  %v459_v0 = vld [vmem:[%s9411_s23 + $0x400] sm:$0xff]  ;;  %v461_v1 = vld [vmem:[%s9411_s23 + $0x410] sm:$0xff]  ;;  %458 = vst [vmem:[%s9419_s24 + $0x1f8] sm:$0xff] %v457_v63 }
  0x35   : > { %460 = vst [vmem:[%s9419_s24 + $0x200] sm:$0xff] %v459_v0  ;;  %462 = vst [vmem:[%s9419_s24 + $0x208] sm:$0xff] %v461_v1  ;;  %v463_v2 = vld [vmem:[%s9411_s23 + $0x420] sm:$0xff]  ;;  %v465_v3 = vld [vmem:[%s9411_s23 + $0x430] sm:$0xff] }
  0x36   : > { %v467_v4 = vld [vmem:[%s9411_s23 + $0x440] sm:$0xff]  ;;  %464 = vst [vmem:[%s9419_s24 + $0x210] sm:$0xff] %v463_v2  ;;  %466 = vst [vmem:[%s9419_s24 + $0x218] sm:$0xff] %v465_v3  ;;  %v469_v5 = vld [vmem:[%s9411_s23 + $0x450] sm:$0xff] }
  0x37   : > { %468 = vst [vmem:[%s9419_s24 + $0x220] sm:$0xff] %v467_v4  ;;  %v471_v6 = vld [vmem:[%s9411_s23 + $0x460] sm:$0xff]  ;;  %v473_v7 = vld [vmem:[%s9411_s23 + $0x470] sm:$0xff]  ;;  %470 = vst [vmem:[%s9419_s24 + $0x228] sm:$0xff] %v469_v5 }
  0x38   : > { %472 = vst [vmem:[%s9419_s24 + $0x230] sm:$0xff] %v471_v6  ;;  %474 = vst [vmem:[%s9419_s24 + $0x238] sm:$0xff] %v473_v7  ;;  %v475_v8 = vld [vmem:[%s9411_s23 + $0x480] sm:$0xff]  ;;  %v477_v9 = vld [vmem:[%s9411_s23 + $0x490] sm:$0xff] }
  0x39   : > { %v479_v10 = vld [vmem:[%s9411_s23 + $0x4a0] sm:$0xff]  ;;  %476 = vst [vmem:[%s9419_s24 + $0x240] sm:$0xff] %v475_v8  ;;  %478 = vst [vmem:[%s9419_s24 + $0x248] sm:$0xff] %v477_v9  ;;  %v481_v11 = vld [vmem:[%s9411_s23 + $0x4b0] sm:$0xff] }
  0x3a   : > { %480 = vst [vmem:[%s9419_s24 + $0x250] sm:$0xff] %v479_v10  ;;  %v483_v12 = vld [vmem:[%s9411_s23 + $0x4c0] sm:$0xff]  ;;  %v485_v13 = vld [vmem:[%s9411_s23 + $0x4d0] sm:$0xff]  ;;  %482 = vst [vmem:[%s9419_s24 + $0x258] sm:$0xff] %v481_v11 }
  0x3b   : > { %484 = vst [vmem:[%s9419_s24 + $0x260] sm:$0xff] %v483_v12  ;;  %486 = vst [vmem:[%s9419_s24 + $0x268] sm:$0xff] %v485_v13  ;;  %v487_v14 = vld [vmem:[%s9411_s23 + $0x4e0] sm:$0xff]  ;;  %v489_v15 = vld [vmem:[%s9411_s23 + $0x4f0] sm:$0xff] }
  0x3c   : > { %v491_v16 = vld [vmem:[%s9411_s23 + $0x500] sm:$0xff]  ;;  %488 = vst [vmem:[%s9419_s24 + $0x270] sm:$0xff] %v487_v14  ;;  %490 = vst [vmem:[%s9419_s24 + $0x278] sm:$0xff] %v489_v15  ;;  %v493_v17 = vld [vmem:[%s9411_s23 + $0x510] sm:$0xff] }
  0x3d   : > { %492 = vst [vmem:[%s9419_s24 + $0x280] sm:$0xff] %v491_v16  ;;  %v495_v18 = vld [vmem:[%s9411_s23 + $0x520] sm:$0xff]  ;;  %v497_v19 = vld [vmem:[%s9411_s23 + $0x530] sm:$0xff]  ;;  %494 = vst [vmem:[%s9419_s24 + $0x288] sm:$0xff] %v493_v17 }
  0x3e   : > { %496 = vst [vmem:[%s9419_s24 + $0x290] sm:$0xff] %v495_v18  ;;  %498 = vst [vmem:[%s9419_s24 + $0x298] sm:$0xff] %v497_v19  ;;  %v499_v20 = vld [vmem:[%s9411_s23 + $0x540] sm:$0xff]  ;;  %v501_v21 = vld [vmem:[%s9411_s23 + $0x550] sm:$0xff] }
  0x3f   : > { %v503_v22 = vld [vmem:[%s9411_s23 + $0x560] sm:$0xff]  ;;  %500 = vst [vmem:[%s9419_s24 + $0x2a0] sm:$0xff] %v499_v20  ;;  %502 = vst [vmem:[%s9419_s24 + $0x2a8] sm:$0xff] %v501_v21  ;;  %v505_v23 = vld [vmem:[%s9411_s23 + $0x570] sm:$0xff] }
  0x40   : > { %504 = vst [vmem:[%s9419_s24 + $0x2b0] sm:$0xff] %v503_v22  ;;  %v507_v24 = vld [vmem:[%s9411_s23 + $0x580] sm:$0xff]  ;;  %v509_v25 = vld [vmem:[%s9411_s23 + $0x590] sm:$0xff]  ;;  %506 = vst [vmem:[%s9419_s24 + $0x2b8] sm:$0xff] %v505_v23 }
  0x41   : > { %508 = vst [vmem:[%s9419_s24 + $0x2c0] sm:$0xff] %v507_v24  ;;  %510 = vst [vmem:[%s9419_s24 + $0x2c8] sm:$0xff] %v509_v25  ;;  %v511_v26 = vld [vmem:[%s9411_s23 + $0x5a0] sm:$0xff]  ;;  %v513_v27 = vld [vmem:[%s9411_s23 + $0x5b0] sm:$0xff] }
  0x42   : > { %v515_v28 = vld [vmem:[%s9411_s23 + $0x5c0] sm:$0xff]  ;;  %512 = vst [vmem:[%s9419_s24 + $0x2d0] sm:$0xff] %v511_v26  ;;  %514 = vst [vmem:[%s9419_s24 + $0x2d8] sm:$0xff] %v513_v27  ;;  %v517_v29 = vld [vmem:[%s9411_s23 + $0x5d0] sm:$0xff] }
  0x43   : > { %516 = vst [vmem:[%s9419_s24 + $0x2e0] sm:$0xff] %v515_v28  ;;  %v519_v30 = vld [vmem:[%s9411_s23 + $0x5e0] sm:$0xff]  ;;  %v521_v31 = vld [vmem:[%s9411_s23 + $0x5f0] sm:$0xff]  ;;  %518 = vst [vmem:[%s9419_s24 + $0x2e8] sm:$0xff] %v517_v29 }
  0x44   : > { %520 = vst [vmem:[%s9419_s24 + $0x2f0] sm:$0xff] %v519_v30  ;;  %522 = vst [vmem:[%s9419_s24 + $0x2f8] sm:$0xff] %v521_v31 }
  0x45 PF: > { %p8024_p7 = scmp.ge.s32.totalorder %s9343_s11, 1  ;;  %p535_p8 = scmp.lt.s32.totalorder %s9343_s11, 3 }
  0x47   : > { %p536_p9 = pnand %p8024_p7, %p535_p8 }
  0x48   : > { %s542_s25 = sand.u32 (!%p536_p9), 1, %s9335_s9   ;;  %vm622_vm0 = vcmask (!%p536_p9), 1046528   ;;  %vm615_vm1 = vcmask (!%p536_p9), 56320   ;;  %p567_p10 = scmp.lt.s32.totalorder (!%p536_p9), %s9386_s12, 1  ;;  %vm701_vm2 = vcmask (!%p536_p9), 130048   ;;  %v9345_v11 = vmov (!%p536_p9), 0.0|0.0  }
  0x49   : > { %539 = sbr.rel (%p536_p9) target bundleno = 10053 (0x2745), region = 62  ;;  %vm9346_vm3 = vmmov (!%p536_p9), 0   ;;  %v9347_v12 = vmov (!%p536_p9), 0.0   ;;  %s8025_s5 = sshll.u32 (!%p536_p9), %s542_s25, 5  ;;  %vm9673_vm4 = vmpackc.low (!%p536_p9), %vm701_vm2, %vm701_vm2  ;;  %vm803_vm5 = vcmask (!%p536_p9), 129024   ;;  %vm2453_vm6 = vcmask (!%p536_p9), 1045504  }
  0x4a   : > { %s9025_s26 = smul.u32 (!%p536_p9), 768, %s542_s25  ;;  %s9661_s6 = scalar_lea.vmem (!%p536_p9), [#allocation3], %s8025_s5  ;;  %vm2446_vm7 = vcmask (!%p536_p9), 48128   ;;  %vm2633_vm8 = vcmask (!%p536_p9), 128000   ;;  %vm4283_vm9 = vcmask (!%p536_p9), 1042432   ;;  %vm4276_vm10 = vcmask (!%p536_p9), 23552  }
  0x4b   : > { %572 = vst [vmem:[%s9661_s6] sm:$0xff] (!%p536_p9), %v9347_v12  ;;  %575 = vst [vmem:[%s9661_s6 + $0x18] sm:$0xf] (!%p536_p9), %v9347_v12  ;;  %vm4463_vm11 = vcmask (!%p536_p9), 124928   ;;  %vm6113_vm12 = vcmask (!%p536_p9), 1041408   ;;  %vm6106_vm13 = vcmask (!%p536_p9), 15360   ;;  %vm6293_vm14 = vcmask (!%p536_p9), 123904  }
  0x4c   : > { %s9612_s27 = scalar_lea.vmem (!%p536_p9), [#allocation2], %s9025_s26  ;;  %573 = vst [vmem:[%s9661_s6 + $0x8] sm:$0xff] (!%p536_p9), %v9347_v12  ;;  %574 = vst [vmem:[%s9661_s6 + $0x10] sm:$0xff] (!%p536_p9), %v9347_v12  ;;  %s9348_s7 = smov (!%p536_p9), 32   ;;  %vm1032_vm15 = vcmask (!%p536_p9), 260224  }
  0x4d   : > { %v578_v32 = vld [vmem:[%s9612_s27] sm:$0x7f] (!%p536_p9)  ;;  %v8036_v34 = vld [vmem:[%s9612_s27 + $0x8] sm:$0x7f] (!%p536_p9)  ;;  %v8054_v54 = vld [vmem:[%s9612_s27 + $0x18] sm:$0x7f] (!%p536_p9) }
  0x4e   : > { %583 = vxpose.xlu0.b32.start.end [1/1] (short) (narrow) (!%p536_p9), %v578_v32, 16  ;;  %v8028_v33 = vld [vmem:[%s9612_s27 + $0x40] sm:$0x7f] (!%p536_p9)  ;;  %v8037_v35 = vld [vmem:[%s9612_s27 + $0x48] sm:$0x7f] (!%p536_p9)  ;;  %s9349_s8 = smov (!%p536_p9), 48  }
  0x4f   : > { %8512 = vmatprep.subr.msk.mxu1 (!%p536_p9), %vm622_vm0, %v8028_v33  ;;  %8524 = vmatprep.subr.msk.mxu0 (!%p536_p9), %vm622_vm0, %v8037_v35  ;;  %v8045_v13 = vld [vmem:[%s9612_s27 + $0x10] sm:$0x7f] (!%p536_p9)  ;;  %v8029_v27 = vld [vmem:[%s9612_s27 + $0x80] sm:$0x7f] (!%p536_p9)  ;;  %v8055_v31 = vld [vmem:[%s9612_s27 + $0x58] sm:$0x7f] (!%p536_p9) }
  0x50   : > { %8513 = vmatpush3.msk.msra.mxu1 %vm622_vm0, %v8028_v33  ;;  %8525 = vmatpush3.msk.msra.mxu0 %vm622_vm0, %v8037_v35  ;;  %s568_s28 = scalar_select %p567_p10, %s9386_s12, 1  ;;  %v8046_v24 = vld [vmem:[%s9612_s27 + $0x50] sm:$0x7f]  ;;  %v8038_v33 = vld [vmem:[%s9612_s27 + $0x88] sm:$0x7f] }
  0x51   : > { %8896 = vmatprep.subr.bf16.mxu1 %v9345_v11  ;;  %8900 = vmatprep.subr.bf16.mxu0 %v9345_v11  ;;  %s9350_s9 = smov 16   ;;  %s9351_s11 = smov 96  }
  0x52   : > { %s8319_s29 = sshll.u32 %s568_s28, 4  ;;  %s9352_s14 = smov 64  }
  0x53   : > { %811 = vxpose.xlu0.b32.start.end [1/1] (short) (narrow) %v8036_v34, 16  ;;  %s9631_s4 = scalar_lea.vmem %s10423_s1, %s8319_s29  ;;  %s9353_s15 = smov 80  }
  0x54   : > { %v9634_v40 = vld [vmem:[%s9631_s4 + $0x8] sm:$0xff]  ;;  %v9637_v42 = vld [vmem:[%s9631_s4] sm:$0xff]  ;;  %s9354_s18 = smov 112   ;;  %s8316_s19 = sshll.u32 (%p9401_p5), %s9386_s12, 3 }
  0x55   : > { %s7906_s22 = scalar_lea.vmem (%p9401_p5), %s10424_s2, %s8316_s19 }
  0xce   : > { %v599_v36 = vpop.trf.xlu0 }
  0xcf   : > { %8514 = vmatprep.mubr.msk.f32.mxu1 %vm615_vm1, %v599_v36 }
  0xd2   : > { %v600_v37 = vpop.trf.xlu0 }
  0xd3   : > { %8515 = vmatmul.mubr.msk.f32.vlgmr.msra.gmra.mrb[0].mxu1 %vm615_vm1, %v600_v37 }
  0xd4   : > { %8521 = vmatprep.mubr.msk.f32.mxu1 %vm9346_vm3, %v9347_v12 }
  0xd6   : > { %v827_v38 = vpop.trf.xlu0 }
  0xd7   : > { %8526 = vmatprep.mubr.msk.f32.mxu0 %vm615_vm1, %v827_v38 }
  0xda   : > { %v828_v39 = vpop.trf.xlu0 }
  0xdb   : > { %8527 = vmatmul.mubr.msk.f32.vlgmr.msra.gmra.mrb[0].mxu0 %vm615_vm1, %v828_v39 }
  0xdc   : > { %8533 = vmatprep.mubr.msk.f32.mxu0 %vm9346_vm3, %v9347_v12 }
 0x1a6   : > { %v8516_v41 = vpop.f32.mrb[0].mxu1 }
 0x1a7   : > { %v698_v43 = vadd.f32 %v8516_v41, %v9634_v40  ;;  %v692_v44 = vpop.f32.mrb[1].mxu1 }
 0x1a8   : > { %v693_v45 = vadd.f32 %v692_v44, %v9637_v42 }
 0x1a9   : > { %v705_v46 = vsel %vm701_vm2, %v698_v43, -inf }
 0x1aa   : > { %706 = vmax.xlane.f32.xlu1 %v705_v46  ;;  %v702_v47 = vsel %vm701_vm2, %v693_v45, -inf }
 0x1ae   : > { %703 = vmax.xlane.f32.xlu1 %v702_v47  ;;  %v8528_v48 = vpop.f32.mrb[0].mxu0 }
 0x1af   : > { %v924_v49 = vadd.f32 %v8528_v48, %v9634_v40  ;;  %v918_v50 = vpop.f32.mrb[1].mxu0 }
 0x1b0   : > { %v919_v51 = vadd.f32 %v918_v50, %v9637_v42 }
 0x1b1   : > { %v930_v52 = vsel %vm701_vm2, %v924_v49, -inf }
 0x1b2   : > { %931 = vmax.xlane.f32.xlu0 %v930_v52  ;;  %v927_v53 = vsel %vm701_vm2, %v919_v51, -inf }
 0x1b3   : > { %928 = vmax.xlane.f32.xlu1 %v927_v53 }
 0x1df   : > { %1269 = vxpose.xlu0.b32.start.end [1/1] (short) (narrow) %v8054_v54, 16 }
 0x237   : > { %v707_v55 = vpop.xlane.xlu1 %706 }
 0x238   : > { %v709_v56 = vsub.f32 %v698_v43, %v707_v55  ;;  %v8072_v55 = vld [vmem:[%s9612_s27 + $0x28] sm:$0x7f] }
 0x23a   : > { %v712_v57 = vmul.f32 1.442695, %v709_v56 }
 0x23b   : > { %v704_v58 = vpop.xlane.xlu1 %703 }
 0x23c   : > { %9060 = vpow2.f32 %v712_v57  ;;  %v708_v59 = vsub.f32 %v693_v45, %v704_v58 }
 0x23e   : > { %v710_v60 = vmul.f32 1.442695, %v708_v59 }
 0x23f   : > { %v932_v61 = vpop.xlane.xlu0 %931 }
 0x240   : > { %9062 = vpow2.f32 %v710_v60  ;;  %v934_v62 = vsub.f32 %v924_v49, %v932_v61  ;;  %v929_v63 = vpop.xlane.xlu1 %928 }
 0x241   : > { %v933_v0 = vsub.f32 %v919_v51, %v929_v63 }
 0x242   : > { %v937_v1 = vmul.f32 1.442695, %v934_v62 }
 0x243   : > { %v935_v2 = vmul.f32 1.442695, %v933_v0 }
 0x245   : > { %9064 = vpow2.f32 %v935_v2 }
 0x246   : > { %v9061_v3 = vpop.eup %9060  ;;  %9066 = vpow2.f32 %v937_v1 }
 0x247   : > { %v717_v4 = vsel %vm701_vm2, %v9061_v3, 0.0 }
 0x248   : > { %718 = vadd.xlane.f32.xlu1 %v717_v4 }
 0x24a   : > { %v9063_v5 = vpop.eup %9062 }
 0x24b   : > { %v714_v6 = vsel %vm701_vm2, %v9063_v5, 0.0 }
 0x24c   : > { %715 = vadd.xlane.f32.xlu1 %v714_v6 }
 0x24f   : > { %v9065_v7 = vpop.eup %9064 }
 0x250   : > { %v939_v8 = vsel %vm701_vm2, %v9065_v7, 0.0  ;;  %v9067_v9 = vpop.eup %9066 }
 0x251   : > { %940 = vadd.xlane.f32.xlu1 %v939_v8  ;;  %v942_v10 = vsel %vm701_vm2, %v9067_v9, 0.0 }
 0x255   : > { %943 = vadd.xlane.f32.xlu1 %v942_v10 }
 0x25f   : > { %v1285_v32 = vpop.trf.xlu0 }
 0x263   : > { %v1286_v34 = vpop.trf.xlu0 }
 0x288   : > { %1040 = vxpose.xlu1.b32.start.end [1/1] (short) (narrow) %v8045_v13, 16 }
 0x2d5   : > { %v719_v14 = vpop.xlane.xlu1 %718 }
 0x2d6   : > { %9068 = vrcp.f32 %v719_v14  ;;  %v8063_v14 = vld [vmem:[%s9612_s27 + $0x20] sm:$0x7f] }
 0x2d9   : > { %v716_v15 = vpop.xlane.xlu1 %715 }
 0x2da   : > { %9070 = vrcp.f32 %v716_v15 }
 0x2de   : > { %v941_v16 = vpop.xlane.xlu1 %940 }
 0x2df   : > { %9072 = vrcp.f32 %v941_v16 }
 0x2e0   : > { %v9069_v17 = vpop.eup %9068 }
 0x2e1   : > { %v723_v20 = vmul.f32 %v9069_v17, %v9061_v3 }
 0x2e2   : > { %v944_v18 = vpop.xlane.xlu1 %943 }
 0x2e3   : > { %9074 = vrcp.f32 %v944_v18 }
 0x2e4   : > { %v9071_v19 = vpop.eup %9070 }
 0x2e5   : > { %v721_v21 = vmul.f32 %v9071_v19, %v9063_v5 }
 0x2e7   : > { %v8897_v23 = vpack.c.bf16 %v723_v20, %v721_v21 }
 0x2e9   : > { %8899 = vmatpush3.bf16.xpose.msk.msra.mxu1 %vm9673_vm4, %v8897_v23  ;;  %v9073_v25 = vpop.eup %9072 }
 0x2ea   : > { %8536 = vmatprep.subr.msk.mxu1 %vm622_vm0, %v8046_v24  ;;  %v946_v28 = vmul.f32 %v9073_v25, %v9065_v7  ;;  %v8064_v25 = vld [vmem:[%s9612_s27 + $0x60] sm:$0x7f] }
 0x2ed   : > { %v9075_v26 = vpop.eup %9074 }
 0x2ee   : > { %v948_v29 = vmul.f32 %v9075_v26, %v9067_v9 }
 0x2f0   : > { %v8901_v30 = vpack.c.bf16 %v948_v29, %v946_v28  ;;  %8522 = vmatmul.mubr.msk.f32.vlgmr.msra.gmra.mrb[2].mxu1 %vm701_vm2, %v8029_v27 }
 0x2f1   : > { %8537 = vmatpush3.msk.msra.mxu1 %vm622_vm0, %v8046_v24 }
 0x2f2   : > { %8903 = vmatpush3.bf16.xpose.msk.msra.mxu0 %vm9673_vm4, %v8901_v30  ;;  %8904 = vmatprep.subr.bf16.mxu1 %v9345_v11  ;;  %v8047_v30 = vld [vmem:[%s9612_s27 + $0x90] sm:$0x7f] }
 0x2f3   : > { %8548 = vmatprep.subr.msk.mxu0 %vm622_vm0, %v8055_v31 }
 0x2f9   : > { %8534 = vmatmul.mubr.msk.f32.vlgmr.msra.gmra.mrb[2].mxu0 %vm701_vm2, %v8038_v33 }
 0x2fa   : > { %8549 = vmatpush3.msk.msra.mxu0 %vm622_vm0, %v8055_v31  ;;  %8550 = vmatprep.mubr.msk.f32.mxu0 %vm615_vm1, %v1285_v32  ;;  %v8073_v32 = vld [vmem:[%s9612_s27 + $0x68] sm:$0x7f] }
 0x2fb   : > { %8908 = vmatprep.subr.bf16.mxu0 %v9345_v11 }
 0x2fd   : > { %8551 = vmatmul.mubr.msk.f32.vlgmr.msra.gmra.mrb[4].mxu0 %vm615_vm1, %v1286_v34  ;;  %v8056_v34 = vld [vmem:[%s9612_s27 + $0x98] sm:$0x7f] }
 0x2fe   : > { %8557 = vmatprep.mubr.msk.f32.mxu0 %vm9346_vm3, %v9347_v12 }
 0x308   : > { %v1056_v35 = vpop.trf.xlu1 }
 0x309   : > { %8538 = vmatprep.mubr.msk.f32.mxu1 %vm615_vm1, %v1056_v35 }
 0x30c   : > { %v1057_v36 = vpop.trf.xlu1 }
 0x30d   : > { %8539 = vmatmul.mubr.msk.f32.vlgmr.msra.gmra.mrb[4].mxu1 %vm615_vm1, %v1057_v36 }
 0x30e   : > { %8545 = vmatprep.mubr.msk.f32.mxu1 %vm9346_vm3, %v9347_v12 }
 0x3c3   : > { %v799_v37 = vpop.f32.mrb[2].mxu1 }
 0x3c4   : > { %804 = vst.msk [vmem:[%s9661_s6] sm:$0x7f] %vm803_vm5, %v799_v37  ;;  %v8523_v38 = vpop.f32.mrb[3].mxu1  ;;  %vm1719_vm5 = vcmask 653824  }
 0x3cc   : > { %v9702_v39 = vpop.f32.mrb[2].mxu0 }
 0x3cd   : > { %v8535_v41 = vpop.f32.mrb[3].mxu0 }
 0x3d0   : > { %v8552_v43 = vpop.f32.mrb[4].mxu0 }
 0x3d1   : > { %v1376_v44 = vpop.f32.mrb[5].mxu0  ;;  %v1382_v53 = vadd.f32 %v8552_v43, %v9634_v40 }
 0x3d2   : > { %v1377_v49 = vadd.f32 %v1376_v44, %v9637_v42 }
 0x3d3   : > { %v1388_v54 = vsel %vm701_vm2, %v1382_v53, -inf }
 0x3d4   : > { %v1385_v52 = vsel %vm701_vm2, %v1377_v49, -inf }
 0x3e0   : > { %v8540_v45 = vpop.f32.mrb[4].mxu1 }
 0x3e1   : > { %v1153_v46 = vadd.f32 %v8540_v45, %v9634_v40  ;;  %v1147_v47 = vpop.f32.mrb[5].mxu1 }
 0x3e2   : > { %v1148_v48 = vadd.f32 %v1147_v47, %v9637_v42 }
 0x3e3   : > { %v1159_v50 = vsel %vm701_vm2, %v1153_v46, -inf }
 0x3e4   : > { %1160 = vmax.xlane.f32.xlu0 %v1159_v50  ;;  %v1156_v51 = vsel %vm701_vm2, %v1148_v48, -inf }
 0x3e5   : > { %1157 = vmax.xlane.f32.xlu1 %v1156_v51 }
 0x3e9   : > { %1386 = vmax.xlane.f32.xlu1 %v1385_v52 }
 0x3ed   : > { %1389 = vmax.xlane.f32.xlu1 %v1388_v54 }
 0x411   : > { %1727 = vxpose.xlu0.b32.start.end [1/1] (short) (narrow) %v8072_v55, 16 }
 0x471   : > { %v1161_v56 = vpop.xlane.xlu0 %1160 }
 0x472   : > { %v1163_v57 = vsub.f32 %v1153_v46, %v1161_v56  ;;  %v1158_v58 = vpop.xlane.xlu1 %1157 }
 0x473   : > { %v1162_v59 = vsub.f32 %v1148_v48, %v1158_v58 }
 0x474   : > { %v1166_v60 = vmul.f32 1.442695, %v1163_v57 }
 0x475   : > { %v1164_v61 = vmul.f32 1.442695, %v1162_v59 }
 0x476   : > { %9076 = vpow2.f32 %v1166_v60  ;;  %v1387_v62 = vpop.xlane.xlu1 %1386 }
 0x477   : > { %v1391_v63 = vsub.f32 %v1377_v49, %v1387_v62  ;;  %9078 = vpow2.f32 %v1164_v61 }
 0x479   : > { %v1393_v0 = vmul.f32 1.442695, %v1391_v63 }
 0x47a   : > { %v1390_v1 = vpop.xlane.xlu1 %1389 }
 0x47b   : > { %v1392_v2 = vsub.f32 %v1382_v53, %v1390_v1  ;;  %9080 = vpow2.f32 %v1393_v0 }
 0x47d   : > { %v1395_v3 = vmul.f32 1.442695, %v1392_v2 }
 0x47f   : > { %9082 = vpow2.f32 %v1395_v3 }
 0x480   : > { %v9077_v4 = vpop.eup %9076 }
 0x481   : > { %v1171_v5 = vsel %vm701_vm2, %v9077_v4, 0.0  ;;  %v9079_v6 = vpop.eup %9078 }
 0x482   : > { %1172 = vadd.xlane.f32.xlu1 %v1171_v5  ;;  %v1168_v7 = vsel %vm701_vm2, %v9079_v6, 0.0 }
 0x485   : > { %v9081_v8 = vpop.eup %9080 }
 0x486   : > { %1169 = vadd.xlane.f32.xlu1 %v1168_v7  ;;  %v1397_v9 = vsel %vm701_vm2, %v9081_v8, 0.0 }
 0x489   : > { %v9083_v10 = vpop.eup %9082 }
 0x48a   : > { %1398 = vadd.xlane.f32.xlu1 %v1397_v9  ;;  %v1400_v13 = vsel %vm701_vm2, %v9083_v10, 0.0 }
 0x48e   : > { %1401 = vadd.xlane.f32.xlu1 %v1400_v13 }
 0x491   : > { %v1743_v33 = vpop.trf.xlu0 }
 0x495   : > { %v1744_v35 = vpop.trf.xlu0 }
 0x4c1   : > { %1498 = vxpose.xlu1.b32.start.end [1/1] (short) (narrow) %v8063_v14, 16 }
 0x50f   : > { %v1173_v15 = vpop.xlane.xlu1 %1172 }
 0x510   : > { %9084 = vrcp.f32 %v1173_v15  ;;  %v8081_v15 = vld [vmem:[%s9612_s27 + $0x30] sm:$0x7f] }
 0x513   : > { %v1170_v16 = vpop.xlane.xlu1 %1169 }
 0x514   : > { %9086 = vrcp.f32 %v1170_v16  ;;  %v8090_v16 = vld [vmem:[%s9612_s27 + $0x38] sm:$0x7f] }
 0x517   : > { %v1399_v17 = vpop.xlane.xlu1 %1398 }
 0x518   : > { %9088 = vrcp.f32 %v1399_v17 }
 0x51a   : > { %v9085_v19 = vpop.eup %9084 }
 0x51b   : > { %v1402_v18 = vpop.xlane.xlu1 %1401  ;;  %v1177_v21 = vmul.f32 %v9085_v19, %v9077_v4 }
 0x51c   : > { %9090 = vrcp.f32 %v1402_v18 }
 0x51e   : > { %v9087_v20 = vpop.eup %9086 }
 0x51f   : > { %v1175_v23 = vmul.f32 %v9087_v20, %v9079_v6 }
 0x521   : > { %v8905_v24 = vpack.c.bf16 %v1177_v21, %v1175_v23 }
 0x522   : > { %v9089_v26 = vpop.eup %9088 }
 0x523   : > { %8907 = vmatpush3.bf16.xpose.msk.msra.mxu1 %vm9673_vm4, %v8905_v24  ;;  %v1404_v28 = vmul.f32 %v9089_v26, %v9081_v8 }
 0x524   : > { %8560 = vmatprep.subr.msk.mxu1 %vm622_vm0, %v8064_v25 }
 0x526   : > { %v9091_v27 = vpop.eup %9090 }
 0x527   : > { %v1406_v29 = vmul.f32 %v9091_v27, %v9083_v10  ;;  %v8082_v27 = vld [vmem:[%s9612_s27 + $0x70] sm:$0x7f] }
 0x529   : > { %v8909_v31 = vpack.c.bf16 %v1406_v29, %v1404_v28 }
 0x52a   : > { %8546 = vmatmul.mubr.msk.f32.vlgmr.msra.gmra.mrb[6].mxu1 %vm701_vm2, %v8047_v30 }
 0x52b   : > { %8911 = vmatpush3.bf16.xpose.msk.msra.mxu0 %vm9673_vm4, %v8909_v31  ;;  %8561 = vmatpush3.msk.msra.mxu1 %vm622_vm0, %v8064_v25 }
 0x52c   : > { %8572 = vmatprep.subr.msk.mxu0 %vm622_vm0, %v8073_v32  ;;  %8912 = vmatprep.subr.bf16.mxu1 %v9345_v11 }
 0x532   : > { %8558 = vmatmul.mubr.msk.f32.vlgmr.msra.gmra.mrb[6].mxu0 %vm701_vm2, %v8056_v34  ;;  %v8091_v34 = vld [vmem:[%s9612_s27 + $0x78] sm:$0x7f] }
 0x533   : > { %8573 = vmatpush3.msk.msra.mxu0 %vm622_vm0, %v8073_v32  ;;  %8574 = vmatprep.mubr.msk.f32.mxu0 %vm615_vm1, %v1743_v33  ;;  %v8065_v32 = vld [vmem:[%s9612_s27 + $0xa0] sm:$0x7f] }
 0x534   : > { %8916 = vmatprep.subr.bf16.mxu0 %v9345_v11 }
 0x536   : > { %8575 = vmatmul.mubr.msk.f32.vlgmr.msra.gmra.mrb[8].mxu0 %vm615_vm1, %v1744_v35  ;;  %v8074_v35 = vld [vmem:[%s9612_s27 + $0xa8] sm:$0x7f] }
 0x537   : > { %8581 = vmatprep.mubr.msk.f32.mxu0 %vm9346_vm3, %v9347_v12 }
 0x541   : > { %v1514_v36 = vpop.trf.xlu1 }
 0x542   : > { %8562 = vmatprep.mubr.msk.f32.mxu1 %vm615_vm1, %v1514_v36 }
 0x545   : > { %v1515_v37 = vpop.trf.xlu1 }
 0x546   : > { %8563 = vmatmul.mubr.msk.f32.vlgmr.msra.gmra.mrb[8].mxu1 %vm615_vm1, %v1515_v37 }
 0x547   : > { %8569 = vmatprep.mubr.msk.f32.mxu1 %vm9346_vm3, %v9347_v12 }
 0x5fd   : > { %v9742_v38 = vpop.f32.mrb[6].mxu1 }
 0x5fe   : > { %v8547_v41 = vpop.f32.mrb[7].mxu1 }
 0x605   : > { %v9744_v43 = vpop.f32.mrb[6].mxu0 }
 0x606   : > { %v8559_v44 = vpop.f32.mrb[7].mxu0 }
 0x609   : > { %v8576_v45 = vpop.f32.mrb[8].mxu0 }
 0x60a   : > { %v1834_v46 = vpop.f32.mrb[9].mxu0  ;;  %v1840_v55 = vadd.f32 %v8576_v45, %v9634_v40 }
 0x60b   : > { %v1835_v50 = vadd.f32 %v1834_v46, %v9637_v42 }
 0x60c   : > { %v1846_v56 = vsel %vm701_vm2, %v1840_v55, -inf }
 0x60d   : > { %v1843_v54 = vsel %vm701_vm2, %v1835_v50, -inf }
 0x619   : > { %v8564_v47 = vpop.f32.mrb[8].mxu1 }
 0x61a   : > { %v1611_v48 = vadd.f32 %v8564_v47, %v9634_v40  ;;  %v1605_v49 = vpop.f32.mrb[9].mxu1 }
 0x61b   : > { %v1606_v51 = vadd.f32 %v1605_v49, %v9637_v42 }
 0x61c   : > { %v1617_v52 = vsel %vm701_vm2, %v1611_v48, -inf }
 0x61d   : > { %1618 = vmax.xlane.f32.xlu1 %v1617_v52  ;;  %v1614_v53 = vsel %vm701_vm2, %v1606_v51, -inf }
 0x61e   : > { %1615 = vmax.xlane.f32.xlu0 %v1614_v53 }
 0x621   : > { %1844 = vmax.xlane.f32.xlu1 %v1843_v54 }
 0x625   : > { %1847 = vmax.xlane.f32.xlu1 %v1846_v56 }
 0x6aa   : > { %v1619_v57 = vpop.xlane.xlu1 %1618 }
 0x6ab   : > { %v1621_v58 = vsub.f32 %v1611_v48, %v1619_v57  ;;  %v1616_v59 = vpop.xlane.xlu0 %1615 }
 0x6ac   : > { %v1620_v60 = vsub.f32 %v1606_v51, %v1616_v59 }
 0x6ad   : > { %v1624_v61 = vmul.f32 1.442695, %v1621_v58 }
 0x6ae   : > { %v1622_v62 = vmul.f32 1.442695, %v1620_v60  ;;  %v1845_v63 = vpop.xlane.xlu1 %1844 }
 0x6af   : > { %9092 = vpow2.f32 %v1624_v61  ;;  %v1849_v0 = vsub.f32 %v1835_v50, %v1845_v63 }
 0x6b0   : > { %9094 = vpow2.f32 %v1622_v62 }
 0x6b1   : > { %v1851_v1 = vmul.f32 1.442695, %v1849_v0 }
 0x6b2   : > { %v1848_v2 = vpop.xlane.xlu1 %1847 }
 0x6b3   : > { %9096 = vpow2.f32 %v1851_v1  ;;  %v1850_v3 = vsub.f32 %v1840_v55, %v1848_v2 }
 0x6b5   : > { %v1853_v4 = vmul.f32 1.442695, %v1850_v3 }
 0x6b7   : > { %9098 = vpow2.f32 %v1853_v4 }
 0x6b9   : > { %v9093_v5 = vpop.eup %9092 }
 0x6ba   : > { %v9095_v6 = vpop.eup %9094  ;;  %v1629_v7 = vsel %vm701_vm2, %v9093_v5, 0.0 }
 0x6bb   : > { %1630 = vadd.xlane.f32.xlu1 %v1629_v7  ;;  %v1626_v8 = vsel %vm701_vm2, %v9095_v6, 0.0 }
 0x6bc   : > { %1627 = vadd.xlane.f32.xlu0 %v1626_v8 }
 0x6bd   : > { %v9097_v9 = vpop.eup %9096 }
 0x6be   : > { %v1855_v10 = vsel %vm701_vm2, %v9097_v9, 0.0 }
 0x6c0   : > { %1856 = vadd.xlane.f32.xlu0 %v1855_v10 }
 0x6c1   : > { %v9099_v13 = vpop.eup %9098 }
 0x6c2   : > { %v1858_v14 = vsel %vm701_vm2, %v9099_v13, 0.0 }
 0x6c3   : > { %1859 = vadd.xlane.f32.xlu1 %v1858_v14 }
 0x6ed   : > { %1956 = vxpose.xlu0.b32.start.end [1/1] (short) (narrow) %v8081_v15, 16 }
 0x6f6   : > { %2185 = vxpose.xlu1.b32.start.end [1/1] (short) (narrow) %v8090_v16, 16 }
 0x748   : > { %v1631_v17 = vpop.xlane.xlu1 %1630 }
 0x749   : > { %9100 = vrcp.f32 %v1631_v17  ;;  %v1628_v18 = vpop.xlane.xlu0 %1627 }
 0x74a   : > { %9102 = vrcp.f32 %v1628_v18 }
 0x74d   : > { %v1857_v19 = vpop.xlane.xlu0 %1856 }
 0x74e   : > { %9104 = vrcp.f32 %v1857_v19  ;;  %v8099_v19 = vld [vmem:[%s9612_s27 + $0xc0] sm:$0x3f] }
 0x750   : > { %v1860_v20 = vpop.xlane.xlu1 %1859 }
 0x751   : > { %9106 = vrcp.f32 %v1860_v20  ;;  %v8108_v20 = vld [vmem:[%s9612_s27 + $0xc8] sm:$0x3f] }
 0x753   : > { %v9101_v21 = vpop.eup %9100 }
 0x754   : > { %v9103_v23 = vpop.eup %9102  ;;  %v1635_v24 = vmul.f32 %v9101_v21, %v9093_v5 }
 0x755   : > { %v1633_v25 = vmul.f32 %v9103_v23, %v9095_v6 }
 0x757   : > { %v8913_v26 = vpack.c.bf16 %v1635_v24, %v1633_v25 }
 0x758   : > { %v9105_v28 = vpop.eup %9104 }
 0x759   : > { %8915 = vmatpush3.bf16.xpose.msk.msra.mxu1 %vm9673_vm4, %v8913_v26  ;;  %v1862_v30 = vmul.f32 %v9105_v28, %v9097_v9 }
 0x75a   : > { %8584 = vmatprep.subr.msk.mxu1 %vm622_vm0, %v8082_v27 }
 0x75b   : > { %v9107_v29 = vpop.eup %9106 }
 0x75c   : > { %v1864_v31 = vmul.f32 %v9107_v29, %v9099_v13 }
 0x75e   : > { %v8917_v33 = vpack.c.bf16 %v1864_v31, %v1862_v30  ;;  %v8100_v31 = vld [vmem:[%s9612_s27 + $0x100] sm:$0x3f] }
 0x760   : > { %8919 = vmatpush3.bf16.xpose.msk.msra.mxu0 %vm9673_vm4, %v8917_v33  ;;  %8570 = vmatmul.mubr.msk.f32.vlgmr.msra.gmra.mrb[10].mxu1 %vm701_vm2, %v8065_v32 }
 0x761   : > { %8585 = vmatpush3.msk.msra.mxu1 %vm622_vm0, %v8082_v27  ;;  %8596 = vmatprep.subr.msk.mxu0 %vm622_vm0, %v8091_v34 }
 0x762   : > { %8920 = vmatprep.subr.bf16.mxu1 %v9345_v11 }
 0x767   : > { %8582 = vmatmul.mubr.msk.f32.vlgmr.msra.gmra.mrb[10].mxu0 %vm701_vm2, %v8074_v35  ;;  %v8083_v35 = vld [vmem:[%s9612_s27 + $0xb0] sm:$0x7f] }
 0x768   : > { %8597 = vmatpush3.msk.msra.mxu0 %vm622_vm0, %v8091_v34  ;;  %vm1261_vm0 = vcmask 391424  }
 0x769   : > { %8924 = vmatprep.subr.bf16.mxu0 %v9345_v11 }
 0x76d   : > { %v1972_v36 = vpop.trf.xlu0 }
 0x76e   : > { %8586 = vmatprep.mubr.msk.f32.mxu1 %vm615_vm1, %v1972_v36 }
 0x771   : > { %v1973_v37 = vpop.trf.xlu0 }
 0x772   : > { %8587 = vmatmul.mubr.msk.f32.vlgmr.msra.gmra.mrb[12].mxu1 %vm615_vm1, %v1973_v37 }
 0x773   : > { %8593 = vmatprep.mubr.msk.f32.mxu1 %vm9346_vm3, %v9347_v12 }
 0x776   : > { %v2201_v41 = vpop.trf.xlu1 }
 0x777   : > { %8598 = vmatprep.mubr.msk.f32.mxu0 %vm615_vm1, %v2201_v41  ;;  %v8109_v41 = vld [vmem:[%s9612_s27 + $0x108] sm:$0x3f] }
 0x77a   : > { %v2202_v44 = vpop.trf.xlu1 }
 0x77b   : > { %8599 = vmatmul.mubr.msk.f32.vlgmr.msra.gmra.mrb[12].mxu0 %vm615_vm1, %v2202_v44  ;;  %v8092_v44 = vld [vmem:[%s9612_s27 + $0xb8] sm:$0x7f]  ;;  %vm1490_vm1 = vcmask 522624  }
 0x77c   : > { %8605 = vmatprep.mubr.msk.f32.mxu0 %vm9346_vm3, %v9347_v12 }
 0x833   : > { %v9784_v45 = vpop.f32.mrb[10].mxu1 }
 0x834   : > { %v8571_v46 = vpop.f32.mrb[11].mxu1 }
 0x83a   : > { %v9786_v47 = vpop.f32.mrb[10].mxu0 }
 0x83b   : > { %v8583_v48 = vpop.f32.mrb[11].mxu0 }
 0x845   : > { %v8588_v49 = vpop.f32.mrb[12].mxu1 }
 0x846   : > { %v2069_v50 = vadd.f32 %v8588_v49, %v9634_v40  ;;  %v2063_v51 = vpop.f32.mrb[13].mxu1 }
 0x847   : > { %v2064_v52 = vadd.f32 %v2063_v51, %v9637_v42 }
 0x848   : > { %v2075_v53 = vsel %vm701_vm2, %v2069_v50, -inf }
 0x849   : > { %2076 = vmax.xlane.f32.xlu1 %v2075_v53  ;;  %v2072_v54 = vsel %vm701_vm2, %v2064_v52, -inf }
 0x84a   : > { %2073 = vmax.xlane.f32.xlu0 %v2072_v54 }
 0x84e   : > { %v8600_v55 = vpop.f32.mrb[12].mxu0 }
 0x84f   : > { %v2298_v56 = vadd.f32 %v8600_v55, %v9634_v40  ;;  %v2292_v57 = vpop.f32.mrb[13].mxu0 }
 0x850   : > { %v2293_v58 = vadd.f32 %v2292_v57, %v9637_v42 }
 0x851   : > { %v2304_v59 = vsel %vm701_vm2, %v2298_v56, -inf }
 0x852   : > { %2305 = vmax.xlane.f32.xlu1 %v2304_v59  ;;  %v2301_v60 = vsel %vm701_vm2, %v2293_v58, -inf }
 0x853   : > { %2302 = vmax.xlane.f32.xlu0 %v2301_v60 }
 0x8d6   : > { %v2077_v61 = vpop.xlane.xlu1 %2076 }
 0x8d7   : > { %v2079_v62 = vsub.f32 %v2069_v50, %v2077_v61  ;;  %v2074_v63 = vpop.xlane.xlu0 %2073 }
 0x8d8   : > { %v2078_v0 = vsub.f32 %v2064_v52, %v2074_v63 }
 0x8d9   : > { %v2082_v1 = vmul.f32 1.442695, %v2079_v62 }
 0x8da   : > { %v2080_v2 = vmul.f32 1.442695, %v2078_v0 }
 0x8db   : > { %9108 = vpow2.f32 %v2082_v1 }
 0x8dc   : > { %9110 = vpow2.f32 %v2080_v2 }
 0x8df   : > { %v2306_v3 = vpop.xlane.xlu1 %2305 }
 0x8e0   : > { %v2308_v4 = vsub.f32 %v2298_v56, %v2306_v3  ;;  %v2303_v5 = vpop.xlane.xlu0 %2302 }
 0x8e1   : > { %v2307_v6 = vsub.f32 %v2293_v58, %v2303_v5 }
 0x8e2   : > { %v2311_v7 = vmul.f32 1.442695, %v2308_v4 }
 0x8e3   : > { %v2309_v8 = vmul.f32 1.442695, %v2307_v6 }
 0x8e4   : > { %9112 = vpow2.f32 %v2311_v7 }
 0x8e5   : > { %v9109_v9 = vpop.eup %9108  ;;  %9114 = vpow2.f32 %v2309_v8 }
 0x8e6   : > { %v9111_v10 = vpop.eup %9110  ;;  %v2087_v13 = vsel %vm701_vm2, %v9109_v9, 0.0 }
 0x8e7   : > { %2088 = vadd.xlane.f32.xlu1 %v2087_v13  ;;  %v2084_v14 = vsel %vm701_vm2, %v9111_v10, 0.0 }
 0x8e8   : > { %2085 = vadd.xlane.f32.xlu0 %v2084_v14 }
 0x8ee   : > { %v9113_v15 = vpop.eup %9112 }
 0x8ef   : > { %v9115_v16 = vpop.eup %9114  ;;  %v2316_v17 = vsel %vm701_vm2, %v9113_v15, 0.0 }
 0x8f0   : > { %2317 = vadd.xlane.f32.xlu1 %v2316_v17  ;;  %v2313_v18 = vsel %vm701_vm2, %v9115_v16, 0.0 }
 0x8f1   : > { %2314 = vadd.xlane.f32.xlu0 %v2313_v18 }
 0x91e   : > { %2414 = vxpose.xlu0.b32.start.end [1/1] (short) (narrow) %v8099_v19, 16 }
 0x923   : > { %2641 = vxpose.xlu1.b32.start.end [1/1] (short) (narrow) %v8108_v20, 16 }
 0x974   : > { %v2089_v21 = vpop.xlane.xlu1 %2088 }
 0x975   : > { %9116 = vrcp.f32 %v2089_v21  ;;  %v2086_v23 = vpop.xlane.xlu0 %2085 }
 0x976   : > { %9118 = vrcp.f32 %v2086_v23 }
 0x97d   : > { %v2318_v24 = vpop.xlane.xlu1 %2317 }
 0x97e   : > { %9120 = vrcp.f32 %v2318_v24  ;;  %v2315_v25 = vpop.xlane.xlu0 %2314 }
 0x97f   : > { %v9117_v26 = vpop.eup %9116  ;;  %9122 = vrcp.f32 %v2315_v25 }
 0x980   : > { %v9119_v27 = vpop.eup %9118  ;;  %v2093_v28 = vmul.f32 %v9117_v26, %v9109_v9  ;;  %v8117_v26 = vld [vmem:[%s9612_s27 + $0xd0] sm:$0x3f] }
 0x981   : > { %v2091_v29 = vmul.f32 %v9119_v27, %v9111_v10  ;;  %v8126_v27 = vld [vmem:[%s9612_s27 + $0xd8] sm:$0x3f] }
 0x983   : > { %v8921_v30 = vpack.c.bf16 %v2093_v28, %v2091_v29 }
 0x985   : > { %8923 = vmatpush3.bf16.xpose.msk.msra.mxu1 %vm9673_vm4, %v8921_v30 }
 0x986   : > { %8608 = vmatprep.subr.msk.mxu1 %vm2453_vm6, %v8100_v31 }
 0x988   : > { %v9121_v32 = vpop.eup %9120 }
 0x989   : > { %v9123_v33 = vpop.eup %9122  ;;  %v2322_v34 = vmul.f32 %v9121_v32, %v9113_v15 }
 0x98a   : > { %v2320_v36 = vmul.f32 %v9123_v33, %v9115_v16 }
 0x98c   : > { %v8925_v37 = vpack.c.bf16 %v2322_v34, %v2320_v36  ;;  %8594 = vmatmul.mubr.msk.f32.vlgmr.msra.gmra.mrb[14].mxu1 %vm701_vm2, %v8083_v35 }
 0x98d   : > { %8609 = vmatpush3.msk.msra.mxu1 %vm2453_vm6, %v8100_v31 }
 0x98e   : > { %8927 = vmatpush3.bf16.xpose.msk.msra.mxu0 %vm9673_vm4, %v8925_v37  ;;  %8928 = vmatprep.subr.bf16.mxu1 %v9345_v11  ;;  %v8118_v37 = vld [vmem:[%s9612_s27 + $0x110] sm:$0x3f] }
 0x98f   : > { %8620 = vmatprep.subr.msk.mxu0 %vm2453_vm6, %v8109_v41 }
 0x995   : > { %8606 = vmatmul.mubr.msk.f32.vlgmr.msra.gmra.mrb[14].mxu0 %vm701_vm2, %v8092_v44 }
 0x996   : > { %8621 = vmatpush3.msk.msra.mxu0 %vm2453_vm6, %v8109_v41 }
 0x997   : > { %8932 = vmatprep.subr.bf16.mxu0 %v9345_v11 }
 0x99e   : > { %v2430_v46 = vpop.trf.xlu0 }
 0x99f   : > { %8610 = vmatprep.mubr.msk.f32.mxu1 %vm2446_vm7, %v2430_v46 }
 0x9a2   : > { %v2431_v48 = vpop.trf.xlu0 }
 0x9a3   : > { %v2657_v49 = vpop.trf.xlu1  ;;  %8611 = vmatmul.mubr.msk.f32.vlgmr.msra.gmra.mrb[16].mxu1 %vm2446_vm7, %v2431_v48 }
 0x9a4   : > { %8622 = vmatprep.mubr.msk.f32.mxu0 %vm2446_vm7, %v2657_v49  ;;  %8617 = vmatprep.mubr.msk.f32.mxu1 %vm9346_vm3, %v9347_v12 }
 0x9a7   : > { %v2658_v50 = vpop.trf.xlu1 }
 0x9a8   : > { %8623 = vmatmul.mubr.msk.f32.vlgmr.msra.gmra.mrb[16].mxu0 %vm2446_vm7, %v2658_v50  ;;  %v8127_v50 = vld [vmem:[%s9612_s27 + $0x118] sm:$0x3f] }
 0x9a9   : > { %8629 = vmatprep.mubr.msk.f32.mxu0 %vm9346_vm3, %v9347_v12 }
 0xa5f   : > { %v9826_v51 = vpop.f32.mrb[14].mxu1 }
 0xa60   : > { %v8595_v52 = vpop.f32.mrb[15].mxu1 }
 0xa61   : > { %v8101_v52 = vld [vmem:[%s9612_s27 + $0x140] sm:$0x3f] }
 0xa68   : > { %v9828_v53 = vpop.f32.mrb[14].mxu0 }
 0xa69   : > { %v8607_v54 = vpop.f32.mrb[15].mxu0 }
 0xa6a   : > { %v8110_v54 = vld [vmem:[%s9612_s27 + $0x148] sm:$0x3f] }
 0xa76   : > { %v8612_v55 = vpop.f32.mrb[16].mxu1 }
 0xa77   : > { %v2529_v56 = vadd.f32 %v8612_v55, %v9634_v40  ;;  %v2523_v57 = vpop.f32.mrb[17].mxu1 }
 0xa78   : > { %v2524_v58 = vadd.f32 %v2523_v57, %v9637_v42 }
 0xa79   : > { %v2535_v59 = vsel %vm701_vm2, %v2529_v56, -inf }
 0xa7a   : > { %2536 = vmax.xlane.f32.xlu1 %v2535_v59  ;;  %v2532_v60 = vsel %vm701_vm2, %v2524_v58, -inf }
 0xa7b   : > { %v8624_v61 = vpop.f32.mrb[16].mxu0  ;;  %2533 = vmax.xlane.f32.xlu0 %v2532_v60 }
 0xa7c   : > { %v2754_v62 = vadd.f32 %v8624_v61, %v9634_v40  ;;  %v2748_v63 = vpop.f32.mrb[17].mxu0 }
 0xa7d   : > { %v2749_v0 = vadd.f32 %v2748_v63, %v9637_v42 }
 0xa7e   : > { %v2760_v1 = vsel %vm701_vm2, %v2754_v62, -inf }
 0xa7f   : > { %2761 = vmax.xlane.f32.xlu1 %v2760_v1  ;;  %v2757_v2 = vsel %vm701_vm2, %v2749_v0, -inf }
 0xa80   : > { %2758 = vmax.xlane.f32.xlu0 %v2757_v2 }
 0xb07   : > { %v2537_v3 = vpop.xlane.xlu1 %2536 }
 0xb08   : > { %v2539_v4 = vsub.f32 %v2529_v56, %v2537_v3  ;;  %v2534_v5 = vpop.xlane.xlu0 %2533 }
 0xb09   : > { %v2538_v6 = vsub.f32 %v2524_v58, %v2534_v5 }
 0xb0a   : > { %v2542_v7 = vmul.f32 1.442695, %v2539_v4 }
 0xb0b   : > { %v2540_v8 = vmul.f32 1.442695, %v2538_v6 }
 0xb0c   : > { %9124 = vpow2.f32 %v2542_v7  ;;  %v2762_v9 = vpop.xlane.xlu1 %2761 }
 0xb0d   : > { %9126 = vpow2.f32 %v2540_v8  ;;  %v2764_v10 = vsub.f32 %v2754_v62, %v2762_v9  ;;  %v2759_v13 = vpop.xlane.xlu0 %2758 }
 0xb0e   : > { %v2763_v14 = vsub.f32 %v2749_v0, %v2759_v13 }
 0xb0f   : > { %v2767_v15 = vmul.f32 1.442695, %v2764_v10 }
 0xb10   : > { %v2765_v16 = vmul.f32 1.442695, %v2763_v14 }
 0xb11   : > { %9128 = vpow2.f32 %v2767_v15 }
 0xb12   : > { %9130 = vpow2.f32 %v2765_v16 }
 0xb16   : > { %v9125_v17 = vpop.eup %9124 }
 0xb17   : > { %v9127_v18 = vpop.eup %9126  ;;  %v2547_v19 = vsel %vm701_vm2, %v9125_v17, 0.0 }
 0xb18   : > { %2548 = vadd.xlane.f32.xlu1 %v2547_v19  ;;  %v2544_v20 = vsel %vm701_vm2, %v9127_v18, 0.0 }
 0xb19   : > { %2545 = vadd.xlane.f32.xlu0 %v2544_v20 }
 0xb1b   : > { %v9129_v21 = vpop.eup %9128 }
 0xb1c   : > { %v9131_v23 = vpop.eup %9130  ;;  %v2772_v24 = vsel %vm701_vm2, %v9129_v21, 0.0 }
 0xb1d   : > { %2773 = vadd.xlane.f32.xlu1 %v2772_v24  ;;  %v2769_v25 = vsel %vm701_vm2, %v9131_v23, 0.0 }
 0xb1e   : > { %2770 = vadd.xlane.f32.xlu0 %v2769_v25 }
 0xb4b   : > { %2870 = vxpose.xlu0.b32.start.end [1/1] (short) (narrow) %v8117_v26, 16 }
 0xb50   : > { %3099 = vxpose.xlu1.b32.start.end [1/1] (short) (narrow) %v8126_v27, 16 }
 0xba5   : > { %v2549_v28 = vpop.xlane.xlu1 %2548 }
 0xba6   : > { %9132 = vrcp.f32 %v2549_v28  ;;  %v2546_v29 = vpop.xlane.xlu0 %2545 }
 0xba7   : > { %9134 = vrcp.f32 %v2546_v29 }
 0xbaa   : > { %v2774_v30 = vpop.xlane.xlu1 %2773 }
 0xbab   : > { %9136 = vrcp.f32 %v2774_v30  ;;  %v2771_v31 = vpop.xlane.xlu0 %2770 }
 0xbac   : > { %9138 = vrcp.f32 %v2771_v31  ;;  %v8135_v31 = vld [vmem:[%s9612_s27 + $0xe0] sm:$0x3f] }
 0xbb0   : > { %v9133_v32 = vpop.eup %9132 }
 0xbb1   : > { %v9135_v33 = vpop.eup %9134  ;;  %v2553_v34 = vmul.f32 %v9133_v32, %v9125_v17  ;;  %v8144_v32 = vld [vmem:[%s9612_s27 + $0xe8] sm:$0x3f] }
 0xbb2   : > { %v2551_v35 = vmul.f32 %v9135_v33, %v9127_v18 }
 0xbb4   : > { %v8929_v36 = vpack.c.bf16 %v2553_v34, %v2551_v35 }
 0xbb5   : > { %v9137_v41 = vpop.eup %9136 }
 0xbb6   : > { %v9139_v44 = vpop.eup %9138  ;;  %v2778_v46 = vmul.f32 %v9137_v41, %v9129_v21  ;;  %8931 = vmatpush3.bf16.xpose.msk.msra.mxu1 %vm9673_vm4, %v8929_v36 }
 0xbb7   : > { %v2776_v48 = vmul.f32 %v9139_v44, %v9131_v23  ;;  %8632 = vmatprep.subr.msk.mxu1 %vm2453_vm6, %v8118_v37 }
 0xbb9   : > { %v8933_v49 = vpack.c.bf16 %v2778_v46, %v2776_v48 }
 0xbbb   : > { %8935 = vmatpush3.bf16.xpose.msk.msra.mxu0 %vm9673_vm4, %v8933_v49  ;;  %v8136_v49 = vld [vmem:[%s9612_s27 + $0x120] sm:$0x3f] }
 0xbbc   : > { %8644 = vmatprep.subr.msk.mxu0 %vm2453_vm6, %v8127_v50 }
 0xbbd   : > { %8618 = vmatmul.mubr.msk.f32.vlgmr.msra.gmra.mrb[18].mxu1 %vm701_vm2, %v8101_v52 }
 0xbbe   : > { %8633 = vmatpush3.msk.msra.mxu1 %vm2453_vm6, %v8118_v37 }
 0xbbf   : > { %8936 = vmatprep.subr.bf16.mxu1 %v9345_v11 }
 0xbc2   : > { %8630 = vmatmul.mubr.msk.f32.vlgmr.msra.gmra.mrb[18].mxu0 %vm701_vm2, %v8110_v54 }
 0xbc3   : > { %8645 = vmatpush3.msk.msra.mxu0 %vm2453_vm6, %v8127_v50 }
 0xbc4   : > { %8940 = vmatprep.subr.bf16.mxu0 %v9345_v11 }
 0xbcb   : > { %v2886_v55 = vpop.trf.xlu0 }
 0xbcc   : > { %8634 = vmatprep.mubr.msk.f32.mxu1 %vm2446_vm7, %v2886_v55 }
 0xbcf   : > { %v2887_v56 = vpop.trf.xlu0 }
 0xbd0   : > { %v3115_v57 = vpop.trf.xlu1  ;;  %8635 = vmatmul.mubr.msk.f32.vlgmr.msra.gmra.mrb[20].mxu1 %vm2446_vm7, %v2887_v56 }
 0xbd1   : > { %8646 = vmatprep.mubr.msk.f32.mxu0 %vm2446_vm7, %v3115_v57  ;;  %8641 = vmatprep.mubr.msk.f32.mxu1 %vm9346_vm3, %v9347_v12  ;;  %v8145_v57 = vld [vmem:[%s9612_s27 + $0x128] sm:$0x3f] }
 0xbd4   : > { %v3116_v58 = vpop.trf.xlu1 }
 0xbd5   : > { %8647 = vmatmul.mubr.msk.f32.vlgmr.msra.gmra.mrb[20].mxu0 %vm2446_vm7, %v3116_v58  ;;  %v8119_v58 = vld [vmem:[%s9612_s27 + $0x150] sm:$0x3f] }
 0xbd6   : > { %8653 = vmatprep.mubr.msk.f32.mxu0 %vm9346_vm3, %v9347_v12 }
 0xc90   : > { %v2629_v59 = vpop.f32.mrb[18].mxu1 }
 0xc91   : > { %2634 = vst.msk [vmem:[%s9661_s6 + $0x7] sm:$0x3f] %vm2633_vm8, %v2629_v59  ;;  %v8619_v60 = vpop.f32.mrb[19].mxu1  ;;  %v8128_v59 = vld [vmem:[%s9612_s27 + $0x158] sm:$0x3f]  ;;  %vm2862_vm8 = vcmask 259200  }
 0xc95   : > { %v9869_v61 = vpop.f32.mrb[18].mxu0 }
 0xc96   : > { %v8631_v62 = vpop.f32.mrb[19].mxu0 }
 0xca3   : > { %v8636_v63 = vpop.f32.mrb[20].mxu1 }
 0xca4   : > { %v2983_v0 = vadd.f32 %v8636_v63, %v9634_v40  ;;  %v2977_v1 = vpop.f32.mrb[21].mxu1 }
 0xca5   : > { %v2978_v2 = vadd.f32 %v2977_v1, %v9637_v42 }
 0xca6   : > { %v2989_v3 = vsel %vm701_vm2, %v2983_v0, -inf }
 0xca7   : > { %2990 = vmax.xlane.f32.xlu1 %v2989_v3  ;;  %v2986_v4 = vsel %vm701_vm2, %v2978_v2, -inf }
 0xca8   : > { %v8648_v5 = vpop.f32.mrb[20].mxu0  ;;  %2987 = vmax.xlane.f32.xlu0 %v2986_v4 }
 0xca9   : > { %v3212_v12 = vadd.f32 %v8648_v5, %v9634_v40  ;;  %v3206_v6 = vpop.f32.mrb[21].mxu0 }
 0xcaa   : > { %v3207_v7 = vadd.f32 %v3206_v6, %v9637_v42  ;;  %v9917_v6 = vld [vmem:[%s9631_s4 + $0x8] sm:$0xff] }
 0xcab   : > { %v3218_v8 = vsel %vm701_vm2, %v3212_v12, -inf }
 0xcac   : > { %3219 = vmax.xlane.f32.xlu1 %v3218_v8  ;;  %v3215_v9 = vsel %vm701_vm2, %v3207_v7, -inf }
 0xcad   : > { %3216 = vmax.xlane.f32.xlu0 %v3215_v9  ;;  %v9921_v9 = vld [vmem:[%s9631_s4] sm:$0xff] }
 0xd34   : > { %v2991_v10 = vpop.xlane.xlu1 %2990 }
 0xd35   : > { %v2993_v13 = vsub.f32 %v2983_v0, %v2991_v10  ;;  %v2988_v14 = vpop.xlane.xlu0 %2987  ;;  %v9905_v0 = vld [vmem:[%s9661_s6 + $0x10] sm:$0xff] }
 0xd36   : > { %v2992_v15 = vsub.f32 %v2978_v2, %v2988_v14 }
 0xd37   : > { %v2996_v16 = vmul.f32 1.442695, %v2993_v13 }
 0xd38   : > { %v2994_v17 = vmul.f32 1.442695, %v2992_v15 }
 0xd39   : > { %9140 = vpow2.f32 %v2996_v16  ;;  %v3220_v18 = vpop.xlane.xlu1 %3219 }
 0xd3a   : > { %9142 = vpow2.f32 %v2994_v17  ;;  %v3222_v19 = vsub.f32 %v3212_v12, %v3220_v18  ;;  %v3217_v40 = vpop.xlane.xlu0 %3216 }
 0xd3b   : > { %v3221_v20 = vsub.f32 %v3207_v7, %v3217_v40 }
 0xd3c   : > { %v3225_v21 = vmul.f32 1.442695, %v3222_v19 }
 0xd3d   : > { %v3223_v42 = vmul.f32 1.442695, %v3221_v20 }
 0xd3e   : > { %9144 = vpow2.f32 %v3225_v21 }
 0xd3f   : > { %9146 = vpow2.f32 %v3223_v42 }
 0xd43   : > { %v9141_v23 = vpop.eup %9140 }
 0xd44   : > { %v9143_v24 = vpop.eup %9142  ;;  %v3001_v25 = vsel %vm701_vm2, %v9141_v23, 0.0 }
 0xd45   : > { %3002 = vadd.xlane.f32.xlu1 %v3001_v25  ;;  %v2998_v26 = vsel %vm701_vm2, %v9143_v24, 0.0 }
 0xd46   : > { %2999 = vadd.xlane.f32.xlu0 %v2998_v26 }
 0xd48   : > { %v9145_v27 = vpop.eup %9144 }
 0xd49   : > { %v9147_v28 = vpop.eup %9146  ;;  %v3230_v29 = vsel %vm701_vm2, %v9145_v27, 0.0 }
 0xd4a   : > { %3231 = vadd.xlane.f32.xlu1 %v3230_v29  ;;  %v3227_v30 = vsel %vm701_vm2, %v9147_v28, 0.0 }
 0xd4b   : > { %3228 = vadd.xlane.f32.xlu0 %v3227_v30 }
 0xd78   : > { %3328 = vxpose.xlu0.b32.start.end [1/1] (short) (narrow) %v8135_v31, 16 }
 0xd7d   : > { %3557 = vxpose.xlu1.b32.start.end [1/1] (short) (narrow) %v8144_v32, 16 }
 0xdd2   : > { %v3003_v33 = vpop.xlane.xlu1 %3002 }
 0xdd3   : > { %9148 = vrcp.f32 %v3003_v33  ;;  %v3000_v34 = vpop.xlane.xlu0 %2999 }
 0xdd4   : > { %9150 = vrcp.f32 %v3000_v34 }
 0xdd7   : > { %v3232_v35 = vpop.xlane.xlu1 %3231 }
 0xdd8   : > { %9152 = vrcp.f32 %v3232_v35  ;;  %v3229_v36 = vpop.xlane.xlu0 %3228 }
 0xdd9   : > { %9154 = vrcp.f32 %v3229_v36 }
 0xddd   : > { %v9149_v37 = vpop.eup %9148 }
 0xdde   : > { %v9151_v41 = vpop.eup %9150  ;;  %v3007_v44 = vmul.f32 %v9149_v37, %v9141_v23 }
 0xddf   : > { %v3005_v46 = vmul.f32 %v9151_v41, %v9143_v24 }
 0xde1   : > { %v8937_v48 = vpack.c.bf16 %v3007_v44, %v3005_v46  ;;  %v8153_v46 = vld [vmem:[%s9612_s27 + $0xf0] sm:$0x3f] }
 0xde2   : > { %v9153_v50 = vpop.eup %9152 }
 0xde3   : > { %v9155_v52 = vpop.eup %9154  ;;  %v3236_v54 = vmul.f32 %v9153_v50, %v9145_v27  ;;  %8939 = vmatpush3.bf16.xpose.msk.msra.mxu1 %vm9673_vm4, %v8937_v48  ;;  %v8162_v48 = vld [vmem:[%s9612_s27 + $0xf8] sm:$0x3f] }
 0xde4   : > { %v3234_v55 = vmul.f32 %v9155_v52, %v9147_v28  ;;  %8656 = vmatprep.subr.msk.mxu1 %vm2453_vm6, %v8136_v49 }
 0xde6   : > { %v8941_v56 = vpack.c.bf16 %v3236_v54, %v3234_v55 }
 0xde8   : > { %8943 = vmatpush3.bf16.xpose.msk.msra.mxu0 %vm9673_vm4, %v8941_v56 }
 0xde9   : > { %8668 = vmatprep.subr.msk.mxu0 %vm2453_vm6, %v8145_v57 }
 0xdea   : > { %8642 = vmatmul.mubr.msk.f32.vlgmr.msra.gmra.mrb[22].mxu1 %vm701_vm2, %v8119_v58 }
 0xdeb   : > { %8657 = vmatpush3.msk.msra.mxu1 %vm2453_vm6, %v8136_v49 }
 0xdec   : > { %8944 = vmatprep.subr.bf16.mxu1 %v9345_v11 }
 0xdef   : > { %8654 = vmatmul.mubr.msk.f32.vlgmr.msra.gmra.mrb[22].mxu0 %vm701_vm2, %v8128_v59 }
 0xdf0   : > { %8669 = vmatpush3.msk.msra.mxu0 %vm2453_vm6, %v8145_v57 }
 0xdf1   : > { %8948 = vmatprep.subr.bf16.mxu0 %v9345_v11 }
 0xdf8   : > { %v3344_v60 = vpop.trf.xlu0 }
 0xdf9   : > { %8658 = vmatprep.mubr.msk.f32.mxu1 %vm2446_vm7, %v3344_v60  ;;  %v8154_v60 = vld [vmem:[%s9612_s27 + $0x130] sm:$0x3f] }
 0xdfc   : > { %v3345_v62 = vpop.trf.xlu0 }
 0xdfd   : > { %v3573_v63 = vpop.trf.xlu1  ;;  %8659 = vmatmul.mubr.msk.f32.vlgmr.msra.gmra.mrb[24].mxu1 %vm2446_vm7, %v3345_v62 }
 0xdfe   : > { %8670 = vmatprep.mubr.msk.f32.mxu0 %vm2446_vm7, %v3573_v63  ;;  %8665 = vmatprep.mubr.msk.f32.mxu1 %vm9346_vm3, %v9905_v0 }
 0xe01   : > { %v3574_v1 = vpop.trf.xlu1 }
 0xe02   : > { %8671 = vmatmul.mubr.msk.f32.vlgmr.msra.gmra.mrb[24].mxu0 %vm2446_vm7, %v3574_v1 }
 0xe03   : > { %8677 = vmatprep.mubr.msk.f32.mxu0 %vm9346_vm3, %v9905_v0 }
 0xebd   : > { %v9912_v2 = vpop.f32.mrb[22].mxu1 }
 0xebe   : > { %v8643_v3 = vpop.f32.mrb[23].mxu1 }
 0xec2   : > { %v9914_v4 = vpop.f32.mrb[22].mxu0 }
 0xec3   : > { %v8655_v5 = vpop.f32.mrb[23].mxu0 }
 0xed0   : > { %v8660_v12 = vpop.f32.mrb[24].mxu1 }
 0xed1   : > { %v3441_v7 = vadd.f32 %v9917_v6, %v8660_v12  ;;  %v3435_v8 = vpop.f32.mrb[25].mxu1  ;;  %v8163_v12 = vld [vmem:[%s9612_s27 + $0x138] sm:$0x3f] }
 0xed2   : > { %v3436_v10 = vadd.f32 %v9921_v9, %v3435_v8  ;;  %v8146_v8 = vld [vmem:[%s9612_s27 + $0x168] sm:$0x3f] }
 0xed3   : > { %v3447_v13 = vsel %vm701_vm2, %v3441_v7, -inf }
 0xed4   : > { %3448 = vmax.xlane.f32.xlu1 %v3447_v13  ;;  %v3444_v14 = vsel %vm701_vm2, %v3436_v10, -inf }
 0xed5   : > { %v8672_v15 = vpop.f32.mrb[24].mxu0  ;;  %3445 = vmax.xlane.f32.xlu0 %v3444_v14 }
 0xed6   : > { %v3670_v16 = vadd.f32 %v9917_v6, %v8672_v15  ;;  %v3664_v17 = vpop.f32.mrb[25].mxu0 }
 0xed7   : > { %v3665_v18 = vadd.f32 %v9921_v9, %v3664_v17 }
 0xed8   : > { %v3676_v19 = vsel %vm701_vm2, %v3670_v16, -inf }
 0xed9   : > { %3677 = vmax.xlane.f32.xlu1 %v3676_v19  ;;  %v3673_v40 = vsel %vm701_vm2, %v3665_v18, -inf }
 0xeda   : > { %3674 = vmax.xlane.f32.xlu0 %v3673_v40 }
 0xf61   : > { %v3449_v20 = vpop.xlane.xlu1 %3448 }
 0xf62   : > { %v3451_v21 = vsub.f32 %v3441_v7, %v3449_v20  ;;  %v3446_v42 = vpop.xlane.xlu0 %3445  ;;  %v8137_v7 = vld [vmem:[%s9612_s27 + $0x160] sm:$0x3f] }
 0xf63   : > { %v3450_v23 = vsub.f32 %v3436_v10, %v3446_v42 }
 0xf64   : > { %v3454_v24 = vmul.f32 1.442695, %v3451_v21 }
 0xf65   : > { %v3452_v25 = vmul.f32 1.442695, %v3450_v23 }
 0xf66   : > { %9156 = vpow2.f32 %v3454_v24  ;;  %v3678_v26 = vpop.xlane.xlu1 %3677 }
 0xf67   : > { %9158 = vpow2.f32 %v3452_v25  ;;  %v3680_v27 = vsub.f32 %v3670_v16, %v3678_v26  ;;  %v3675_v28 = vpop.xlane.xlu0 %3674 }
 0xf68   : > { %v3679_v29 = vsub.f32 %v3665_v18, %v3675_v28 }
 0xf69   : > { %v3683_v30 = vmul.f32 1.442695, %v3680_v27 }
 0xf6a   : > { %v3681_v31 = vmul.f32 1.442695, %v3679_v29 }
 0xf6b   : > { %9160 = vpow2.f32 %v3683_v30 }
 0xf6c   : > { %9162 = vpow2.f32 %v3681_v31 }
 0xf70   : > { %v9157_v32 = vpop.eup %9156 }
 0xf71   : > { %v9159_v33 = vpop.eup %9158  ;;  %v3459_v34 = vsel %vm701_vm2, %v9157_v32, 0.0 }
 0xf72   : > { %3460 = vadd.xlane.f32.xlu1 %v3459_v34  ;;  %v3456_v35 = vsel %vm701_vm2, %v9159_v33, 0.0 }
 0xf73   : > { %3457 = vadd.xlane.f32.xlu0 %v3456_v35 }
 0xf75   : > { %v9161_v36 = vpop.eup %9160 }
 0xf76   : > { %v9163_v37 = vpop.eup %9162  ;;  %v3688_v41 = vsel %vm701_vm2, %v9161_v36, 0.0 }
 0xf77   : > { %3689 = vadd.xlane.f32.xlu1 %v3688_v41  ;;  %v3685_v44 = vsel %vm701_vm2, %v9163_v37, 0.0 }
 0xf78   : > { %3686 = vadd.xlane.f32.xlu0 %v3685_v44 }
 0xfa5   : > { %3786 = vxpose.xlu0.b32.start.end [1/1] (short) (narrow) %v8153_v46, 16 }
 0xfaa   : > { %4015 = vxpose.xlu1.b32.start.end [1/1] (short) (narrow) %v8162_v48, 16 }
 0xfff   : > { %v3461_v49 = vpop.xlane.xlu1 %3460 }
0x1000   : > { %9164 = vrcp.f32 %v3461_v49  ;;  %v3458_v50 = vpop.xlane.xlu0 %3457 }
0x1001   : > { %9166 = vrcp.f32 %v3458_v50 }
0x1004   : > { %v3690_v52 = vpop.xlane.xlu1 %3689 }
0x1005   : > { %9168 = vrcp.f32 %v3690_v52  ;;  %v3687_v54 = vpop.xlane.xlu0 %3686 }
0x1006   : > { %9170 = vrcp.f32 %v3687_v54 }
0x100a   : > { %v9165_v55 = vpop.eup %9164 }
0x100b   : > { %v9167_v56 = vpop.eup %9166  ;;  %v3465_v57 = vmul.f32 %v9165_v55, %v9157_v32 }
0x100c   : > { %v3463_v58 = vmul.f32 %v9167_v56, %v9159_v33 }
0x100e   : > { %v8945_v59 = vpack.c.bf16 %v3465_v57, %v3463_v58 }
0x100f   : > { %v9169_v62 = vpop.eup %9168 }
0x1010   : > { %v9171_v63 = vpop.eup %9170  ;;  %v3694_v1 = vmul.f32 %v9169_v62, %v9161_v36  ;;  %8947 = vmatpush3.bf16.xpose.msk.msra.mxu1 %vm9673_vm4, %v8945_v59  ;;  %v8180_v62 = vld [vmem:[%s9612_s27 + $0x188] sm:$0x7] }
0x1011   : > { %v3692_v3 = vmul.f32 %v9171_v63, %v9163_v37  ;;  %8680 = vmatprep.subr.msk.mxu1 %vm2453_vm6, %v8154_v60 }
0x1013   : > { %v8949_v5 = vpack.c.bf16 %v3694_v1, %v3692_v3 }
0x1015   : > { %8951 = vmatpush3.bf16.xpose.msk.msra.mxu0 %vm9673_vm4, %v8949_v5 }
0x1016   : > { %8692 = vmatprep.subr.msk.mxu0 %vm2453_vm6, %v8163_v12 }
0x1017   : > { %8666 = vmatmul.mubr.msk.f32.vlgmr.msra.gmra.mrb[26].mxu1 %vm701_vm2, %v8137_v7 }
0x1018   : > { %8681 = vmatpush3.msk.msra.mxu1 %vm2453_vm6, %v8154_v60  ;;  %v8171_v60 = vld [vmem:[%s9612_s27 + $0x180] sm:$0x7] }
0x1019   : > { %8952 = vmatprep.subr.bf16.mxu1 %v9345_v11 }
0x101c   : > { %8678 = vmatmul.mubr.msk.f32.vlgmr.msra.gmra.mrb[26].mxu0 %vm701_vm2, %v8146_v8 }
0x101d   : > { %8693 = vmatpush3.msk.msra.mxu0 %vm2453_vm6, %v8163_v12  ;;  %vm1948_vm6 = vcmask 785024  }
0x101e   : > { %8956 = vmatprep.subr.bf16.mxu0 %v9345_v11 }
0x1025   : > { %v3802_v10 = vpop.trf.xlu0 }
0x1026   : > { %8682 = vmatprep.mubr.msk.f32.mxu1 %vm2446_vm7, %v3802_v10 }
0x1029   : > { %v3803_v13 = vpop.trf.xlu0 }
0x102a   : > { %v4031_v14 = vpop.trf.xlu1  ;;  %8683 = vmatmul.mubr.msk.f32.vlgmr.msra.gmra.mrb[28].mxu1 %vm2446_vm7, %v3803_v13 }
0x102b   : > { %8694 = vmatprep.mubr.msk.f32.mxu0 %vm2446_vm7, %v4031_v14  ;;  %8689 = vmatprep.mubr.msk.f32.mxu1 %vm9346_vm3, %v9905_v0  ;;  %v8172_v14 = vld [vmem:[%s9612_s27 + $0x1c0] sm:$0x7] }
0x102e   : > { %v4032_v15 = vpop.trf.xlu1 }
0x102f   : > { %8695 = vmatmul.mubr.msk.f32.vlgmr.msra.gmra.mrb[28].mxu0 %vm2446_vm7, %v4032_v15  ;;  %vm2177_vm7 = vcmask 916224  }
0x1030   : > { %8701 = vmatprep.mubr.msk.f32.mxu0 %vm9346_vm3, %v9905_v0 }
0x10ea   : > { %v9960_v16 = vpop.f32.mrb[26].mxu1 }
0x10eb   : > { %v8667_v17 = vpop.f32.mrb[27].mxu1 }
0x10ef   : > { %v9962_v18 = vpop.f32.mrb[26].mxu0 }
0x10f0   : > { %v8679_v19 = vpop.f32.mrb[27].mxu0 }
0x10fd   : > { %v8684_v40 = vpop.f32.mrb[28].mxu1 }
0x10fe   : > { %v3899_v20 = vadd.f32 %v9917_v6, %v8684_v40  ;;  %v3893_v21 = vpop.f32.mrb[29].mxu1 }
0x10ff   : > { %v3894_v42 = vadd.f32 %v9921_v9, %v3893_v21  ;;  %v8181_v21 = vld [vmem:[%s9612_s27 + $0x1c8] sm:$0x7] }
0x1100   : > { %v3905_v23 = vsel %vm701_vm2, %v3899_v20, -inf }
0x1101   : > { %3906 = vmax.xlane.f32.xlu1 %v3905_v23  ;;  %v3902_v24 = vsel %vm701_vm2, %v3894_v42, -inf  ;;  %v8164_v23 = vld [vmem:[%s9612_s27 + $0x178] sm:$0x3f] }
0x1102   : > { %v8696_v25 = vpop.f32.mrb[28].mxu0  ;;  %3903 = vmax.xlane.f32.xlu0 %v3902_v24 }
0x1103   : > { %v4128_v26 = vadd.f32 %v9917_v6, %v8696_v25  ;;  %v4122_v27 = vpop.f32.mrb[29].mxu0 }
0x1104   : > { %v4123_v28 = vadd.f32 %v9921_v9, %v4122_v27 }
0x1105   : > { %v4134_v29 = vsel %vm701_vm2, %v4128_v26, -inf }
0x1106   : > { %4135 = vmax.xlane.f32.xlu1 %v4134_v29  ;;  %v4131_v30 = vsel %vm701_vm2, %v4123_v28, -inf }
0x1107   : > { %4132 = vmax.xlane.f32.xlu0 %v4131_v30 }
0x118e   : > { %v3907_v31 = vpop.xlane.xlu1 %3906 }
0x118f   : > { %v3909_v32 = vsub.f32 %v3899_v20, %v3907_v31  ;;  %v3904_v33 = vpop.xlane.xlu0 %3903 }
0x1190   : > { %v3908_v34 = vsub.f32 %v3894_v42, %v3904_v33  ;;  %v8155_v42 = vld [vmem:[%s9612_s27 + $0x170] sm:$0x3f] }
0x1191   : > { %v3912_v35 = vmul.f32 1.442695, %v3909_v32 }
0x1192   : > { %v3910_v36 = vmul.f32 1.442695, %v3908_v34 }
0x1193   : > { %9172 = vpow2.f32 %v3912_v35  ;;  %v4136_v37 = vpop.xlane.xlu1 %4135 }
0x1194   : > { %9174 = vpow2.f32 %v3910_v36  ;;  %v4138_v41 = vsub.f32 %v4128_v26, %v4136_v37  ;;  %v4133_v44 = vpop.xlane.xlu0 %4132 }
0x1195   : > { %v4137_v46 = vsub.f32 %v4123_v28, %v4133_v44 }
0x1196   : > { %v4141_v48 = vmul.f32 1.442695, %v4138_v41 }
0x1197   : > { %v4139_v49 = vmul.f32 1.442695, %v4137_v46 }
0x1198   : > { %9176 = vpow2.f32 %v4141_v48 }
0x1199   : > { %9178 = vpow2.f32 %v4139_v49 }
0x119d   : > { %v9173_v50 = vpop.eup %9172 }
0x119e   : > { %v9175_v52 = vpop.eup %9174  ;;  %v3917_v54 = vsel %vm701_vm2, %v9173_v50, 0.0 }
0x119f   : > { %3918 = vadd.xlane.f32.xlu1 %v3917_v54  ;;  %v3914_v55 = vsel %vm701_vm2, %v9175_v52, 0.0 }
0x11a0   : > { %3915 = vadd.xlane.f32.xlu0 %v3914_v55 }
0x11a2   : > { %v9177_v56 = vpop.eup %9176 }
0x11a3   : > { %v9179_v57 = vpop.eup %9178  ;;  %v4146_v58 = vsel %vm701_vm2, %v9177_v56, 0.0 }
0x11a4   : > { %4147 = vadd.xlane.f32.xlu1 %v4146_v58  ;;  %v4143_v59 = vsel %vm701_vm2, %v9179_v57, 0.0 }
0x11a5   : > { %4144 = vadd.xlane.f32.xlu0 %v4143_v59 }
0x11d2   : > { %4244 = vxpose.xlu0.b32.start.end [1/1] (short) (narrow) %v8171_v60, 16 }
0x11d7   : > { %4471 = vxpose.xlu1.b32.start.end [1/1] (short) (narrow) %v8180_v62, 16 }
0x122c   : > { %v3919_v63 = vpop.xlane.xlu1 %3918 }
0x122d   : > { %9180 = vrcp.f32 %v3919_v63  ;;  %v3916_v1 = vpop.xlane.xlu0 %3915 }
0x122e   : > { %9182 = vrcp.f32 %v3916_v1 }
0x1231   : > { %v4148_v3 = vpop.xlane.xlu1 %4147 }
0x1232   : > { %9184 = vrcp.f32 %v4148_v3  ;;  %v4145_v5 = vpop.xlane.xlu0 %4144 }
0x1233   : > { %9186 = vrcp.f32 %v4145_v5 }
0x1237   : > { %v9181_v12 = vpop.eup %9180 }
0x1238   : > { %v9183_v7 = vpop.eup %9182  ;;  %v3923_v8 = vmul.f32 %v9181_v12, %v9173_v50 }
0x1239   : > { %v3921_v10 = vmul.f32 %v9183_v7, %v9175_v52 }
0x123b   : > { %v8953_v13 = vpack.c.bf16 %v3923_v8, %v3921_v10 }
0x123c   : > { %v9185_v15 = vpop.eup %9184 }
0x123d   : > { %v9187_v17 = vpop.eup %9186  ;;  %v4152_v19 = vmul.f32 %v9185_v15, %v9177_v56  ;;  %8955 = vmatpush3.bf16.xpose.msk.msra.mxu1 %vm9673_vm4, %v8953_v13 }
0x123e   : > { %v4150_v40 = vmul.f32 %v9187_v17, %v9179_v57  ;;  %8704 = vmatprep.subr.msk.mxu1 %vm4283_vm9, %v8172_v14  ;;  %v8189_v17 = vld [vmem:[%s9612_s27 + $0x190] sm:$0x7] }
0x1240   : > { %v8957_v20 = vpack.c.bf16 %v4152_v19, %v4150_v40  ;;  %v8198_v19 = vld [vmem:[%s9612_s27 + $0x198] sm:$0x7] }
0x1242   : > { %8959 = vmatpush3.bf16.xpose.msk.msra.mxu0 %vm9673_vm4, %v8957_v20 }
0x1243   : > { %8716 = vmatprep.subr.msk.mxu0 %vm4283_vm9, %v8181_v21 }
0x1244   : > { %8690 = vmatmul.mubr.msk.f32.vlgmr.msra.gmra.mrb[30].mxu1 %vm701_vm2, %v8155_v42 }
0x1245   : > { %8705 = vmatpush3.msk.msra.mxu1 %vm4283_vm9, %v8172_v14 }
0x1246   : > { %8960 = vmatprep.subr.bf16.mxu1 %v9345_v11 }
0x1249   : > { %8702 = vmatmul.mubr.msk.f32.vlgmr.msra.gmra.mrb[30].mxu0 %vm701_vm2, %v8164_v23 }
0x124a   : > { %8717 = vmatpush3.msk.msra.mxu0 %vm4283_vm9, %v8181_v21 }
0x124b   : > { %8964 = vmatprep.subr.bf16.mxu0 %v9345_v11 }
0x1252   : > { %v4260_v24 = vpop.trf.xlu0 }
0x1253   : > { %8706 = vmatprep.mubr.msk.f32.mxu1 %vm4276_vm10, %v4260_v24 }
0x1256   : > { %v4261_v25 = vpop.trf.xlu0 }
0x1257   : > { %v4487_v26 = vpop.trf.xlu1  ;;  %8707 = vmatmul.mubr.msk.f32.vlgmr.msra.gmra.mrb[32].mxu1 %vm4276_vm10, %v4261_v25 }
0x1258   : > { %8718 = vmatprep.mubr.msk.f32.mxu0 %vm4276_vm10, %v4487_v26  ;;  %8713 = vmatprep.mubr.msk.f32.mxu1 %vm9346_vm3, %v9905_v0 }
0x125b   : > { %v4488_v27 = vpop.trf.xlu1 }
0x125c   : > { %8719 = vmatmul.mubr.msk.f32.vlgmr.msra.gmra.mrb[32].mxu0 %vm4276_vm10, %v4488_v27 }
0x125d   : > { %8725 = vmatprep.mubr.msk.f32.mxu0 %vm9346_vm3, %v9905_v0 }
0x1317   : > { %v10002_v28 = vpop.f32.mrb[30].mxu1 }
0x1318   : > { %v8691_v29 = vpop.f32.mrb[31].mxu1 }
0x1319   : > { %v8190_v29 = vld [vmem:[%s9612_s27 + $0x1d0] sm:$0x7] }
0x131c   : > { %v10004_v30 = vpop.f32.mrb[30].mxu0 }
0x131d   : > { %v8703_v31 = vpop.f32.mrb[31].mxu0 }
0x132a   : > { %v8708_v32 = vpop.f32.mrb[32].mxu1 }
0x132b   : > { %v4359_v33 = vadd.f32 %v9917_v6, %v8708_v32  ;;  %v4353_v34 = vpop.f32.mrb[33].mxu1 }
0x132c   : > { %v4354_v35 = vadd.f32 %v9921_v9, %v4353_v34 }
0x132d   : > { %v4365_v36 = vsel %vm701_vm2, %v4359_v33, -inf }
0x132e   : > { %4366 = vmax.xlane.f32.xlu1 %v4365_v36  ;;  %v4362_v37 = vsel %vm701_vm2, %v4354_v35, -inf  ;;  %v8199_v36 = vld [vmem:[%s9612_s27 + $0x1d8] sm:$0x7] }
0x132f   : > { %v8720_v41 = vpop.f32.mrb[32].mxu0  ;;  %4363 = vmax.xlane.f32.xlu0 %v4362_v37  ;;  %v8173_v37 = vld [vmem:[%s9612_s27 + $0x200] sm:$0x7] }
0x1330   : > { %v4584_v44 = vadd.f32 %v9917_v6, %v8720_v41  ;;  %v4578_v46 = vpop.f32.mrb[33].mxu0  ;;  %v8182_v41 = vld [vmem:[%s9612_s27 + $0x208] sm:$0x7] }
0x1331   : > { %v4579_v48 = vadd.f32 %v9921_v9, %v4578_v46 }
0x1332   : > { %v4590_v49 = vsel %vm701_vm2, %v4584_v44, -inf }
0x1333   : > { %4591 = vmax.xlane.f32.xlu1 %v4590_v49  ;;  %v4587_v50 = vsel %vm701_vm2, %v4579_v48, -inf }
0x1334   : > { %4588 = vmax.xlane.f32.xlu0 %v4587_v50 }
0x13bb   : > { %v4367_v52 = vpop.xlane.xlu1 %4366 }
0x13bc   : > { %v4369_v54 = vsub.f32 %v4359_v33, %v4367_v52  ;;  %v4364_v55 = vpop.xlane.xlu0 %4363 }
0x13bd   : > { %v4368_v56 = vsub.f32 %v4354_v35, %v4364_v55 }
0x13be   : > { %v4372_v57 = vmul.f32 1.442695, %v4369_v54 }
0x13bf   : > { %v4370_v58 = vmul.f32 1.442695, %v4368_v56 }
0x13c0   : > { %9188 = vpow2.f32 %v4372_v57  ;;  %v4592_v59 = vpop.xlane.xlu1 %4591 }
0x13c1   : > { %9190 = vpow2.f32 %v4370_v58  ;;  %v4594_v60 = vsub.f32 %v4584_v44, %v4592_v59  ;;  %v4589_v62 = vpop.xlane.xlu0 %4588 }
0x13c2   : > { %v4593_v63 = vsub.f32 %v4579_v48, %v4589_v62 }
0x13c3   : > { %v4597_v1 = vmul.f32 1.442695, %v4594_v60 }
0x13c4   : > { %v4595_v3 = vmul.f32 1.442695, %v4593_v63 }
0x13c5   : > { %9192 = vpow2.f32 %v4597_v1 }
0x13c6   : > { %9194 = vpow2.f32 %v4595_v3 }
0x13ca   : > { %v9189_v5 = vpop.eup %9188 }
0x13cb   : > { %v9191_v12 = vpop.eup %9190  ;;  %v4377_v7 = vsel %vm701_vm2, %v9189_v5, 0.0 }
0x13cc   : > { %4378 = vadd.xlane.f32.xlu1 %v4377_v7  ;;  %v4374_v8 = vsel %vm701_vm2, %v9191_v12, 0.0 }
0x13cd   : > { %4375 = vadd.xlane.f32.xlu0 %v4374_v8 }
0x13cf   : > { %v9193_v10 = vpop.eup %9192 }
0x13d0   : > { %v9195_v13 = vpop.eup %9194  ;;  %v4602_v14 = vsel %vm701_vm2, %v9193_v10, 0.0 }
0x13d1   : > { %4603 = vadd.xlane.f32.xlu1 %v4602_v14  ;;  %v4599_v15 = vsel %vm701_vm2, %v9195_v13, 0.0 }
0x13d2   : > { %4600 = vadd.xlane.f32.xlu0 %v4599_v15 }
0x13ff   : > { %4700 = vxpose.xlu0.b32.start.end [1/1] (short) (narrow) %v8189_v17, 16 }
0x1404   : > { %4929 = vxpose.xlu1.b32.start.end [1/1] (short) (narrow) %v8198_v19, 16 }
0x1459   : > { %v4379_v40 = vpop.xlane.xlu1 %4378 }
0x145a   : > { %9196 = vrcp.f32 %v4379_v40  ;;  %v4376_v20 = vpop.xlane.xlu0 %4375 }
0x145b   : > { %9198 = vrcp.f32 %v4376_v20 }
0x145e   : > { %v4604_v21 = vpop.xlane.xlu1 %4603 }
0x145f   : > { %9200 = vrcp.f32 %v4604_v21  ;;  %v4601_v42 = vpop.xlane.xlu0 %4600 }
0x1460   : > { %9202 = vrcp.f32 %v4601_v42 }
0x1464   : > { %v9197_v23 = vpop.eup %9196 }
0x1465   : > { %v9199_v24 = vpop.eup %9198  ;;  %v4383_v25 = vmul.f32 %v9197_v23, %v9189_v5 }
0x1466   : > { %v4381_v26 = vmul.f32 %v9199_v24, %v9191_v12 }
0x1468   : > { %v8961_v27 = vpack.c.bf16 %v4383_v25, %v4381_v26 }
0x1469   : > { %v9201_v31 = vpop.eup %9200 }
0x146a   : > { %v9203_v32 = vpop.eup %9202  ;;  %v4608_v33 = vmul.f32 %v9201_v31, %v9193_v10  ;;  %8963 = vmatpush3.bf16.xpose.msk.msra.mxu1 %vm9673_vm4, %v8961_v27 }
0x146b   : > { %v4606_v34 = vmul.f32 %v9203_v32, %v9195_v13  ;;  %8728 = vmatprep.subr.msk.mxu1 %vm4283_vm9, %v8190_v29 }
0x146d   : > { %v8965_v35 = vpack.c.bf16 %v4608_v33, %v4606_v34  ;;  %v8207_v34 = vld [vmem:[%s9612_s27 + $0x1a0] sm:$0x7] }
0x146f   : > { %8967 = vmatpush3.bf16.xpose.msk.msra.mxu0 %vm9673_vm4, %v8965_v35  ;;  %v8216_v35 = vld [vmem:[%s9612_s27 + $0x1a8] sm:$0x7] }
0x1470   : > { %8740 = vmatprep.subr.msk.mxu0 %vm4283_vm9, %v8199_v36 }
0x1471   : > { %8714 = vmatmul.mubr.msk.f32.vlgmr.msra.gmra.mrb[34].mxu1 %vm701_vm2, %v8173_v37 }
0x1472   : > { %8729 = vmatpush3.msk.msra.mxu1 %vm4283_vm9, %v8190_v29 }
0x1473   : > { %8968 = vmatprep.subr.bf16.mxu1 %v9345_v11 }
0x1476   : > { %8726 = vmatmul.mubr.msk.f32.vlgmr.msra.gmra.mrb[34].mxu0 %vm701_vm2, %v8182_v41 }
0x1477   : > { %8741 = vmatpush3.msk.msra.mxu0 %vm4283_vm9, %v8199_v36 }
0x1478   : > { %8972 = vmatprep.subr.bf16.mxu0 %v9345_v11 }
0x147f   : > { %v4716_v44 = vpop.trf.xlu0 }
0x1480   : > { %8730 = vmatprep.mubr.msk.f32.mxu1 %vm4276_vm10, %v4716_v44 }
0x1483   : > { %v4717_v46 = vpop.trf.xlu0 }
0x1484   : > { %v4945_v48 = vpop.trf.xlu1  ;;  %8731 = vmatmul.mubr.msk.f32.vlgmr.msra.gmra.mrb[36].mxu1 %vm4276_vm10, %v4717_v46 }
0x1485   : > { %8742 = vmatprep.mubr.msk.f32.mxu0 %vm4276_vm10, %v4945_v48  ;;  %8737 = vmatprep.mubr.msk.f32.mxu1 %vm9346_vm3, %v9905_v0 }
0x1488   : > { %v4946_v49 = vpop.trf.xlu1 }
0x1489   : > { %8743 = vmatmul.mubr.msk.f32.vlgmr.msra.gmra.mrb[36].mxu0 %vm4276_vm10, %v4946_v49 }
0x148a   : > { %8749 = vmatprep.mubr.msk.f32.mxu0 %vm9346_vm3, %v9905_v0 }
0x1544   : > { %v4459_v50 = vpop.f32.mrb[34].mxu1 }
0x1545   : > { %4464 = vst.msk [vmem:[%s9661_s6 + $0xe] sm:$0x7] %vm4463_vm11, %v4459_v50  ;;  %v8715_v52 = vpop.f32.mrb[35].mxu1  ;;  %vm3320_vm11 = vcmask 521600  }
0x1549   : > { %v10045_v54 = vpop.f32.mrb[34].mxu0 }
0x154a   : > { %v8727_v55 = vpop.f32.mrb[35].mxu0 }
0x154b   : > { %v8208_v55 = vld [vmem:[%s9612_s27 + $0x1e0] sm:$0x7] }
0x1557   : > { %v8732_v56 = vpop.f32.mrb[36].mxu1 }
0x1558   : > { %v4813_v57 = vadd.f32 %v9917_v6, %v8732_v56  ;;  %v4807_v58 = vpop.f32.mrb[37].mxu1 }
0x1559   : > { %v4808_v59 = vadd.f32 %v9921_v9, %v4807_v58 }
0x155a   : > { %v4819_v60 = vsel %vm701_vm2, %v4813_v57, -inf }
0x155b   : > { %4820 = vmax.xlane.f32.xlu1 %v4819_v60  ;;  %v4816_v62 = vsel %vm701_vm2, %v4808_v59, -inf }
0x155c   : > { %v8744_v63 = vpop.f32.mrb[36].mxu0  ;;  %4817 = vmax.xlane.f32.xlu0 %v4816_v62  ;;  %v8217_v62 = vld [vmem:[%s9612_s27 + $0x1e8] sm:$0x7] }
0x155d   : > { %v5042_v1 = vadd.f32 %v9917_v6, %v8744_v63  ;;  %v5036_v3 = vpop.f32.mrb[37].mxu0  ;;  %v8191_v63 = vld [vmem:[%s9612_s27 + $0x210] sm:$0x7] }
0x155e   : > { %v5037_v5 = vadd.f32 %v9921_v9, %v5036_v3 }
0x155f   : > { %v5048_v12 = vsel %vm701_vm2, %v5042_v1, -inf }
0x1560   : > { %5049 = vmax.xlane.f32.xlu1 %v5048_v12  ;;  %v5045_v7 = vsel %vm701_vm2, %v5037_v5, -inf }
0x1561   : > { %5046 = vmax.xlane.f32.xlu0 %v5045_v7 }
0x15e8   : > { %v4821_v8 = vpop.xlane.xlu1 %4820 }
0x15e9   : > { %v4823_v10 = vsub.f32 %v4813_v57, %v4821_v8  ;;  %v4818_v13 = vpop.xlane.xlu0 %4817 }
0x15ea   : > { %v4822_v14 = vsub.f32 %v4808_v59, %v4818_v13 }
0x15eb   : > { %v4826_v15 = vmul.f32 1.442695, %v4823_v10 }
0x15ec   : > { %v4824_v17 = vmul.f32 1.442695, %v4822_v14 }
0x15ed   : > { %9204 = vpow2.f32 %v4826_v15  ;;  %v5050_v19 = vpop.xlane.xlu1 %5049 }
0x15ee   : > { %9206 = vpow2.f32 %v4824_v17  ;;  %v5052_v40 = vsub.f32 %v5042_v1, %v5050_v19  ;;  %v5047_v20 = vpop.xlane.xlu0 %5046  ;;  %v8200_v1 = vld [vmem:[%s9612_s27 + $0x218] sm:$0x7] }
0x15ef   : > { %v5051_v21 = vsub.f32 %v5037_v5, %v5047_v20 }
0x15f0   : > { %v5055_v42 = vmul.f32 1.442695, %v5052_v40 }
0x15f1   : > { %v5053_v23 = vmul.f32 1.442695, %v5051_v21 }
0x15f2   : > { %9208 = vpow2.f32 %v5055_v42 }
0x15f3   : > { %9210 = vpow2.f32 %v5053_v23 }
0x15f7   : > { %v9205_v24 = vpop.eup %9204 }
0x15f8   : > { %v9207_v25 = vpop.eup %9206  ;;  %v4831_v26 = vsel %vm701_vm2, %v9205_v24, 0.0 }
0x15f9   : > { %4832 = vadd.xlane.f32.xlu1 %v4831_v26  ;;  %v4828_v27 = vsel %vm701_vm2, %v9207_v25, 0.0 }
0x15fa   : > { %4829 = vadd.xlane.f32.xlu0 %v4828_v27 }
0x15fc   : > { %v9209_v29 = vpop.eup %9208 }
0x15fd   : > { %v9211_v31 = vpop.eup %9210  ;;  %v5060_v32 = vsel %vm701_vm2, %v9209_v29, 0.0 }
0x15fe   : > { %5061 = vadd.xlane.f32.xlu1 %v5060_v32  ;;  %v5057_v33 = vsel %vm701_vm2, %v9211_v31, 0.0 }
0x15ff   : > { %5058 = vadd.xlane.f32.xlu0 %v5057_v33 }
0x162c   : > { %5158 = vxpose.xlu0.b32.start.end [1/1] (short) (narrow) %v8207_v34, 16 }
0x1631   : > { %5387 = vxpose.xlu1.b32.start.end [1/1] (short) (narrow) %v8216_v35, 16 }
0x1686   : > { %v4833_v36 = vpop.xlane.xlu1 %4832 }
0x1687   : > { %9212 = vrcp.f32 %v4833_v36  ;;  %v4830_v37 = vpop.xlane.xlu0 %4829 }
0x1688   : > { %9214 = vrcp.f32 %v4830_v37 }
0x168b   : > { %v5062_v41 = vpop.xlane.xlu1 %5061 }
0x168c   : > { %9216 = vrcp.f32 %v5062_v41  ;;  %v5059_v44 = vpop.xlane.xlu0 %5058 }
0x168d   : > { %9218 = vrcp.f32 %v5059_v44 }
0x1691   : > { %v9213_v46 = vpop.eup %9212 }
0x1692   : > { %v9215_v48 = vpop.eup %9214  ;;  %v4837_v49 = vmul.f32 %v9213_v46, %v9205_v24 }
0x1693   : > { %v4835_v50 = vmul.f32 %v9215_v48, %v9207_v25 }
0x1695   : > { %v8969_v52 = vpack.c.bf16 %v4837_v49, %v4835_v50 }
0x1696   : > { %v9217_v56 = vpop.eup %9216 }
0x1697   : > { %v9219_v57 = vpop.eup %9218  ;;  %v5066_v58 = vmul.f32 %v9217_v56, %v9209_v29  ;;  %8971 = vmatpush3.bf16.xpose.msk.msra.mxu1 %vm9673_vm4, %v8969_v52 }
0x1698   : > { %v5064_v59 = vmul.f32 %v9219_v57, %v9211_v31  ;;  %8752 = vmatprep.subr.msk.mxu1 %vm4283_vm9, %v8208_v55 }
0x169a   : > { %v8973_v60 = vpack.c.bf16 %v5066_v58, %v5064_v59 }
0x169c   : > { %8975 = vmatpush3.bf16.xpose.msk.msra.mxu0 %vm9673_vm4, %v8973_v60  ;;  %v8225_v60 = vld [vmem:[%s9612_s27 + $0x1b0] sm:$0x7] }
0x169d   : > { %8764 = vmatprep.subr.msk.mxu0 %vm4283_vm9, %v8217_v62 }
0x169e   : > { %8738 = vmatmul.mubr.msk.f32.vlgmr.msra.gmra.mrb[38].mxu1 %vm701_vm2, %v8191_v63 }
0x169f   : > { %8753 = vmatpush3.msk.msra.mxu1 %vm4283_vm9, %v8208_v55 }
0x16a0   : > { %8976 = vmatprep.subr.bf16.mxu1 %v9345_v11 }
0x16a3   : > { %8750 = vmatmul.mubr.msk.f32.vlgmr.msra.gmra.mrb[38].mxu0 %vm701_vm2, %v8200_v1 }
0x16a4   : > { %8765 = vmatpush3.msk.msra.mxu0 %vm4283_vm9, %v8217_v62  ;;  %v8234_v62 = vld [vmem:[%s9612_s27 + $0x1b8] sm:$0x7] }
0x16a5   : > { %8980 = vmatprep.subr.bf16.mxu0 %v9345_v11 }
0x16ac   : > { %v5174_v3 = vpop.trf.xlu0 }
0x16ad   : > { %8754 = vmatprep.mubr.msk.f32.mxu1 %vm4276_vm10, %v5174_v3 }
0x16b0   : > { %v5175_v5 = vpop.trf.xlu0 }
0x16b1   : > { %v5403_v12 = vpop.trf.xlu1  ;;  %8755 = vmatmul.mubr.msk.f32.vlgmr.msra.gmra.mrb[40].mxu1 %vm4276_vm10, %v5175_v5 }
0x16b2   : > { %8766 = vmatprep.mubr.msk.f32.mxu0 %vm4276_vm10, %v5403_v12  ;;  %8761 = vmatprep.mubr.msk.f32.mxu1 %vm9346_vm3, %v9905_v0 }
0x16b5   : > { %v5404_v7 = vpop.trf.xlu1 }
0x16b6   : > { %8767 = vmatmul.mubr.msk.f32.vlgmr.msra.gmra.mrb[40].mxu0 %vm4276_vm10, %v5404_v7 }
0x16b7   : > { %8773 = vmatprep.mubr.msk.f32.mxu0 %vm9346_vm3, %v9905_v0 }
0x1771   : > { %v10085_v8 = vpop.f32.mrb[38].mxu1 }
0x1772   : > { %v8739_v10 = vpop.f32.mrb[39].mxu1 }
0x1776   : > { %v10087_v13 = vpop.f32.mrb[38].mxu0 }
0x1777   : > { %v8751_v14 = vpop.f32.mrb[39].mxu0 }
0x1784   : > { %v8756_v15 = vpop.f32.mrb[40].mxu1 }
0x1785   : > { %v5271_v17 = vadd.f32 %v9917_v6, %v8756_v15  ;;  %v5265_v19 = vpop.f32.mrb[41].mxu1 }
0x1786   : > { %v5266_v40 = vadd.f32 %v9921_v9, %v5265_v19 }
0x1787   : > { %v5277_v20 = vsel %vm701_vm2, %v5271_v17, -inf }
0x1788   : > { %5278 = vmax.xlane.f32.xlu1 %v5277_v20  ;;  %v5274_v21 = vsel %vm701_vm2, %v5266_v40, -inf }
0x1789   : > { %v8768_v42 = vpop.f32.mrb[40].mxu0  ;;  %5275 = vmax.xlane.f32.xlu0 %v5274_v21 }
0x178a   : > { %v5500_v23 = vadd.f32 %v9917_v6, %v8768_v42  ;;  %v5494_v24 = vpop.f32.mrb[41].mxu0 }
0x178b   : > { %v5495_v25 = vadd.f32 %v9921_v9, %v5494_v24  ;;  %v8209_v24 = vld [vmem:[%s9612_s27 + $0x220] sm:$0x7] }
0x178c   : > { %v5506_v26 = vsel %vm701_vm2, %v5500_v23, -inf }
0x178d   : > { %5507 = vmax.xlane.f32.xlu1 %v5506_v26  ;;  %v5503_v27 = vsel %vm701_vm2, %v5495_v25, -inf }
0x178e   : > { %5504 = vmax.xlane.f32.xlu0 %v5503_v27 }
0x1815   : > { %v5279_v29 = vpop.xlane.xlu1 %5278 }
0x1816   : > { %v5281_v31 = vsub.f32 %v5271_v17, %v5279_v29  ;;  %v5276_v32 = vpop.xlane.xlu0 %5275  ;;  %v8226_v17 = vld [vmem:[%s9612_s27 + $0x1f0] sm:$0x7] }
0x1817   : > { %v5280_v33 = vsub.f32 %v5266_v40, %v5276_v32 }
0x1818   : > { %v5284_v34 = vmul.f32 1.442695, %v5281_v31 }
0x1819   : > { %v5282_v35 = vmul.f32 1.442695, %v5280_v33 }
0x181a   : > { %9220 = vpow2.f32 %v5284_v34  ;;  %v5508_v36 = vpop.xlane.xlu1 %5507 }
0x181b   : > { %9222 = vpow2.f32 %v5282_v35  ;;  %v5510_v37 = vsub.f32 %v5500_v23, %v5508_v36  ;;  %v5505_v41 = vpop.xlane.xlu0 %5504  ;;  %v8235_v23 = vld [vmem:[%s9612_s27 + $0x1f8] sm:$0x7] }
0x181c   : > { %v5509_v44 = vsub.f32 %v5495_v25, %v5505_v41  ;;  %v8218_v25 = vld [vmem:[%s9612_s27 + $0x228] sm:$0x7] }
0x181d   : > { %v5513_v46 = vmul.f32 1.442695, %v5510_v37 }
0x181e   : > { %v5511_v48 = vmul.f32 1.442695, %v5509_v44 }
0x181f   : > { %9224 = vpow2.f32 %v5513_v46 }
0x1820   : > { %9226 = vpow2.f32 %v5511_v48 }
0x1824   : > { %v9221_v49 = vpop.eup %9220 }
0x1825   : > { %v9223_v50 = vpop.eup %9222  ;;  %v5289_v52 = vsel %vm701_vm2, %v9221_v49, 0.0 }
0x1826   : > { %5290 = vadd.xlane.f32.xlu1 %v5289_v52  ;;  %v5286_v55 = vsel %vm701_vm2, %v9223_v50, 0.0 }
0x1827   : > { %5287 = vadd.xlane.f32.xlu0 %v5286_v55 }
0x1829   : > { %v9225_v56 = vpop.eup %9224 }
0x182a   : > { %v9227_v57 = vpop.eup %9226  ;;  %v5518_v58 = vsel %vm701_vm2, %v9225_v56, 0.0 }
0x182b   : > { %5519 = vadd.xlane.f32.xlu1 %v5518_v58  ;;  %v5515_v59 = vsel %vm701_vm2, %v9227_v57, 0.0 }
0x182c   : > { %5516 = vadd.xlane.f32.xlu0 %v5515_v59 }
0x1859   : > { %5616 = vxpose.xlu0.b32.start.end [1/1] (short) (narrow) %v8225_v60, 16 }
0x185e   : > { %5845 = vxpose.xlu1.b32.start.end [1/1] (short) (narrow) %v8234_v62, 16 }
0x18b3   : > { %v5291_v63 = vpop.xlane.xlu1 %5290 }
0x18b4   : > { %9228 = vrcp.f32 %v5291_v63  ;;  %v5288_v1 = vpop.xlane.xlu0 %5287 }
0x18b5   : > { %9230 = vrcp.f32 %v5288_v1 }
0x18b8   : > { %v5520_v3 = vpop.xlane.xlu1 %5519 }
0x18b9   : > { %9232 = vrcp.f32 %v5520_v3  ;;  %v5517_v5 = vpop.xlane.xlu0 %5516 }
0x18ba   : > { %9234 = vrcp.f32 %v5517_v5 }
0x18be   : > { %v9229_v12 = vpop.eup %9228 }
0x18bf   : > { %v9231_v7 = vpop.eup %9230  ;;  %v5295_v10 = vmul.f32 %v9229_v12, %v9221_v49 }
0x18c0   : > { %v5293_v14 = vmul.f32 %v9231_v7, %v9223_v50 }
0x18c2   : > { %v8977_v15 = vpack.c.bf16 %v5295_v10, %v5293_v14 }
0x18c3   : > { %v9233_v19 = vpop.eup %9232 }
0x18c4   : > { %v9235_v40 = vpop.eup %9234  ;;  %v5524_v20 = vmul.f32 %v9233_v19, %v9225_v56  ;;  %8979 = vmatpush3.bf16.xpose.msk.msra.mxu1 %vm9673_vm4, %v8977_v15 }
0x18c5   : > { %v5522_v21 = vmul.f32 %v9235_v40, %v9227_v57  ;;  %8776 = vmatprep.subr.msk.mxu1 %vm4283_vm9, %v8226_v17 }
0x18c7   : > { %v8981_v42 = vpack.c.bf16 %v5524_v20, %v5522_v21 }
0x18c9   : > { %8983 = vmatpush3.bf16.xpose.msk.msra.mxu0 %vm9673_vm4, %v8981_v42  ;;  %v8243_v42 = vld [vmem:[%s9612_s27 + $0x240] sm:$0x3] }
0x18ca   : > { %8788 = vmatprep.subr.msk.mxu0 %vm4283_vm9, %v8235_v23 }
0x18cb   : > { %8762 = vmatmul.mubr.msk.f32.vlgmr.msra.gmra.mrb[42].mxu1 %vm701_vm2, %v8209_v24 }
0x18cc   : > { %8777 = vmatpush3.msk.msra.mxu1 %vm4283_vm9, %v8226_v17 }
0x18cd   : > { %8984 = vmatprep.subr.bf16.mxu1 %v9345_v11 }
0x18d0   : > { %8774 = vmatmul.mubr.msk.f32.vlgmr.msra.gmra.mrb[42].mxu0 %vm701_vm2, %v8218_v25 }
0x18d1   : > { %8789 = vmatpush3.msk.msra.mxu0 %vm4283_vm9, %v8235_v23  ;;  %v8252_v23 = vld [vmem:[%s9612_s27 + $0x248] sm:$0x3]  ;;  %vm2406_vm9 = vcmask 1047424  }
0x18d2   : > { %8988 = vmatprep.subr.bf16.mxu0 %v9345_v11 }
0x18d9   : > { %v5632_v26 = vpop.trf.xlu0 }
0x18da   : > { %8778 = vmatprep.mubr.msk.f32.mxu1 %vm4276_vm10, %v5632_v26 }
0x18dd   : > { %v5633_v27 = vpop.trf.xlu0 }
0x18de   : > { %v5861_v29 = vpop.trf.xlu1  ;;  %8779 = vmatmul.mubr.msk.f32.vlgmr.msra.gmra.mrb[44].mxu1 %vm4276_vm10, %v5633_v27 }
0x18df   : > { %8790 = vmatprep.mubr.msk.f32.mxu0 %vm4276_vm10, %v5861_v29  ;;  %8785 = vmatprep.mubr.msk.f32.mxu1 %vm9346_vm3, %v9905_v0 }
0x18e2   : > { %v5862_v31 = vpop.trf.xlu1 }
0x18e3   : > { %8791 = vmatmul.mubr.msk.f32.vlgmr.msra.gmra.mrb[44].mxu0 %vm4276_vm10, %v5862_v31  ;;  %vm3091_vm10 = vcmask 390400  }
0x18e4   : > { %8797 = vmatprep.mubr.msk.f32.mxu0 %vm9346_vm3, %v9905_v0 }
0x199e   : > { %v10127_v32 = vpop.f32.mrb[42].mxu1 }
0x199f   : > { %v8763_v33 = vpop.f32.mrb[43].mxu1 }
0x19a3   : > { %v10129_v34 = vpop.f32.mrb[42].mxu0 }
0x19a4   : > { %v8775_v35 = vpop.f32.mrb[43].mxu0 }
0x19b1   : > { %v8780_v36 = vpop.f32.mrb[44].mxu1 }
0x19b2   : > { %v5729_v37 = vadd.f32 %v9917_v6, %v8780_v36  ;;  %v5723_v41 = vpop.f32.mrb[45].mxu1 }
0x19b3   : > { %v5724_v44 = vadd.f32 %v9921_v9, %v5723_v41 }
0x19b4   : > { %v5735_v46 = vsel %vm701_vm2, %v5729_v37, -inf }
0x19b5   : > { %5736 = vmax.xlane.f32.xlu1 %v5735_v46  ;;  %v5732_v48 = vsel %vm701_vm2, %v5724_v44, -inf }
0x19b6   : > { %v8792_v49 = vpop.f32.mrb[44].mxu0  ;;  %5733 = vmax.xlane.f32.xlu0 %v5732_v48 }
0x19b7   : > { %v5958_v50 = vadd.f32 %v9917_v6, %v8792_v49  ;;  %v5952_v52 = vpop.f32.mrb[45].mxu0 }
0x19b8   : > { %v5953_v55 = vadd.f32 %v9921_v9, %v5952_v52  ;;  %v8227_v52 = vld [vmem:[%s9612_s27 + $0x230] sm:$0x7] }
0x19b9   : > { %v5964_v56 = vsel %vm701_vm2, %v5958_v50, -inf }
0x19ba   : > { %5965 = vmax.xlane.f32.xlu1 %v5964_v56  ;;  %v5961_v57 = vsel %vm701_vm2, %v5953_v55, -inf }
0x19bb   : > { %5962 = vmax.xlane.f32.xlu0 %v5961_v57 }
0x1a42   : > { %v5737_v58 = vpop.xlane.xlu1 %5736 }
0x1a43   : > { %v5739_v59 = vsub.f32 %v5729_v37, %v5737_v58  ;;  %v5734_v60 = vpop.xlane.xlu0 %5733  ;;  %v8244_v37 = vld [vmem:[%s9612_s27 + $0x280] sm:$0x3] }
0x1a44   : > { %v5738_v62 = vsub.f32 %v5724_v44, %v5734_v60 }
0x1a45   : > { %v5742_v63 = vmul.f32 1.442695, %v5739_v59 }
0x1a46   : > { %v5740_v1 = vmul.f32 1.442695, %v5738_v62 }
0x1a47   : > { %9236 = vpow2.f32 %v5742_v63  ;;  %v5966_v3 = vpop.xlane.xlu1 %5965 }
0x1a48   : > { %9238 = vpow2.f32 %v5740_v1  ;;  %v5968_v5 = vsub.f32 %v5958_v50, %v5966_v3  ;;  %v5963_v6 = vpop.xlane.xlu0 %5962  ;;  %v8253_v50 = vld [vmem:[%s9612_s27 + $0x288] sm:$0x3] }
0x1a49   : > { %v5967_v12 = vsub.f32 %v5953_v55, %v5963_v6  ;;  %v8236_v55 = vld [vmem:[%s9612_s27 + $0x238] sm:$0x7] }
0x1a4a   : > { %v5971_v7 = vmul.f32 1.442695, %v5968_v5  ;;  %v10174_v5 = vld [vmem:[%s9631_s4 + $0x8] sm:$0xff] }
0x1a4b   : > { %v5969_v9 = vmul.f32 1.442695, %v5967_v12 }
0x1a4c   : > { %9240 = vpow2.f32 %v5971_v7  ;;  %v10178_v7 = vld [vmem:[%s9631_s4] sm:$0xff] }
0x1a4d   : > { %9242 = vpow2.f32 %v5969_v9 }
0x1a51   : > { %v9237_v10 = vpop.eup %9236 }
0x1a52   : > { %v9239_v14 = vpop.eup %9238  ;;  %v5747_v15 = vsel %vm701_vm2, %v9237_v10, 0.0 }
0x1a53   : > { %5748 = vadd.xlane.f32.xlu1 %v5747_v15  ;;  %v5744_v17 = vsel %vm701_vm2, %v9239_v14, 0.0 }
0x1a54   : > { %5745 = vadd.xlane.f32.xlu0 %v5744_v17 }
0x1a56   : > { %v9241_v19 = vpop.eup %9240 }
0x1a57   : > { %v9243_v40 = vpop.eup %9242  ;;  %v5976_v20 = vsel %vm701_vm2, %v9241_v19, 0.0 }
0x1a58   : > { %5977 = vadd.xlane.f32.xlu1 %v5976_v20  ;;  %v5973_v21 = vsel %vm701_vm2, %v9243_v40, 0.0 }
0x1a59   : > { %5974 = vadd.xlane.f32.xlu0 %v5973_v21 }
0x1a86   : > { %6074 = vxpose.xlu0.b32.start.end [1/1] (short) (narrow) %v8243_v42, 16 }
0x1a8b   : > { %6301 = vxpose.xlu1.b32.start.end [1/1] (short) (narrow) %v8252_v23, 16 }
0x1ae0   : > { %v5749_v24 = vpop.xlane.xlu1 %5748 }
0x1ae1   : > { %9244 = vrcp.f32 %v5749_v24  ;;  %v5746_v25 = vpop.xlane.xlu0 %5745 }
0x1ae2   : > { %9246 = vrcp.f32 %v5746_v25 }
0x1ae5   : > { %v5978_v26 = vpop.xlane.xlu1 %5977 }
0x1ae6   : > { %9248 = vrcp.f32 %v5978_v26  ;;  %v5975_v27 = vpop.xlane.xlu0 %5974 }
0x1ae7   : > { %9250 = vrcp.f32 %v5975_v27 }
0x1aeb   : > { %v9245_v29 = vpop.eup %9244 }
0x1aec   : > { %v9247_v31 = vpop.eup %9246  ;;  %v5753_v33 = vmul.f32 %v9245_v29, %v9237_v10 }
0x1aed   : > { %v5751_v35 = vmul.f32 %v9247_v31, %v9239_v14 }
0x1aef   : > { %v8985_v36 = vpack.c.bf16 %v5753_v33, %v5751_v35 }
0x1af0   : > { %v9249_v41 = vpop.eup %9248 }
0x1af1   : > { %v9251_v44 = vpop.eup %9250  ;;  %v5982_v46 = vmul.f32 %v9249_v41, %v9241_v19  ;;  %8987 = vmatpush3.bf16.xpose.msk.msra.mxu1 %vm9673_vm4, %v8985_v36 }
0x1af2   : > { %v5980_v48 = vmul.f32 %v9251_v44, %v9243_v40  ;;  %8800 = vmatprep.subr.msk.mxu1 %vm6113_vm12, %v8244_v37 }
0x1af4   : > { %v8989_v49 = vpack.c.bf16 %v5982_v46, %v5980_v48 }
0x1af6   : > { %8991 = vmatpush3.bf16.xpose.msk.msra.mxu0 %vm9673_vm4, %v8989_v49 }
0x1af7   : > { %8812 = vmatprep.subr.msk.mxu0 %vm6113_vm12, %v8253_v50 }
0x1af8   : > { %8786 = vmatmul.mubr.msk.f32.vlgmr.msra.gmra.mrb[46].mxu1 %vm701_vm2, %v8227_v52 }
0x1af9   : > { %8801 = vmatpush3.msk.msra.mxu1 %vm6113_vm12, %v8244_v37 }
0x1afa   : > { %8992 = vmatprep.subr.bf16.mxu1 %v9345_v11 }
0x1afd   : > { %8798 = vmatmul.mubr.msk.f32.vlgmr.msra.gmra.mrb[46].mxu0 %vm701_vm2, %v8236_v55 }
0x1afe   : > { %8813 = vmatpush3.msk.msra.mxu0 %vm6113_vm12, %v8253_v50 }
0x1aff   : > { %8996 = vmatprep.subr.bf16.mxu0 %v9345_v11 }
0x1b06   : > { %v6090_v56 = vpop.trf.xlu0 }
0x1b07   : > { %8802 = vmatprep.mubr.msk.f32.mxu1 %vm6106_vm13, %v6090_v56  ;;  %v8261_v56 = vld [vmem:[%s9612_s27 + $0x250] sm:$0x3] }
0x1b0a   : > { %v6091_v57 = vpop.trf.xlu0 }
0x1b0b   : > { %v6317_v58 = vpop.trf.xlu1  ;;  %8803 = vmatmul.mubr.msk.f32.vlgmr.msra.gmra.mrb[48].mxu1 %vm6106_vm13, %v6091_v57  ;;  %v8270_v57 = vld [vmem:[%s9612_s27 + $0x258] sm:$0x3] }
0x1b0c   : > { %8814 = vmatprep.mubr.msk.f32.mxu0 %vm6106_vm13, %v6317_v58  ;;  %8809 = vmatprep.mubr.msk.f32.mxu1 %vm9346_vm3, %v9905_v0 }
0x1b0f   : > { %v6318_v59 = vpop.trf.xlu1 }
0x1b10   : > { %8815 = vmatmul.mubr.msk.f32.vlgmr.msra.gmra.mrb[48].mxu0 %vm6106_vm13, %v6318_v59 }
0x1b11   : > { %8821 = vmatprep.mubr.msk.f32.mxu0 %vm9346_vm3, %v9905_v0 }
0x1bcb   : > { %v10169_v60 = vpop.f32.mrb[46].mxu1 }
0x1bcc   : > { %v8787_v62 = vpop.f32.mrb[47].mxu1 }
0x1bd0   : > { %v10171_v63 = vpop.f32.mrb[46].mxu0 }
0x1bd1   : > { %v8799_v1 = vpop.f32.mrb[47].mxu0 }
0x1bde   : > { %v8804_v3 = vpop.f32.mrb[48].mxu1 }
0x1bdf   : > { %v6189_v6 = vadd.f32 %v10174_v5, %v8804_v3  ;;  %v6183_v12 = vpop.f32.mrb[49].mxu1 }
0x1be0   : > { %v6184_v9 = vadd.f32 %v10178_v7, %v6183_v12 }
0x1be1   : > { %v6195_v10 = vsel %vm701_vm2, %v6189_v6, -inf }
0x1be2   : > { %6196 = vmax.xlane.f32.xlu1 %v6195_v10  ;;  %v6192_v14 = vsel %vm701_vm2, %v6184_v9, -inf }
0x1be3   : > { %v8816_v15 = vpop.f32.mrb[48].mxu0  ;;  %6193 = vmax.xlane.f32.xlu0 %v6192_v14  ;;  %v8262_v14 = vld [vmem:[%s9612_s27 + $0x290] sm:$0x3] }
0x1be4   : > { %v6414_v17 = vadd.f32 %v10174_v5, %v8816_v15  ;;  %v6408_v19 = vpop.f32.mrb[49].mxu0 }
0x1be5   : > { %v6409_v40 = vadd.f32 %v10178_v7, %v6408_v19 }
0x1be6   : > { %v6420_v20 = vsel %vm701_vm2, %v6414_v17, -inf }
0x1be7   : > { %6421 = vmax.xlane.f32.xlu1 %v6420_v20  ;;  %v6417_v21 = vsel %vm701_vm2, %v6409_v40, -inf }
0x1be8   : > { %6418 = vmax.xlane.f32.xlu0 %v6417_v21  ;;  %v8271_v21 = vld [vmem:[%s9612_s27 + $0x298] sm:$0x3] }
0x1c6f   : > { %v6197_v42 = vpop.xlane.xlu1 %6196 }
0x1c70   : > { %v6199_v23 = vsub.f32 %v6189_v6, %v6197_v42  ;;  %v6194_v24 = vpop.xlane.xlu0 %6193  ;;  %v8245_v42 = vld [vmem:[%s9612_s27 + $0x2c0] sm:$0x3] }
0x1c71   : > { %v6198_v25 = vsub.f32 %v6184_v9, %v6194_v24 }
0x1c72   : > { %v6202_v26 = vmul.f32 1.442695, %v6199_v23  ;;  %v8254_v23 = vld [vmem:[%s9612_s27 + $0x2c8] sm:$0x3] }
0x1c73   : > { %v6200_v27 = vmul.f32 1.442695, %v6198_v25 }
0x1c74   : > { %9252 = vpow2.f32 %v6202_v26  ;;  %v6422_v29 = vpop.xlane.xlu1 %6421 }
0x1c75   : > { %9254 = vpow2.f32 %v6200_v27  ;;  %v6424_v31 = vsub.f32 %v6414_v17, %v6422_v29  ;;  %v6419_v33 = vpop.xlane.xlu0 %6418 }
0x1c76   : > { %v6423_v35 = vsub.f32 %v6409_v40, %v6419_v33 }
0x1c77   : > { %v6427_v36 = vmul.f32 1.442695, %v6424_v31 }
0x1c78   : > { %v6425_v37 = vmul.f32 1.442695, %v6423_v35 }
0x1c79   : > { %9256 = vpow2.f32 %v6427_v36 }
0x1c7a   : > { %9258 = vpow2.f32 %v6425_v37 }
0x1c7e   : > { %v9253_v41 = vpop.eup %9252 }
0x1c7f   : > { %v9255_v44 = vpop.eup %9254  ;;  %v6207_v46 = vsel %vm701_vm2, %v9253_v41, 0.0 }
0x1c80   : > { %6208 = vadd.xlane.f32.xlu1 %v6207_v46  ;;  %v6204_v48 = vsel %vm701_vm2, %v9255_v44, 0.0 }
0x1c81   : > { %6205 = vadd.xlane.f32.xlu0 %v6204_v48 }
0x1c83   : > { %v9257_v49 = vpop.eup %9256 }
0x1c84   : > { %v9259_v50 = vpop.eup %9258  ;;  %v6432_v52 = vsel %vm701_vm2, %v9257_v49, 0.0 }
0x1c85   : > { %6433 = vadd.xlane.f32.xlu1 %v6432_v52  ;;  %v6429_v55 = vsel %vm701_vm2, %v9259_v50, 0.0 }
0x1c86   : > { %6430 = vadd.xlane.f32.xlu0 %v6429_v55 }
0x1cb3   : > { %6530 = vxpose.xlu0.b32.start.end [1/1] (short) (narrow) %v8261_v56, 16 }
0x1cb8   : > { %6759 = vxpose.xlu1.b32.start.end [1/1] (short) (narrow) %v8270_v57, 16 }
0x1d0d   : > { %v6209_v58 = vpop.xlane.xlu1 %6208 }
0x1d0e   : > { %9260 = vrcp.f32 %v6209_v58  ;;  %v6206_v59 = vpop.xlane.xlu0 %6205 }
0x1d0f   : > { %9262 = vrcp.f32 %v6206_v59 }
0x1d12   : > { %v6434_v62 = vpop.xlane.xlu1 %6433 }
0x1d13   : > { %9264 = vrcp.f32 %v6434_v62  ;;  %v6431_v1 = vpop.xlane.xlu0 %6430 }
0x1d14   : > { %9266 = vrcp.f32 %v6431_v1 }
0x1d18   : > { %v9261_v3 = vpop.eup %9260 }
0x1d19   : > { %v9263_v6 = vpop.eup %9262  ;;  %v6213_v12 = vmul.f32 %v9261_v3, %v9253_v41 }
0x1d1a   : > { %v6211_v9 = vmul.f32 %v9263_v6, %v9255_v44 }
0x1d1c   : > { %v8993_v10 = vpack.c.bf16 %v6213_v12, %v6211_v9 }
0x1d1d   : > { %v9265_v15 = vpop.eup %9264 }
0x1d1e   : > { %v9267_v17 = vpop.eup %9266  ;;  %v6438_v19 = vmul.f32 %v9265_v15, %v9257_v49  ;;  %8995 = vmatpush3.bf16.xpose.msk.msra.mxu1 %vm9673_vm4, %v8993_v10 }
0x1d1f   : > { %v6436_v40 = vmul.f32 %v9267_v17, %v9259_v50  ;;  %8824 = vmatprep.subr.msk.mxu1 %vm6113_vm12, %v8262_v14 }
0x1d21   : > { %v8997_v20 = vpack.c.bf16 %v6438_v19, %v6436_v40 }
0x1d23   : > { %8999 = vmatpush3.bf16.xpose.msk.msra.mxu0 %vm9673_vm4, %v8997_v20 }
0x1d24   : > { %8836 = vmatprep.subr.msk.mxu0 %vm6113_vm12, %v8271_v21 }
0x1d25   : > { %8810 = vmatmul.mubr.msk.f32.vlgmr.msra.gmra.mrb[50].mxu1 %vm701_vm2, %v8245_v42 }
0x1d26   : > { %8825 = vmatpush3.msk.msra.mxu1 %vm6113_vm12, %v8262_v14 }
0x1d27   : > { %9000 = vmatprep.subr.bf16.mxu1 %v9345_v11 }
0x1d2a   : > { %8822 = vmatmul.mubr.msk.f32.vlgmr.msra.gmra.mrb[50].mxu0 %vm701_vm2, %v8254_v23 }
0x1d2b   : > { %8837 = vmatpush3.msk.msra.mxu0 %vm6113_vm12, %v8271_v21 }
0x1d2c   : > { %9004 = vmatprep.subr.bf16.mxu0 %v9345_v11 }
0x1d33   : > { %v6546_v24 = vpop.trf.xlu0 }
0x1d34   : > { %8826 = vmatprep.mubr.msk.f32.mxu1 %vm6106_vm13, %v6546_v24 }
0x1d37   : > { %v6547_v25 = vpop.trf.xlu0 }
0x1d38   : > { %v6775_v26 = vpop.trf.xlu1  ;;  %8827 = vmatmul.mubr.msk.f32.vlgmr.msra.gmra.mrb[52].mxu1 %vm6106_vm13, %v6547_v25 }
0x1d39   : > { %8838 = vmatprep.mubr.msk.f32.mxu0 %vm6106_vm13, %v6775_v26  ;;  %8833 = vmatprep.mubr.msk.f32.mxu1 %vm9346_vm3, %v9905_v0  ;;  %v8279_v26 = vld [vmem:[%s9612_s27 + $0x260] sm:$0x3] }
0x1d3c   : > { %v6776_v27 = vpop.trf.xlu1 }
0x1d3d   : > { %8839 = vmatmul.mubr.msk.f32.vlgmr.msra.gmra.mrb[52].mxu0 %vm6106_vm13, %v6776_v27  ;;  %v8288_v27 = vld [vmem:[%s9612_s27 + $0x268] sm:$0x3] }
0x1d3e   : > { %8845 = vmatprep.mubr.msk.f32.mxu0 %vm9346_vm3, %v9905_v0 }
0x1df8   : > { %v6289_v29 = vpop.f32.mrb[50].mxu1 }
0x1df9   : > { %6294 = vst.msk [vmem:[%s9661_s6 + $0x15] sm:$0x3] %vm6293_vm14, %v6289_v29  ;;  %v8811_v31 = vpop.f32.mrb[51].mxu1  ;;  %vm3549_vm14 = vcmask 652800  }
0x1dfd   : > { %v10218_v33 = vpop.f32.mrb[50].mxu0 }
0x1dfe   : > { %v8823_v35 = vpop.f32.mrb[51].mxu0 }
0x1e0b   : > { %v8828_v36 = vpop.f32.mrb[52].mxu1 }
0x1e0c   : > { %v6643_v37 = vadd.f32 %v10174_v5, %v8828_v36  ;;  %v6637_v41 = vpop.f32.mrb[53].mxu1 }
0x1e0d   : > { %v6638_v44 = vadd.f32 %v10178_v7, %v6637_v41 }
0x1e0e   : > { %v6649_v46 = vsel %vm701_vm2, %v6643_v37, -inf }
0x1e0f   : > { %6650 = vmax.xlane.f32.xlu1 %v6649_v46  ;;  %v6646_v48 = vsel %vm701_vm2, %v6638_v44, -inf }
0x1e10   : > { %v8840_v49 = vpop.f32.mrb[52].mxu0  ;;  %6647 = vmax.xlane.f32.xlu0 %v6646_v48 }
0x1e11   : > { %v6872_v50 = vadd.f32 %v10174_v5, %v8840_v49  ;;  %v6866_v52 = vpop.f32.mrb[53].mxu0  ;;  %v8289_v49 = vld [vmem:[%s9612_s27 + $0x2a8] sm:$0x3] }
0x1e12   : > { %v6867_v55 = vadd.f32 %v10178_v7, %v6866_v52  ;;  %v8272_v52 = vld [vmem:[%s9612_s27 + $0x2d8] sm:$0x3] }
0x1e13   : > { %v6878_v56 = vsel %vm701_vm2, %v6872_v50, -inf }
0x1e14   : > { %6879 = vmax.xlane.f32.xlu1 %v6878_v56  ;;  %v6875_v57 = vsel %vm701_vm2, %v6867_v55, -inf }
0x1e15   : > { %6876 = vmax.xlane.f32.xlu0 %v6875_v57 }
0x1e9c   : > { %v6651_v58 = vpop.xlane.xlu1 %6650 }
0x1e9d   : > { %v6653_v59 = vsub.f32 %v6643_v37, %v6651_v58  ;;  %v6648_v62 = vpop.xlane.xlu0 %6647  ;;  %v8280_v37 = vld [vmem:[%s9612_s27 + $0x2a0] sm:$0x3] }
0x1e9e   : > { %v6652_v1 = vsub.f32 %v6638_v44, %v6648_v62 }
0x1e9f   : > { %v6656_v3 = vmul.f32 1.442695, %v6653_v59 }
0x1ea0   : > { %v6654_v6 = vmul.f32 1.442695, %v6652_v1 }
0x1ea1   : > { %9268 = vpow2.f32 %v6656_v3  ;;  %v6880_v12 = vpop.xlane.xlu1 %6879 }
0x1ea2   : > { %9270 = vpow2.f32 %v6654_v6  ;;  %v6882_v9 = vsub.f32 %v6872_v50, %v6880_v12  ;;  %v6877_v10 = vpop.xlane.xlu0 %6876  ;;  %v8263_v50 = vld [vmem:[%s9612_s27 + $0x2d0] sm:$0x3] }
0x1ea3   : > { %v6881_v14 = vsub.f32 %v6867_v55, %v6877_v10 }
0x1ea4   : > { %v6885_v15 = vmul.f32 1.442695, %v6882_v9 }
0x1ea5   : > { %v6883_v17 = vmul.f32 1.442695, %v6881_v14 }
0x1ea6   : > { %9272 = vpow2.f32 %v6885_v15 }
0x1ea7   : > { %9274 = vpow2.f32 %v6883_v17 }
0x1eab   : > { %v9269_v19 = vpop.eup %9268 }
0x1eac   : > { %v9271_v40 = vpop.eup %9270  ;;  %v6661_v20 = vsel %vm701_vm2, %v9269_v19, 0.0 }
0x1ead   : > { %6662 = vadd.xlane.f32.xlu1 %v6661_v20  ;;  %v6658_v21 = vsel %vm701_vm2, %v9271_v40, 0.0 }
0x1eae   : > { %6659 = vadd.xlane.f32.xlu0 %v6658_v21 }
0x1eb0   : > { %v9273_v42 = vpop.eup %9272 }
0x1eb1   : > { %v9275_v23 = vpop.eup %9274  ;;  %v6890_v24 = vsel %vm701_vm2, %v9273_v42, 0.0 }
0x1eb2   : > { %6891 = vadd.xlane.f32.xlu1 %v6890_v24  ;;  %v6887_v25 = vsel %vm701_vm2, %v9275_v23, 0.0 }
0x1eb3   : > { %6888 = vadd.xlane.f32.xlu0 %v6887_v25 }
0x1ee0   : > { %6988 = vxpose.xlu0.b32.start.end [1/1] (short) (narrow) %v8279_v26, 16 }
0x1ee5   : > { %7217 = vxpose.xlu1.b32.start.end [1/1] (short) (narrow) %v8288_v27, 16 }
0x1f07   : > { %1258 = vrot.lane.b32.xlu1 %v9742_v38, %s9348_s7 }
0x1f0b   : > { %1487 = vrot.lane.b32.xlu1 %v9744_v43, %s9349_s8 }
0x1f0d   : > { %1029 = vrot.lane.b32.xlu0 %v9702_v39, %s9350_s9 }
0x1f0f   : > { %2174 = vrot.lane.b32.xlu1 %v9826_v51, %s9351_s11 }
0x1f11   : > { %1716 = vrot.lane.b32.xlu0 %v9784_v45, %s9352_s14 }
0x1f15   : > { %1945 = vrot.lane.b32.xlu0 %v9786_v47, %s9353_s15 }
0x1f3a   : > { %v6663_v38 = vpop.xlane.xlu1 %6662 }
0x1f3b   : > { %9276 = vrcp.f32 %v6663_v38  ;;  %v6660_v43 = vpop.xlane.xlu0 %6659 }
0x1f3c   : > { %9278 = vrcp.f32 %v6660_v43 }
0x1f3f   : > { %v6892_v29 = vpop.xlane.xlu1 %6891 }
0x1f40   : > { %9280 = vrcp.f32 %v6892_v29  ;;  %v6889_v39 = vpop.xlane.xlu0 %6888 }
0x1f41   : > { %9282 = vrcp.f32 %v6889_v39 }
0x1f45   : > { %v9277_v51 = vpop.eup %9276 }
0x1f46   : > { %v9279_v31 = vpop.eup %9278  ;;  %v6667_v35 = vmul.f32 %v9277_v51, %v9269_v19 }
0x1f47   : > { %v6665_v36 = vmul.f32 %v9279_v31, %v9271_v40 }
0x1f49   : > { %v9001_v45 = vpack.c.bf16 %v6667_v35, %v6665_v36 }
0x1f4a   : > { %v9281_v41 = vpop.eup %9280 }
0x1f4b   : > { %v9283_v44 = vpop.eup %9282  ;;  %v6896_v47 = vmul.f32 %v9281_v41, %v9273_v42  ;;  %9003 = vmatpush3.bf16.xpose.msk.msra.mxu1 %vm9673_vm4, %v9001_v45 }
0x1f4c   : > { %v6894_v46 = vmul.f32 %v9283_v44, %v9275_v23  ;;  %8848 = vmatprep.subr.msk.mxu1 %vm6113_vm12, %v8280_v37 }
0x1f4e   : > { %v9005_v48 = vpack.c.bf16 %v6896_v47, %v6894_v46 }
0x1f50   : > { %9007 = vmatpush3.bf16.xpose.msk.msra.mxu0 %vm9673_vm4, %v9005_v48 }
0x1f51   : > { %8860 = vmatprep.subr.msk.mxu0 %vm6113_vm12, %v8289_v49 }
0x1f52   : > { %8834 = vmatmul.mubr.msk.f32.vlgmr.msra.gmra.mrb[54].mxu1 %vm701_vm2, %v8263_v50 }
0x1f53   : > { %8849 = vmatpush3.msk.msra.mxu1 %vm6113_vm12, %v8280_v37 }
0x1f54   : > { %9008 = vmatprep.subr.bf16.mxu1 %v9345_v11 }
0x1f57   : > { %8846 = vmatmul.mubr.msk.f32.vlgmr.msra.gmra.mrb[54].mxu0 %vm701_vm2, %v8272_v52 }
0x1f58   : > { %8861 = vmatpush3.msk.msra.mxu0 %vm6113_vm12, %v8289_v49 }
0x1f59   : > { %9012 = vmatprep.subr.bf16.mxu0 %v9345_v11 }
0x1f60   : > { %v7004_v55 = vpop.trf.xlu0 }
0x1f61   : > { %8850 = vmatprep.mubr.msk.f32.mxu1 %vm6106_vm13, %v7004_v55 }
0x1f64   : > { %v7005_v56 = vpop.trf.xlu0 }
0x1f65   : > { %v7233_v57 = vpop.trf.xlu1  ;;  %8851 = vmatmul.mubr.msk.f32.vlgmr.msra.gmra.mrb[56].mxu1 %vm6106_vm13, %v7005_v56 }
0x1f66   : > { %8862 = vmatprep.mubr.msk.f32.mxu0 %vm6106_vm13, %v7233_v57  ;;  %8857 = vmatprep.mubr.msk.f32.mxu1 %vm9346_vm3, %v9905_v0 }
0x1f69   : > { %v7234_v58 = vpop.trf.xlu1 }
0x1f6a   : > { %8863 = vmatmul.mubr.msk.f32.vlgmr.msra.gmra.mrb[56].mxu0 %vm6106_vm13, %v7234_v58 }
0x1f6b   : > { %8869 = vmatprep.mubr.msk.f32.mxu0 %vm9346_vm3, %v9905_v0 }
0x1f79   : > { %v1259_v59 = vpop.permute.xlu1 %1258 }
0x1f7d   : > { %v1488_v1 = vpop.permute.xlu1 %1487 }
0x1f7f   : > { %v1030_v62 = vpop.permute.xlu0 %1029 }
0x1f80   : > { %1033 = vst.msk [vmem:[%s9661_s6] sm:$0x7f] %vm1032_vm15, %v1030_v62  ;;  %vm3778_vm15 = vcmask 784000   ;;  %v8297_v62 = vld [vmem:[%s9612_s27 + $0x270] sm:$0x3] }
0x1f81   : > { %1262 = vst.msk [vmem:[%s9661_s6] sm:$0x7f] %vm1261_vm0, %v1259_v59  ;;  %v2175_v12 = vpop.permute.xlu1 %2174  ;;  %vm4007_vm0 = vcmask 915200  }
0x1f82   : > { %1491 = vst.msk [vmem:[%s9661_s6] sm:$0x7f] %vm1490_vm1, %v1488_v1  ;;  %vm4236_vm1 = vcmask 1046400   ;;  %v8306_v1 = vld [vmem:[%s9612_s27 + $0x278] sm:$0x3] }
0x1f83   : > { %v1717_v3 = vpop.permute.xlu0 %1716 }
0x1f84   : > { %1720 = vst.msk [vmem:[%s9661_s6] sm:$0x7f] %vm1719_vm5, %v1717_v3  ;;  %vm4692_vm5 = vcmask 256128  }
0x1f87   : > { %v1946_v6 = vpop.permute.xlu0 %1945 }
0x1f88   : > { %1949 = vst.msk [vmem:[%s9661_s6] sm:$0x7f] %vm1948_vm6, %v1946_v6  ;;  %vm4921_vm6 = vcmask 387328  }
0x1f89   : > { %2178 = vst.msk [vmem:[%s9661_s6] sm:$0x7f] %vm2177_vm7, %v2175_v12  ;;  %vm5150_vm7 = vcmask 518528  }
0x2025   : > { %v6743_v9 = vpop.f32.mrb[54].mxu1 }
0x2026   : > { %v8835_v10 = vpop.f32.mrb[55].mxu1 }
0x202a   : > { %v6972_v14 = vpop.f32.mrb[54].mxu0 }
0x202b   : > { %v8847_v15 = vpop.f32.mrb[55].mxu0 }
0x2038   : > { %v8852_v17 = vpop.f32.mrb[56].mxu1 }
0x2039   : > { %v7101_v19 = vadd.f32 %v10174_v5, %v8852_v17  ;;  %v7095_v40 = vpop.f32.mrb[57].mxu1 }
0x203a   : > { %v7096_v24 = vadd.f32 %v10178_v7, %v7095_v40 }
0x203b   : > { %v7107_v20 = vsel %vm701_vm2, %v7101_v19, -inf }
0x203c   : > { %7108 = vmax.xlane.f32.xlu0 %v7107_v20  ;;  %v7104_v38 = vsel %vm701_vm2, %v7096_v24, -inf  ;;  %v8298_v20 = vld [vmem:[%s9612_s27 + $0x2b0] sm:$0x3] }
0x203d   : > { %v8864_v21 = vpop.f32.mrb[56].mxu0 }
0x203e   : > { %v7330_v42 = vadd.f32 %v10174_v5, %v8864_v21  ;;  %v7324_v23 = vpop.f32.mrb[57].mxu0 }
0x203f   : > { %v7325_v25 = vadd.f32 %v10178_v7, %v7324_v23 }
0x2040   : > { %v7336_v26 = vsel %vm701_vm2, %v7330_v42, -inf }
0x2041   : > { %7337 = vmax.xlane.f32.xlu1 %v7336_v26  ;;  %v7333_v27 = vsel %vm701_vm2, %v7325_v25, -inf }
0x2042   : > { %7334 = vmax.xlane.f32.xlu0 %v7333_v27 }
0x2045   : > { %7105 = vmax.xlane.f32.xlu1 %v7104_v38  ;;  %v8290_v38 = vld [vmem:[%s9612_s27 + $0x2e8] sm:$0x3] }
0x2056   : > { %2403 = vrot.lane.b32.xlu1 %v9828_v53, %s9354_s18 }
0x2058   : > { %2859 = vrot.lane.b32.xlu0 %v9869_v61, %s9350_s9 }
0x205a   : > { %3088 = vrot.lane.b32.xlu1 %v9912_v2, %s9348_s7 }
0x205c   : > { %3317 = vrot.lane.b32.xlu0 %v9914_v4, %s9349_s8 }
0x205e   : > { %3546 = vrot.lane.b32.xlu1 %v9960_v16, %s9352_s14 }
0x2060   : > { %3775 = vrot.lane.b32.xlu0 %v9962_v18, %s9353_s15 }
0x2062   : > { %4004 = vrot.lane.b32.xlu1 %v10002_v28, %s9351_s11 }
0x2064   : > { %4233 = vrot.lane.b32.xlu0 %v10004_v30, %s9354_s18 }
0x2066   : > { %4689 = vrot.lane.b32.xlu1 %v10045_v54, %s9350_s9 }
0x2068   : > { %4918 = vrot.lane.b32.xlu0 %v10085_v8, %s9348_s7 }
0x206a   : > { %5147 = vrot.lane.b32.xlu1 %v10087_v13, %s9349_s8 }
0x206c   : > { %5376 = vrot.lane.b32.xlu0 %v10127_v32, %s9352_s14 }
0x206e   : > { %5605 = vrot.lane.b32.xlu1 %v10129_v34, %s9353_s15 }
0x2070   : > { %5834 = vrot.lane.b32.xlu0 %v10169_v60, %s9351_s11 }
0x2072   : > { %6063 = vrot.lane.b32.xlu1 %v10171_v63, %s9354_s18 }
0x2074   : > { %6519 = vrot.lane.b32.xlu0 %v10218_v33, %s9350_s9 }
0x2076   : > { %6748 = vrot.lane.b32.xlu1 %v6743_v9, %s9348_s7 }
0x2078   : > { %6977 = vrot.lane.b32.xlu0 %v6972_v14, %s9349_s8 }
0x20c9   : > { %v7109_v53 = vpop.xlane.xlu0 %7108 }
0x20ca   : > { %v7111_v61 = vsub.f32 %v7101_v19, %v7109_v53 }
0x20cc   : > { %v7114_v2 = vmul.f32 1.442695, %v7111_v61  ;;  %v8307_v61 = vld [vmem:[%s9612_s27 + $0x2b8] sm:$0x3] }
0x20ce   : > { %9284 = vpow2.f32 %v7114_v2  ;;  %v7338_v4 = vpop.xlane.xlu1 %7337 }
0x20cf   : > { %v7335_v16 = vpop.xlane.xlu0 %7334  ;;  %v7340_v28 = vsub.f32 %v7330_v42, %v7338_v4 }
0x20d0   : > { %v7339_v18 = vsub.f32 %v7325_v25, %v7335_v16  ;;  %v8281_v25 = vld [vmem:[%s9612_s27 + $0x2e0] sm:$0x3] }
0x20d1   : > { %v7343_v32 = vmul.f32 1.442695, %v7340_v28 }
0x20d2   : > { %v7341_v30 = vmul.f32 1.442695, %v7339_v18  ;;  %v7106_v54 = vpop.xlane.xlu1 %7105 }
0x20d3   : > { %v7110_v8 = vsub.f32 %v7096_v24, %v7106_v54  ;;  %v2860_v13 = vpop.permute.xlu0 %2859 }
0x20d4   : > { %9286 = vpow2.f32 %v7341_v30  ;;  %2863 = vst.msk [vmem:[%s9661_s6 + $0x7] sm:$0x3f] %vm2862_vm8, %v2860_v13  ;;  %vm5379_vm8 = vcmask 649728  }
0x20d5   : > { %v7112_v34 = vmul.f32 1.442695, %v7110_v8 }
0x20d6   : > { %v2404_v60 = vpop.permute.xlu1 %2403 }
0x20d7   : > { %9288 = vpow2.f32 %v7112_v34  ;;  %2407 = vst.msk [vmem:[%s9661_s6] sm:$0x7f] %vm2406_vm9, %v2404_v60  ;;  %v3318_v63 = vpop.permute.xlu0 %3317  ;;  %vm5608_vm9 = vcmask 780928  }
0x20d8   : > { %v10320_v33 = vpop.eup %9284  ;;  %9290 = vpow2.f32 %v7343_v32 }
0x20d9   : > { %v7119_v43 = vsel %vm701_vm2, %v10320_v33, 0.0 }
0x20da   : > { %v3089_v29 = vpop.permute.xlu1 %3088  ;;  %7120 = vadd.xlane.f32.xlu0 %v7119_v43 }
0x20db   : > { %3092 = vst.msk [vmem:[%s9661_s6 + $0x7] sm:$0x3f] %vm3091_vm10, %v3089_v29  ;;  %v3776_v39 = vpop.permute.xlu0 %3775  ;;  %vm6522_vm10 = vcmask 255104  }
0x20dc   : > { %3321 = vst.msk [vmem:[%s9661_s6 + $0x7] sm:$0x3f] %vm3320_vm11, %v3318_v63  ;;  %vm5837_vm11 = vcmask 912128  }
0x20de   : > { %v10326_v51 = vpop.eup %9286  ;;  %v3547_v31 = vpop.permute.xlu1 %3546 }
0x20df   : > { %3550 = vst.msk [vmem:[%s9661_s6 + $0x7] sm:$0x3f] %vm3549_vm14, %v3547_v31  ;;  %v4234_v35 = vpop.permute.xlu0 %4233  ;;  %v7345_v36 = vsel %vm701_vm2, %v10326_v51, 0.0  ;;  %vm6066_vm14 = vcmask 1043328  }
0x20e0   : > { %7346 = vadd.xlane.f32.xlu0 %v7345_v36  ;;  %3779 = vst.msk [vmem:[%s9661_s6 + $0x7] sm:$0x3f] %vm3778_vm15, %v3776_v39  ;;  %vm6751_vm15 = vcmask 386304  }
0x20e1   : > { %v9289_v45 = vpop.eup %9288 }
0x20e2   : > { %v4005_v37 = vpop.permute.xlu1 %4004  ;;  %v7116_v41 = vsel %vm701_vm2, %v9289_v45, 0.0  ;;  %v9291_v44 = vpop.eup %9290 }
0x20e3   : > { %4008 = vst.msk [vmem:[%s9661_s6 + $0x7] sm:$0x3f] %vm4007_vm0, %v4005_v37  ;;  %7117 = vadd.xlane.f32.xlu1 %v7116_v41  ;;  %v4919_v47 = vpop.permute.xlu0 %4918  ;;  %v7348_v48 = vsel %vm701_vm2, %v9291_v44, 0.0  ;;  %vm6980_vm0 = vcmask 517504  }
0x20e4   : > { %4237 = vst.msk [vmem:[%s9661_s6 + $0x7] sm:$0x3f] %vm4236_vm1, %v4234_v35  ;;  %vm7896_vm1 = vcmask 1042304  }
0x20e6   : > { %v4690_v46 = vpop.permute.xlu1 %4689 }
0x20e7   : > { %4693 = vst.msk [vmem:[%s9661_s6 + $0xe] sm:$0x7] %vm4692_vm5, %v4690_v46  ;;  %7349 = vadd.xlane.f32.xlu1 %v7348_v48  ;;  %v5377_v49 = vpop.permute.xlu0 %5376 }
0x20e8   : > { %4922 = vst.msk [vmem:[%s9661_s6 + $0xe] sm:$0x7] %vm4921_vm6, %v4919_v47 }
0x20ea   : > { %v5148_v50 = vpop.permute.xlu1 %5147 }
0x20eb   : > { %5151 = vst.msk [vmem:[%s9661_s6 + $0xe] sm:$0x7] %vm5150_vm7, %v5148_v50  ;;  %v5835_v52 = vpop.permute.xlu0 %5834  ;;  %v7940_v22 = vld [vmem:[%s9661_s6] sm:$0xff] (%p9401_p5) }
0x20ec   : > { %5380 = vst.msk [vmem:[%s9661_s6 + $0xe] sm:$0x7] %vm5379_vm8, %v5377_v49  ;;  %7941 = vst [vmem:[%s7906_s22] sm:$0xff] (%p9401_p5), %v7940_v22 }
0x20ee   : > { %v5606_v55 = vpop.permute.xlu1 %5605 }
0x20ef   : > { %5609 = vst.msk [vmem:[%s9661_s6 + $0xe] sm:$0x7] %vm5608_vm9, %v5606_v55  ;;  %v6520_v56 = vpop.permute.xlu0 %6519 }
0x20f0   : > { %6523 = vst.msk [vmem:[%s9661_s6 + $0x15] sm:$0x3] %vm6522_vm10, %v6520_v56 }
0x20f1   : > { %5838 = vst.msk [vmem:[%s9661_s6 + $0xe] sm:$0x7] %vm5837_vm11, %v5835_v52 }
0x20f2   : > { %v6064_v57 = vpop.permute.xlu1 %6063 }
0x20f3   : > { %6067 = vst.msk [vmem:[%s9661_s6 + $0xe] sm:$0x7] %vm6066_vm14, %v6064_v57  ;;  %v6978_v59 = vpop.permute.xlu0 %6977 }
0x20f6   : > { %v6749_v58 = vpop.permute.xlu1 %6748 }
0x20f7   : > { %6752 = vst.msk [vmem:[%s9661_s6 + $0x15] sm:$0x3] %vm6751_vm15, %v6749_v58 }
0x20f8   : > { %6981 = vst.msk [vmem:[%s9661_s6 + $0x15] sm:$0x3] %vm6980_vm0, %v6978_v59 }
0x211a   : > { %7446 = vxpose.xlu1.b32.start.end [1/1] (short) (narrow) %v8297_v62, 16  ;;  %v8299_v62 = vld [vmem:[%s9612_s27 + $0x2f0] sm:$0x3] }
0x211f   : > { %7675 = vxpose.xlu1.b32.start.end [1/1] (short) (narrow) %v8306_v1, 16 }
0x2167   : > { %v7121_v3 = vpop.xlane.xlu0 %7120 }
0x2168   : > { %9292 = vrcp.f32 %v7121_v3 }
0x216d   : > { %v7347_v6 = vpop.xlane.xlu0 %7346 }
0x2170   : > { %v7118_v12 = vpop.xlane.xlu1 %7117 }
0x2171   : > { %9294 = vrcp.f32 %v7118_v12 }
0x2172   : > { %9296 = vrcp.f32 %v7347_v6  ;;  %v9293_v10 = vpop.eup %9292 }
0x2173   : > { %v7125_v15 = vmul.f32 %v9293_v10, %v10320_v33 }
0x2174   : > { %v7350_v9 = vpop.xlane.xlu1 %7349 }
0x2175   : > { %9298 = vrcp.f32 %v7350_v9 }
0x217b   : > { %v9295_v14 = vpop.eup %9294 }
0x217c   : > { %v7123_v17 = vmul.f32 %v9295_v14, %v9289_v45  ;;  %v9297_v19 = vpop.eup %9296 }
0x217d   : > { %v7352_v42 = vmul.f32 %v9297_v19, %v10326_v51 }
0x217e   : > { %v9009_v40 = vpack.c.bf16 %v7125_v15, %v7123_v17 }
0x217f   : > { %v9299_v21 = vpop.eup %9298 }
0x2180   : > { %v7354_v23 = vmul.f32 %v9299_v21, %v9291_v44  ;;  %9011 = vmatpush3.bf16.xpose.msk.msra.mxu1 %vm9673_vm4, %v9009_v40 }
0x2181   : > { %8872 = vmatprep.subr.msk.mxu1 %vm6113_vm12, %v8298_v20 }
0x2182   : > { %v9013_v24 = vpack.c.bf16 %v7354_v23, %v7352_v42 }
0x2184   : > { %9015 = vmatpush3.bf16.xpose.msk.msra.mxu0 %vm9673_vm4, %v9013_v24 }
0x2185   : > { %8884 = vmatprep.subr.msk.mxu0 %vm6113_vm12, %v8307_v61 }
0x2187   : > { %8858 = vmatmul.mubr.msk.f32.vlgmr.msra.gmra.mrb[58].mxu1 %vm701_vm2, %v8281_v25  ;;  %v8308_v25 = vld [vmem:[%s9612_s27 + $0x2f8] sm:$0x3] }
0x2188   : > { %8873 = vmatpush3.msk.msra.mxu1 %vm6113_vm12, %v8298_v20 }
0x2189   : > { %9016 = vmatprep.subr.bf16.mxu1 %v9345_v11 }
0x218b   : > { %8870 = vmatmul.mubr.msk.f32.vlgmr.msra.gmra.mrb[58].mxu0 %vm701_vm2, %v8290_v38 }
0x218c   : > { %8885 = vmatpush3.msk.msra.mxu0 %vm6113_vm12, %v8307_v61  ;;  %vm7209_vm12 = vcmask 648704  }
0x218d   : > { %9020 = vmatprep.subr.bf16.mxu0 %v9345_v11 }
0x219a   : > { %v7462_v26 = vpop.trf.xlu1 }
0x219b   : > { %8874 = vmatprep.mubr.msk.f32.mxu1 %vm6106_vm13, %v7462_v26 }
0x219e   : > { %v7463_v27 = vpop.trf.xlu1 }
0x219f   : > { %8875 = vmatmul.mubr.msk.f32.vlgmr.msra.gmra.mrb[60].mxu1 %vm6106_vm13, %v7463_v27 }
0x21a0   : > { %8881 = vmatprep.mubr.msk.f32.mxu1 %vm9346_vm3, %v9905_v0 }
0x21a2   : > { %v7691_v53 = vpop.trf.xlu1 }
0x21a3   : > { %8886 = vmatprep.mubr.msk.f32.mxu0 %vm6106_vm13, %v7691_v53  ;;  %v7942_v53 = vld [vmem:[%s9661_s6 + $0x8] sm:$0xff] (%p9401_p5) }
0x21a4   : > { %7943 = vst [vmem:[%s7906_s22 + $0x10] sm:$0xff] (%p9401_p5), %v7942_v53 }
0x21a6   : > { %v7692_v2 = vpop.trf.xlu1 }
0x21a7   : > { %8887 = vmatmul.mubr.msk.f32.vlgmr.msra.gmra.mrb[60].mxu0 %vm6106_vm13, %v7692_v2  ;;  %vm7667_vm13 = vcmask 911104   ;;  %v7946_v2 = vld [vmem:[%s9661_s6 + $0x18] sm:$0xff] (%p9401_p5) }
0x21a8   : > { %8893 = vmatprep.mubr.msk.f32.mxu0 %vm9346_vm3, %v9905_v0  ;;  %vm7438_vm3 = vcmask 779904   ;;  %7947 = vst [vmem:[%s7906_s22 + $0x30] sm:$0xff] (%p9401_p5), %v7946_v2 }
0x225a   : > { %v7201_v4 = vpop.f32.mrb[58].mxu1 }
0x225b   : > { %7206 = vrot.lane.b32.xlu0 %v7201_v4, %s9352_s14  ;;  %v8859_v16 = vpop.f32.mrb[59].mxu1 }
0x225e   : > { %v7430_v0 = vpop.f32.mrb[58].mxu0 }
0x225f   : > { %7435 = vrot.lane.b32.xlu1 %v7430_v0, %s9353_s15  ;;  %v8871_v32 = vpop.f32.mrb[59].mxu0 }
0x2272   : > { %v8876_v18 = vpop.f32.mrb[60].mxu1 }
0x2273   : > { %v7559_v28 = vadd.f32 %v10174_v5, %v8876_v18  ;;  %v7553_v30 = vpop.f32.mrb[61].mxu1 }
0x2274   : > { %v7554_v8 = vadd.f32 %v10178_v7, %v7553_v30 }
0x2275   : > { %v7565_v54 = vsel %vm701_vm2, %v7559_v28, -inf }
0x2276   : > { %v7562_v11 = vsel %vm701_vm2, %v7554_v8, -inf }
0x227a   : > { %7566 = vmax.xlane.f32.xlu0 %v7565_v54  ;;  %v8888_v34 = vpop.f32.mrb[60].mxu0 }
0x227b   : > { %v7782_v60 = vpop.f32.mrb[61].mxu0  ;;  %v7788_v6 = vadd.f32 %v10174_v5, %v8888_v34 }
0x227c   : > { %v7783_v63 = vadd.f32 %v10178_v7, %v7782_v60 }
0x227d   : > { %v7794_v12 = vsel %vm701_vm2, %v7788_v6, -inf }
0x227e   : > { %7563 = vmax.xlane.f32.xlu0 %v7562_v11  ;;  %v7791_v33 = vsel %vm701_vm2, %v7783_v63, -inf }
0x2283   : > { %7792 = vmax.xlane.f32.xlu1 %v7791_v33 }
0x22cd   : > { %v7207_v13 = vpop.permute.xlu0 %7206 }
0x22ce   : > { %7210 = vst.msk [vmem:[%s9661_s6 + $0x15] sm:$0x3] %vm7209_vm12, %v7207_v13 }
0x22d1   : > { %v7436_v7 = vpop.permute.xlu1 %7435 }
0x22d2   : > { %7439 = vst.msk [vmem:[%s9661_s6 + $0x15] sm:$0x3] %vm7438_vm3, %v7436_v7 }
0x2307   : > { %v7567_v43 = vpop.xlane.xlu0 %7566 }
0x2308   : > { %v7569_v29 = vsub.f32 %v7559_v28, %v7567_v43 }
0x230a   : > { %v7572_v39 = vmul.f32 1.442695, %v7569_v29 }
0x230b   : > { %v7564_v51 = vpop.xlane.xlu0 %7563 }
0x230c   : > { %9300 = vpow2.f32 %v7572_v39  ;;  %v7568_v31 = vsub.f32 %v7554_v8, %v7564_v51 }
0x230e   : > { %v7570_v35 = vmul.f32 1.442695, %v7568_v31 }
0x2310   : > { %9302 = vpow2.f32 %v7570_v35  ;;  %v7793_v44 = vpop.xlane.xlu1 %7792 }
0x2311   : > { %v7797_v47 = vsub.f32 %v7783_v63, %v7793_v44 }
0x2313   : > { %v7799_v46 = vmul.f32 1.442695, %v7797_v47 }
0x2315   : > { %9304 = vpow2.f32 %v7799_v46 }
0x2316   : > { %v9301_v36 = vpop.eup %9300 }
0x2317   : > { %v7577_v45 = vsel %vm701_vm2, %v9301_v36, 0.0 }
0x2318   : > { %7578 = vadd.xlane.f32.xlu0 %v7577_v45 }
0x231a   : > { %v9303_v37 = vpop.eup %9302 }
0x231b   : > { %v7574_v41 = vsel %vm701_vm2, %v9303_v37, 0.0 }
0x231c   : > { %7575 = vadd.xlane.f32.xlu0 %v7574_v41 }
0x231f   : > { %v9305_v48 = vpop.eup %9304 }
0x2320   : > { %v7803_v49 = vsel %vm701_vm2, %v9305_v48, 0.0 }
0x2321   : > { %7804 = vadd.xlane.f32.xlu1 %v7803_v49 }
0x23a5   : > { %v7579_v50 = vpop.xlane.xlu0 %7578 }
0x23a6   : > { %9306 = vrcp.f32 %v7579_v50 }
0x23a9   : > { %v7576_v52 = vpop.xlane.xlu0 %7575 }
0x23aa   : > { %9308 = vrcp.f32 %v7576_v52 }
0x23ae   : > { %v7805_v40 = vpop.xlane.xlu1 %7804 }
0x23b0   : > { %v9307_v55 = vpop.eup %9306 }
0x23b1   : > { %v7583_v57 = vmul.f32 %v9307_v55, %v9301_v36 }
0x23b4   : > { %v9309_v56 = vpop.eup %9308 }
0x23b5   : > { %v7581_v58 = vmul.f32 %v9309_v56, %v9303_v37 }
0x23b7   : > { %v9017_v59 = vpack.c.bf16 %v7583_v57, %v7581_v58 }
0x23b9   : > { %9019 = vmatpush3.bf16.xpose.msk.msra.mxu1 %vm9673_vm4, %v9017_v59 }
0x23c0   : > { %8882 = vmatmul.mubr.msk.f32.vlgmr.msra.gmra.mrb[62].mxu1 %vm701_vm2, %v8299_v62 }
0x2493   : > { %v7659_v1 = vpop.f32.mrb[62].mxu1 }
0x2494   : > { %7664 = vrot.lane.b32.xlu0 %v7659_v1, %s9351_s11  ;;  %v8883_v3 = vpop.f32.mrb[63].mxu1 }
0x24b3   : > { %7795 = vmax.xlane.f32.xlu0 %v7794_v12 }
0x2506   : > { %v7665_v9 = vpop.permute.xlu0 %7664 }
0x2507   : > { %7668 = vst.msk [vmem:[%s9661_s6 + $0x15] sm:$0x3] %vm7667_vm13, %v7665_v9 }
0x2540   : > { %v7796_v10 = vpop.xlane.xlu0 %7795 }
0x2541   : > { %v7798_v14 = vsub.f32 %v7788_v6, %v7796_v10 }
0x2543   : > { %v7801_v15 = vmul.f32 1.442695, %v7798_v14 }
0x2545   : > { %9310 = vpow2.f32 %v7801_v15 }
0x2546   : > { %9312 = vrcp.f32 %v7805_v40 }
0x254f   : > { %v9311_v17 = vpop.eup %9310 }
0x2550   : > { %v7806_v19 = vsel %vm701_vm2, %v9311_v17, 0.0  ;;  %v9313_v5 = vpop.eup %9312 }
0x2551   : > { %7807 = vadd.xlane.f32.xlu1 %v7806_v19  ;;  %v7810_v42 = vmul.f32 %v9313_v5, %v9305_v48 }
0x25de   : > { %v7808_v20 = vpop.xlane.xlu1 %7807 }
0x25df   : > { %9314 = vrcp.f32 %v7808_v20 }
0x25e9   : > { %v9315_v21 = vpop.eup %9314 }
0x25ea   : > { %v7812_v23 = vmul.f32 %v9315_v21, %v9311_v17 }
0x25ec   : > { %v9021_v24 = vpack.c.bf16 %v7812_v23, %v7810_v42 }
0x25ee   : > { %9023 = vmatpush3.bf16.xpose.msk.msra.mxu0 %vm9673_vm4, %v9021_v24 }
0x25f5   : > { %8894 = vmatmul.mubr.msk.f32.vlgmr.msra.gmra.mrb[62].mxu0 %vm701_vm2, %v8308_v25 }
0x26c8   : > { %v7888_v26 = vpop.f32.mrb[62].mxu0 }
0x26c9   : > { %7893 = vrot.lane.b32.xlu1 %v7888_v26, %s9354_s18  ;;  %v8895_v27 = vpop.f32.mrb[63].mxu0 }
0x2736   : > { %7904 = sbr.rel (!%p9401_p5) target bundleno = 10053 (0x2745), region = 70 }
0x273b   : > { %v7894_v38 = vpop.permute.xlu1 %7893 }
0x273c   : > { %7897 = vst.msk [vmem:[%s9661_s6 + $0x15] sm:$0x3] %vm7896_vm1, %v7894_v38 }
0x2743   : > { %v7944_v61 = vld [vmem:[%s9661_s6 + $0x10] sm:$0xff] }
0x2744   : > { %7945 = vst [vmem:[%s7906_s22 + $0x20] sm:$0xff] %v7944_v61 }
0x2745 PF: > { %p9_p11 = scmp.ge.s32.totalorder %s9389_s13, 4   ;;  %s10428_s9 = smov %s9339_s10 }
0x2746   : > { %s10429_s10 = smov %s9399_s16  ;;  %s10430_s11 = smov %s9389_s13 }
0x2747   :  { %11 = sbr.rel (!%p9_p11) target bundleno = 2 (0x2), region = 237 }

</bundles_post_ra>
